<compile_context>
chip_gen: v6e
topology: v6e:2x2x1
jax: 0.10.0
libtpu: 0.0.40
codegen_flags: <defaults>
</compile_context>

<pallas_src>
import functools

import jax
import jax.numpy as jnp
from jax.experimental import pallas as pl
from jax.experimental.pallas import tpu as pltpu

NEG_SLOPE = 0.01       # F.leaky_relu default
LANE_TILE = 512        # lane tile for the matmul N axis (multiple of 128)


def _round_up(v, m):
    return ((v + m - 1) // m) * m


def _apply_act(x, act):
    if act == "leaky_relu":
        return jnp.where(x >= 0, x, NEG_SLOPE * x)
    if act == "relu":
        return jnp.maximum(x, 0.0)
    if act == "tanh":
        return jnp.tanh(x)
    return x


# ----------------------------------------------------------------------------
# Pallas kernel: (C_out, Kd) @ (Kd, TILE) + bias, fused activation.
# Grid tiles the lane (N = B*L_out, padded) axis; weights/bias stay resident.
# ----------------------------------------------------------------------------
def _matmul_bias_act_kernel(w_ref, x_ref, b_ref, o_ref, *, activation):
    acc = jnp.dot(w_ref[...], x_ref[...], preferred_element_type=jnp.float32)
    acc = acc + b_ref[...]                      # (C_out, 1) broadcast over lanes
    o_ref[...] = _apply_act(acc, activation)


def _matmul_bias_act(lhs, rhs, bias, *, activation, tile):
    C_out, Kd = lhs.shape
    Kd2, N_pad = rhs.shape
    assert Kd == Kd2 and N_pad % tile == 0
    grid = (N_pad // tile,)
    return pl.pallas_call(
        functools.partial(_matmul_bias_act_kernel, activation=activation),
        out_shape=jax.ShapeDtypeStruct((C_out, N_pad), jnp.float32),
        grid=grid,
        in_specs=[
            pl.BlockSpec((C_out, Kd), lambda i: (0, 0)),   # weight (resident)
            pl.BlockSpec((Kd, tile), lambda i: (0, i)),    # im2col lane tile
            pl.BlockSpec((C_out, 1), lambda i: (0, 0)),    # bias
        ],
        out_specs=pl.BlockSpec((C_out, tile), lambda i: (0, i)),
        compiler_params=pltpu.CompilerParams(
            dimension_semantics=("parallel",),
            vmem_limit_bytes=32 * 1024 * 1024,
        ),
    )(lhs, rhs, bias)


# ----------------------------------------------------------------------------
# Conv1d with PyTorch semantics:
#   Conv1d( zero_pad( upsample_nearest(x, U), padding ), stride ) + activation
# Executed as a single MXU matmul per layer inside the Pallas kernel above.
# ----------------------------------------------------------------------------
def conv1d_pallas(x, w, b, *, stride=1, padding=0, upsample=1, activation=None):
    B, C_in, L_in = x.shape
    C_out, C_in_w, K = w.shape
    assert C_in_w == C_in
    Lu = upsample * L_in
    L_out = (Lu + 2 * padding - K) // stride + 1

    # im2col with the nearest-upsample fused into the gather index:
    #   padded-upsampled position t = l*stride + k ; value = x[(t-pad)//U]
    t = stride * jnp.arange(L_out)[None, :] + jnp.arange(K)[:, None]   # (K, L_out)
    src = t - padding
    valid = (src >= 0) & (src < Lu)
    j = jnp.clip(src // upsample, 0, L_in - 1)
    patches = jnp.take(x, j, axis=2)                                   # (B, C_in, K, L_out)
    patches = jnp.where(valid[None, None], patches, 0.0)
    rhs = patches.transpose(1, 2, 0, 3).reshape(C_in * K, B * L_out)   # contraction = C_in*K

    # Lane padding / tiling so stores are unmasked and lane-dense.
    N = B * L_out
    tile = LANE_TILE if N >= LANE_TILE else _round_up(N, 128)
    N_pad = _round_up(N, tile)
    rhs = jnp.pad(rhs, ((0, 0), (0, N_pad - N))).astype(jnp.bfloat16)

    lhs = w.reshape(C_out, C_in * K).astype(jnp.bfloat16)
    bias = b.reshape(C_out, 1).astype(jnp.float32)

    out = _matmul_bias_act(lhs, rhs, bias, activation=activation, tile=tile)
    return out[:, :N].reshape(C_out, B, L_out).transpose(1, 0, 2)


# ----------------------------------------------------------------------------
# Layer wrappers matching the PyTorch modules (upsample=True path).
# ----------------------------------------------------------------------------
def transpose1d_layer(x, w, b, *, upsample, activation):
    # nn.Upsample(scale_factor, 'nearest') + ConstantPad1d(K//2, 0) + Conv1d(stride=1)
    K = w.shape[2]
    return conv1d_pallas(x, w, b, stride=1, padding=K // 2,
                         upsample=upsample, activation=activation)


def transpose1d_layer_multi(x, skip, w, b, *, upsample, activation):
    x = jnp.concatenate((x, skip), axis=1)
    return transpose1d_layer(x, w, b, upsample=upsample, activation=activation)


def init_params(key, num_classes, model_size, num_channels, cond_len):
    ms = model_size
    K = 25
    layer_defs = {
        "conv_1": (num_channels, ms // 5),
        "conv_2": (ms // 5, ms // 2),
        "conv_3": (ms // 2, ms),
        "conv_4": (ms, ms * 3),
        "conv_5": (ms * 3, ms * 5),
        "conv_6": (ms * 5, ms * 5),
        "deconv_1": (5 * ms, 5 * ms),
        "deconv_2": (5 * ms * 2, 3 * ms),
        "deconv_3": (3 * ms * 2, ms),
        "deconv_5": (ms * 2, ms // 2),
        "deconv_6": ((ms // 2) * 2, ms // 5),
        "deconv_7": (ms // 5, num_channels),
    }
    params = {}
    keys = jax.random.split(key, len(layer_defs) + 1)
    for k_, (name, (cin, cout)) in zip(keys[:-1], layer_defs.items()):
        kw, kb = jax.random.split(k_)
        scale = 1.0 / (float(cin * K) ** 0.5)
        params[name] = (
            jax.random.normal(kw, (cout, cin, K), jnp.float32) * scale,
            jax.random.uniform(kb, (cout,), jnp.float32, -scale, scale),
        )
    # self.conditional = torch.rand(num_classes, 8, cond_len)
    params["conditional"] = jax.random.uniform(
        keys[-1], (num_classes, num_channels, cond_len), jnp.float32)
    return params


def wavegan_generator_forward(params, x, label):
    # conditional = (cond * label[:, :, None, None]).sum(1); x += conditional
    # (tiny broadcast-FMA; left to XLA instead of a dedicated pallas_call)
    x = x + jnp.einsum("bc,cnl->bnl", label, params["conditional"])

    c1 = conv1d_pallas(x,  *params["conv_1"], stride=2, padding=12, activation="leaky_relu")
    c2 = conv1d_pallas(c1, *params["conv_2"], stride=5, padding=12, activation="leaky_relu")
    c3 = conv1d_pallas(c2, *params["conv_3"], stride=2, padding=12, activation="leaky_relu")
    c4 = conv1d_pallas(c3, *params["conv_4"], stride=5, padding=12, activation="leaky_relu")
    c5 = conv1d_pallas(c4, *params["conv_5"], stride=5, padding=12, activation="leaky_relu")
    h  = conv1d_pallas(c5, *params["conv_6"], stride=5, padding=12, activation="leaky_relu")

    h = transpose1d_layer(h, *params["deconv_1"], upsample=5, activation="relu")
    h = transpose1d_layer_multi(h, c5, *params["deconv_2"], upsample=5, activation="relu")
    h = transpose1d_layer_multi(h, c4, *params["deconv_3"], upsample=5, activation="relu")
    h = transpose1d_layer_multi(h, c3, *params["deconv_5"], upsample=2, activation="relu")
    h = transpose1d_layer_multi(h, c2, *params["deconv_6"], upsample=5, activation="relu")
    out = transpose1d_layer(h, *params["deconv_7"], upsample=2, activation="tanh")
    return out


if __name__ == "__main__":
    # Small configuration consistent with the module:
    #   model_size=10 (divisible by 2 and 5), num_channels=8, num_classes=4.
    #   Sequence length must be a multiple of 2500 for the U-Net skip lengths
    #   to align (the reference uses 5000); use the minimal 2500.
    num_classes = 4
    model_size = 10
    num_channels = 8
    cond_len = 2500
    batch = 2

    key = jax.random.PRNGKey(0)
    kp, kx, kl = jax.random.split(key, 3)
    params = init_params(kp, num_classes, model_size, num_channels, cond_len)
    x = 0.1 * jax.random.normal(kx, (batch, num_channels, cond_len), jnp.float32)
    label = jax.random.uniform(kl, (batch, num_classes), jnp.float32)

    fwd = jax.jit(functools.partial(wavegan_generator_forward, params))
    out = fwd(x, label)
    out = jax.block_until_ready(out)
    assert out.shape == (batch, num_channels, cond_len), out.shape
    assert bool(jnp.isfinite(out).all())
    print("KERNEL_OK")
</pallas_src>

<mosaic_0001>
module attributes {stable_mosaic.version = 11 : i64} {
  func.func @_matmul_bias_act_kernel(%arg0: i32, %arg1: memref<2x200xbf16, #tpu.memory_space<vmem>>, %arg2: memref<200x512xbf16, #tpu.memory_space<vmem>>, %arg3: memref<2x1xf32, #tpu.memory_space<vmem>>, %arg4: memref<2x512xf32, #tpu.memory_space<vmem>>) attributes {dimension_semantics = [#tpu.dimension_semantics<parallel>], iteration_bounds = array<i64: 5>, scalar_prefetch = 0 : i64, scratch_operands = 0 : i64, tpu.core_type = #tpu.core_type<tc>, window_params = [{pipeline_mode = #tpu.pipeline_mode<synchronous>, transform_indices = @transform_0, window_bounds = array<i64: 2, 200>}, {transform_indices = @transform_1, window_bounds = array<i64: 200, 512>}, {pipeline_mode = #tpu.pipeline_mode<synchronous>, transform_indices = @transform_2, window_bounds = array<i64: 2, 1>}, {transform_indices = @transform_3, window_bounds = array<i64: 2, 512>}]} {
    %c0 = arith.constant 0 : index
    %c0_0 = arith.constant 0 : index
    %0 = vector.load %arg1[%c0, %c0_0] : memref<2x200xbf16, #tpu.memory_space<vmem>>, vector<2x200xbf16>
    %c0_1 = arith.constant 0 : index
    %c0_2 = arith.constant 0 : index
    %1 = vector.load %arg2[%c0_1, %c0_2] : memref<200x512xbf16, #tpu.memory_space<vmem>>, vector<200x512xbf16>
    %cst = arith.constant dense<0.000000e+00> : vector<2x512xf32>
    %2 = tpu.matmul %0, %1, %cst {dimension_numbers = #tpu.dot_dimension_numbers<[1], [0], [0], [1], [0, 0, 1, 1], [], []>} : vector<2x200xbf16>, vector<200x512xbf16>, vector<2x512xf32> -> vector<2x512xf32>
    %c0_3 = arith.constant 0 : index
    %c0_4 = arith.constant 0 : index
    %3 = vector.load %arg3[%c0_3, %c0_4] : memref<2x1xf32, #tpu.memory_space<vmem>>, vector<2x1xf32>
    %4 = vector.broadcast %3 : vector<2x1xf32> to vector<2x512xf32>
    %5 = arith.addf %2, %4 : vector<2x512xf32>
    %cst_5 = arith.constant 0.000000e+00 : f32
    %6 = vector.broadcast %cst_5 : f32 to vector<2x512xf32>
    %7 = arith.cmpf oge, %5, %6 : vector<2x512xf32>
    %cst_6 = arith.constant 0.00999999977 : f32
    %8 = vector.broadcast %cst_6 : f32 to vector<2x512xf32>
    %9 = arith.mulf %8, %5 : vector<2x512xf32>
    %10 = arith.select %7, %5, %9 : vector<2x512xi1>, vector<2x512xf32>
    %c0_7 = arith.constant 0 : index
    %c0_8 = arith.constant 0 : index
    %11 = vector.load %arg4[%c0_7, %c0_8] : memref<2x512xf32, #tpu.memory_space<vmem>>, vector<2x512xf32>
    tpu.vector_store %arg4[%c0_7, %c0_8], %10 {strides = array<i32>} : memref<2x512xf32, #tpu.memory_space<vmem>>, vector<2x512xf32>,
    return
  }
  func.func @transform_0(%arg0: i32) -> (i32, i32) {
    %c0_i32 = arith.constant 0 : i32
    %c0_i32_0 = arith.constant 0 : i32
    %c0_i32_1 = arith.constant 0 : i32
    return %c0_i32, %c0_i32_0 : i32, i32
  }
  func.func @transform_1(%arg0: i32) -> (i32, i32) {
    %c0_i32 = arith.constant 0 : i32
    %c0_i32_0 = arith.constant 0 : i32
    return %c0_i32, %arg0 : i32, i32
  }
  func.func @transform_2(%arg0: i32) -> (i32, i32) {
    %c0_i32 = arith.constant 0 : i32
    %c0_i32_0 = arith.constant 0 : i32
    %c0_i32_1 = arith.constant 0 : i32
    return %c0_i32, %c0_i32_0 : i32, i32
  }
  func.func @transform_3(%arg0: i32) -> (i32, i32) {
    %c0_i32 = arith.constant 0 : i32
    %c0_i32_0 = arith.constant 0 : i32
    return %c0_i32, %arg0 : i32, i32
  }
}

module attributes {stable_mosaic.version = 11 : i64} {
  func.func @_matmul_bias_act_kernel(%arg0: i32, %arg1: memref<5x50xbf16, #tpu.memory_space<vmem>>, %arg2: memref<50x512xbf16, #tpu.memory_space<vmem>>, %arg3: memref<5x1xf32, #tpu.memory_space<vmem>>, %arg4: memref<5x512xf32, #tpu.memory_space<vmem>>) attributes {dimension_semantics = [#tpu.dimension_semantics<parallel>], iteration_bounds = array<i64: 1>, scalar_prefetch = 0 : i64, scratch_operands = 0 : i64, tpu.core_type = #tpu.core_type<tc>, window_params = [{pipeline_mode = #tpu.pipeline_mode<synchronous>, transform_indices = @transform_0, window_bounds = array<i64: 5, 50>}, {transform_indices = @transform_1, window_bounds = array<i64: 50, 512>}, {pipeline_mode = #tpu.pipeline_mode<synchronous>, transform_indices = @transform_2, window_bounds = array<i64: 5, 1>}, {transform_indices = @transform_3, window_bounds = array<i64: 5, 512>}]} {
    %c0 = arith.constant 0 : index
    %c0_0 = arith.constant 0 : index
    %0 = vector.load %arg1[%c0, %c0_0] : memref<5x50xbf16, #tpu.memory_space<vmem>>, vector<5x50xbf16>
    %c0_1 = arith.constant 0 : index
    %c0_2 = arith.constant 0 : index
    %1 = vector.load %arg2[%c0_1, %c0_2] : memref<50x512xbf16, #tpu.memory_space<vmem>>, vector<50x512xbf16>
    %cst = arith.constant dense<0.000000e+00> : vector<5x512xf32>
    %2 = tpu.matmul %0, %1, %cst {dimension_numbers = #tpu.dot_dimension_numbers<[1], [0], [0], [1], [0, 0, 1, 1], [], []>} : vector<5x50xbf16>, vector<50x512xbf16>, vector<5x512xf32> -> vector<5x512xf32>
    %c0_3 = arith.constant 0 : index
    %c0_4 = arith.constant 0 : index
    %3 = vector.load %arg3[%c0_3, %c0_4] : memref<5x1xf32, #tpu.memory_space<vmem>>, vector<5x1xf32>
    %4 = vector.broadcast %3 : vector<5x1xf32> to vector<5x512xf32>
    %5 = arith.addf %2, %4 : vector<5x512xf32>
    %cst_5 = arith.constant 0.000000e+00 : f32
    %6 = vector.broadcast %cst_5 : f32 to vector<5x512xf32>
    %7 = arith.cmpf oge, %5, %6 : vector<5x512xf32>
    %cst_6 = arith.constant 0.00999999977 : f32
    %8 = vector.broadcast %cst_6 : f32 to vector<5x512xf32>
    %9 = arith.mulf %8, %5 : vector<5x512xf32>
    %10 = arith.select %7, %5, %9 : vector<5x512xi1>, vector<5x512xf32>
    %c0_7 = arith.constant 0 : index
    %c0_8 = arith.constant 0 : index
    %11 = vector.load %arg4[%c0_7, %c0_8] : memref<5x512xf32, #tpu.memory_space<vmem>>, vector<5x512xf32>
    tpu.vector_store %arg4[%c0_7, %c0_8], %10 {strides = array<i32>} : memref<5x512xf32, #tpu.memory_space<vmem>>, vector<5x512xf32>,
    return
  }
  func.func @transform_0(%arg0: i32) -> (i32, i32) {
    %c0_i32 = arith.constant 0 : i32
    %c0_i32_0 = arith.constant 0 : i32
    %c0_i32_1 = arith.constant 0 : i32
    return %c0_i32, %c0_i32_0 : i32, i32
  }
  func.func @transform_1(%arg0: i32) -> (i32, i32) {
    %c0_i32 = arith.constant 0 : i32
    %c0_i32_0 = arith.constant 0 : i32
    return %c0_i32, %arg0 : i32, i32
  }
  func.func @transform_2(%arg0: i32) -> (i32, i32) {
    %c0_i32 = arith.constant 0 : i32
    %c0_i32_0 = arith.constant 0 : i32
    %c0_i32_1 = arith.constant 0 : i32
    return %c0_i32, %c0_i32_0 : i32, i32
  }
  func.func @transform_3(%arg0: i32) -> (i32, i32) {
    %c0_i32 = arith.constant 0 : i32
    %c0_i32_0 = arith.constant 0 : i32
    return %c0_i32, %arg0 : i32, i32
  }
}

module attributes {stable_mosaic.version = 11 : i64} {
  func.func @_matmul_bias_act_kernel(%arg0: i32, %arg1: memref<10x125xbf16, #tpu.memory_space<vmem>>, %arg2: memref<125x256xbf16, #tpu.memory_space<vmem>>, %arg3: memref<10x1xf32, #tpu.memory_space<vmem>>, %arg4: memref<10x256xf32, #tpu.memory_space<vmem>>) attributes {dimension_semantics = [#tpu.dimension_semantics<parallel>], iteration_bounds = array<i64: 1>, scalar_prefetch = 0 : i64, scratch_operands = 0 : i64, tpu.core_type = #tpu.core_type<tc>, window_params = [{pipeline_mode = #tpu.pipeline_mode<synchronous>, transform_indices = @transform_0, window_bounds = array<i64: 10, 125>}, {transform_indices = @transform_1, window_bounds = array<i64: 125, 256>}, {pipeline_mode = #tpu.pipeline_mode<synchronous>, transform_indices = @transform_2, window_bounds = array<i64: 10, 1>}, {transform_indices = @transform_3, window_bounds = array<i64: 10, 256>}]} {
    %c0 = arith.constant 0 : index
    %c0_0 = arith.constant 0 : index
    %0 = vector.load %arg1[%c0, %c0_0] : memref<10x125xbf16, #tpu.memory_space<vmem>>, vector<10x125xbf16>
    %c0_1 = arith.constant 0 : index
    %c0_2 = arith.constant 0 : index
    %1 = vector.load %arg2[%c0_1, %c0_2] : memref<125x256xbf16, #tpu.memory_space<vmem>>, vector<125x256xbf16>
    %cst = arith.constant dense<0.000000e+00> : vector<10x256xf32>
    %2 = tpu.matmul %0, %1, %cst {dimension_numbers = #tpu.dot_dimension_numbers<[1], [0], [0], [1], [0, 0, 1, 1], [], []>} : vector<10x125xbf16>, vector<125x256xbf16>, vector<10x256xf32> -> vector<10x256xf32>
    %c0_3 = arith.constant 0 : index
    %c0_4 = arith.constant 0 : index
    %3 = vector.load %arg3[%c0_3, %c0_4] : memref<10x1xf32, #tpu.memory_space<vmem>>, vector<10x1xf32>
    %4 = vector.broadcast %3 : vector<10x1xf32> to vector<10x256xf32>
    %5 = arith.addf %2, %4 : vector<10x256xf32>
    %cst_5 = arith.constant 0.000000e+00 : f32
    %6 = vector.broadcast %cst_5 : f32 to vector<10x256xf32>
    %7 = arith.cmpf oge, %5, %6 : vector<10x256xf32>
    %cst_6 = arith.constant 0.00999999977 : f32
    %8 = vector.broadcast %cst_6 : f32 to vector<10x256xf32>
    %9 = arith.mulf %8, %5 : vector<10x256xf32>
    %10 = arith.select %7, %5, %9 : vector<10x256xi1>, vector<10x256xf32>
    %c0_7 = arith.constant 0 : index
    %c0_8 = arith.constant 0 : index
    %11 = vector.load %arg4[%c0_7, %c0_8] : memref<10x256xf32, #tpu.memory_space<vmem>>, vector<10x256xf32>
    tpu.vector_store %arg4[%c0_7, %c0_8], %10 {strides = array<i32>} : memref<10x256xf32, #tpu.memory_space<vmem>>, vector<10x256xf32>,
    return
  }
  func.func @transform_0(%arg0: i32) -> (i32, i32) {
    %c0_i32 = arith.constant 0 : i32
    %c0_i32_0 = arith.constant 0 : i32
    %c0_i32_1 = arith.constant 0 : i32
    return %c0_i32, %c0_i32_0 : i32, i32
  }
  func.func @transform_1(%arg0: i32) -> (i32, i32) {
    %c0_i32 = arith.constant 0 : i32
    %c0_i32_0 = arith.constant 0 : i32
    return %c0_i32, %arg0 : i32, i32
  }
  func.func @transform_2(%arg0: i32) -> (i32, i32) {
    %c0_i32 = arith.constant 0 : i32
    %c0_i32_0 = arith.constant 0 : i32
    %c0_i32_1 = arith.constant 0 : i32
    return %c0_i32, %c0_i32_0 : i32, i32
  }
  func.func @transform_3(%arg0: i32) -> (i32, i32) {
    %c0_i32 = arith.constant 0 : i32
    %c0_i32_0 = arith.constant 0 : i32
    return %c0_i32, %arg0 : i32, i32
  }
}

module attributes {stable_mosaic.version = 11 : i64} {
  func.func @_matmul_bias_act_kernel(%arg0: i32, %arg1: memref<30x250xbf16, #tpu.memory_space<vmem>>, %arg2: memref<250x128xbf16, #tpu.memory_space<vmem>>, %arg3: memref<30x1xf32, #tpu.memory_space<vmem>>, %arg4: memref<30x128xf32, #tpu.memory_space<vmem>>) attributes {dimension_semantics = [#tpu.dimension_semantics<parallel>], iteration_bounds = array<i64: 1>, scalar_prefetch = 0 : i64, scratch_operands = 0 : i64, tpu.core_type = #tpu.core_type<tc>, window_params = [{pipeline_mode = #tpu.pipeline_mode<synchronous>, transform_indices = @transform_0, window_bounds = array<i64: 30, 250>}, {transform_indices = @transform_1, window_bounds = array<i64: 250, 128>}, {pipeline_mode = #tpu.pipeline_mode<synchronous>, transform_indices = @transform_2, window_bounds = array<i64: 30, 1>}, {transform_indices = @transform_3, window_bounds = array<i64: 30, 128>}]} {
    %c0 = arith.constant 0 : index
    %c0_0 = arith.constant 0 : index
    %0 = vector.load %arg1[%c0, %c0_0] : memref<30x250xbf16, #tpu.memory_space<vmem>>, vector<30x250xbf16>
    %c0_1 = arith.constant 0 : index
    %c0_2 = arith.constant 0 : index
    %1 = vector.load %arg2[%c0_1, %c0_2] : memref<250x128xbf16, #tpu.memory_space<vmem>>, vector<250x128xbf16>
    %cst = arith.constant dense<0.000000e+00> : vector<30x128xf32>
    %2 = tpu.matmul %0, %1, %cst {dimension_numbers = #tpu.dot_dimension_numbers<[1], [0], [0], [1], [0, 0, 1, 1], [], []>} : vector<30x250xbf16>, vector<250x128xbf16>, vector<30x128xf32> -> vector<30x128xf32>
    %c0_3 = arith.constant 0 : index
    %c0_4 = arith.constant 0 : index
    %3 = vector.load %arg3[%c0_3, %c0_4] : memref<30x1xf32, #tpu.memory_space<vmem>>, vector<30x1xf32>
    %4 = vector.broadcast %3 : vector<30x1xf32> to vector<30x128xf32>
    %5 = arith.addf %2, %4 : vector<30x128xf32>
    %cst_5 = arith.constant 0.000000e+00 : f32
    %6 = vector.broadcast %cst_5 : f32 to vector<30x128xf32>
    %7 = arith.cmpf oge, %5, %6 : vector<30x128xf32>
    %cst_6 = arith.constant 0.00999999977 : f32
    %8 = vector.broadcast %cst_6 : f32 to vector<30x128xf32>
    %9 = arith.mulf %8, %5 : vector<30x128xf32>
    %10 = arith.select %7, %5, %9 : vector<30x128xi1>, vector<30x128xf32>
    %c0_7 = arith.constant 0 : index
    %c0_8 = arith.constant 0 : index
    %11 = vector.load %arg4[%c0_7, %c0_8] : memref<30x128xf32, #tpu.memory_space<vmem>>, vector<30x128xf32>
    tpu.vector_store %arg4[%c0_7, %c0_8], %10 {strides = array<i32>} : memref<30x128xf32, #tpu.memory_space<vmem>>, vector<30x128xf32>,
    return
  }
  func.func @transform_0(%arg0: i32) -> (i32, i32) {
    %c0_i32 = arith.constant 0 : i32
    %c0_i32_0 = arith.constant 0 : i32
    %c0_i32_1 = arith.constant 0 : i32
    return %c0_i32, %c0_i32_0 : i32, i32
  }
  func.func @transform_1(%arg0: i32) -> (i32, i32) {
    %c0_i32 = arith.constant 0 : i32
    %c0_i32_0 = arith.constant 0 : i32
    return %c0_i32, %arg0 : i32, i32
  }
  func.func @transform_2(%arg0: i32) -> (i32, i32) {
    %c0_i32 = arith.constant 0 : i32
    %c0_i32_0 = arith.constant 0 : i32
    %c0_i32_1 = arith.constant 0 : i32
    return %c0_i32, %c0_i32_0 : i32, i32
  }
  func.func @transform_3(%arg0: i32) -> (i32, i32) {
    %c0_i32 = arith.constant 0 : i32
    %c0_i32_0 = arith.constant 0 : i32
    return %c0_i32, %arg0 : i32, i32
  }
}

module attributes {stable_mosaic.version = 11 : i64} {
  func.func @_matmul_bias_act_kernel(%arg0: i32, %arg1: memref<50x750xbf16, #tpu.memory_space<vmem>>, %arg2: memref<750x128xbf16, #tpu.memory_space<vmem>>, %arg3: memref<50x1xf32, #tpu.memory_space<vmem>>, %arg4: memref<50x128xf32, #tpu.memory_space<vmem>>) attributes {dimension_semantics = [#tpu.dimension_semantics<parallel>], iteration_bounds = array<i64: 1>, scalar_prefetch = 0 : i64, scratch_operands = 0 : i64, tpu.core_type = #tpu.core_type<tc>, window_params = [{pipeline_mode = #tpu.pipeline_mode<synchronous>, transform_indices = @transform_0, window_bounds = array<i64: 50, 750>}, {transform_indices = @transform_1, window_bounds = array<i64: 750, 128>}, {pipeline_mode = #tpu.pipeline_mode<synchronous>, transform_indices = @transform_2, window_bounds = array<i64: 50, 1>}, {transform_indices = @transform_3, window_bounds = array<i64: 50, 128>}]} {
    %c0 = arith.constant 0 : index
    %c0_0 = arith.constant 0 : index
    %0 = vector.load %arg1[%c0, %c0_0] : memref<50x750xbf16, #tpu.memory_space<vmem>>, vector<50x750xbf16>
    %c0_1 = arith.constant 0 : index
    %c0_2 = arith.constant 0 : index
    %1 = vector.load %arg2[%c0_1, %c0_2] : memref<750x128xbf16, #tpu.memory_space<vmem>>, vector<750x128xbf16>
    %cst = arith.constant dense<0.000000e+00> : vector<50x128xf32>
    %2 = tpu.matmul %0, %1, %cst {dimension_numbers = #tpu.dot_dimension_numbers<[1], [0], [0], [1], [0, 0, 1, 1], [], []>} : vector<50x750xbf16>, vector<750x128xbf16>, vector<50x128xf32> -> vector<50x128xf32>
    %c0_3 = arith.constant 0 : index
    %c0_4 = arith.constant 0 : index
    %3 = vector.load %arg3[%c0_3, %c0_4] : memref<50x1xf32, #tpu.memory_space<vmem>>, vector<50x1xf32>
    %4 = vector.broadcast %3 : vector<50x1xf32> to vector<50x128xf32>
    %5 = arith.addf %2, %4 : vector<50x128xf32>
    %cst_5 = arith.constant 0.000000e+00 : f32
    %6 = vector.broadcast %cst_5 : f32 to vector<50x128xf32>
    %7 = arith.cmpf oge, %5, %6 : vector<50x128xf32>
    %cst_6 = arith.constant 0.00999999977 : f32
    %8 = vector.broadcast %cst_6 : f32 to vector<50x128xf32>
    %9 = arith.mulf %8, %5 : vector<50x128xf32>
    %10 = arith.select %7, %5, %9 : vector<50x128xi1>, vector<50x128xf32>
    %c0_7 = arith.constant 0 : index
    %c0_8 = arith.constant 0 : index
    %11 = vector.load %arg4[%c0_7, %c0_8] : memref<50x128xf32, #tpu.memory_space<vmem>>, vector<50x128xf32>
    tpu.vector_store %arg4[%c0_7, %c0_8], %10 {strides = array<i32>} : memref<50x128xf32, #tpu.memory_space<vmem>>, vector<50x128xf32>,
    return
  }
  func.func @transform_0(%arg0: i32) -> (i32, i32) {
    %c0_i32 = arith.constant 0 : i32
    %c0_i32_0 = arith.constant 0 : i32
    %c0_i32_1 = arith.constant 0 : i32
    return %c0_i32, %c0_i32_0 : i32, i32
  }
  func.func @transform_1(%arg0: i32) -> (i32, i32) {
    %c0_i32 = arith.constant 0 : i32
    %c0_i32_0 = arith.constant 0 : i32
    return %c0_i32, %arg0 : i32, i32
  }
  func.func @transform_2(%arg0: i32) -> (i32, i32) {
    %c0_i32 = arith.constant 0 : i32
    %c0_i32_0 = arith.constant 0 : i32
    %c0_i32_1 = arith.constant 0 : i32
    return %c0_i32, %c0_i32_0 : i32, i32
  }
  func.func @transform_3(%arg0: i32) -> (i32, i32) {
    %c0_i32 = arith.constant 0 : i32
    %c0_i32_0 = arith.constant 0 : i32
    return %c0_i32, %arg0 : i32, i32
  }
}

module attributes {stable_mosaic.version = 11 : i64} {
  func.func @_matmul_bias_act_kernel(%arg0: i32, %arg1: memref<50x1250xbf16, #tpu.memory_space<vmem>>, %arg2: memref<1250x128xbf16, #tpu.memory_space<vmem>>, %arg3: memref<50x1xf32, #tpu.memory_space<vmem>>, %arg4: memref<50x128xf32, #tpu.memory_space<vmem>>) attributes {dimension_semantics = [#tpu.dimension_semantics<parallel>], iteration_bounds = array<i64: 1>, scalar_prefetch = 0 : i64, scratch_operands = 0 : i64, tpu.core_type = #tpu.core_type<tc>, window_params = [{pipeline_mode = #tpu.pipeline_mode<synchronous>, transform_indices = @transform_0, window_bounds = array<i64: 50, 1250>}, {transform_indices = @transform_1, window_bounds = array<i64: 1250, 128>}, {pipeline_mode = #tpu.pipeline_mode<synchronous>, transform_indices = @transform_2, window_bounds = array<i64: 50, 1>}, {transform_indices = @transform_3, window_bounds = array<i64: 50, 128>}]} {
    %c0 = arith.constant 0 : index
    %c0_0 = arith.constant 0 : index
    %0 = vector.load %arg1[%c0, %c0_0] : memref<50x1250xbf16, #tpu.memory_space<vmem>>, vector<50x1250xbf16>
    %c0_1 = arith.constant 0 : index
    %c0_2 = arith.constant 0 : index
    %1 = vector.load %arg2[%c0_1, %c0_2] : memref<1250x128xbf16, #tpu.memory_space<vmem>>, vector<1250x128xbf16>
    %cst = arith.constant dense<0.000000e+00> : vector<50x128xf32>
    %2 = tpu.matmul %0, %1, %cst {dimension_numbers = #tpu.dot_dimension_numbers<[1], [0], [0], [1], [0, 0, 1, 1], [], []>} : vector<50x1250xbf16>, vector<1250x128xbf16>, vector<50x128xf32> -> vector<50x128xf32>
    %c0_3 = arith.constant 0 : index
    %c0_4 = arith.constant 0 : index
    %3 = vector.load %arg3[%c0_3, %c0_4] : memref<50x1xf32, #tpu.memory_space<vmem>>, vector<50x1xf32>
    %4 = vector.broadcast %3 : vector<50x1xf32> to vector<50x128xf32>
    %5 = arith.addf %2, %4 : vector<50x128xf32>
    %cst_5 = arith.constant 0.000000e+00 : f32
    %6 = vector.broadcast %cst_5 : f32 to vector<50x128xf32>
    %7 = arith.cmpf oge, %5, %6 : vector<50x128xf32>
    %cst_6 = arith.constant 0.00999999977 : f32
    %8 = vector.broadcast %cst_6 : f32 to vector<50x128xf32>
    %9 = arith.mulf %8, %5 : vector<50x128xf32>
    %10 = arith.select %7, %5, %9 : vector<50x128xi1>, vector<50x128xf32>
    %c0_7 = arith.constant 0 : index
    %c0_8 = arith.constant 0 : index
    %11 = vector.load %arg4[%c0_7, %c0_8] : memref<50x128xf32, #tpu.memory_space<vmem>>, vector<50x128xf32>
    tpu.vector_store %arg4[%c0_7, %c0_8], %10 {strides = array<i32>} : memref<50x128xf32, #tpu.memory_space<vmem>>, vector<50x128xf32>,
    return
  }
  func.func @transform_0(%arg0: i32) -> (i32, i32) {
    %c0_i32 = arith.constant 0 : i32
    %c0_i32_0 = arith.constant 0 : i32
    %c0_i32_1 = arith.constant 0 : i32
    return %c0_i32, %c0_i32_0 : i32, i32
  }
  func.func @transform_1(%arg0: i32) -> (i32, i32) {
    %c0_i32 = arith.constant 0 : i32
    %c0_i32_0 = arith.constant 0 : i32
    return %c0_i32, %arg0 : i32, i32
  }
  func.func @transform_2(%arg0: i32) -> (i32, i32) {
    %c0_i32 = arith.constant 0 : i32
    %c0_i32_0 = arith.constant 0 : i32
    %c0_i32_1 = arith.constant 0 : i32
    return %c0_i32, %c0_i32_0 : i32, i32
  }
  func.func @transform_3(%arg0: i32) -> (i32, i32) {
    %c0_i32 = arith.constant 0 : i32
    %c0_i32_0 = arith.constant 0 : i32
    return %c0_i32, %arg0 : i32, i32
  }
}

module attributes {stable_mosaic.version = 11 : i64} {
  func.func @_matmul_bias_act_kernel(%arg0: i32, %arg1: memref<50x1250xbf16, #tpu.memory_space<vmem>>, %arg2: memref<1250x128xbf16, #tpu.memory_space<vmem>>, %arg3: memref<50x1xf32, #tpu.memory_space<vmem>>, %arg4: memref<50x128xf32, #tpu.memory_space<vmem>>) attributes {dimension_semantics = [#tpu.dimension_semantics<parallel>], iteration_bounds = array<i64: 1>, scalar_prefetch = 0 : i64, scratch_operands = 0 : i64, tpu.core_type = #tpu.core_type<tc>, window_params = [{pipeline_mode = #tpu.pipeline_mode<synchronous>, transform_indices = @transform_0, window_bounds = array<i64: 50, 1250>}, {transform_indices = @transform_1, window_bounds = array<i64: 1250, 128>}, {pipeline_mode = #tpu.pipeline_mode<synchronous>, transform_indices = @transform_2, window_bounds = array<i64: 50, 1>}, {transform_indices = @transform_3, window_bounds = array<i64: 50, 128>}]} {
    %c0 = arith.constant 0 : index
    %c0_0 = arith.constant 0 : index
    %0 = vector.load %arg1[%c0, %c0_0] : memref<50x1250xbf16, #tpu.memory_space<vmem>>, vector<50x1250xbf16>
    %c0_1 = arith.constant 0 : index
    %c0_2 = arith.constant 0 : index
    %1 = vector.load %arg2[%c0_1, %c0_2] : memref<1250x128xbf16, #tpu.memory_space<vmem>>, vector<1250x128xbf16>
    %cst = arith.constant dense<0.000000e+00> : vector<50x128xf32>
    %2 = tpu.matmul %0, %1, %cst {dimension_numbers = #tpu.dot_dimension_numbers<[1], [0], [0], [1], [0, 0, 1, 1], [], []>} : vector<50x1250xbf16>, vector<1250x128xbf16>, vector<50x128xf32> -> vector<50x128xf32>
    %c0_3 = arith.constant 0 : index
    %c0_4 = arith.constant 0 : index
    %3 = vector.load %arg3[%c0_3, %c0_4] : memref<50x1xf32, #tpu.memory_space<vmem>>, vector<50x1xf32>
    %4 = vector.broadcast %3 : vector<50x1xf32> to vector<50x128xf32>
    %5 = arith.addf %2, %4 : vector<50x128xf32>
    %cst_5 = arith.constant 0.000000e+00 : f32
    %6 = vector.broadcast %cst_5 : f32 to vector<50x128xf32>
    %7 = arith.maximumf %5, %6 : vector<50x128xf32>
    %c0_6 = arith.constant 0 : index
    %c0_7 = arith.constant 0 : index
    %8 = vector.load %arg4[%c0_6, %c0_7] : memref<50x128xf32, #tpu.memory_space<vmem>>, vector<50x128xf32>
    tpu.vector_store %arg4[%c0_6, %c0_7], %7 {strides = array<i32>} : memref<50x128xf32, #tpu.memory_space<vmem>>, vector<50x128xf32>,
    return
  }
  func.func @transform_0(%arg0: i32) -> (i32, i32) {
    %c0_i32 = arith.constant 0 : i32
    %c0_i32_0 = arith.constant 0 : i32
    %c0_i32_1 = arith.constant 0 : i32
    return %c0_i32, %c0_i32_0 : i32, i32
  }
  func.func @transform_1(%arg0: i32) -> (i32, i32) {
    %c0_i32 = arith.constant 0 : i32
    %c0_i32_0 = arith.constant 0 : i32
    return %c0_i32, %arg0 : i32, i32
  }
  func.func @transform_2(%arg0: i32) -> (i32, i32) {
    %c0_i32 = arith.constant 0 : i32
    %c0_i32_0 = arith.constant 0 : i32
    %c0_i32_1 = arith.constant 0 : i32
    return %c0_i32, %c0_i32_0 : i32, i32
  }
  func.func @transform_3(%arg0: i32) -> (i32, i32) {
    %c0_i32 = arith.constant 0 : i32
    %c0_i32_0 = arith.constant 0 : i32
    return %c0_i32, %arg0 : i32, i32
  }
}

module attributes {stable_mosaic.version = 11 : i64} {
  func.func @_matmul_bias_act_kernel(%arg0: i32, %arg1: memref<30x2500xbf16, #tpu.memory_space<vmem>>, %arg2: memref<2500x128xbf16, #tpu.memory_space<vmem>>, %arg3: memref<30x1xf32, #tpu.memory_space<vmem>>, %arg4: memref<30x128xf32, #tpu.memory_space<vmem>>) attributes {dimension_semantics = [#tpu.dimension_semantics<parallel>], iteration_bounds = array<i64: 1>, scalar_prefetch = 0 : i64, scratch_operands = 0 : i64, tpu.core_type = #tpu.core_type<tc>, window_params = [{pipeline_mode = #tpu.pipeline_mode<synchronous>, transform_indices = @transform_0, window_bounds = array<i64: 30, 2500>}, {transform_indices = @transform_1, window_bounds = array<i64: 2500, 128>}, {pipeline_mode = #tpu.pipeline_mode<synchronous>, transform_indices = @transform_2, window_bounds = array<i64: 30, 1>}, {transform_indices = @transform_3, window_bounds = array<i64: 30, 128>}]} {
    %c0 = arith.constant 0 : index
    %c0_0 = arith.constant 0 : index
    %0 = vector.load %arg1[%c0, %c0_0] : memref<30x2500xbf16, #tpu.memory_space<vmem>>, vector<30x2500xbf16>
    %c0_1 = arith.constant 0 : index
    %c0_2 = arith.constant 0 : index
    %1 = vector.load %arg2[%c0_1, %c0_2] : memref<2500x128xbf16, #tpu.memory_space<vmem>>, vector<2500x128xbf16>
    %cst = arith.constant dense<0.000000e+00> : vector<30x128xf32>
    %2 = tpu.matmul %0, %1, %cst {dimension_numbers = #tpu.dot_dimension_numbers<[1], [0], [0], [1], [0, 0, 1, 1], [], []>} : vector<30x2500xbf16>, vector<2500x128xbf16>, vector<30x128xf32> -> vector<30x128xf32>
    %c0_3 = arith.constant 0 : index
    %c0_4 = arith.constant 0 : index
    %3 = vector.load %arg3[%c0_3, %c0_4] : memref<30x1xf32, #tpu.memory_space<vmem>>, vector<30x1xf32>
    %4 = vector.broadcast %3 : vector<30x1xf32> to vector<30x128xf32>
    %5 = arith.addf %2, %4 : vector<30x128xf32>
    %cst_5 = arith.constant 0.000000e+00 : f32
    %6 = vector.broadcast %cst_5 : f32 to vector<30x128xf32>
    %7 = arith.maximumf %5, %6 : vector<30x128xf32>
    %c0_6 = arith.constant 0 : index
    %c0_7 = arith.constant 0 : index
    %8 = vector.load %arg4[%c0_6, %c0_7] : memref<30x128xf32, #tpu.memory_space<vmem>>, vector<30x128xf32>
    tpu.vector_store %arg4[%c0_6, %c0_7], %7 {strides = array<i32>} : memref<30x128xf32, #tpu.memory_space<vmem>>, vector<30x128xf32>,
    return
  }
  func.func @transform_0(%arg0: i32) -> (i32, i32) {
    %c0_i32 = arith.constant 0 : i32
    %c0_i32_0 = arith.constant 0 : i32
    %c0_i32_1 = arith.constant 0 : i32
    return %c0_i32, %c0_i32_0 : i32, i32
  }
  func.func @transform_1(%arg0: i32) -> (i32, i32) {
    %c0_i32 = arith.constant 0 : i32
    %c0_i32_0 = arith.constant 0 : i32
    return %c0_i32, %arg0 : i32, i32
  }
  func.func @transform_2(%arg0: i32) -> (i32, i32) {
    %c0_i32 = arith.constant 0 : i32
    %c0_i32_0 = arith.constant 0 : i32
    %c0_i32_1 = arith.constant 0 : i32
    return %c0_i32, %c0_i32_0 : i32, i32
  }
  func.func @transform_3(%arg0: i32) -> (i32, i32) {
    %c0_i32 = arith.constant 0 : i32
    %c0_i32_0 = arith.constant 0 : i32
    return %c0_i32, %arg0 : i32, i32
  }
}

module attributes {stable_mosaic.version = 11 : i64} {
  func.func @_matmul_bias_act_kernel(%arg0: i32, %arg1: memref<10x1500xbf16, #tpu.memory_space<vmem>>, %arg2: memref<1500x256xbf16, #tpu.memory_space<vmem>>, %arg3: memref<10x1xf32, #tpu.memory_space<vmem>>, %arg4: memref<10x256xf32, #tpu.memory_space<vmem>>) attributes {dimension_semantics = [#tpu.dimension_semantics<parallel>], iteration_bounds = array<i64: 1>, scalar_prefetch = 0 : i64, scratch_operands = 0 : i64, tpu.core_type = #tpu.core_type<tc>, window_params = [{pipeline_mode = #tpu.pipeline_mode<synchronous>, transform_indices = @transform_0, window_bounds = array<i64: 10, 1500>}, {transform_indices = @transform_1, window_bounds = array<i64: 1500, 256>}, {pipeline_mode = #tpu.pipeline_mode<synchronous>, transform_indices = @transform_2, window_bounds = array<i64: 10, 1>}, {transform_indices = @transform_3, window_bounds = array<i64: 10, 256>}]} {
    %c0 = arith.constant 0 : index
    %c0_0 = arith.constant 0 : index
    %0 = vector.load %arg1[%c0, %c0_0] : memref<10x1500xbf16, #tpu.memory_space<vmem>>, vector<10x1500xbf16>
    %c0_1 = arith.constant 0 : index
    %c0_2 = arith.constant 0 : index
    %1 = vector.load %arg2[%c0_1, %c0_2] : memref<1500x256xbf16, #tpu.memory_space<vmem>>, vector<1500x256xbf16>
    %cst = arith.constant dense<0.000000e+00> : vector<10x256xf32>
    %2 = tpu.matmul %0, %1, %cst {dimension_numbers = #tpu.dot_dimension_numbers<[1], [0], [0], [1], [0, 0, 1, 1], [], []>} : vector<10x1500xbf16>, vector<1500x256xbf16>, vector<10x256xf32> -> vector<10x256xf32>
    %c0_3 = arith.constant 0 : index
    %c0_4 = arith.constant 0 : index
    %3 = vector.load %arg3[%c0_3, %c0_4] : memref<10x1xf32, #tpu.memory_space<vmem>>, vector<10x1xf32>
    %4 = vector.broadcast %3 : vector<10x1xf32> to vector<10x256xf32>
    %5 = arith.addf %2, %4 : vector<10x256xf32>
    %cst_5 = arith.constant 0.000000e+00 : f32
    %6 = vector.broadcast %cst_5 : f32 to vector<10x256xf32>
    %7 = arith.maximumf %5, %6 : vector<10x256xf32>
    %c0_6 = arith.constant 0 : index
    %c0_7 = arith.constant 0 : index
    %8 = vector.load %arg4[%c0_6, %c0_7] : memref<10x256xf32, #tpu.memory_space<vmem>>, vector<10x256xf32>
    tpu.vector_store %arg4[%c0_6, %c0_7], %7 {strides = array<i32>} : memref<10x256xf32, #tpu.memory_space<vmem>>, vector<10x256xf32>,
    return
  }
  func.func @transform_0(%arg0: i32) -> (i32, i32) {
    %c0_i32 = arith.constant 0 : i32
    %c0_i32_0 = arith.constant 0 : i32
    %c0_i32_1 = arith.constant 0 : i32
    return %c0_i32, %c0_i32_0 : i32, i32
  }
  func.func @transform_1(%arg0: i32) -> (i32, i32) {
    %c0_i32 = arith.constant 0 : i32
    %c0_i32_0 = arith.constant 0 : i32
    return %c0_i32, %arg0 : i32, i32
  }
  func.func @transform_2(%arg0: i32) -> (i32, i32) {
    %c0_i32 = arith.constant 0 : i32
    %c0_i32_0 = arith.constant 0 : i32
    %c0_i32_1 = arith.constant 0 : i32
    return %c0_i32, %c0_i32_0 : i32, i32
  }
  func.func @transform_3(%arg0: i32) -> (i32, i32) {
    %c0_i32 = arith.constant 0 : i32
    %c0_i32_0 = arith.constant 0 : i32
    return %c0_i32, %arg0 : i32, i32
  }
}

module attributes {stable_mosaic.version = 11 : i64} {
  func.func @_matmul_bias_act_kernel(%arg0: i32, %arg1: memref<5x500xbf16, #tpu.memory_space<vmem>>, %arg2: memref<500x512xbf16, #tpu.memory_space<vmem>>, %arg3: memref<5x1xf32, #tpu.memory_space<vmem>>, %arg4: memref<5x512xf32, #tpu.memory_space<vmem>>) attributes {dimension_semantics = [#tpu.dimension_semantics<parallel>], iteration_bounds = array<i64: 1>, scalar_prefetch = 0 : i64, scratch_operands = 0 : i64, tpu.core_type = #tpu.core_type<tc>, window_params = [{pipeline_mode = #tpu.pipeline_mode<synchronous>, transform_indices = @transform_0, window_bounds = array<i64: 5, 500>}, {transform_indices = @transform_1, window_bounds = array<i64: 500, 512>}, {pipeline_mode = #tpu.pipeline_mode<synchronous>, transform_indices = @transform_2, window_bounds = array<i64: 5, 1>}, {transform_indices = @transform_3, window_bounds = array<i64: 5, 512>}]} {
    %c0 = arith.constant 0 : index
    %c0_0 = arith.constant 0 : index
    %0 = vector.load %arg1[%c0, %c0_0] : memref<5x500xbf16, #tpu.memory_space<vmem>>, vector<5x500xbf16>
    %c0_1 = arith.constant 0 : index
    %c0_2 = arith.constant 0 : index
    %1 = vector.load %arg2[%c0_1, %c0_2] : memref<500x512xbf16, #tpu.memory_space<vmem>>, vector<500x512xbf16>
    %cst = arith.constant dense<0.000000e+00> : vector<5x512xf32>
    %2 = tpu.matmul %0, %1, %cst {dimension_numbers = #tpu.dot_dimension_numbers<[1], [0], [0], [1], [0, 0, 1, 1], [], []>} : vector<5x500xbf16>, vector<500x512xbf16>, vector<5x512xf32> -> vector<5x512xf32>
    %c0_3 = arith.constant 0 : index
    %c0_4 = arith.constant 0 : index
    %3 = vector.load %arg3[%c0_3, %c0_4] : memref<5x1xf32, #tpu.memory_space<vmem>>, vector<5x1xf32>
    %4 = vector.broadcast %3 : vector<5x1xf32> to vector<5x512xf32>
    %5 = arith.addf %2, %4 : vector<5x512xf32>
    %cst_5 = arith.constant 0.000000e+00 : f32
    %6 = vector.broadcast %cst_5 : f32 to vector<5x512xf32>
    %7 = arith.maximumf %5, %6 : vector<5x512xf32>
    %c0_6 = arith.constant 0 : index
    %c0_7 = arith.constant 0 : index
    %8 = vector.load %arg4[%c0_6, %c0_7] : memref<5x512xf32, #tpu.memory_space<vmem>>, vector<5x512xf32>
    tpu.vector_store %arg4[%c0_6, %c0_7], %7 {strides = array<i32>} : memref<5x512xf32, #tpu.memory_space<vmem>>, vector<5x512xf32>,
    return
  }
  func.func @transform_0(%arg0: i32) -> (i32, i32) {
    %c0_i32 = arith.constant 0 : i32
    %c0_i32_0 = arith.constant 0 : i32
    %c0_i32_1 = arith.constant 0 : i32
    return %c0_i32, %c0_i32_0 : i32, i32
  }
  func.func @transform_1(%arg0: i32) -> (i32, i32) {
    %c0_i32 = arith.constant 0 : i32
    %c0_i32_0 = arith.constant 0 : i32
    return %c0_i32, %arg0 : i32, i32
  }
  func.func @transform_2(%arg0: i32) -> (i32, i32) {
    %c0_i32 = arith.constant 0 : i32
    %c0_i32_0 = arith.constant 0 : i32
    %c0_i32_1 = arith.constant 0 : i32
    return %c0_i32, %c0_i32_0 : i32, i32
  }
  func.func @transform_3(%arg0: i32) -> (i32, i32) {
    %c0_i32 = arith.constant 0 : i32
    %c0_i32_0 = arith.constant 0 : i32
    return %c0_i32, %arg0 : i32, i32
  }
}

module attributes {stable_mosaic.version = 11 : i64} {
  func.func @_matmul_bias_act_kernel(%arg0: i32, %arg1: memref<2x250xbf16, #tpu.memory_space<vmem>>, %arg2: memref<250x512xbf16, #tpu.memory_space<vmem>>, %arg3: memref<2x1xf32, #tpu.memory_space<vmem>>, %arg4: memref<2x512xf32, #tpu.memory_space<vmem>>) attributes {dimension_semantics = [#tpu.dimension_semantics<parallel>], iteration_bounds = array<i64: 5>, scalar_prefetch = 0 : i64, scratch_operands = 0 : i64, tpu.core_type = #tpu.core_type<tc>, window_params = [{pipeline_mode = #tpu.pipeline_mode<synchronous>, transform_indices = @transform_0, window_bounds = array<i64: 2, 250>}, {transform_indices = @transform_1, window_bounds = array<i64: 250, 512>}, {pipeline_mode = #tpu.pipeline_mode<synchronous>, transform_indices = @transform_2, window_bounds = array<i64: 2, 1>}, {transform_indices = @transform_3, window_bounds = array<i64: 2, 512>}]} {
    %c0 = arith.constant 0 : index
    %c0_0 = arith.constant 0 : index
    %0 = vector.load %arg1[%c0, %c0_0] : memref<2x250xbf16, #tpu.memory_space<vmem>>, vector<2x250xbf16>
    %c0_1 = arith.constant 0 : index
    %c0_2 = arith.constant 0 : index
    %1 = vector.load %arg2[%c0_1, %c0_2] : memref<250x512xbf16, #tpu.memory_space<vmem>>, vector<250x512xbf16>
    %cst = arith.constant dense<0.000000e+00> : vector<2x512xf32>
    %2 = tpu.matmul %0, %1, %cst {dimension_numbers = #tpu.dot_dimension_numbers<[1], [0], [0], [1], [0, 0, 1, 1], [], []>} : vector<2x250xbf16>, vector<250x512xbf16>, vector<2x512xf32> -> vector<2x512xf32>
    %c0_3 = arith.constant 0 : index
    %c0_4 = arith.constant 0 : index
    %3 = vector.load %arg3[%c0_3, %c0_4] : memref<2x1xf32, #tpu.memory_space<vmem>>, vector<2x1xf32>
    %4 = vector.broadcast %3 : vector<2x1xf32> to vector<2x512xf32>
    %5 = arith.addf %2, %4 : vector<2x512xf32>
    %cst_5 = arith.constant 0.000000e+00 : f32
    %6 = vector.broadcast %cst_5 : f32 to vector<2x512xf32>
    %7 = arith.maximumf %5, %6 : vector<2x512xf32>
    %c0_6 = arith.constant 0 : index
    %c0_7 = arith.constant 0 : index
    %8 = vector.load %arg4[%c0_6, %c0_7] : memref<2x512xf32, #tpu.memory_space<vmem>>, vector<2x512xf32>
    tpu.vector_store %arg4[%c0_6, %c0_7], %7 {strides = array<i32>} : memref<2x512xf32, #tpu.memory_space<vmem>>, vector<2x512xf32>,
    return
  }
  func.func @transform_0(%arg0: i32) -> (i32, i32) {
    %c0_i32 = arith.constant 0 : i32
    %c0_i32_0 = arith.constant 0 : i32
    %c0_i32_1 = arith.constant 0 : i32
    return %c0_i32, %c0_i32_0 : i32, i32
  }
  func.func @transform_1(%arg0: i32) -> (i32, i32) {
    %c0_i32 = arith.constant 0 : i32
    %c0_i32_0 = arith.constant 0 : i32
    return %c0_i32, %arg0 : i32, i32
  }
  func.func @transform_2(%arg0: i32) -> (i32, i32) {
    %c0_i32 = arith.constant 0 : i32
    %c0_i32_0 = arith.constant 0 : i32
    %c0_i32_1 = arith.constant 0 : i32
    return %c0_i32, %c0_i32_0 : i32, i32
  }
  func.func @transform_3(%arg0: i32) -> (i32, i32) {
    %c0_i32 = arith.constant 0 : i32
    %c0_i32_0 = arith.constant 0 : i32
    return %c0_i32, %arg0 : i32, i32
  }
}

module attributes {stable_mosaic.version = 11 : i64} {
  func.func @_matmul_bias_act_kernel(%arg0: i32, %arg1: memref<8x50xbf16, #tpu.memory_space<vmem>>, %arg2: memref<50x512xbf16, #tpu.memory_space<vmem>>, %arg3: memref<8x1xf32, #tpu.memory_space<vmem>>, %arg4: memref<8x512xf32, #tpu.memory_space<vmem>>) attributes {dimension_semantics = [#tpu.dimension_semantics<parallel>], iteration_bounds = array<i64: 10>, scalar_prefetch = 0 : i64, scratch_operands = 0 : i64, tpu.core_type = #tpu.core_type<tc>, window_params = [{pipeline_mode = #tpu.pipeline_mode<synchronous>, transform_indices = @transform_0, window_bounds = array<i64: 8, 50>}, {transform_indices = @transform_1, window_bounds = array<i64: 50, 512>}, {pipeline_mode = #tpu.pipeline_mode<synchronous>, transform_indices = @transform_2, window_bounds = array<i64: 8, 1>}, {transform_indices = @transform_3, window_bounds = array<i64: 8, 512>}]} {
    %c0 = arith.constant 0 : index
    %c0_0 = arith.constant 0 : index
    %0 = vector.load %arg1[%c0, %c0_0] : memref<8x50xbf16, #tpu.memory_space<vmem>>, vector<8x50xbf16>
    %c0_1 = arith.constant 0 : index
    %c0_2 = arith.constant 0 : index
    %1 = vector.load %arg2[%c0_1, %c0_2] : memref<50x512xbf16, #tpu.memory_space<vmem>>, vector<50x512xbf16>
    %cst = arith.constant dense<0.000000e+00> : vector<8x512xf32>
    %2 = tpu.matmul %0, %1, %cst {dimension_numbers = #tpu.dot_dimension_numbers<[1], [0], [0], [1], [0, 0, 1, 1], [], []>} : vector<8x50xbf16>, vector<50x512xbf16>, vector<8x512xf32> -> vector<8x512xf32>
    %c0_3 = arith.constant 0 : index
    %c0_4 = arith.constant 0 : index
    %3 = vector.load %arg3[%c0_3, %c0_4] : memref<8x1xf32, #tpu.memory_space<vmem>>, vector<8x1xf32>
    %4 = vector.broadcast %3 : vector<8x1xf32> to vector<8x512xf32>
    %5 = arith.addf %2, %4 : vector<8x512xf32>
    %6 = math.tanh %5 : vector<8x512xf32>
    %c0_5 = arith.constant 0 : index
    %c0_6 = arith.constant 0 : index
    %7 = vector.load %arg4[%c0_5, %c0_6] : memref<8x512xf32, #tpu.memory_space<vmem>>, vector<8x512xf32>
    tpu.vector_store %arg4[%c0_5, %c0_6], %6 {strides = array<i32>} : memref<8x512xf32, #tpu.memory_space<vmem>>, vector<8x512xf32>,
    return
  }
  func.func @transform_0(%arg0: i32) -> (i32, i32) {
    %c0_i32 = arith.constant 0 : i32
    %c0_i32_0 = arith.constant 0 : i32
    %c0_i32_1 = arith.constant 0 : i32
    return %c0_i32, %c0_i32_0 : i32, i32
  }
  func.func @transform_1(%arg0: i32) -> (i32, i32) {
    %c0_i32 = arith.constant 0 : i32
    %c0_i32_0 = arith.constant 0 : i32
    return %c0_i32, %arg0 : i32, i32
  }
  func.func @transform_2(%arg0: i32) -> (i32, i32) {
    %c0_i32 = arith.constant 0 : i32
    %c0_i32_0 = arith.constant 0 : i32
    %c0_i32_1 = arith.constant 0 : i32
    return %c0_i32, %c0_i32_0 : i32, i32
  }
  func.func @transform_3(%arg0: i32) -> (i32, i32) {
    %c0_i32 = arith.constant 0 : i32
    %c0_i32_0 = arith.constant 0 : i32
    return %c0_i32, %arg0 : i32, i32
  }
}

</mosaic_0001>

<bundles_post_ra>
// kernel: wavegan_generator_forward.12
= control target key start
LH: loop header
LB: loop body
LE: loop exit
PB: predicated region body
PF: predicated region fallthrough
CT: control target
= control target key end

     0   :  { %s1041_s12 = smov 0   ;;  %s1043_s13 = smov 0   ;;  %s1268_s0 = inlined_call_operand.vmem [shape: bf16[2,200], index: 0, kind: input, shape index: {}]   ;;  %s1269_s1 = inlined_call_operand.vmem [shape: bf16[200,2560], index: 1, kind: input, shape index: {}]   ;;  %s1270_s2 = inlined_call_operand.vmem [shape: f32[2,1], index: 2, kind: input, shape index: {}]   ;;  %s1271_s3 = inlined_call_operand.vmem [shape: f32[2,2560], index: 3, kind: output, shape index: {}]  }
   0x1   :  { %s1045_s14 = smov 0  }
   0x2 LB: > { %s819_s15 = sadd.s32 4294967295, %s1016_s14   ;;  %s1058_s16 = sadd.s32 1, %s1016_s14   ;;  %s1016_s14 = sphi %s1045_s14, %s1274_s14   ;;  %s1012_s13 = sphi %s1043_s13, %s1273_s13   ;;  %s1008_s12 = sphi %s1041_s12, %s1272_s12  }
   0x3   : > { %s38_s17 = ssub.s32 %s1016_s14, %s1058_s16  ;;  %s41_s18 = sadd.s32 1, %s1012_s13 }
   0x4   : > { %p39_p0 = scmp.eq.s32.totalorder %s38_s17, 0  ;;  %p48_p1 = scmp.ne.s32.totalorder %s1012_s13, %s1008_s12 }
   0x5   : > { %p49_p2 = scmp.eq.s32.totalorder %s1016_s14, 0  ;;  %p822_p4 = scmp.ge.s32.totalorder %s1016_s14, 5 }
   0x6   : > { %s1067_s19 = scalar_select %p39_p0, %s1012_s13, %s41_s18  }
   0x7   : > { %p50_p3 = por %p49_p2, %p48_p1  ;;  %127 = sbr.rel (%p822_p4) target bundleno = 42 (0x2a), region = 24 }
   0xc   : > { %130 = sbr.rel (!%p50_p3) target bundleno = 42 (0x2a), region = 28  ;;  %s132_s20 = sand.u32 (%p50_p3), 1, %s1012_s13  }
   0xd   : > { %s887_s21 = sshll.u32 (%p50_p3), %s1016_s14, 4  ;;  %s888_s22 = smul.u32 (%p50_p3), 400, %s132_s20 }
   0xe   : > { %s1075_s25 = scalar_lea.vmem (%p50_p3), %s1269_s1, %s887_s21 }
   0xf   : > { %v150_v0 = vld [vmem:[%s1075_s25] sm:$0xff] (%p50_p3)  ;;  %v152_v1 = vld [vmem:[%s1075_s25 + $0x8] sm:$0xff] (%p50_p3)  ;;  %v154_v2 = vld [vmem:[%s1075_s25 + $0x50] sm:$0xff] (%p50_p3)  ;;  %s1083_s26 = scalar_lea.vmem (%p50_p3), [#allocation2], %s888_s22 }
  0x10   : > { %v156_v3 = vld [vmem:[%s1075_s25 + $0x58] sm:$0xff] (%p50_p3)  ;;  %v158_v4 = vld [vmem:[%s1075_s25 + $0xa0] sm:$0xff] (%p50_p3)  ;;  %v160_v5 = vld [vmem:[%s1075_s25 + $0xa8] sm:$0xff] (%p50_p3)  ;;  %151 = vst [vmem:[%s1083_s26] sm:$0xff] (%p50_p3), %v150_v0 }
  0x11   : > { %153 = vst [vmem:[%s1083_s26 + $0x8] sm:$0xff] %v152_v1  ;;  %155 = vst [vmem:[%s1083_s26 + $0x10] sm:$0xff] %v154_v2  ;;  %v162_v6 = vld [vmem:[%s1075_s25 + $0xf0] sm:$0xff]  ;;  %v164_v7 = vld [vmem:[%s1075_s25 + $0xf8] sm:$0xff] }
  0x12   : > { %157 = vst [vmem:[%s1083_s26 + $0x18] sm:$0xff] %v156_v3  ;;  %159 = vst [vmem:[%s1083_s26 + $0x20] sm:$0xff] %v158_v4  ;;  %v166_v8 = vld [vmem:[%s1075_s25 + $0x140] sm:$0xff]  ;;  %v168_v9 = vld [vmem:[%s1075_s25 + $0x148] sm:$0xff] }
  0x13   : > { %161 = vst [vmem:[%s1083_s26 + $0x28] sm:$0xff] %v160_v5  ;;  %163 = vst [vmem:[%s1083_s26 + $0x30] sm:$0xff] %v162_v6  ;;  %v170_v10 = vld [vmem:[%s1075_s25 + $0x190] sm:$0xff]  ;;  %v172_v11 = vld [vmem:[%s1075_s25 + $0x198] sm:$0xff] }
  0x14   : > { %165 = vst [vmem:[%s1083_s26 + $0x38] sm:$0xff] %v164_v7  ;;  %167 = vst [vmem:[%s1083_s26 + $0x40] sm:$0xff] %v166_v8  ;;  %v174_v12 = vld [vmem:[%s1075_s25 + $0x1e0] sm:$0xff]  ;;  %v176_v13 = vld [vmem:[%s1075_s25 + $0x1e8] sm:$0xff] }
  0x15   : > { %169 = vst [vmem:[%s1083_s26 + $0x48] sm:$0xff] %v168_v9  ;;  %171 = vst [vmem:[%s1083_s26 + $0x50] sm:$0xff] %v170_v10  ;;  %v178_v14 = vld [vmem:[%s1075_s25 + $0x230] sm:$0xff]  ;;  %v180_v15 = vld [vmem:[%s1075_s25 + $0x238] sm:$0xff] }
  0x16   : > { %173 = vst [vmem:[%s1083_s26 + $0x58] sm:$0xff] %v172_v11  ;;  %175 = vst [vmem:[%s1083_s26 + $0x60] sm:$0xff] %v174_v12  ;;  %v182_v16 = vld [vmem:[%s1075_s25 + $0x280] sm:$0xff]  ;;  %v184_v17 = vld [vmem:[%s1075_s25 + $0x288] sm:$0xff] }
  0x17   : > { %177 = vst [vmem:[%s1083_s26 + $0x68] sm:$0xff] %v176_v13  ;;  %179 = vst [vmem:[%s1083_s26 + $0x70] sm:$0xff] %v178_v14  ;;  %v186_v18 = vld [vmem:[%s1075_s25 + $0x2d0] sm:$0xff]  ;;  %v188_v19 = vld [vmem:[%s1075_s25 + $0x2d8] sm:$0xff] }
  0x18   : > { %181 = vst [vmem:[%s1083_s26 + $0x78] sm:$0xff] %v180_v15  ;;  %183 = vst [vmem:[%s1083_s26 + $0x80] sm:$0xff] %v182_v16  ;;  %v190_v20 = vld [vmem:[%s1075_s25 + $0x320] sm:$0xff]  ;;  %v192_v21 = vld [vmem:[%s1075_s25 + $0x328] sm:$0xff] }
  0x19   : > { %185 = vst [vmem:[%s1083_s26 + $0x88] sm:$0xff] %v184_v17  ;;  %187 = vst [vmem:[%s1083_s26 + $0x90] sm:$0xff] %v186_v18  ;;  %v194_v22 = vld [vmem:[%s1075_s25 + $0x370] sm:$0xff]  ;;  %v196_v23 = vld [vmem:[%s1075_s25 + $0x378] sm:$0xff] }
  0x1a   : > { %189 = vst [vmem:[%s1083_s26 + $0x98] sm:$0xff] %v188_v19  ;;  %191 = vst [vmem:[%s1083_s26 + $0xa0] sm:$0xff] %v190_v20  ;;  %v198_v24 = vld [vmem:[%s1075_s25 + $0x3c0] sm:$0xff]  ;;  %v200_v25 = vld [vmem:[%s1075_s25 + $0x3c8] sm:$0xff] }
  0x1b   : > { %193 = vst [vmem:[%s1083_s26 + $0xa8] sm:$0xff] %v192_v21  ;;  %195 = vst [vmem:[%s1083_s26 + $0xb0] sm:$0xff] %v194_v22  ;;  %v202_v26 = vld [vmem:[%s1075_s25 + $0x410] sm:$0xff]  ;;  %v204_v27 = vld [vmem:[%s1075_s25 + $0x418] sm:$0xff] }
  0x1c   : > { %197 = vst [vmem:[%s1083_s26 + $0xb8] sm:$0xff] %v196_v23  ;;  %199 = vst [vmem:[%s1083_s26 + $0xc0] sm:$0xff] %v198_v24  ;;  %v206_v28 = vld [vmem:[%s1075_s25 + $0x460] sm:$0xff]  ;;  %v208_v29 = vld [vmem:[%s1075_s25 + $0x468] sm:$0xff] }
  0x1d   : > { %201 = vst [vmem:[%s1083_s26 + $0xc8] sm:$0xff] %v200_v25  ;;  %203 = vst [vmem:[%s1083_s26 + $0xd0] sm:$0xff] %v202_v26  ;;  %v210_v30 = vld [vmem:[%s1075_s25 + $0x4b0] sm:$0xff]  ;;  %v212_v31 = vld [vmem:[%s1075_s25 + $0x4b8] sm:$0xff] }
  0x1e   : > { %205 = vst [vmem:[%s1083_s26 + $0xd8] sm:$0xff] %v204_v27  ;;  %207 = vst [vmem:[%s1083_s26 + $0xe0] sm:$0xff] %v206_v28  ;;  %v214_v32 = vld [vmem:[%s1075_s25 + $0x500] sm:$0xff]  ;;  %v216_v33 = vld [vmem:[%s1075_s25 + $0x508] sm:$0xff] }
  0x1f   : > { %209 = vst [vmem:[%s1083_s26 + $0xe8] sm:$0xff] %v208_v29  ;;  %211 = vst [vmem:[%s1083_s26 + $0xf0] sm:$0xff] %v210_v30  ;;  %v218_v34 = vld [vmem:[%s1075_s25 + $0x550] sm:$0xff]  ;;  %v220_v35 = vld [vmem:[%s1075_s25 + $0x558] sm:$0xff] }
  0x20   : > { %213 = vst [vmem:[%s1083_s26 + $0xf8] sm:$0xff] %v212_v31  ;;  %215 = vst [vmem:[%s1083_s26 + $0x100] sm:$0xff] %v214_v32  ;;  %v222_v36 = vld [vmem:[%s1075_s25 + $0x5a0] sm:$0xff]  ;;  %v224_v37 = vld [vmem:[%s1075_s25 + $0x5a8] sm:$0xff] }
  0x21   : > { %217 = vst [vmem:[%s1083_s26 + $0x108] sm:$0xff] %v216_v33  ;;  %219 = vst [vmem:[%s1083_s26 + $0x110] sm:$0xff] %v218_v34  ;;  %v226_v38 = vld [vmem:[%s1075_s25 + $0x5f0] sm:$0xff]  ;;  %v228_v39 = vld [vmem:[%s1075_s25 + $0x5f8] sm:$0xff] }
  0x22   : > { %221 = vst [vmem:[%s1083_s26 + $0x118] sm:$0xff] %v220_v35  ;;  %223 = vst [vmem:[%s1083_s26 + $0x120] sm:$0xff] %v222_v36  ;;  %v230_v40 = vld [vmem:[%s1075_s25 + $0x640] sm:$0xff]  ;;  %v232_v41 = vld [vmem:[%s1075_s25 + $0x648] sm:$0xff] }
  0x23   : > { %225 = vst [vmem:[%s1083_s26 + $0x128] sm:$0xff] %v224_v37  ;;  %227 = vst [vmem:[%s1083_s26 + $0x130] sm:$0xff] %v226_v38  ;;  %v234_v42 = vld [vmem:[%s1075_s25 + $0x690] sm:$0xff]  ;;  %v236_v43 = vld [vmem:[%s1075_s25 + $0x698] sm:$0xff] }
  0x24   : > { %229 = vst [vmem:[%s1083_s26 + $0x138] sm:$0xff] %v228_v39  ;;  %231 = vst [vmem:[%s1083_s26 + $0x140] sm:$0xff] %v230_v40  ;;  %v238_v44 = vld [vmem:[%s1075_s25 + $0x6e0] sm:$0xff]  ;;  %v240_v45 = vld [vmem:[%s1075_s25 + $0x6e8] sm:$0xff] }
  0x25   : > { %233 = vst [vmem:[%s1083_s26 + $0x148] sm:$0xff] %v232_v41  ;;  %235 = vst [vmem:[%s1083_s26 + $0x150] sm:$0xff] %v234_v42  ;;  %v242_v46 = vld [vmem:[%s1075_s25 + $0x730] sm:$0xff]  ;;  %v244_v47 = vld [vmem:[%s1075_s25 + $0x738] sm:$0xff] }
  0x26   : > { %237 = vst [vmem:[%s1083_s26 + $0x158] sm:$0xff] %v236_v43  ;;  %239 = vst [vmem:[%s1083_s26 + $0x160] sm:$0xff] %v238_v44  ;;  %v246_v48 = vld [vmem:[%s1075_s25 + $0x780] sm:$0xff]  ;;  %v248_v49 = vld [vmem:[%s1075_s25 + $0x788] sm:$0xff] }
  0x27   : > { %241 = vst [vmem:[%s1083_s26 + $0x168] sm:$0xff] %v240_v45  ;;  %243 = vst [vmem:[%s1083_s26 + $0x170] sm:$0xff] %v242_v46 }
  0x28   : > { %245 = vst [vmem:[%s1083_s26 + $0x178] sm:$0xff] %v244_v47  ;;  %247 = vst [vmem:[%s1083_s26 + $0x180] sm:$0xff] %v246_v48 }
  0x29   : > { %249 = vst [vmem:[%s1083_s26 + $0x188] sm:$0xff] %v248_v49 }
  0x2a PF: > { %p825_p5 = scmp.ge.s32.totalorder %s1016_s14, 1  ;;  %p254_p6 = scmp.lt.s32.totalorder %s1016_s14, 6 }
  0x2c   : > { %p255_p7 = pnand %p825_p5, %p254_p6 }
  0x2d   : > { %s261_s27 = sand.u32 (!%p255_p7), 1, %s1008_s12   ;;  %s826_s7 = sshll.u32 (!%p255_p7), %s819_s15, 2 }
  0x2e   : > { %258 = sbr.rel (%p255_p7) target bundleno = 313 (0x139), region = 51  ;;  %p286_p8 = scmp.lt.s32.totalorder (!%p255_p7), %s826_s7, 19 }
  0x2f   : > { %s889_s30 = smul.u32 (!%p255_p7), 400, %s261_s27 }
  0x31   : > { %s1192_s6 = scalar_lea.vmem (!%p255_p7), [#allocation2], %s889_s30 }
  0x33   : > { %v1185_v50 = vld.sshfl [vmem:[%s1268_s0] sm:$0x11 pattern:$0x75316420]  ;;  %v361_v51 = vlaneseq  ;;  %v1018_v52 = vmov 1966171168  }
  0x34   : > { %v359_v53 = vunpack.c.l.s4 %v1018_v52  ;;  %v343_v55 = vld [vmem:[%s1270_s2] sm:$0x3]  ;;  %v1019_v56 = vmov 0   ;;  %v918_v57 = vld [vmem:[%s1192_s6 + $0xe4] ss:$16 sps:$4 sm:$0xff]   ;;  %v357_v58 = vcombine.high %v1185_v50, %v1185_v50  ;;  %vm623_vm0 = vcmask 588800  }
  0x35   : > { %v1187_v54 = vshrl.u32 %v361_v51, 7  ;;  %917 = vset.pattern.permute.xlu0 %v1019_v56  ;;  %v920_v60 = vld [vmem:[%s1192_s6 + $0xec] ss:$16 sps:$4 sm:$0xff]   ;;  %640 = vmatprep.subr.bf16.mxu0 %v918_v57  ;;  %v922_v61 = vld [vmem:[%s1192_s6 + $0xe0] ss:$16 sps:$4 sm:$0xff]   ;;  %vm627_vm1 = vcmask 1043456  }
  0x36   : > { %v360_v59 = vunpack.c.0.s8 %v359_v53  ;;  %346 = vperm.xlu0 %917, %v343_v55   ;;  %v923_v62 = vld [vmem:[%s1192_s6 + $0xe8] ss:$16 sps:$4 sm:$0xff]   ;;  %681 = vmatprep.subr.bf16.mxu1 %v920_v60  ;;  %v924_v0 = vld [vmem:[%s1192_s6 + $0xc4] ss:$16 sps:$4 sm:$0xff]   ;;  %v926_v1 = vld [vmem:[%s1192_s6 + $0xcc] ss:$16 sps:$4 sm:$0xff]  }
  0x37   : > { %641 = vmatpush1.bf16.msra.mxu0 %v922_v61  ;;  %682 = vmatpush1.bf16.msra.mxu1 %v923_v62  ;;  %v928_v2 = vld [vmem:[%s1192_s6 + $0xc0] ss:$16 sps:$4 sm:$0xff]   ;;  %v929_v4 = vld [vmem:[%s1192_s6 + $0xc8] ss:$16 sps:$4 sm:$0xff]   ;;  %v930_v5 = vld [vmem:[%s1192_s6 + $0xa4] ss:$16 sps:$4 sm:$0xff]  }
  0x38   : > { %v1201_v63 = vsub.s32 %v360_v59, %v1187_v54  ;;  %642 = vmatprep.subr.bf16.mxu0 %v924_v0  ;;  %683 = vmatprep.subr.bf16.mxu1 %v926_v1  ;;  %v932_v6 = vld [vmem:[%s1192_s6 + $0xac] ss:$16 sps:$4 sm:$0xff]   ;;  %v934_v7 = vld [vmem:[%s1192_s6 + $0xa0] ss:$16 sps:$4 sm:$0xff]   ;;  %v935_v8 = vld [vmem:[%s1192_s6 + $0xa8] ss:$16 sps:$4 sm:$0xff]  }
  0x39   : > { %v936_v9 = vld [vmem:[%s1192_s6 + $0x84] ss:$16 sps:$4 sm:$0xff]   ;;  %v938_v10 = vld [vmem:[%s1192_s6 + $0x8c] ss:$16 sps:$4 sm:$0xff]   ;;  %v940_v11 = vld [vmem:[%s1192_s6 + $0x80] ss:$16 sps:$4 sm:$0xff]  }
  0x3a   : > { %v371_v3 = vrot.slane %v357_v58, %v1201_v63  ;;  %v941_v12 = vld [vmem:[%s1192_s6 + $0x88] ss:$16 sps:$4 sm:$0xff]   ;;  %v942_v13 = vld [vmem:[%s1192_s6 + $0x64] ss:$16 sps:$4 sm:$0xff]   ;;  %v944_v14 = vld [vmem:[%s1192_s6 + $0x6c] ss:$16 sps:$4 sm:$0xff]   ;;  %v364_v55 = vrot.slane %v1185_v50, %v1201_v63 }
  0x3b   : > { %643 = vmatpush1.bf16.msra.mxu0 %v928_v2  ;;  %684 = vmatpush1.bf16.msra.mxu1 %v929_v4  ;;  %v946_v15 = vld [vmem:[%s1192_s6 + $0x60] ss:$16 sps:$4 sm:$0xff]   ;;  %v947_v16 = vld [vmem:[%s1192_s6 + $0x68] ss:$16 sps:$4 sm:$0xff]   ;;  %v948_v17 = vld [vmem:[%s1192_s6 + $0x44] ss:$16 sps:$4 sm:$0xff]  }
  0x3c   : > { %882 = vmatprep.mubr.msk.bf16.mxu0 %vm623_vm0, %v371_v3  ;;  %884 = vmatprep.mubr.msk.bf16.mxu1 %vm623_vm0, %v371_v3  ;;  %v950_v18 = vld [vmem:[%s1192_s6 + $0x4c] ss:$16 sps:$4 sm:$0xff]   ;;  %v952_v19 = vld [vmem:[%s1192_s6 + $0x40] ss:$16 sps:$4 sm:$0xff]   ;;  %v953_v20 = vld [vmem:[%s1192_s6 + $0x48] ss:$16 sps:$4 sm:$0xff]  }
  0x3d   : > { %644 = vmatprep.subr.bf16.mxu0 %v930_v5  ;;  %685 = vmatprep.subr.bf16.mxu1 %v932_v6  ;;  %v954_v21 = vld [vmem:[%s1192_s6 + $0x24] ss:$16 sps:$4 sm:$0xff]   ;;  %v956_v22 = vld [vmem:[%s1192_s6 + $0x2c] ss:$16 sps:$4 sm:$0xff]   ;;  %v958_v23 = vld [vmem:[%s1192_s6 + $0x20] ss:$16 sps:$4 sm:$0xff]  }
  0x3e   : > { %v959_v24 = vld [vmem:[%s1192_s6 + $0x28] ss:$16 sps:$4 sm:$0xff]   ;;  %v960_v25 = vld [vmem:[%s1192_s6 + $0x4] ss:$16 sps:$4 sm:$0xff]   ;;  %v962_v26 = vld [vmem:[%s1192_s6 + $0xc] ss:$16 sps:$4 sm:$0xff]  }
  0x3f   : > { %645 = vmatpush1.bf16.msra.mxu0 %v934_v7  ;;  %686 = vmatpush1.bf16.msra.mxu1 %v935_v8  ;;  %v341_v27 = vld [vmem:[%s1192_s6 + $0x180] sm:$0xff]  ;;  %v342_v28 = vld [vmem:[%s1192_s6 + $0x188] sm:$0xff]  ;;  %v1020_v57 = vmov 1983009808   ;;  %s1276_s7 = smov (!%p286_p8, %s826_s7), 19 }
  0x40   : > { %646 = vmatprep.subr.bf16.mxu0 %v936_v9  ;;  %687 = vmatprep.subr.bf16.mxu1 %v938_v10  ;;  %v964_v29 = vld [vmem:[%s1192_s6] ss:$16 sps:$4 sm:$0xff]   ;;  %v965_v30 = vld [vmem:[%s1192_s6 + $0x8] ss:$16 sps:$4 sm:$0xff]   ;;  %v878_v31 = vcombine.high %v341_v27, %v341_v27  ;;  %v880_v32 = vcombine.high %v342_v28, %v342_v28  ;;  %v877_v33 = vcombine.low %v341_v27, %v341_v27  ;;  %v970_v37 = vld [vmem:[%s1192_s6 + $0x164] ss:$16 sps:$4 sm:$0xff]   ;;  %v741_v58 = vunpack.c.l.s4 %v1020_v57 }
  0x41   : > { %v879_v34 = vcombine.low %v342_v28, %v342_v28  ;;  %v972_v38 = vld [vmem:[%s1192_s6 + $0x16c] ss:$16 sps:$4 sm:$0xff]   ;;  %v974_v39 = vld [vmem:[%s1192_s6 + $0x160] ss:$16 sps:$4 sm:$0xff]   ;;  %v975_v40 = vld [vmem:[%s1192_s6 + $0x168] ss:$16 sps:$4 sm:$0xff]  }
  0x42   : > { %v629_v35 = vsel %vm627_vm1, %v877_v33, 0  ;;  %v976_v41 = vld [vmem:[%s1192_s6 + $0x144] ss:$16 sps:$4 sm:$0xff]   ;;  %v978_v42 = vld [vmem:[%s1192_s6 + $0x14c] ss:$16 sps:$4 sm:$0xff]   ;;  %v742_v2 = vunpack.c.0.s8 %v741_v58  ;;  %s827_s8 = sshll.u32 %s1276_s7, 1 }
  0x43   : > { %647 = vmatpush1.bf16.msra.mxu0 %v940_v11  ;;  %688 = vmatpush1.bf16.msra.mxu1 %v941_v12  ;;  %v635_v36 = vsel %vm627_vm1, %v879_v34, 0  ;;  %v980_v43 = vld [vmem:[%s1192_s6 + $0x140] ss:$16 sps:$4 sm:$0xff]   ;;  %v981_v44 = vld [vmem:[%s1192_s6 + $0x148] ss:$16 sps:$4 sm:$0xff]   ;;  %s289_s11 = scalar_lea.vmem %s1271_s3, %s827_s8 }
  0x44   : > { %648 = vmatprep.subr.bf16.mxu0 %v942_v13  ;;  %689 = vmatprep.subr.bf16.mxu1 %v944_v14  ;;  %v982_v45 = vld [vmem:[%s1192_s6 + $0x124] ss:$16 sps:$4 sm:$0xff]   ;;  %v984_v46 = vld [vmem:[%s1192_s6 + $0x12c] ss:$16 sps:$4 sm:$0xff]   ;;  %v986_v47 = vld [vmem:[%s1192_s6 + $0x120] ss:$16 sps:$4 sm:$0xff]   ;;  %v745_v11 = vsub.s32 %v742_v2, %v1187_v54 }
  0x45   : > { %v987_v48 = vld [vmem:[%s1192_s6 + $0x128] ss:$16 sps:$4 sm:$0xff]   ;;  %v988_v49 = vld [vmem:[%s1192_s6 + $0x104] ss:$16 sps:$4 sm:$0xff]   ;;  %v990_v51 = vld [vmem:[%s1192_s6 + $0x10c] ss:$16 sps:$4 sm:$0xff]  }
  0x46   : > { %v992_v52 = vld [vmem:[%s1192_s6 + $0x100] ss:$16 sps:$4 sm:$0xff]   ;;  %v993_v53 = vld [vmem:[%s1192_s6 + $0x108] ss:$16 sps:$4 sm:$0xff]  }
  0x47   : > { %649 = vmatpush1.bf16.msra.mxu0 %v946_v15  ;;  %690 = vmatpush1.bf16.msra.mxu1 %v947_v16 }
  0x48   : > { %650 = vmatprep.subr.bf16.mxu0 %v948_v17  ;;  %691 = vmatprep.subr.bf16.mxu1 %v950_v18 }
  0x4b   : > { %651 = vmatpush1.bf16.msra.mxu0 %v952_v19  ;;  %692 = vmatpush1.bf16.msra.mxu1 %v953_v20 }
  0x4c   : > { %652 = vmatprep.subr.bf16.mxu0 %v954_v21  ;;  %693 = vmatprep.subr.bf16.mxu1 %v956_v22 }
  0x4f   : > { %653 = vmatpush1.bf16.msra.mxu0 %v958_v23  ;;  %694 = vmatpush1.bf16.msra.mxu1 %v959_v24 }
  0x50   : > { %654 = vmatprep.subr.bf16.mxu0 %v960_v25  ;;  %695 = vmatprep.subr.bf16.mxu1 %v962_v26 }
  0x53   : > { %655 = vmatpush1.bf16.msra.mxu0 %v964_v29  ;;  %696 = vmatpush1.bf16.msra.mxu1 %v965_v30 }
  0x54   : > { %881 = vmatprep.subr.msk.bf16.mxu0 %vm627_vm1, %v878_v31  ;;  %883 = vmatprep.subr.msk.bf16.mxu1 %vm627_vm1, %v880_v32 }
  0x57   : > { %663 = vmatpush2.bf16.msra.mxu0 %v629_v35  ;;  %704 = vmatpush2.bf16.msra.mxu1 %v635_v36 }
  0x58   : > { %664 = vmatprep.subr.bf16.mxu0 %v970_v37  ;;  %705 = vmatprep.subr.bf16.mxu1 %v972_v38 }
  0x5b   : > { %665 = vmatpush2.bf16.msra.mxu0 %v974_v39  ;;  %706 = vmatpush2.bf16.msra.mxu1 %v975_v40 }
  0x5c   : > { %666 = vmatprep.subr.bf16.mxu0 %v976_v41  ;;  %707 = vmatprep.subr.bf16.mxu1 %v978_v42 }
  0x5f   : > { %667 = vmatpush2.bf16.msra.mxu0 %v980_v43  ;;  %708 = vmatpush2.bf16.msra.mxu1 %v981_v44 }
  0x60   : > { %668 = vmatprep.subr.bf16.mxu0 %v982_v45  ;;  %709 = vmatprep.subr.bf16.mxu1 %v984_v46 }
  0x63   : > { %669 = vmatpush2.bf16.msra.mxu0 %v986_v47  ;;  %710 = vmatpush2.bf16.msra.mxu1 %v987_v48 }
  0x64   : > { %670 = vmatprep.subr.bf16.mxu0 %v988_v49  ;;  %711 = vmatprep.subr.bf16.mxu1 %v990_v51 }
  0x67   : > { %671 = vmatpush2.bf16.msra.mxu0 %v992_v52  ;;  %712 = vmatpush2.bf16.msra.mxu1 %v993_v53 }
  0x6a   : > { %673 = vmatmul.mubr.bf16.vlgmr.msra.gmra.mxu0 %v364_v55  ;;  %714 = vmatmul.mubr.bf16.vlgmr.msra.gmra.mxu1 %v364_v55 }
  0xb1   : > { %v347_v56 = vpop.permute.xlu0 %346 }
 0x12a   : > { %v674_v59 = vpop.f32.mrf.mxu0  ;;  %v715_v60 = vpop.f32.mrf.mxu1 }
 0x12b   : > { %v675_v61 = vadd.f32 %v674_v59, %v347_v56  ;;  %v716_v62 = vadd.f32 %v715_v60, %v347_v56 }
 0x12c   : > { %v676_v0 = vpop.f32.mrf.mxu0  ;;  %v717_v1 = vpop.f32.mrf.mxu1 }
 0x12d   : > { %v726_v3 = vmul.f32 0.01, %v675_v61  ;;  %v728_v4 = vmul.f32 0.01, %v716_v62  ;;  %v677_v50 = vadd.f32 %v676_v0, %v347_v56  ;;  %v718_v63 = vadd.f32 %v717_v1, %v347_v56 }
 0x12e   : > { %v678_v5 = vpop.f32.mrf.mxu0  ;;  %v719_v6 = vpop.f32.mrf.mxu1  ;;  %vm722_vm2 = vcmp.ge.f32.partialorder %v675_v61, 0.0  ;;  %vm724_vm3 = vcmp.ge.f32.partialorder %v716_v62, 0.0 }
 0x12f   : > { %vm723_vm4 = vcmp.ge.f32.partialorder %v677_v50, 0.0  ;;  %v727_v7 = vmul.f32 0.01, %v677_v50  ;;  %vm725_vm5 = vcmp.ge.f32.partialorder %v718_v63, 0.0  ;;  %v729_v8 = vmul.f32 0.01, %v718_v63 }
 0x130   : > { %v679_v9 = vpop.f32.mrf.mxu0  ;;  %v720_v10 = vpop.f32.mrf.mxu1  ;;  %v730_v12 = vsel %vm722_vm2, %v675_v61, %v726_v3  ;;  %v732_v13 = vsel %vm724_vm3, %v716_v62, %v728_v4 }
 0x131   : > { %v731_v14 = vsel %vm723_vm4, %v677_v50, %v727_v7  ;;  %v733_v15 = vsel %vm725_vm5, %v718_v63, %v729_v8 }
 0x132   : > { %v738_v16 = vcombine.low %v730_v12, %v731_v14  ;;  %v739_v17 = vcombine.low %v732_v13, %v733_v15 }
 0x134   : > { %v746_v18 = vrot.slane %v738_v16, %v745_v11  ;;  %v753_v19 = vrot.slane %v739_v17, %v745_v11 }
 0x136   : > { %v754_v20 = vcombine.low %v746_v18, %v753_v19 }
 0x138   : > { %756 = vst [vmem:[%s289_s11] sm:$0xff] %v754_v20 }
 0x139 PF: > { %p10_p9 = scmp.ge.s32.totalorder %s1058_s16, 7   ;;  %s1272_s12 = smov %s1012_s13 }
 0x13a   : > { %s1273_s13 = smov %s1067_s19  ;;  %s1274_s14 = smov %s1058_s16 }
 0x13b   :  { %12 = sbr.rel (!%p10_p9) target bundleno = 2 (0x2), region = 90 }

// kernel: wavegan_generator_forward.13
= control target key start
LH: loop header
LB: loop body
LE: loop exit
PB: predicated region body
PF: predicated region fallthrough
CT: control target
= control target key end

     0   :  { %vm110_vm0 = vcmask 1040384   ;;  %v269_v2 = vmov 0   ;;  %vm106_vm1 = vcmask 408576   ;;  %s350_s1 = inlined_call_operand.vmem [shape: bf16[50,512], index: 1, kind: input, shape index: {}]   ;;  %s351_s2 = inlined_call_operand.vmem [shape: f32[5,1], index: 2, kind: input, shape index: {}]   ;;  %s352_s0 = inlined_call_operand.vmem [shape: bf16[5,50], index: 0, kind: input, shape index: {}]   ;;  %s353_s3 = inlined_call_operand.vmem [shape: f32[5,512], index: 3, kind: output, shape index: {}]  }
   0x1   :  { %v28_v0 = vld [vmem:[%s350_s1 + $0x60] sm:$0x11]  ;;  %v29_v1 = vld [vmem:[%s350_s1 + $0x68] sm:$0x11]  ;;  %155 = vmatprep.mubr.bf16.mxu0 %v269_v2  ;;  %196 = vmatprep.mubr.bf16.mxu1 %v269_v2 }
   0x2   :  { %v238_v3 = vcombine.high %v28_v0, %v28_v0  ;;  %v240_v4 = vcombine.high %v29_v1, %v29_v1  ;;  %v237_v5 = vcombine.low %v28_v0, %v28_v0  ;;  %v239_v6 = vcombine.low %v29_v1, %v29_v1  ;;  %v251_v7 = vld [vmem:[%s350_s1 + $0x44] ss:$16 sps:$4 sm:$0xff]   ;;  %246 = vset.pattern.permute.xlu0 %v269_v2  ;;  %v253_v8 = vld [vmem:[%s350_s1 + $0x4c] ss:$16 sps:$4 sm:$0xff]   ;;  %v255_v11 = vld [vmem:[%s350_s1 + $0x40] ss:$16 sps:$4 sm:$0xff]  }
   0x3   :  { %v256_v12 = vld [vmem:[%s350_s1 + $0x48] ss:$16 sps:$4 sm:$0xff]   ;;  %v257_v13 = vld [vmem:[%s350_s1 + $0x24] ss:$16 sps:$4 sm:$0xff]   ;;  %v259_v14 = vld [vmem:[%s350_s1 + $0x2c] ss:$16 sps:$4 sm:$0xff]  }
   0x4   :  { %241 = vmatprep.subr.msk.bf16.mxu0 %vm110_vm0, %v238_v3  ;;  %243 = vmatprep.subr.msk.bf16.mxu1 %vm110_vm0, %v240_v4  ;;  %v112_v9 = vsel %vm110_vm0, %v237_v5, 0  ;;  %v118_v10 = vsel %vm110_vm0, %v239_v6, 0  ;;  %v261_v15 = vld [vmem:[%s350_s1 + $0x20] ss:$16 sps:$4 sm:$0xff]   ;;  %v262_v16 = vld [vmem:[%s350_s1 + $0x28] ss:$16 sps:$4 sm:$0xff]  }
   0x5   :  { %132 = vmatpush1.bf16.msra.mxu0 %v112_v9  ;;  %173 = vmatpush1.bf16.msra.mxu1 %v118_v10  ;;  %v263_v17 = vld [vmem:[%s350_s1 + $0x4] ss:$16 sps:$4 sm:$0xff]   ;;  %v265_v18 = vld [vmem:[%s350_s1 + $0xc] ss:$16 sps:$4 sm:$0xff]   ;;  %v267_v20 = vld [vmem:[%s350_s1] ss:$16 sps:$4 sm:$0xff]  }
   0x6   :  { %133 = vmatprep.subr.bf16.mxu0 %v251_v7  ;;  %174 = vmatprep.subr.bf16.mxu1 %v253_v8  ;;  %v30_v19 = vld [vmem:[%s351_s2] sm:$0x1f]  ;;  %v268_v21 = vld [vmem:[%s350_s1 + $0x8] ss:$16 sps:$4 sm:$0xff]  }
   0x7   :  { %33 = vperm.xlu0 %246, %v30_v19   ;;  %v15_v22 = vld [vmem:[%s352_s0] sm:$0x7] }
   0x9   :  { %134 = vmatpush1.bf16.msra.mxu0 %v255_v11  ;;  %175 = vmatpush1.bf16.msra.mxu1 %v256_v12 }
   0xa   :  { %135 = vmatprep.subr.bf16.mxu0 %v257_v13  ;;  %176 = vmatprep.subr.bf16.mxu1 %v259_v14 }
   0xd   :  { %136 = vmatpush1.bf16.msra.mxu0 %v261_v15  ;;  %177 = vmatpush1.bf16.msra.mxu1 %v262_v16 }
   0xe   :  { %137 = vmatprep.subr.bf16.mxu0 %v263_v17  ;;  %178 = vmatprep.subr.bf16.mxu1 %v265_v18 }
  0x11   :  { %138 = vmatpush1.bf16.msra.mxu0 %v267_v20  ;;  %179 = vmatpush1.bf16.msra.mxu1 %v268_v21 }
  0x14   :  { %242 = vmatmul.mubr.msk.bf16.vlgmr.msra.gmra.mxu0 %vm106_vm1, %v15_v22  ;;  %244 = vmatmul.mubr.msk.bf16.vlgmr.msra.gmra.mxu1 %vm106_vm1, %v15_v22 }
  0x82   :  { %v34_v23 = vpop.permute.xlu0 %33 }
  0xd4   :  { %v157_v24 = vpop.f32.mrf.mxu0  ;;  %v198_v25 = vpop.f32.mrf.mxu1 }
  0xd5   :  { %v158_v26 = vadd.f32 %v157_v24, %v34_v23  ;;  %v199_v27 = vadd.f32 %v198_v25, %v34_v23 }
  0xd6   :  { %v159_v28 = vpop.f32.mrf.mxu0  ;;  %v200_v29 = vpop.f32.mrf.mxu1 }
  0xd7   :  { %vm205_vm2 = vcmp.ge.f32.partialorder %v158_v26, 0.0  ;;  %v209_v30 = vmul.f32 0.01, %v158_v26  ;;  %vm207_vm3 = vcmp.ge.f32.partialorder %v199_v27, 0.0  ;;  %v211_v31 = vmul.f32 0.01, %v199_v27 }
  0xd8   :  { %v160_v32 = vadd.f32 %v159_v28, %v34_v23  ;;  %v201_v33 = vadd.f32 %v200_v29, %v34_v23  ;;  %v161_v34 = vpop.f32.mrf.mxu0  ;;  %v202_v35 = vpop.f32.mrf.mxu1 }
  0xd9   :  { %v213_v36 = vsel %vm205_vm2, %v158_v26, %v209_v30  ;;  %v215_v37 = vsel %vm207_vm3, %v199_v27, %v211_v31 }
  0xda   :  { %217 = vst [vmem:[%s353_s3] sm:$0x1f] %v213_v36  ;;  %219 = vst [vmem:[%s353_s3 + $0x10] sm:$0x1f] %v215_v37  ;;  %vm206_vm4 = vcmp.ge.f32.partialorder %v160_v32, 0.0  ;;  %v210_v38 = vmul.f32 0.01, %v160_v32  ;;  %v162_v40 = vpop.f32.mrf.mxu0  ;;  %v203_v41 = vpop.f32.mrf.mxu1 }
  0xdb   :  { %vm208_vm5 = vcmp.ge.f32.partialorder %v201_v33, 0.0  ;;  %v212_v39 = vmul.f32 0.01, %v201_v33 }
  0xdc   :  { %v214_v42 = vsel %vm206_vm4, %v160_v32, %v210_v38 }
  0xdd   :  { %v216_v43 = vsel %vm208_vm5, %v201_v33, %v212_v39  ;;  %218 = vst [vmem:[%s353_s3 + $0x8] sm:$0x1f] %v214_v42 }
  0xde   :  { %220 = vst [vmem:[%s353_s3 + $0x18] sm:$0x1f] %v216_v43 }

// kernel: wavegan_generator_forward.14
= control target key start
LH: loop header
LB: loop body
LE: loop exit
PB: predicated region body
PF: predicated region fallthrough
CT: control target
= control target key end

     0   :  { %vm132_vm0 = vcmask 1045504   ;;  %vm133_vm1 = vcmask 1046528   ;;  %v251_v1 = vmov 0   ;;  %v252_v2 = vmov 65535   ;;  %s342_s1 = inlined_call_operand.vmem [shape: bf16[125,256], index: 1, kind: input, shape index: {}]   ;;  %s343_s2 = inlined_call_operand.vmem [shape: f32[10,1], index: 2, kind: input, shape index: {}]   ;;  %s344_s0 = inlined_call_operand.vmem [shape: bf16[10,125], index: 0, kind: input, shape index: {}]   ;;  %s345_s3 = inlined_call_operand.vmem [shape: f32[10,256], index: 3, kind: output, shape index: {}]  }
   0x1   :  { %v226_v0 = vld [vmem:[%s342_s1 + $0x74] ss:$8 sps:$4 sm:$0x7f]   ;;  %174 = vmatprep.mubr.bf16.mxu0 %v251_v1  ;;  %225 = vset.pattern.permute.xlu0 %v251_v1  ;;  %v134_v3 = vsel %vm132_vm0, 4294967295, %v252_v2  ;;  %v229_v8 = vld [vmem:[%s342_s1 + $0x64] ss:$8 sps:$4 sm:$0xff]  }
   0x2   :  { %v228_v4 = vld [vmem:[%s342_s1 + $0x70] ss:$8 sps:$4 sm:$0x7f]   ;;  %v135_v5 = vsel %vm133_vm1, %v134_v3, 0  ;;  %v231_v9 = vld [vmem:[%s342_s1 + $0x60] ss:$8 sps:$4 sm:$0xff]  }
   0x3   :  { %v140_v6 = vand.u32 %v226_v0, %v135_v5  ;;  %v137_v7 = vand.u32 %v228_v4, %v135_v5  ;;  %v232_v10 = vld [vmem:[%s342_s1 + $0x54] ss:$8 sps:$4 sm:$0xff]   ;;  %v234_v11 = vld [vmem:[%s342_s1 + $0x50] ss:$8 sps:$4 sm:$0xff]   ;;  %v235_v12 = vld [vmem:[%s342_s1 + $0x44] ss:$8 sps:$4 sm:$0xff]  }
   0x4   :  { %v33_v13 = vld [vmem:[%s343_s2] sm:$0xff]  ;;  %v34_v14 = vld [vmem:[%s343_s2 + $0x8] sm:$0x3]  ;;  %v238_v16 = vld [vmem:[%s342_s1 + $0x34] ss:$8 sps:$4 sm:$0xff]   ;;  %vm128_vm2 = vcmask 1022976  }
   0x5   :  { %142 = vmatprep.subr.bf16.mxu0 %v140_v6  ;;  %37 = vperm.xlu0 %225, %v33_v13   ;;  %v237_v15 = vld [vmem:[%s342_s1 + $0x40] ss:$8 sps:$4 sm:$0xff]   ;;  %v240_v17 = vld [vmem:[%s342_s1 + $0x30] ss:$8 sps:$4 sm:$0xff]   ;;  %v241_v18 = vld [vmem:[%s342_s1 + $0x24] ss:$8 sps:$4 sm:$0xff]  }
   0x6   :  { %143 = vmatpush1.bf16.msra.mxu0 %v137_v7  ;;  %v243_v19 = vld [vmem:[%s342_s1 + $0x20] ss:$8 sps:$4 sm:$0xff]   ;;  %v244_v20 = vld [vmem:[%s342_s1 + $0x14] ss:$8 sps:$4 sm:$0xff]   ;;  %v246_v21 = vld [vmem:[%s342_s1 + $0x10] ss:$8 sps:$4 sm:$0xff]  }
   0x7   :  { %144 = vmatprep.subr.bf16.mxu0 %v229_v8  ;;  %v247_v22 = vld [vmem:[%s342_s1 + $0x4] ss:$8 sps:$4 sm:$0xff]   ;;  %v249_v23 = vld [vmem:[%s342_s1] ss:$8 sps:$4 sm:$0xff]  }
   0x8   :  { %v250_v24 = vld [vmem:[%s344_s0] sm:$0x1f]  }
   0x9   :  { %42 = vperm.xlu0 %225, %v34_v14  }
   0xa   :  { %145 = vmatpush1.bf16.msra.mxu0 %v231_v9 }
   0xb   :  { %146 = vmatprep.subr.bf16.mxu0 %v232_v10 }
   0xe   :  { %147 = vmatpush1.bf16.msra.mxu0 %v234_v11 }
   0xf   :  { %148 = vmatprep.subr.bf16.mxu0 %v235_v12 }
  0x12   :  { %149 = vmatpush1.bf16.msra.mxu0 %v237_v15 }
  0x13   :  { %150 = vmatprep.subr.bf16.mxu0 %v238_v16 }
  0x16   :  { %151 = vmatpush1.bf16.msra.mxu0 %v240_v17 }
  0x17   :  { %152 = vmatprep.subr.bf16.mxu0 %v241_v18 }
  0x1a   :  { %153 = vmatpush1.bf16.msra.mxu0 %v243_v19 }
  0x1b   :  { %154 = vmatprep.subr.bf16.mxu0 %v244_v20 }
  0x1e   :  { %155 = vmatpush1.bf16.msra.mxu0 %v246_v21 }
  0x1f   :  { %156 = vmatprep.subr.bf16.mxu0 %v247_v22 }
  0x22   :  { %157 = vmatpush1.bf16.msra.mxu0 %v249_v23 }
  0x25   :  { %222 = vmatmul.mubr.msk.bf16.vlgmr.msra.gmra.mxu0 %vm128_vm2, %v250_v24 }
  0x80   :  { %v38_v25 = vpop.permute.xlu0 %37 }
  0x84   :  { %v43_v31 = vpop.permute.xlu0 %42 }
  0xe5   :  { %v176_v26 = vpop.f32.mrf.mxu0 }
  0xe6   :  { %v177_v27 = vadd.f32 %v176_v26, %v38_v25 }
  0xe7   :  { %v178_v28 = vpop.f32.mrf.mxu0 }
  0xe8   :  { %vm185_vm3 = vcmp.ge.f32.partialorder %v177_v27, 0.0  ;;  %v189_v29 = vmul.f32 0.01, %v177_v27  ;;  %v179_v30 = vadd.f32 %v178_v28, %v38_v25 }
  0xe9   :  { %v180_v32 = vpop.f32.mrf.mxu0 }
  0xea   :  { %v193_v33 = vsel %vm185_vm3, %v177_v27, %v189_v29  ;;  %vm186_vm4 = vcmp.ge.f32.partialorder %v179_v30, 0.0  ;;  %v190_v34 = vmul.f32 0.01, %v179_v30  ;;  %v181_v35 = vadd.f32 %v180_v32, %v43_v31 }
  0xeb   :  { %197 = vst [vmem:[%s345_s3] sm:$0xff] %v193_v33  ;;  %v182_v36 = vpop.f32.mrf.mxu0 }
  0xec   :  { %v194_v37 = vsel %vm186_vm4, %v179_v30, %v190_v34  ;;  %vm187_vm5 = vcmp.ge.f32.partialorder %v181_v35, 0.0  ;;  %v191_v38 = vmul.f32 0.01, %v181_v35  ;;  %v183_v39 = vadd.f32 %v182_v36, %v43_v31 }
  0xed   :  { %198 = vst [vmem:[%s345_s3 + $0x8] sm:$0xff] %v194_v37 }
  0xee   :  { %v195_v40 = vsel %vm187_vm5, %v181_v35, %v191_v38  ;;  %vm188_vm6 = vcmp.ge.f32.partialorder %v183_v39, 0.0  ;;  %v192_v41 = vmul.f32 0.01, %v183_v39 }
  0xef   :  { %199 = vst [vmem:[%s345_s3 + $0x10] sm:$0x3] %v195_v40 }
  0xf0   :  { %v196_v42 = vsel %vm188_vm6, %v183_v39, %v192_v41 }
  0xf1   :  { %200 = vst [vmem:[%s345_s3 + $0x18] sm:$0x3] %v196_v42 }

// kernel: wavegan_generator_forward.15
= control target key start
LH: loop header
LB: loop body
LE: loop exit
PB: predicated region body
PF: predicated region fallthrough
CT: control target
= control target key end

     0   :  { %vm195_vm0 = vcmask 1044480   ;;  %v361_v1 = vmov 0   ;;  %vm188_vm1 = vcmask 998400   ;;  %s466_s1 = inlined_call_operand.vmem [shape: bf16[250,128], index: 1, kind: input, shape index: {}]   ;;  %s467_s0 = inlined_call_operand.vmem [shape: bf16[30,250], index: 0, kind: input, shape index: {}]   ;;  %s468_s2 = inlined_call_operand.vmem [shape: f32[30,1], index: 2, kind: input, shape index: {}]   ;;  %s469_s3 = inlined_call_operand.vmem [shape: f32[30,128], index: 3, kind: output, shape index: {}]  }
   0x1   :  { %v339_v0 = vld [vmem:[%s466_s1 + $0x78] sm:$0x1f]   ;;  %338 = vset.pattern.permute.xlu1 %v361_v1  ;;  %337 = vset.pattern.permute.xlu0 %v361_v1  ;;  %v341_v3 = vld [vmem:[%s466_s1 + $0x70] sm:$0xff]   ;;  %v343_v5 = vld [vmem:[%s466_s1 + $0x68] sm:$0xff]  }
   0x2   :  { %v340_v2 = vld [vmem:[%s466_s1 + $0x38] sm:$0xff]   ;;  %334 = vmatprep.subr.msk.bf16.mxu0 %vm195_vm0, %v339_v0  ;;  %335 = vmatprep.subr.msk.bf16.mxu1 %vm195_vm0, %v339_v0  ;;  %v342_v4 = vld [vmem:[%s466_s1 + $0x30] sm:$0xff]   ;;  %v344_v6 = vld [vmem:[%s466_s1 + $0x28] sm:$0xff]  }
   0x3   :  { %291 = vmatpush3.bf16.msra.mxu0 %v340_v2  ;;  %326 = vmatpush3.bf16.msra.mxu1 %v340_v2  ;;  %v345_v7 = vld [vmem:[%s466_s1 + $0x60] sm:$0xff]   ;;  %v347_v9 = vld [vmem:[%s466_s1 + $0x58] sm:$0xff]   ;;  %v349_v11 = vld [vmem:[%s466_s1 + $0x50] sm:$0xff]  }
   0x4   :  { %292 = vmatprep.subr.bf16.mxu0 %v341_v3  ;;  %319 = vmatprep.subr.bf16.mxu1 %v341_v3  ;;  %v346_v8 = vld [vmem:[%s466_s1 + $0x20] sm:$0xff]   ;;  %v348_v10 = vld [vmem:[%s466_s1 + $0x18] sm:$0xff]   ;;  %v350_v14 = vld [vmem:[%s466_s1 + $0x10] sm:$0xff]  }
   0x5   :  { %v357_v12 = vld [vmem:[%s467_s0 + $0x4] ss:$8 sps:$4 sm:$0xff]   ;;  %v360_v13 = vld [vmem:[%s467_s0 + $0x14] ss:$8 sps:$4 sm:$0x7f]  }
   0x6   :  { %v53_v15 = vld [vmem:[%s468_s2 + $0x10] sm:$0xff]  ;;  %v51_v16 = vld [vmem:[%s468_s2] sm:$0xff]  ;;  %v351_v17 = vld [vmem:[%s466_s1 + $0x48] sm:$0xff]   ;;  %288 = vmatprep.mubr.msk.bf16.mxu0 %vm188_vm1, %v357_v12  ;;  %289 = vmatprep.mubr.msk.bf16.mxu1 %vm188_vm1, %v360_v13 }
   0x7   :  { %293 = vmatpush3.bf16.msra.mxu0 %v342_v4  ;;  %327 = vmatpush3.bf16.msra.mxu1 %v342_v4  ;;  %v352_v18 = vld [vmem:[%s466_s1 + $0x8] sm:$0xff]   ;;  %v54_v19 = vld [vmem:[%s468_s2 + $0x18] sm:$0x3f]  ;;  %v353_v21 = vld [vmem:[%s466_s1 + $0x40] sm:$0xff]  }
   0x8   :  { %294 = vmatprep.subr.bf16.mxu0 %v343_v5  ;;  %320 = vmatprep.subr.bf16.mxu1 %v343_v5  ;;  %v52_v20 = vld [vmem:[%s468_s2 + $0x8] sm:$0xff]  ;;  %v354_v22 = vld [vmem:[%s466_s1] sm:$0xff]   ;;  %v358_v24 = vld [vmem:[%s467_s0 + $0x10] ss:$8 sps:$4 sm:$0x7f]  }
   0x9   :  { %67 = vperm.xlu1 %338, %v53_v15   ;;  %57 = vperm.xlu0 %337, %v51_v16   ;;  %v355_v23 = vld [vmem:[%s467_s0] ss:$8 sps:$4 sm:$0xff]  }
   0xb   :  { %295 = vmatpush3.bf16.msra.mxu0 %v344_v6  ;;  %328 = vmatpush3.bf16.msra.mxu1 %v344_v6 }
   0xc   :  { %296 = vmatprep.subr.bf16.mxu0 %v345_v7  ;;  %321 = vmatprep.subr.bf16.mxu1 %v345_v7 }
   0xd   :  { %72 = vperm.xlu1 %338, %v54_v19   ;;  %62 = vperm.xlu0 %337, %v52_v20  }
   0xf   :  { %297 = vmatpush3.bf16.msra.mxu0 %v346_v8  ;;  %329 = vmatpush3.bf16.msra.mxu1 %v346_v8 }
  0x10   :  { %298 = vmatprep.subr.bf16.mxu0 %v347_v9  ;;  %322 = vmatprep.subr.bf16.mxu1 %v347_v9 }
  0x13   :  { %299 = vmatpush3.bf16.msra.mxu0 %v348_v10  ;;  %330 = vmatpush3.bf16.msra.mxu1 %v348_v10 }
  0x14   :  { %300 = vmatprep.subr.bf16.mxu0 %v349_v11  ;;  %323 = vmatprep.subr.bf16.mxu1 %v349_v11 }
  0x17   :  { %301 = vmatpush3.bf16.msra.mxu0 %v350_v14  ;;  %331 = vmatpush3.bf16.msra.mxu1 %v350_v14 }
  0x18   :  { %302 = vmatprep.subr.bf16.mxu0 %v351_v17  ;;  %324 = vmatprep.subr.bf16.mxu1 %v351_v17 }
  0x1b   :  { %303 = vmatpush3.bf16.msra.mxu0 %v352_v18  ;;  %332 = vmatpush3.bf16.msra.mxu1 %v352_v18 }
  0x1c   :  { %304 = vmatprep.subr.bf16.mxu0 %v353_v21  ;;  %325 = vmatprep.subr.bf16.mxu1 %v353_v21 }
  0x1f   :  { %305 = vmatpush3.bf16.msra.mxu0 %v354_v22  ;;  %333 = vmatpush3.bf16.msra.mxu1 %v354_v22 }
  0x22   :  { %232 = vmatmul.mubr.bf16.vlgmr.msra.gmra.mxu0 %v355_v23  ;;  %240 = vmatmul.mubr.bf16.vlgmr.msra.gmra.mxu1 %v358_v24 }
  0x84   :  { %v68_v29 = vpop.permute.xlu1 %67  ;;  %v58_v30 = vpop.permute.xlu0 %57 }
  0x88   :  { %v73_v45 = vpop.permute.xlu1 %72  ;;  %v63_v46 = vpop.permute.xlu0 %62 }
  0xe2   :  { %v306_v25 = vpop.f32.mrf.mxu0  ;;  %v312_v26 = vpop.f32.mrf.mxu1 }
  0xe4   :  { %v307_v27 = vpop.f32.mrf.mxu0  ;;  %v313_v28 = vpop.f32.mrf.mxu1 }
  0xe5   :  { %v308_v31 = vadd.f32 %v307_v27, %v306_v25  ;;  %v314_v32 = vadd.f32 %v313_v28, %v312_v26 }
  0xe6   :  { %v309_v33 = vpop.f32.mrf.mxu0  ;;  %v315_v34 = vpop.f32.mrf.mxu1 }
  0xe7   :  { %v234_v35 = vadd.f32 %v308_v31, %v58_v30  ;;  %v242_v36 = vadd.f32 %v314_v32, %v68_v29 }
  0xe8   :  { %v310_v37 = vpop.f32.mrf.mxu0  ;;  %v316_v38 = vpop.f32.mrf.mxu1 }
  0xe9   :  { %vm248_vm2 = vcmp.ge.f32.partialorder %v234_v35, 0.0  ;;  %v252_v39 = vmul.f32 0.01, %v234_v35  ;;  %vm250_vm3 = vcmp.ge.f32.partialorder %v242_v36, 0.0  ;;  %v254_v40 = vmul.f32 0.01, %v242_v36 }
  0xea   :  { %v311_v41 = vadd.f32 %v310_v37, %v309_v33  ;;  %v317_v42 = vadd.f32 %v316_v38, %v315_v34 }
  0xeb   :  { %v256_v43 = vsel %vm248_vm2, %v234_v35, %v252_v39  ;;  %v258_v44 = vsel %vm250_vm3, %v242_v36, %v254_v40 }
  0xec   :  { %260 = vst [vmem:[%s469_s3] sm:$0xff] %v256_v43  ;;  %262 = vst [vmem:[%s469_s3 + $0x10] sm:$0xff] %v258_v44  ;;  %v237_v47 = vadd.f32 %v311_v41, %v63_v46  ;;  %v245_v48 = vadd.f32 %v317_v42, %v73_v45 }
  0xee   :  { %vm249_vm4 = vcmp.ge.f32.partialorder %v237_v47, 0.0  ;;  %v253_v49 = vmul.f32 0.01, %v237_v47  ;;  %vm251_vm5 = vcmp.ge.f32.partialorder %v245_v48, 0.0  ;;  %v255_v50 = vmul.f32 0.01, %v245_v48 }
  0xf0   :  { %v257_v51 = vsel %vm249_vm4, %v237_v47, %v253_v49  ;;  %v259_v52 = vsel %vm251_vm5, %v245_v48, %v255_v50 }
  0xf1   :  { %261 = vst [vmem:[%s469_s3 + $0x8] sm:$0xff] %v257_v51  ;;  %263 = vst [vmem:[%s469_s3 + $0x18] sm:$0x3f] %v259_v52 }

// kernel: wavegan_generator_forward.16
= control target key start
LH: loop header
LB: loop body
LE: loop exit
PB: predicated region body
PF: predicated region fallthrough
CT: control target
= control target key end

     0   :  { %v1039_v1 = vmov 0   ;;  %vm573_vm0 = vcmask 1046528   ;;  %vm560_vm1 = vcmask 900096   ;;  %s1333_s1 = inlined_call_operand.vmem [shape: bf16[750,128], index: 1, kind: input, shape index: {}]   ;;  %s1334_s0 = inlined_call_operand.vmem [shape: bf16[50,750], index: 0, kind: input, shape index: {}]   ;;  %s1335_s2 = inlined_call_operand.vmem [shape: f32[50,1], index: 2, kind: input, shape index: {}]   ;;  %s1336_s3 = inlined_call_operand.vmem [shape: f32[50,128], index: 3, kind: output, shape index: {}]  }
   0x1   :  { %v959_v0 = vld [vmem:[%s1333_s1 + $0x78] sm:$0xff]   ;;  %705 = vmatprep.subr.bf16.mxu0 %v1039_v1  ;;  %957 = vset.pattern.permute.xlu0 %v1039_v1  ;;  %v961_v3 = vld [vmem:[%s1333_s1 + $0x70] sm:$0xff]   ;;  %v964_v6 = vld [vmem:[%s1333_s1 + $0x68] sm:$0xff]  }
   0x2   :  { %v960_v2 = vld [vmem:[%s1333_s1 + $0x38] sm:$0xff]   ;;  %958 = vset.pattern.permute.xlu1 %v1039_v1  ;;  %876 = vmatprep.subr.bf16.mxu1 %v959_v0  ;;  %v962_v4 = vld [vmem:[%s1333_s1 + $0x30] sm:$0xff]   ;;  %v965_v7 = vld [vmem:[%s1333_s1 + $0x28] sm:$0xff]  }
   0x3   :  { %877 = vmatpush3.bf16.msra.mxu1 %v960_v2  ;;  %v963_v5 = vld [vmem:[%s1333_s1 + $0x138] sm:$0xff]   ;;  %v966_v8 = vld [vmem:[%s1333_s1 + $0x130] sm:$0xff]   ;;  %v967_v9 = vld [vmem:[%s1333_s1 + $0x60] sm:$0xff]  }
   0x4   :  { %878 = vmatprep.subr.bf16.mxu1 %v961_v3  ;;  %706 = vmatpush1.bf16.msra.mxu0 %v963_v5  ;;  %v969_v10 = vld [vmem:[%s1333_s1 + $0x128] sm:$0xff]   ;;  %v968_v11 = vld [vmem:[%s1333_s1 + $0x20] sm:$0xff]   ;;  %v970_v12 = vld [vmem:[%s1333_s1 + $0x58] sm:$0xff]  }
   0x5   :  { %707 = vmatprep.subr.bf16.mxu0 %v1039_v1  ;;  %v972_v13 = vld [vmem:[%s1333_s1 + $0x120] sm:$0xff]   ;;  %v971_v14 = vld [vmem:[%s1333_s1 + $0x18] sm:$0xff]   ;;  %v973_v15 = vld [vmem:[%s1333_s1 + $0x50] sm:$0xff]  }
   0x6   :  { %v975_v16 = vld [vmem:[%s1333_s1 + $0x118] sm:$0xff]   ;;  %v974_v17 = vld [vmem:[%s1333_s1 + $0x10] sm:$0xff]   ;;  %v976_v18 = vld [vmem:[%s1333_s1 + $0x48] sm:$0xff]  }
   0x7   :  { %879 = vmatpush3.bf16.msra.mxu1 %v962_v4  ;;  %v977_v19 = vld [vmem:[%s1333_s1 + $0x8] sm:$0xff]   ;;  %v978_v20 = vld [vmem:[%s1333_s1 + $0x110] sm:$0xff]   ;;  %v979_v21 = vld [vmem:[%s1333_s1 + $0x40] sm:$0xff]  }
   0x8   :  { %880 = vmatprep.subr.bf16.mxu1 %v964_v6  ;;  %708 = vmatpush1.bf16.msra.mxu0 %v966_v8  ;;  %v984_v22 = vld [vmem:[%s1334_s0 + $0x4] ss:$24 sps:$4 sm:$0xff]   ;;  %v981_v23 = vld [vmem:[%s1333_s1 + $0x108] sm:$0xff]   ;;  %v982_v25 = vld [vmem:[%s1334_s0] ss:$24 sps:$4 sm:$0xff]  }
   0x9   :  { %709 = vmatprep.subr.bf16.mxu0 %v1039_v1  ;;  %609 = vmatprep.mubr.bf16.mxu1 %v984_v22  ;;  %v980_v24 = vld [vmem:[%s1333_s1] sm:$0xff]   ;;  %v985_v26 = vld [vmem:[%s1333_s1 + $0xf8] sm:$0xff]   ;;  %v988_v29 = vld [vmem:[%s1333_s1 + $0xf0] sm:$0xff]  }
   0xa   :  { %v986_v27 = vld [vmem:[%s1333_s1 + $0xb8] sm:$0xff]   ;;  %v987_v28 = vld [vmem:[%s1333_s1 + $0x100] sm:$0xff]   ;;  %v990_v30 = vld [vmem:[%s1333_s1 + $0x170] sm:$0x7f]  }
   0xb   :  { %881 = vmatpush3.bf16.msra.mxu1 %v965_v7  ;;  %v991_v31 = vld [vmem:[%s1334_s0 + $0x34] ss:$24 sps:$4 sm:$0xff]   ;;  %v575_v33 = vsel %vm573_vm0, %v990_v30, 0  ;;  %v993_v35 = vld [vmem:[%s1334_s0 + $0x30] ss:$24 sps:$4 sm:$0xff]   ;;  %v997_v38 = vld [vmem:[%s1333_s1 + $0xe0] sm:$0xff]  }
   0xc   :  { %882 = vmatprep.subr.bf16.mxu1 %v967_v9  ;;  %710 = vmatpush1.bf16.msra.mxu0 %v969_v10  ;;  %v989_v32 = vld [vmem:[%s1333_s1 + $0xb0] sm:$0xff]   ;;  %v994_v34 = vld [vmem:[%s1333_s1 + $0xe8] sm:$0xff]   ;;  %v1000_v39 = vld [vmem:[%s1334_s0 + $0x64] ss:$24 sps:$4 sm:$0xff]  }
   0xd   :  { %711 = vmatprep.subr.bf16.mxu0 %v1039_v1  ;;  %v995_v36 = vld [vmem:[%s1333_s1 + $0xa8] sm:$0xff]   ;;  %v999_v40 = vld [vmem:[%s1333_s1 + $0x160] sm:$0xff]   ;;  %v1003_v43 = vld [vmem:[%s1333_s1 + $0xd8] sm:$0xff]  }
   0xe   :  { %v996_v37 = vld [vmem:[%s1333_s1 + $0x168] sm:$0xff]   ;;  %v998_v41 = vld [vmem:[%s1333_s1 + $0xa0] sm:$0xff]   ;;  %v33_v44 = vld [vmem:[%s1334_s0 + $0x90] sm:$0x11] }
   0xf   :  { %883 = vmatpush3.bf16.msra.mxu1 %v968_v11  ;;  %v1002_v42 = vld [vmem:[%s1334_s0 + $0x60] ss:$24 sps:$4 sm:$0xff]   ;;  %v1006_v47 = vld [vmem:[%s1333_s1 + $0xd0] sm:$0xff]   ;;  %v820_v48 = vcombine.high %v33_v44, %v33_v44  ;;  %v1011_v51 = vld [vmem:[%s1333_s1 + $0xc8] sm:$0xff]   ;;  %v819_v53 = vcombine.low %v33_v44, %v33_v44 }
  0x10   :  { %884 = vmatprep.subr.bf16.mxu1 %v970_v12  ;;  %712 = vmatpush1.bf16.msra.mxu0 %v972_v13  ;;  %v1005_v45 = vld [vmem:[%s1333_s1 + $0x158] sm:$0xff]   ;;  %v1008_v49 = vld [vmem:[%s1333_s1 + $0x150] sm:$0xff]   ;;  %v1013_v54 = vld [vmem:[%s1333_s1 + $0x148] sm:$0xff]  }
  0x11   :  { %713 = vmatprep.subr.bf16.mxu0 %v1039_v1  ;;  %v1004_v46 = vld [vmem:[%s1333_s1 + $0x98] sm:$0xff]   ;;  %v1007_v50 = vld [vmem:[%s1333_s1 + $0x90] sm:$0xff]   ;;  %v1012_v55 = vld [vmem:[%s1333_s1 + $0x88] sm:$0xff]  }
  0x12   :  { %v1022_v52 = vld [vmem:[%s1334_s0 + $0x14] ss:$24 sps:$4 sm:$0xff]   ;;  %v1014_v56 = vld [vmem:[%s1333_s1 + $0xc0] sm:$0xff]   ;;  %v1020_v62 = vld [vmem:[%s1334_s0 + $0x10] ss:$24 sps:$4 sm:$0xff]  }
  0x13   :  { %885 = vmatpush3.bf16.msra.mxu1 %v971_v14  ;;  %v1019_v57 = vld [vmem:[%s1334_s0 + $0xc] ss:$24 sps:$4 sm:$0xff]   ;;  %872 = vmatprep.mubr.msk.bf16.mxu0 %vm560_vm1, %v1022_v52  ;;  %v132_v61 = vld [vmem:[%s1335_s2 + $0x10] sm:$0xff]  ;;  %v1017_v63 = vld [vmem:[%s1334_s0 + $0x8] ss:$24 sps:$4 sm:$0xff]  }
  0x14   :  { %886 = vmatprep.subr.bf16.mxu1 %v973_v15  ;;  %714 = vmatpush1.bf16.msra.mxu0 %v975_v16  ;;  %v1016_v58 = vld [vmem:[%s1333_s1 + $0x140] sm:$0xff]   ;;  %v1023_v2 = vld [vmem:[%s1334_s0 + $0x3c] ss:$24 sps:$4 sm:$0xff]   ;;  %v135_v5 = vld [vmem:[%s1335_s2 + $0x28] sm:$0xff] }
  0x15   :  { %715 = vmatprep.subr.bf16.mxu0 %v1039_v1  ;;  %v1015_v59 = vld [vmem:[%s1333_s1 + $0x80] sm:$0xff]   ;;  %149 = vperm.xlu1 %958, %v132_v61   ;;  %v133_v3 = vld [vmem:[%s1335_s2 + $0x18] sm:$0xff]  ;;  %v1032_v8 = vld [vmem:[%s1334_s0 + $0x74] ss:$24 sps:$4 sm:$0xff]  }
  0x16   :  { %v130_v60 = vld [vmem:[%s1335_s2] sm:$0xff]  ;;  %v1025_v7 = vld [vmem:[%s1334_s0 + $0x38] ss:$24 sps:$4 sm:$0xff]  }
  0x17   :  { %887 = vmatpush3.bf16.msra.mxu1 %v974_v17  ;;  %139 = vperm.xlu0 %957, %v130_v60   ;;  %v1026_v0 = vld [vmem:[%s1334_s0 + $0x44] ss:$24 sps:$4 sm:$0xff]   ;;  %v1028_v6 = vld [vmem:[%s1334_s0 + $0x40] ss:$24 sps:$4 sm:$0xff]   ;;  %v136_v9 = vld [vmem:[%s1335_s2 + $0x30] sm:$0x3] }
  0x18   :  { %888 = vmatprep.subr.bf16.mxu1 %v976_v18  ;;  %716 = vmatpush1.bf16.msra.mxu0 %v978_v20  ;;  %v134_v4 = vld [vmem:[%s1335_s2 + $0x20] sm:$0xff]  ;;  %v34_v12 = vld [vmem:[%s1334_s0 + $0x98] sm:$0x11]  ;;  %v1034_v13 = vld [vmem:[%s1334_s0 + $0x70] ss:$24 sps:$4 sm:$0xff]  }
  0x19   :  { %717 = vmatprep.subr.bf16.mxu0 %v1039_v1  ;;  %154 = vperm.xlu1 %958, %v133_v3   ;;  %v1029_v10 = vld [vmem:[%s1334_s0 + $0x6c] ss:$24 sps:$4 sm:$0xff]   ;;  %v1031_v14 = vld [vmem:[%s1334_s0 + $0x68] ss:$24 sps:$4 sm:$0xff]   ;;  %v822_v16 = vcombine.high %v34_v12, %v34_v12  ;;  %v821_v18 = vcombine.low %v34_v12, %v34_v12 }
  0x1a   :  { %v35_v11 = vld [vmem:[%s1334_s0 + $0xa0] sm:$0x11] }
  0x1b   :  { %889 = vmatpush3.bf16.msra.mxu1 %v977_v19  ;;  %v824_v15 = vcombine.high %v35_v11, %v35_v11  ;;  %v823_v17 = vcombine.low %v35_v11, %v35_v11 }
  0x1c   :  { %890 = vmatprep.subr.bf16.mxu1 %v979_v21  ;;  %718 = vmatpush1.bf16.msra.mxu0 %v981_v23 }
  0x1d   :  { %719 = vmatprep.subr.bf16.mxu0 %v1039_v1  ;;  %164 = vperm.xlu1 %958, %v135_v5  }
  0x1f   :  { %891 = vmatpush3.bf16.msra.mxu1 %v980_v24 }
  0x20   :  { %916 = vmatprep.subr.bf16.mxu1 %v985_v26  ;;  %720 = vmatpush1.bf16.msra.mxu0 %v987_v28 }
  0x21   :  { %723 = vmatprep.subr.bf16.mxu0 %v1039_v1 }
  0x22   :  { %610 = vmatmul.mubr.bf16.vlgmr.msra.gmra.mxu1 %v982_v25 }
  0x23   :  { %917 = vmatpush3.bf16.msra.mxu1 %v986_v27  ;;  %617 = vmatprep.mubr.bf16.mxu1 %v991_v31 }
  0x24   :  { %918 = vmatprep.subr.bf16.mxu1 %v988_v29  ;;  %724 = vmatpush2.bf16.msra.mxu0 %v575_v33 }
  0x25   :  { %725 = vmatprep.subr.bf16.mxu0 %v1039_v1 }
  0x27   :  { %919 = vmatpush3.bf16.msra.mxu1 %v989_v32 }
  0x28   :  { %920 = vmatprep.subr.bf16.mxu1 %v994_v34  ;;  %726 = vmatpush2.bf16.msra.mxu0 %v996_v37 }
  0x29   :  { %727 = vmatprep.subr.bf16.mxu0 %v1039_v1 }
  0x2a   :  { %618 = vmatmul.mubr.bf16.gmra.mxu1 %v993_v35 }
  0x2b   :  { %921 = vmatpush3.bf16.msra.mxu1 %v995_v36  ;;  %625 = vmatprep.mubr.bf16.mxu1 %v1000_v39 }
  0x2c   :  { %922 = vmatprep.subr.bf16.mxu1 %v997_v38  ;;  %728 = vmatpush2.bf16.msra.mxu0 %v999_v40 }
  0x2d   :  { %729 = vmatprep.subr.bf16.mxu0 %v1039_v1 }
  0x2f   :  { %923 = vmatpush3.bf16.msra.mxu1 %v998_v41 }
  0x30   :  { %924 = vmatprep.subr.bf16.mxu1 %v1003_v43  ;;  %730 = vmatpush2.bf16.msra.mxu0 %v1005_v45 }
  0x31   :  { %731 = vmatprep.subr.bf16.mxu0 %v1039_v1 }
  0x32   :  { %626 = vmatmul.mubr.bf16.gmra.mxu1 %v1002_v42 }
  0x33   :  { %925 = vmatpush3.bf16.msra.mxu1 %v1004_v46  ;;  %633 = vmatprep.mubr.bf16.mxu1 %v820_v48 }
  0x34   :  { %926 = vmatprep.subr.bf16.mxu1 %v1006_v47  ;;  %732 = vmatpush2.bf16.msra.mxu0 %v1008_v49 }
  0x35   :  { %733 = vmatprep.subr.bf16.mxu0 %v1039_v1 }
  0x37   :  { %927 = vmatpush3.bf16.msra.mxu1 %v1007_v50 }
  0x38   :  { %928 = vmatprep.subr.bf16.mxu1 %v1011_v51  ;;  %734 = vmatpush2.bf16.msra.mxu0 %v1013_v54 }
  0x39   :  { %735 = vmatprep.subr.bf16.mxu0 %v1039_v1  ;;  %v131_v1 = vld [vmem:[%s1335_s2 + $0x8] sm:$0xff] }
  0x3a   :  { %634 = vmatmul.mubr.bf16.gmra.mxu1 %v819_v53  ;;  %144 = vperm.xlu0 %957, %v131_v1  }
  0x3b   :  { %929 = vmatpush3.bf16.msra.mxu1 %v1012_v55  ;;  %673 = vmatprep.mubr.bf16.mxu1 %v1019_v57 }
  0x3c   :  { %930 = vmatprep.subr.bf16.mxu1 %v1014_v56  ;;  %736 = vmatpush2.bf16.msra.mxu0 %v1016_v58 }
  0x3e   :  { %159 = vperm.xlu0 %957, %v134_v4  }
  0x3f   :  { %931 = vmatpush3.bf16.msra.mxu1 %v1015_v59  ;;  %738 = vmatmul.mubr.bf16.vlgmr.msra.gmra.mxu0 %v1020_v62 }
  0x40   :  { %873 = vmatprep.mubr.msk.bf16.mxu0 %vm560_vm1, %v1026_v0 }
  0x42   :  { %674 = vmatmul.mubr.bf16.vlgmr.msra.gmra.mxu1 %v1017_v63  ;;  %169 = vperm.xlu0 %957, %v136_v9  }
  0x43   :  { %681 = vmatprep.mubr.bf16.mxu1 %v1023_v2 }
  0x47   :  { %746 = vmatmul.mubr.bf16.gmra.mxu0 %v1028_v6 }
  0x48   :  { %874 = vmatprep.mubr.msk.bf16.mxu0 %vm560_vm1, %v1032_v8 }
  0x4a   :  { %682 = vmatmul.mubr.bf16.gmra.mxu1 %v1025_v7 }
  0x4b   :  { %689 = vmatprep.mubr.bf16.mxu1 %v1029_v10 }
  0x4f   :  { %754 = vmatmul.mubr.bf16.gmra.mxu0 %v1034_v13 }
  0x50   :  { %875 = vmatprep.mubr.msk.bf16.mxu0 %vm560_vm1, %v824_v15 }
  0x52   :  { %690 = vmatmul.mubr.bf16.gmra.mxu1 %v1031_v14 }
  0x53   :  { %697 = vmatprep.mubr.bf16.mxu1 %v822_v16 }
  0x57   :  { %762 = vmatmul.mubr.bf16.gmra.mxu0 %v823_v17 }
  0x5a   :  { %698 = vmatmul.mubr.bf16.gmra.mxu1 %v821_v18 }
  0x90   :  { %v150_v47 = vpop.permute.xlu1 %149 }
  0x92   :  { %v140_v34 = vpop.permute.xlu0 %139 }
  0x94   :  { %v155_v63 = vpop.permute.xlu1 %154 }
  0xb5   :  { %v145_v45 = vpop.permute.xlu0 %144 }
  0xb9   :  { %v160_v15 = vpop.permute.xlu0 %159 }
  0xe2   :  { %v892_v19 = vpop.f32.mrf.mxu1 }
  0xe4   :  { %v893_v20 = vpop.f32.mrf.mxu1 }
  0xe5   :  { %v894_v36 = vadd.f32 %v893_v20, %v892_v19 }
  0xe6   :  { %v895_v21 = vpop.f32.mrf.mxu1 }
  0xe7   :  { %v612_v41 = vadd.f32 %v894_v36, %v140_v34 }
  0xe8   :  { %v896_v22 = vpop.f32.mrf.mxu1 }
  0xe9   :  { %v897_v42 = vadd.f32 %v896_v22, %v895_v21 }
  0xea   :  { %v898_v23 = vpop.f32.mrf.mxu1 }
  0xeb   :  { %v615_v51 = vadd.f32 %v897_v42, %v145_v45 }
  0xec   :  { %v899_v24 = vpop.f32.mrf.mxu1 }
  0xed   :  { %v900_v52 = vadd.f32 %v899_v24, %v898_v23  ;;  %v165_v23 = vpop.permute.xlu1 %164 }
  0xee   :  { %v901_v25 = vpop.f32.mrf.mxu1 }
  0xef   :  { %v620_v62 = vadd.f32 %v900_v52, %v150_v47 }
  0xf0   :  { %v902_v26 = vpop.f32.mrf.mxu1 }
  0xf1   :  { %v903_v60 = vadd.f32 %v902_v26, %v901_v25 }
  0xf2   :  { %v904_v27 = vpop.f32.mrf.mxu1 }
  0xf3   :  { %v623_v8 = vadd.f32 %v903_v60, %v155_v63 }
  0xf4   :  { %v905_v28 = vpop.f32.mrf.mxu1 }
  0xf5   :  { %v906_v10 = vadd.f32 %v905_v28, %v904_v27 }
  0xf6   :  { %v907_v29 = vpop.f32.mrf.mxu1 }
  0xf7   :  { %v628_v22 = vadd.f32 %v906_v10, %v160_v15 }
  0xf8   :  { %v908_v30 = vpop.f32.mrf.mxu1 }
  0xf9   :  { %v909_v20 = vadd.f32 %v908_v30, %v907_v29 }
  0xfa   :  { %v1306_v31 = vpop.f32.mrf.mxu1 }
  0xfb   :  { %v631_v36 = vadd.f32 %v909_v20, %v165_v23 }
  0xfc   :  { %v1308_v32 = vpop.f32.mrf.mxu1 }
  0xfd   :  { %v912_v29 = vadd.f32 %v1308_v32, %v1306_v31 }
  0xfe   :  { %v913_v33 = vpop.f32.mrf.mxu1 }
  0xff   :  { %v739_v37 = vpop.f32.mrf.mxu0 }
 0x100   :  { %v914_v35 = vpop.f32.mrf.mxu1 }
 0x101   :  { %v741_v39 = vpop.f32.mrf.mxu0 }
 0x102   :  { %v932_v38 = vpop.f32.mrf.mxu1 }
 0x103   :  { %v742_v44 = vpop.f32.mrf.mxu0 }
 0x104   :  { %v933_v40 = vpop.f32.mrf.mxu1 }
 0x105   :  { %v934_v43 = vadd.f32 %v933_v40, %v932_v38  ;;  %v744_v49 = vpop.f32.mrf.mxu0 }
 0x106   :  { %v935_v46 = vpop.f32.mrf.mxu1 }
 0x107   :  { %v676_v48 = vadd.f32 %v934_v43, %v612_v41  ;;  %v747_v55 = vpop.f32.mrf.mxu0  ;;  %v170_v41 = vpop.permute.xlu0 %169 }
 0x108   :  { %v936_v50 = vpop.f32.mrf.mxu1  ;;  %v636_v47 = vadd.f32 %v912_v29, %v170_v41 }
 0x109   :  { %v740_v53 = vadd.f32 %v739_v37, %v676_v48  ;;  %v937_v54 = vadd.f32 %v936_v50, %v935_v46  ;;  %v749_v59 = vpop.f32.mrf.mxu0 }
 0x10a   :  { %v938_v56 = vpop.f32.mrf.mxu1 }
 0x10b   :  { %vm769_vm2 = vcmp.ge.f32.partialorder %v740_v53, 0.0  ;;  %v776_v57 = vmul.f32 0.01, %v740_v53  ;;  %v679_v58 = vadd.f32 %v937_v54, %v615_v51  ;;  %v750_v3 = vpop.f32.mrf.mxu0 }
 0x10c   :  { %v939_v61 = vpop.f32.mrf.mxu1 }
 0x10d   :  { %v783_v0 = vsel %vm769_vm2, %v740_v53, %v776_v57  ;;  %v743_v1 = vadd.f32 %v742_v44, %v679_v58  ;;  %v940_v2 = vadd.f32 %v939_v61, %v938_v56  ;;  %v752_v7 = vpop.f32.mrf.mxu0 }
 0x10e   :  { %790 = vst [vmem:[%s1336_s3] sm:$0xff] %v783_v0  ;;  %v941_v4 = vpop.f32.mrf.mxu1 }
 0x10f   :  { %vm770_vm3 = vcmp.ge.f32.partialorder %v743_v1, 0.0  ;;  %v777_v5 = vmul.f32 0.01, %v743_v1  ;;  %v684_v6 = vadd.f32 %v940_v2, %v620_v62  ;;  %v755_v14 = vpop.f32.mrf.mxu0 }
 0x110   :  { %v942_v9 = vpop.f32.mrf.mxu1 }
 0x111   :  { %v784_v11 = vsel %vm770_vm3, %v743_v1, %v777_v5  ;;  %v748_v12 = vadd.f32 %v747_v55, %v684_v6  ;;  %v943_v13 = vadd.f32 %v942_v9, %v941_v4  ;;  %v757_v19 = vpop.f32.mrf.mxu0 }
 0x112   :  { %791 = vst [vmem:[%s1336_s3 + $0x8] sm:$0xff] %v784_v11  ;;  %v944_v16 = vpop.f32.mrf.mxu1 }
 0x113   :  { %vm771_vm4 = vcmp.ge.f32.partialorder %v748_v12, 0.0  ;;  %v778_v17 = vmul.f32 0.01, %v748_v12  ;;  %v687_v18 = vadd.f32 %v943_v13, %v623_v8  ;;  %v758_v27 = vpop.f32.mrf.mxu0 }
 0x114   :  { %v945_v21 = vpop.f32.mrf.mxu1 }
 0x115   :  { %v785_v24 = vsel %vm771_vm4, %v748_v12, %v778_v17  ;;  %v751_v25 = vadd.f32 %v750_v3, %v687_v18  ;;  %v946_v26 = vadd.f32 %v945_v21, %v944_v16  ;;  %v760_v35 = vpop.f32.mrf.mxu0 }
 0x116   :  { %792 = vst [vmem:[%s1336_s3 + $0x10] sm:$0xff] %v785_v24  ;;  %v947_v28 = vpop.f32.mrf.mxu1 }
 0x117   :  { %vm772_vm5 = vcmp.ge.f32.partialorder %v751_v25, 0.0  ;;  %v779_v33 = vmul.f32 0.01, %v751_v25  ;;  %v692_v34 = vadd.f32 %v946_v26, %v628_v22  ;;  %v763_v40 = vpop.f32.mrf.mxu0 }
 0x118   :  { %v948_v37 = vpop.f32.mrf.mxu1 }
 0x119   :  { %v786_v30 = vsel %vm772_vm5, %v751_v25, %v779_v33  ;;  %v756_v38 = vadd.f32 %v755_v14, %v692_v34  ;;  %v949_v39 = vadd.f32 %v948_v37, %v947_v28  ;;  %v765_v45 = vpop.f32.mrf.mxu0 }
 0x11a   :  { %793 = vst [vmem:[%s1336_s3 + $0x18] sm:$0xff] %v786_v30  ;;  %v950_v42 = vpop.f32.mrf.mxu1 }
 0x11b   :  { %vm773_vm6 = vcmp.ge.f32.partialorder %v756_v38, 0.0  ;;  %v780_v43 = vmul.f32 0.01, %v756_v38  ;;  %v695_v44 = vadd.f32 %v949_v39, %v631_v36  ;;  %v766_v31 = vpop.f32.mrf.mxu0 }
 0x11c   :  { %v951_v46 = vpop.f32.mrf.mxu1 }
 0x11d   :  { %v787_v48 = vsel %vm773_vm6, %v756_v38, %v780_v43  ;;  %v759_v49 = vadd.f32 %v758_v27, %v695_v44  ;;  %v952_v50 = vadd.f32 %v951_v46, %v950_v42  ;;  %v767_v53 = vpop.f32.mrf.mxu0 }
 0x11e   :  { %794 = vst [vmem:[%s1336_s3 + $0x20] sm:$0xff] %v787_v48  ;;  %v953_v32 = vpop.f32.mrf.mxu1 }
 0x11f   :  { %vm774_vm7 = vcmp.ge.f32.partialorder %v759_v49, 0.0  ;;  %v781_v51 = vmul.f32 0.01, %v759_v49  ;;  %v700_v52 = vadd.f32 %v952_v50, %v636_v47 }
 0x120   :  { %v954_v54 = vpop.f32.mrf.mxu1 }
 0x121   :  { %v788_v55 = vsel %vm774_vm7, %v759_v49, %v781_v51  ;;  %v764_v56 = vadd.f32 %v763_v40, %v700_v52 }
 0x122   :  { %795 = vst [vmem:[%s1336_s3 + $0x28] sm:$0xff] %v788_v55 }
 0x123   :  { %vm775_vm8 = vcmp.ge.f32.partialorder %v764_v56, 0.0  ;;  %v782_v57 = vmul.f32 0.01, %v764_v56 }
 0x125   :  { %v789_v58 = vsel %vm775_vm8, %v764_v56, %v782_v57 }
 0x126   :  { %796 = vst [vmem:[%s1336_s3 + $0x30] sm:$0x3] %v789_v58 }

// kernel: wavegan_generator_forward.17
= control target key start
LH: loop header
LB: loop body
LE: loop exit
PB: predicated region body
PF: predicated region fallthrough
CT: control target
= control target key end

     0   :  { %v1690_v1 = vmov 0   ;;  %vm914_vm0 = vcmask 1040384   ;;  %vm901_vm1 = vcmask 801792   ;;  %s2176_s1 = inlined_call_operand.vmem [shape: bf16[1250,128], index: 1, kind: input, shape index: {}]   ;;  %s2177_s0 = inlined_call_operand.vmem [shape: bf16[50,1250], index: 0, kind: input, shape index: {}]   ;;  %s2178_s2 = inlined_call_operand.vmem [shape: f32[50,1], index: 2, kind: input, shape index: {}]   ;;  %s2179_s3 = inlined_call_operand.vmem [shape: f32[50,128], index: 3, kind: output, shape index: {}]  }
   0x1   :  { %v1556_v0 = vld [vmem:[%s2176_s1 + $0x78] sm:$0xff]   ;;  %1554 = vset.pattern.permute.xlu0 %v1690_v1  ;;  %1555 = vset.pattern.permute.xlu1 %v1690_v1  ;;  %v1558_v3 = vld [vmem:[%s2176_s1 + $0x70] sm:$0xff]   ;;  %v1562_v7 = vld [vmem:[%s2176_s1 + $0x68] sm:$0xff]  }
   0x2   :  { %v1557_v2 = vld [vmem:[%s2176_s1 + $0x38] sm:$0xff]   ;;  %1393 = vmatprep.subr.bf16.mxu1 %v1556_v0  ;;  %v1559_v4 = vld [vmem:[%s2176_s1 + $0x30] sm:$0xff]   ;;  %v1563_v8 = vld [vmem:[%s2176_s1 + $0x28] sm:$0xff]  }
   0x3   :  { %1394 = vmatpush3.bf16.msra.mxu1 %v1557_v2  ;;  %v1560_v5 = vld [vmem:[%s2176_s1 + $0x178] sm:$0xff]   ;;  %v1564_v9 = vld [vmem:[%s2176_s1 + $0x170] sm:$0xff]   ;;  %v1566_v11 = vld [vmem:[%s2176_s1 + $0x60] sm:$0xff]  }
   0x4   :  { %1395 = vmatprep.subr.bf16.mxu1 %v1558_v3  ;;  %v1561_v6 = vld [vmem:[%s2176_s1 + $0x138] sm:$0xff]   ;;  %1473 = vmatprep.subr.bf16.mxu0 %v1560_v5  ;;  %v1565_v10 = vld [vmem:[%s2176_s1 + $0x130] sm:$0xff]   ;;  %v1567_v12 = vld [vmem:[%s2176_s1 + $0x20] sm:$0xff]  }
   0x5   :  { %1474 = vmatpush3.bf16.msra.mxu0 %v1561_v6  ;;  %v1568_v13 = vld [vmem:[%s2176_s1 + $0x168] sm:$0xff]   ;;  %v1570_v15 = vld [vmem:[%s2176_s1 + $0x58] sm:$0xff]   ;;  %v1572_v17 = vld [vmem:[%s2176_s1 + $0x160] sm:$0xff]  }
   0x6   :  { %1475 = vmatprep.subr.bf16.mxu0 %v1564_v9  ;;  %v1569_v14 = vld [vmem:[%s2176_s1 + $0x128] sm:$0xff]   ;;  %v1571_v16 = vld [vmem:[%s2176_s1 + $0x18] sm:$0xff]   ;;  %v1573_v18 = vld [vmem:[%s2176_s1 + $0x120] sm:$0xff]  }
   0x7   :  { %1396 = vmatpush3.bf16.msra.mxu1 %v1559_v4  ;;  %v1574_v19 = vld [vmem:[%s2176_s1 + $0x50] sm:$0xff]   ;;  %v1576_v21 = vld [vmem:[%s2176_s1 + $0x158] sm:$0xff]   ;;  %v1578_v23 = vld [vmem:[%s2176_s1 + $0x48] sm:$0xff]  }
   0x8   :  { %1397 = vmatprep.subr.bf16.mxu1 %v1562_v7  ;;  %v1575_v20 = vld [vmem:[%s2176_s1 + $0x10] sm:$0xff]   ;;  %v1577_v22 = vld [vmem:[%s2176_s1 + $0x118] sm:$0xff]   ;;  %v1579_v24 = vld [vmem:[%s2176_s1 + $0x8] sm:$0xff]  }
   0x9   :  { %1476 = vmatpush3.bf16.msra.mxu0 %v1565_v10  ;;  %v1580_v25 = vld [vmem:[%s2176_s1 + $0x150] sm:$0xff]   ;;  %v1582_v27 = vld [vmem:[%s2176_s1 + $0x40] sm:$0xff]   ;;  %v1584_v29 = vld [vmem:[%s2176_s1 + $0x148] sm:$0xff]  }
   0xa   :  { %1477 = vmatprep.subr.bf16.mxu0 %v1568_v13  ;;  %v1581_v26 = vld [vmem:[%s2176_s1 + $0x110] sm:$0xff]   ;;  %v1583_v28 = vld [vmem:[%s2176_s1] sm:$0xff]   ;;  %v1585_v30 = vld [vmem:[%s2176_s1 + $0x108] sm:$0xff]  }
   0xb   :  { %1398 = vmatpush3.bf16.msra.mxu1 %v1563_v8  ;;  %v1586_v31 = vld [vmem:[%s2177_s0] ss:$40 sps:$4 sm:$0xff]   ;;  %v1588_v32 = vld [vmem:[%s2177_s0 + $0x4] ss:$40 sps:$4 sm:$0xff]   ;;  %v1589_v33 = vld [vmem:[%s2176_s1 + $0xf8] sm:$0xff]  }
   0xc   :  { %1399 = vmatprep.subr.bf16.mxu1 %v1566_v11  ;;  %950 = vmatprep.mubr.bf16.mxu1 %v1588_v32  ;;  %v1590_v34 = vld [vmem:[%s2176_s1 + $0xb8] sm:$0xff]   ;;  %v1591_v35 = vld [vmem:[%s2176_s1 + $0x140] sm:$0xff]   ;;  %v1593_v37 = vld [vmem:[%s2176_s1 + $0xf0] sm:$0xff]  }
   0xd   :  { %1478 = vmatpush3.bf16.msra.mxu0 %v1569_v14  ;;  %v1592_v36 = vld [vmem:[%s2176_s1 + $0x100] sm:$0xff]   ;;  %v1594_v38 = vld [vmem:[%s2176_s1 + $0xb0] sm:$0xff]   ;;  %v1598_v41 = vld [vmem:[%s2176_s1 + $0x238] sm:$0xff]  }
   0xe   :  { %1479 = vmatprep.subr.bf16.mxu0 %v1572_v17  ;;  %v1595_v39 = vld [vmem:[%s2177_s0 + $0x10] ss:$40 sps:$4 sm:$0xff]   ;;  %v1597_v40 = vld [vmem:[%s2177_s0 + $0x14] ss:$40 sps:$4 sm:$0xff]   ;;  %v1602_v44 = vld [vmem:[%s2176_s1 + $0xe8] sm:$0xff]  }
   0xf   :  { %1400 = vmatpush3.bf16.msra.mxu1 %v1567_v12  ;;  %1078 = vmatprep.mubr.bf16.mxu0 %v1597_v40  ;;  %v1599_v42 = vld [vmem:[%s2177_s0 + $0x54] ss:$40 sps:$4 sm:$0xff]   ;;  %v1601_v43 = vld [vmem:[%s2177_s0 + $0x50] ss:$40 sps:$4 sm:$0xff]   ;;  %v1603_v45 = vld [vmem:[%s2176_s1 + $0xa8] sm:$0xff]  }
  0x10   :  { %1401 = vmatprep.subr.bf16.mxu1 %v1570_v15  ;;  %v1604_v46 = vld [vmem:[%s2176_s1 + $0x230] sm:$0xff]   ;;  %v1605_v47 = vld [vmem:[%s2176_s1 + $0xe0] sm:$0xff]   ;;  %v1607_v49 = vld [vmem:[%s2176_s1 + $0x228] sm:$0xff]  }
  0x11   :  { %1480 = vmatpush3.bf16.msra.mxu0 %v1573_v18  ;;  %v1606_v48 = vld [vmem:[%s2176_s1 + $0xa0] sm:$0xff]   ;;  %v1611_v52 = vld [vmem:[%s2176_s1 + $0xd8] sm:$0xff]   ;;  %v1614_v55 = vld [vmem:[%s2176_s1 + $0xd0] sm:$0xff]  }
  0x12   :  { %1481 = vmatprep.subr.bf16.mxu0 %v1576_v21  ;;  %v1608_v50 = vld [vmem:[%s2177_s0 + $0xa4] ss:$40 sps:$4 sm:$0xff]   ;;  %v1610_v51 = vld [vmem:[%s2177_s0 + $0xa0] ss:$40 sps:$4 sm:$0xff]   ;;  %v1612_v53 = vld [vmem:[%s2176_s1 + $0x98] sm:$0xff]  }
  0x13   :  { %1402 = vmatpush3.bf16.msra.mxu1 %v1571_v16  ;;  %v1613_v54 = vld [vmem:[%s2176_s1 + $0x220] sm:$0xff]   ;;  %v1615_v56 = vld [vmem:[%s2176_s1 + $0x90] sm:$0xff]   ;;  %v1616_v57 = vld [vmem:[%s2176_s1 + $0x218] sm:$0xff]  }
  0x14   :  { %1403 = vmatprep.subr.bf16.mxu1 %v1574_v19  ;;  %v45_v58 = vld [vmem:[%s2177_s0 + $0xf0] sm:$0x11]  ;;  %v1619_v61 = vld [vmem:[%s2176_s1 + $0xc8] sm:$0xff]   ;;  %v1622_v0 = vld [vmem:[%s2176_s1 + $0xc0] sm:$0xff]  }
  0x15   :  { %1482 = vmatpush3.bf16.msra.mxu0 %v1577_v22  ;;  %v1301_v59 = vcombine.high %v45_v58, %v45_v58  ;;  %v1300_v60 = vcombine.low %v45_v58, %v45_v58  ;;  %v1620_v62 = vld [vmem:[%s2176_s1 + $0x88] sm:$0xff]   ;;  %v1621_v63 = vld [vmem:[%s2176_s1 + $0x210] sm:$0xff]   ;;  %v1623_v2 = vld [vmem:[%s2176_s1 + $0x80] sm:$0xff]  }
  0x16   :  { %1483 = vmatprep.subr.bf16.mxu0 %v1580_v25  ;;  %v1624_v3 = vld [vmem:[%s2176_s1 + $0x208] sm:$0xff]   ;;  %v1628_v5 = vld [vmem:[%s2176_s1 + $0x1f8] sm:$0xff]   ;;  %v1631_v8 = vld [vmem:[%s2176_s1 + $0x1f0] sm:$0xff]  }
  0x17   :  { %1404 = vmatpush3.bf16.msra.mxu1 %v1575_v20  ;;  %v1627_v4 = vld [vmem:[%s2177_s0 + $0xc] ss:$40 sps:$4 sm:$0xff]   ;;  %v1625_v6 = vld [vmem:[%s2177_s0 + $0x8] ss:$40 sps:$4 sm:$0xff]   ;;  %v1629_v7 = vld [vmem:[%s2176_s1 + $0x1b8] sm:$0xff]  }
  0x18   :  { %1405 = vmatprep.subr.bf16.mxu1 %v1578_v23  ;;  %v1630_v9 = vld [vmem:[%s2176_s1 + $0x200] sm:$0xff]   ;;  %v1633_v10 = vld [vmem:[%s2176_s1 + $0x270] ss:$0 sps:$4 sm:$0x11]   ;;  %v1639_v16 = vld [vmem:[%s2176_s1 + $0x1e8] sm:$0xff]  }
  0x19   :  { %1484 = vmatpush3.bf16.msra.mxu0 %v1581_v26  ;;  %v1632_v11 = vld [vmem:[%s2176_s1 + $0x1b0] sm:$0xff]   ;;  %v1634_v12 = vld [vmem:[%s2177_s0 + $0x5c] ss:$40 sps:$4 sm:$0xff]   ;;  %v1636_v13 = vld [vmem:[%s2177_s0 + $0x58] ss:$40 sps:$4 sm:$0xff]   ;;  %v916_v15 = vsel %vm914_vm0, %v1633_v10, 0 }
  0x1a   :  { %1485 = vmatprep.subr.bf16.mxu0 %v1584_v29  ;;  %v1637_v14 = vld [vmem:[%s2177_s0 + $0x64] ss:$40 sps:$4 sm:$0xff]   ;;  %v1640_v17 = vld [vmem:[%s2177_s0 + $0x60] ss:$40 sps:$4 sm:$0xff]   ;;  %v1649_v25 = vld [vmem:[%s2177_s0 + $0xb4] ss:$40 sps:$4 sm:$0xff]  }
  0x1b   :  { %1406 = vmatpush3.bf16.msra.mxu1 %v1579_v24  ;;  %v1641_v18 = vld [vmem:[%s2176_s1 + $0x1a8] sm:$0xff]   ;;  %v1643_v20 = vld [vmem:[%s2176_s1 + $0x1e0] sm:$0xff]   ;;  %v1651_v26 = vld [vmem:[%s2176_s1 + $0x1d8] sm:$0xff]  }
  0x1c   :  { %1407 = vmatprep.subr.bf16.mxu1 %v1582_v27  ;;  %v1642_v19 = vld [vmem:[%s2176_s1 + $0x268] sm:$0xff]   ;;  %v1644_v21 = vld [vmem:[%s2176_s1 + $0x1a0] sm:$0xff]   ;;  %v1652_v27 = vld [vmem:[%s2177_s0 + $0xb0] ss:$40 sps:$4 sm:$0xff]  }
  0x1d   :  { %1486 = vmatpush3.bf16.msra.mxu0 %v1585_v30  ;;  %v1645_v22 = vld [vmem:[%s2176_s1 + $0x260] sm:$0xff]   ;;  %v1646_v23 = vld [vmem:[%s2177_s0 + $0xac] ss:$40 sps:$4 sm:$0xff]   ;;  %v1648_v24 = vld [vmem:[%s2177_s0 + $0xa8] ss:$40 sps:$4 sm:$0xff]  }
  0x1e   :  { %1487 = vmatprep.subr.bf16.mxu0 %v1591_v35  ;;  %v1654_v29 = vld [vmem:[%s2176_s1 + $0x258] sm:$0xff]   ;;  %v1655_v30 = vld [vmem:[%s2176_s1 + $0x1d0] sm:$0xff]   ;;  %v1663_v40 = vld [vmem:[%s2176_s1 + $0x188] sm:$0xff]  }
  0x1f   :  { %1408 = vmatpush3.bf16.msra.mxu1 %v1583_v28  ;;  %v1653_v28 = vld [vmem:[%s2176_s1 + $0x198] sm:$0xff]   ;;  %v1657_v32 = vld [vmem:[%s2176_s1 + $0x250] sm:$0xff]   ;;  %v1683_v58 = vld [vmem:[%s2177_s0 + $0xc4] ss:$40 sps:$4 sm:$0xff]  }
  0x20   :  { %1433 = vmatprep.subr.bf16.mxu1 %v1589_v33  ;;  %v46_v33 = vld [vmem:[%s2177_s0 + $0xf8] sm:$0x11] }
  0x21   :  { %1488 = vmatpush3.bf16.msra.mxu0 %v1592_v36  ;;  %v1303_v35 = vcombine.high %v46_v33, %v46_v33 }
  0x22   :  { %951 = vmatmul.mubr.bf16.vlgmr.msra.gmra.mxu1 %v1586_v31  ;;  %1174 = vmatprep.subr.bf16.mxu0 %v1690_v1  ;;  %v1656_v31 = vld [vmem:[%s2176_s1 + $0x190] sm:$0xff]  }
  0x23   :  { %1434 = vmatpush3.bf16.msra.mxu1 %v1590_v34  ;;  %958 = vmatprep.mubr.bf16.mxu1 %v1599_v42  ;;  %v47_v34 = vld [vmem:[%s2177_s0 + $0x100] sm:$0x11]  ;;  %v1664_v42 = vld [vmem:[%s2176_s1 + $0x248] sm:$0xff]  }
  0x24   :  { %1435 = vmatprep.subr.bf16.mxu1 %v1593_v37  ;;  %1079 = vmatmul.mubr.bf16.vlgmr.msra.gmra.mxu0 %v1595_v39  ;;  %v1305_v36 = vcombine.high %v47_v34, %v47_v34  ;;  %v1661_v37 = vld [vmem:[%s2176_s1 + $0x1c8] sm:$0xff]   ;;  %v1304_v39 = vcombine.low %v47_v34, %v47_v34 }
  0x25   :  { %1175 = vmatpush1.bf16.msra.mxu0 %v1598_v41  ;;  %1086 = vmatprep.mubr.bf16.mxu0 %v1637_v14  ;;  %v1665_v41 = vld [vmem:[%s2176_s1 + $0x1c0] sm:$0xff]  }
  0x26   :  { %1176 = vmatprep.subr.bf16.mxu0 %v1690_v1 }
  0x27   :  { %1436 = vmatpush3.bf16.msra.mxu1 %v1594_v38  ;;  %v1302_v38 = vcombine.low %v46_v33, %v46_v33 }
  0x28   :  { %1437 = vmatprep.subr.bf16.mxu1 %v1602_v44  ;;  %v1670_v44 = vld [vmem:[%s2177_s0 + $0x1c] ss:$40 sps:$4 sm:$0xff]  }
  0x29   :  { %1177 = vmatpush1.bf16.msra.mxu0 %v1604_v46  ;;  %v1673_v46 = vld [vmem:[%s2177_s0 + $0x24] ss:$40 sps:$4 sm:$0xff]  }
  0x2a   :  { %959 = vmatmul.mubr.bf16.gmra.mxu1 %v1601_v43  ;;  %1178 = vmatprep.subr.bf16.mxu0 %v1690_v1  ;;  %v1666_v43 = vld [vmem:[%s2176_s1 + $0x180] sm:$0xff]  }
  0x2b   :  { %1438 = vmatpush3.bf16.msra.mxu1 %v1603_v45  ;;  %966 = vmatprep.mubr.bf16.mxu1 %v1608_v50  ;;  %v1667_v45 = vld [vmem:[%s2176_s1 + $0x240] sm:$0xff]  }
  0x2c   :  { %1439 = vmatprep.subr.bf16.mxu1 %v1605_v47  ;;  %1087 = vmatmul.mubr.bf16.gmra.mxu0 %v1640_v17  ;;  %v1668_v47 = vld [vmem:[%s2177_s0 + $0x18] ss:$40 sps:$4 sm:$0xff]  }
  0x2d   :  { %1179 = vmatpush1.bf16.msra.mxu0 %v1607_v49  ;;  %1094 = vmatprep.mubr.bf16.mxu0 %v1649_v25  ;;  %v207_v49 = vld [vmem:[%s2178_s2] sm:$0xff] }
  0x2e   :  { %1180 = vmatprep.subr.bf16.mxu0 %v1690_v1  ;;  %v1671_v50 = vld [vmem:[%s2177_s0 + $0x20] ss:$40 sps:$4 sm:$0xff]   ;;  %216 = vperm.xlu0 %1554, %v207_v49  }
  0x2f   :  { %1440 = vmatpush3.bf16.msra.mxu1 %v1606_v48  ;;  %v1674_v48 = vld [vmem:[%s2177_s0 + $0x6c] ss:$40 sps:$4 sm:$0xff]  }
  0x30   :  { %1441 = vmatprep.subr.bf16.mxu1 %v1611_v52  ;;  %v209_v52 = vld [vmem:[%s2178_s2 + $0x10] sm:$0xff] }
  0x31   :  { %1181 = vmatpush1.bf16.msra.mxu0 %v1613_v54  ;;  %226 = vperm.xlu1 %1555, %v209_v52   ;;  %v1676_v54 = vld [vmem:[%s2177_s0 + $0x68] ss:$40 sps:$4 sm:$0xff]  }
  0x32   :  { %967 = vmatmul.mubr.bf16.gmra.mxu1 %v1610_v51  ;;  %1182 = vmatprep.subr.bf16.mxu0 %v1690_v1  ;;  %v208_v51 = vld [vmem:[%s2178_s2 + $0x8] sm:$0xff] }
  0x33   :  { %1442 = vmatpush3.bf16.msra.mxu1 %v1612_v53  ;;  %974 = vmatprep.mubr.bf16.mxu1 %v1301_v59  ;;  %v211_v53 = vld [vmem:[%s2178_s2 + $0x20] sm:$0xff]  ;;  %v213_v59 = vld [vmem:[%s2178_s2 + $0x30] sm:$0x3] }
  0x34   :  { %1443 = vmatprep.subr.bf16.mxu1 %v1614_v55  ;;  %1095 = vmatmul.mubr.bf16.gmra.mxu0 %v1652_v27  ;;  %v210_v55 = vld [vmem:[%s2178_s2 + $0x18] sm:$0xff] }
  0x35   :  { %1183 = vmatpush1.bf16.msra.mxu0 %v1616_v57  ;;  %1102 = vmatprep.mubr.bf16.mxu0 %v1305_v36  ;;  %v1679_v57 = vld [vmem:[%s2177_s0 + $0x70] ss:$40 sps:$4 sm:$0xff]  }
  0x36   :  { %1184 = vmatprep.subr.bf16.mxu0 %v1690_v1  ;;  %221 = vperm.xlu0 %1554, %v208_v51  }
  0x37   :  { %1444 = vmatpush3.bf16.msra.mxu1 %v1615_v56  ;;  %v1680_v56 = vld [vmem:[%s2177_s0 + $0xbc] ss:$40 sps:$4 sm:$0xff]   ;;  %231 = vperm.xlu1 %1555, %v210_v55  }
  0x38   :  { %1445 = vmatprep.subr.bf16.mxu1 %v1619_v61  ;;  %v48_v61 = vld [vmem:[%s2177_s0 + $0x108] sm:$0x11] }
  0x39   :  { %1185 = vmatpush1.bf16.msra.mxu0 %v1621_v63  ;;  %v49_v63 = vld [vmem:[%s2177_s0 + $0x110] sm:$0x11] }
  0x3a   :  { %975 = vmatmul.mubr.bf16.gmra.mxu1 %v1300_v60  ;;  %1186 = vmatprep.subr.bf16.mxu0 %v1690_v1  ;;  %v212_v60 = vld [vmem:[%s2178_s2 + $0x28] sm:$0xff] }
  0x3b   :  { %1446 = vmatpush3.bf16.msra.mxu1 %v1620_v62  ;;  %1014 = vmatprep.mubr.bf16.mxu1 %v1627_v4  ;;  %v1682_v62 = vld [vmem:[%s2177_s0 + $0xb8] ss:$40 sps:$4 sm:$0xff]   ;;  %v1306_v4 = vcombine.low %v48_v61, %v48_v61 }
  0x3c   :  { %1447 = vmatprep.subr.bf16.mxu1 %v1622_v0  ;;  %1103 = vmatmul.mubr.bf16.gmra.mxu0 %v1304_v39  ;;  %v1307_v0 = vcombine.high %v48_v61, %v48_v61 }
  0x3d   :  { %1187 = vmatpush1.bf16.msra.mxu0 %v1624_v3  ;;  %1389 = vmatprep.mubr.msk.bf16.mxu0 %vm901_vm1, %v1673_v46  ;;  %v1309_v3 = vcombine.high %v49_v63, %v49_v63 }
  0x3e   :  { %1188 = vmatprep.subr.bf16.mxu0 %v1690_v1  ;;  %236 = vperm.xlu0 %1554, %v211_v53  }
  0x3f   :  { %1448 = vmatpush3.bf16.msra.mxu1 %v1623_v2  ;;  %241 = vperm.xlu1 %1555, %v212_v60   ;;  %v1685_v2 = vld [vmem:[%s2177_s0 + $0xc0] ss:$40 sps:$4 sm:$0xff]  }
  0x40   :  { %1513 = vmatprep.subr.bf16.mxu1 %v1628_v5  ;;  %v1308_v5 = vcombine.low %v49_v63, %v49_v63 }
  0x41   :  { %1189 = vmatpush1.bf16.msra.mxu0 %v1630_v9 }
  0x42   :  { %1015 = vmatmul.mubr.bf16.vlgmr.msra.gmra.mxu1 %v1625_v6  ;;  %1192 = vmatprep.subr.bf16.mxu0 %v1690_v1 }
  0x43   :  { %1514 = vmatpush3.bf16.msra.mxu1 %v1629_v7  ;;  %1022 = vmatprep.mubr.bf16.mxu1 %v1634_v12 }
  0x44   :  { %1515 = vmatprep.subr.bf16.mxu1 %v1631_v8  ;;  %246 = vperm.xlu0 %1554, %v213_v59  }
  0x45   :  { %1193 = vmatpush2.bf16.msra.mxu0 %v916_v15 }
  0x46   :  { %1194 = vmatprep.subr.bf16.mxu0 %v1690_v1 }
  0x47   :  { %1516 = vmatpush3.bf16.msra.mxu1 %v1632_v11 }
  0x48   :  { %1517 = vmatprep.subr.bf16.mxu1 %v1639_v16 }
  0x49   :  { %1195 = vmatpush2.bf16.msra.mxu0 %v1642_v19 }
  0x4a   :  { %1023 = vmatmul.mubr.bf16.gmra.mxu1 %v1636_v13  ;;  %1196 = vmatprep.subr.bf16.mxu0 %v1690_v1 }
  0x4b   :  { %1518 = vmatpush3.bf16.msra.mxu1 %v1641_v18  ;;  %1030 = vmatprep.mubr.bf16.mxu1 %v1646_v23 }
  0x4c   :  { %1519 = vmatprep.subr.bf16.mxu1 %v1643_v20 }
  0x4d   :  { %1197 = vmatpush2.bf16.msra.mxu0 %v1645_v22 }
  0x4e   :  { %1198 = vmatprep.subr.bf16.mxu0 %v1690_v1 }
  0x4f   :  { %1520 = vmatpush3.bf16.msra.mxu1 %v1644_v21 }
  0x50   :  { %1521 = vmatprep.subr.bf16.mxu1 %v1651_v26 }
  0x51   :  { %1199 = vmatpush2.bf16.msra.mxu0 %v1654_v29 }
  0x52   :  { %1031 = vmatmul.mubr.bf16.gmra.mxu1 %v1648_v24  ;;  %1200 = vmatprep.subr.bf16.mxu0 %v1690_v1 }
  0x53   :  { %1522 = vmatpush3.bf16.msra.mxu1 %v1653_v28  ;;  %1038 = vmatprep.mubr.bf16.mxu1 %v1303_v35 }
  0x54   :  { %1523 = vmatprep.subr.bf16.mxu1 %v1655_v30 }
  0x55   :  { %1201 = vmatpush2.bf16.msra.mxu0 %v1657_v32 }
  0x56   :  { %1202 = vmatprep.subr.bf16.mxu0 %v1690_v1 }
  0x57   :  { %1524 = vmatpush3.bf16.msra.mxu1 %v1656_v31 }
  0x58   :  { %1525 = vmatprep.subr.bf16.mxu1 %v1661_v37 }
  0x59   :  { %1203 = vmatpush2.bf16.msra.mxu0 %v1664_v42 }
  0x5a   :  { %1039 = vmatmul.mubr.bf16.gmra.mxu1 %v1302_v38  ;;  %1204 = vmatprep.subr.bf16.mxu0 %v1690_v1  ;;  %v1677_v1 = vld [vmem:[%s2177_s0 + $0x74] ss:$40 sps:$4 sm:$0xff]  }
  0x5b   :  { %1526 = vmatpush3.bf16.msra.mxu1 %v1663_v40  ;;  %1142 = vmatprep.mubr.bf16.mxu1 %v1670_v44 }
  0x5c   :  { %1527 = vmatprep.subr.bf16.mxu1 %v1665_v41 }
  0x5d   :  { %1205 = vmatpush2.bf16.msra.mxu0 %v1667_v45 }
  0x5f   :  { %1528 = vmatpush3.bf16.msra.mxu1 %v1666_v43 }
  0x60   :  { %1207 = vmatmul.mubr.bf16.vlgmr.msra.gmra.mxu0 %v1671_v50 }
  0x61   :  { %1390 = vmatprep.mubr.msk.bf16.mxu0 %vm901_vm1, %v1677_v1 }
  0x62   :  { %1143 = vmatmul.mubr.bf16.vlgmr.msra.gmra.mxu1 %v1668_v47 }
  0x63   :  { %1150 = vmatprep.mubr.bf16.mxu1 %v1674_v48 }
  0x68   :  { %1215 = vmatmul.mubr.bf16.gmra.mxu0 %v1679_v57 }
  0x69   :  { %1391 = vmatprep.mubr.msk.bf16.mxu0 %vm901_vm1, %v1683_v58 }
  0x6a   :  { %1151 = vmatmul.mubr.bf16.gmra.mxu1 %v1676_v54 }
  0x6b   :  { %1158 = vmatprep.mubr.bf16.mxu1 %v1680_v56 }
  0x70   :  { %1223 = vmatmul.mubr.bf16.gmra.mxu0 %v1685_v2 }
  0x71   :  { %1392 = vmatprep.mubr.msk.bf16.mxu0 %vm901_vm1, %v1309_v3 }
  0x72   :  { %1159 = vmatmul.mubr.bf16.gmra.mxu1 %v1682_v62 }
  0x73   :  { %1166 = vmatprep.mubr.bf16.mxu1 %v1307_v0 }
  0x78   :  { %1231 = vmatmul.mubr.bf16.gmra.mxu0 %v1308_v5 }
  0x7a   :  { %1167 = vmatmul.mubr.bf16.gmra.mxu1 %v1306_v4 }
  0xa9   :  { %v217_v46 = vpop.permute.xlu0 %216 }
  0xac   :  { %v227_v59 = vpop.permute.xlu1 %226 }
  0xb1   :  { %v222_v56 = vpop.permute.xlu0 %221 }
  0xe2   :  { %v1409_v6 = vpop.f32.mrf.mxu1 }
  0xe4   :  { %v1410_v7 = vpop.f32.mrf.mxu1  ;;  %v1489_v18 = vpop.f32.mrf.mxu0 }
  0xe5   :  { %v1411_v49 = vadd.f32 %v1410_v7, %v1409_v6 }
  0xe6   :  { %v1412_v8 = vpop.f32.mrf.mxu1  ;;  %v1490_v21 = vpop.f32.mrf.mxu0 }
  0xe7   :  { %v953_v54 = vadd.f32 %v1411_v49, %v217_v46  ;;  %v1491_v2 = vadd.f32 %v1490_v21, %v1489_v18  ;;  %v232_v46 = vpop.permute.xlu1 %231 }
  0xe8   :  { %v1413_v9 = vpop.f32.mrf.mxu1  ;;  %v1492_v24 = vpop.f32.mrf.mxu0 }
  0xe9   :  { %v1414_v55 = vadd.f32 %v1413_v9, %v1412_v8 }
  0xea   :  { %v1415_v10 = vpop.f32.mrf.mxu1  ;;  %v1493_v27 = vpop.f32.mrf.mxu0 }
  0xeb   :  { %v956_v0 = vadd.f32 %v1414_v55, %v222_v56  ;;  %v1494_v8 = vadd.f32 %v1493_v27, %v1492_v24  ;;  %v237_v24 = vpop.permute.xlu0 %236 }
  0xec   :  { %v1416_v11 = vpop.f32.mrf.mxu1  ;;  %v1495_v30 = vpop.f32.mrf.mxu0 }
  0xed   :  { %v1417_v62 = vadd.f32 %v1416_v11, %v1415_v10 }
  0xee   :  { %v2095_v12 = vpop.f32.mrf.mxu1  ;;  %v1496_v32 = vpop.f32.mrf.mxu0 }
  0xef   :  { %v1497_v10 = vadd.f32 %v1496_v32, %v1495_v30 }
  0xf0   :  { %v2097_v13 = vpop.f32.mrf.mxu1  ;;  %v2111_v34 = vpop.f32.mrf.mxu0 }
  0xf1   :  { %v1420_v9 = vadd.f32 %v2097_v13, %v2095_v12 }
  0xf2   :  { %v2099_v14 = vpop.f32.mrf.mxu1  ;;  %v2113_v36 = vpop.f32.mrf.mxu0 }
  0xf4   :  { %v2101_v15 = vpop.f32.mrf.mxu1  ;;  %v2115_v38 = vpop.f32.mrf.mxu0 }
  0xf6   :  { %v2103_v16 = vpop.f32.mrf.mxu1  ;;  %v2117_v40 = vpop.f32.mrf.mxu0 }
  0xf8   :  { %v2105_v17 = vpop.f32.mrf.mxu1  ;;  %v2119_v42 = vpop.f32.mrf.mxu0 }
  0xfa   :  { %v2107_v19 = vpop.f32.mrf.mxu1  ;;  %v2123_v44 = vpop.f32.mrf.mxu0 }
  0xfc   :  { %v2109_v20 = vpop.f32.mrf.mxu1  ;;  %v2129_v48 = vpop.f32.mrf.mxu0 }
  0xfe   :  { %v1430_v22 = vpop.f32.mrf.mxu1  ;;  %v2133_v1 = vpop.f32.mrf.mxu0 }
 0x100   :  { %v1431_v23 = vpop.f32.mrf.mxu1  ;;  %v1510_v53 = vpop.f32.mrf.mxu0 }
 0x101   :  { %v961_v23 = vadd.f32 %v1417_v62, %v227_v59  ;;  %v1426_v59 = vadd.f32 %v2105_v17, %v2103_v16 }
 0x102   :  { %v1449_v25 = vpop.f32.mrf.mxu1  ;;  %v1511_v58 = vpop.f32.mrf.mxu0 }
 0x104   :  { %v1450_v26 = vpop.f32.mrf.mxu1 }
 0x105   :  { %v1451_v51 = vadd.f32 %v1450_v26, %v1449_v25 }
 0x106   :  { %v1452_v28 = vpop.f32.mrf.mxu1 }
 0x107   :  { %v1017_v60 = vadd.f32 %v1451_v51, %v953_v54  ;;  %v1423_v51 = vadd.f32 %v2101_v15, %v2099_v14  ;;  %v964_v54 = vadd.f32 %v1420_v9, %v232_v46 }
 0x108   :  { %v1453_v29 = vpop.f32.mrf.mxu1 }
 0x109   :  { %v1454_v61 = vadd.f32 %v1453_v29, %v1452_v28  ;;  %v1081_v7 = vadd.f32 %v1491_v2, %v1017_v60  ;;  %v969_v58 = vadd.f32 %v1423_v51, %v237_v24  ;;  %v242_v60 = vpop.permute.xlu1 %241 }
 0x10a   :  { %v1455_v31 = vpop.f32.mrf.mxu1 }
 0x10b   :  { %v1020_v6 = vadd.f32 %v1454_v61, %v956_v0 }
 0x10c   :  { %v1456_v33 = vpop.f32.mrf.mxu1 }
 0x10d   :  { %v1457_v3 = vadd.f32 %v1456_v33, %v1455_v31  ;;  %v1084_v31 = vadd.f32 %v1494_v8, %v1020_v6  ;;  %v972_v6 = vadd.f32 %v1426_v59, %v242_v60 }
 0x10e   :  { %v1458_v35 = vpop.f32.mrf.mxu1 }
 0x10f   :  { %v1025_v28 = vadd.f32 %v1457_v3, %v961_v23 }
 0x110   :  { %v1459_v37 = vpop.f32.mrf.mxu1 }
 0x111   :  { %v1460_v18 = vadd.f32 %v1459_v37, %v1458_v35  ;;  %v1089_v13 = vadd.f32 %v1497_v10, %v1025_v28 }
 0x112   :  { %v1461_v39 = vpop.f32.mrf.mxu1 }
 0x113   :  { %v1028_v32 = vadd.f32 %v1460_v18, %v964_v54 }
 0x114   :  { %v1462_v41 = vpop.f32.mrf.mxu1 }
 0x115   :  { %v1463_v55 = vadd.f32 %v1462_v41, %v1461_v39  ;;  %v1500_v39 = vadd.f32 %v2113_v36, %v2111_v34 }
 0x116   :  { %v2121_v43 = vpop.f32.mrf.mxu1 }
 0x117   :  { %v1033_v62 = vadd.f32 %v1463_v55, %v969_v58  ;;  %v1092_v2 = vadd.f32 %v1500_v39, %v1028_v32 }
 0x118   :  { %v2125_v45 = vpop.f32.mrf.mxu1 }
 0x119   :  { %v1466_v16 = vadd.f32 %v2125_v45, %v2121_v43 }
 0x11a   :  { %v2127_v47 = vpop.f32.mrf.mxu1 }
 0x11c   :  { %v2131_v50 = vpop.f32.mrf.mxu1 }
 0x11e   :  { %v1470_v52 = vpop.f32.mrf.mxu1 }
 0x120   :  { %v1471_v57 = vpop.f32.mrf.mxu1  ;;  %v1208_v4 = vpop.f32.mrf.mxu0 }
 0x122   :  { %v1529_v63 = vpop.f32.mrf.mxu1  ;;  %v1210_v25 = vpop.f32.mrf.mxu0 }
 0x124   :  { %v1530_v5 = vpop.f32.mrf.mxu1  ;;  %v1211_v11 = vpop.f32.mrf.mxu0 }
 0x125   :  { %v1531_v22 = vadd.f32 %v1530_v5, %v1529_v63  ;;  %v1503_v63 = vadd.f32 %v2117_v40, %v2115_v38  ;;  %v247_v38 = vpop.permute.xlu0 %246 }
 0x126   :  { %v1532_v26 = vpop.f32.mrf.mxu1  ;;  %v1213_v52 = vpop.f32.mrf.mxu0 }
 0x127   :  { %v1145_v49 = vadd.f32 %v1531_v22, %v1081_v7  ;;  %v1429_v7 = vadd.f32 %v2109_v20, %v2107_v19  ;;  %v1097_v45 = vadd.f32 %v1503_v63, %v1033_v62  ;;  %v1036_v22 = vadd.f32 %v1466_v16, %v972_v6 }
 0x128   :  { %v1533_v29 = vpop.f32.mrf.mxu1  ;;  %v1216_v56 = vpop.f32.mrf.mxu0 }
 0x129   :  { %v1209_v21 = vadd.f32 %v1208_v4, %v1145_v49  ;;  %v1534_v33 = vadd.f32 %v1533_v29, %v1532_v26  ;;  %v1469_v26 = vadd.f32 %v2131_v50, %v2127_v47  ;;  %v1506_v49 = vadd.f32 %v2123_v44, %v2119_v42 }
 0x12a   :  { %v1535_v53 = vpop.f32.mrf.mxu1  ;;  %v1218_v14 = vpop.f32.mrf.mxu0  ;;  %v977_v28 = vadd.f32 %v1429_v7, %v247_v38  ;;  %v1509_v47 = vadd.f32 %v2133_v1, %v2129_v48 }
 0x12b   :  { %vm1238_vm2 = vcmp.ge.f32.partialorder %v1209_v21, 0.0  ;;  %v1245_v27 = vmul.f32 0.01, %v1209_v21  ;;  %v1148_v12 = vadd.f32 %v1534_v33, %v1084_v31  ;;  %v1100_v29 = vadd.f32 %v1506_v49, %v1036_v22 }
 0x12c   :  { %v1536_v30 = vpop.f32.mrf.mxu1  ;;  %v1219_v17 = vpop.f32.mrf.mxu0 }
 0x12d   :  { %v1252_v57 = vsel %vm1238_vm2, %v1209_v21, %v1245_v27  ;;  %v1212_v35 = vadd.f32 %v1211_v11, %v1148_v12  ;;  %v1537_v37 = vadd.f32 %v1536_v30, %v1535_v53  ;;  %v1041_v21 = vadd.f32 %v1469_v26, %v977_v28 }
 0x12e   :  { %1259 = vst [vmem:[%s2179_s3] sm:$0xff] %v1252_v57  ;;  %v1538_v15 = vpop.f32.mrf.mxu1  ;;  %v1221_v34 = vpop.f32.mrf.mxu0 }
 0x12f   :  { %vm1239_vm3 = vcmp.ge.f32.partialorder %v1212_v35, 0.0  ;;  %v1246_v41 = vmul.f32 0.01, %v1212_v35  ;;  %v1153_v61 = vadd.f32 %v1537_v37, %v1089_v13  ;;  %v1105_v27 = vadd.f32 %v1509_v47, %v1041_v21 }
 0x130   :  { %v1539_v0 = vpop.f32.mrf.mxu1  ;;  %v1224_v23 = vpop.f32.mrf.mxu0 }
 0x131   :  { %v1253_v3 = vsel %vm1239_vm3, %v1212_v35, %v1246_v41  ;;  %v1217_v4 = vadd.f32 %v1216_v56, %v1153_v61  ;;  %v1540_v5 = vadd.f32 %v1539_v0, %v1538_v15 }
 0x132   :  { %1260 = vst [vmem:[%s2179_s3 + $0x8] sm:$0xff] %v1253_v3  ;;  %v1541_v36 = vpop.f32.mrf.mxu1  ;;  %v1226_v19 = vpop.f32.mrf.mxu0 }
 0x133   :  { %vm1240_vm4 = vcmp.ge.f32.partialorder %v1217_v4, 0.0  ;;  %v1247_v40 = vmul.f32 0.01, %v1217_v4  ;;  %v1156_v43 = vadd.f32 %v1540_v5, %v1092_v2 }
 0x134   :  { %v1542_v25 = vpop.f32.mrf.mxu1  ;;  %v1227_v50 = vpop.f32.mrf.mxu0 }
 0x135   :  { %v1254_v8 = vsel %vm1240_vm4, %v1217_v4, %v1247_v40  ;;  %v1220_v9 = vadd.f32 %v1219_v17, %v1156_v43  ;;  %v1543_v46 = vadd.f32 %v1542_v25, %v1541_v36 }
 0x136   :  { %1261 = vst [vmem:[%s2179_s3 + $0x10] sm:$0xff] %v1254_v8  ;;  %v1544_v20 = vpop.f32.mrf.mxu1  ;;  %v1229_v44 = vpop.f32.mrf.mxu0 }
 0x137   :  { %vm1241_vm5 = vcmp.ge.f32.partialorder %v1220_v9, 0.0  ;;  %v1248_v10 = vmul.f32 0.01, %v1220_v9  ;;  %v1161_v11 = vadd.f32 %v1543_v46, %v1097_v45 }
 0x138   :  { %v1545_v18 = vpop.f32.mrf.mxu1  ;;  %v1232_v54 = vpop.f32.mrf.mxu0 }
 0x139   :  { %v1255_v31 = vsel %vm1241_vm5, %v1220_v9, %v1248_v10  ;;  %v1225_v33 = vadd.f32 %v1224_v23, %v1161_v11  ;;  %v1546_v42 = vadd.f32 %v1545_v18, %v1544_v20 }
 0x13a   :  { %1262 = vst [vmem:[%s2179_s3 + $0x18] sm:$0xff] %v1255_v31  ;;  %v1547_v51 = vpop.f32.mrf.mxu1  ;;  %v1234_v13 = vpop.f32.mrf.mxu0 }
 0x13b   :  { %vm1242_vm6 = vcmp.ge.f32.partialorder %v1225_v33, 0.0  ;;  %v1249_v52 = vmul.f32 0.01, %v1225_v33  ;;  %v1164_v53 = vadd.f32 %v1546_v42, %v1100_v29 }
 0x13c   :  { %v1548_v24 = vpop.f32.mrf.mxu1  ;;  %v1235_v32 = vpop.f32.mrf.mxu0 }
 0x13d   :  { %v1256_v12 = vsel %vm1242_vm6, %v1225_v33, %v1249_v52  ;;  %v1228_v48 = vadd.f32 %v1227_v50, %v1164_v53  ;;  %v1549_v1 = vadd.f32 %v1548_v24, %v1547_v51 }
 0x13e   :  { %1263 = vst [vmem:[%s2179_s3 + $0x20] sm:$0xff] %v1256_v12  ;;  %v1550_v55 = vpop.f32.mrf.mxu1  ;;  %v1236_v58 = vpop.f32.mrf.mxu0 }
 0x13f   :  { %vm1243_vm7 = vcmp.ge.f32.partialorder %v1228_v48, 0.0  ;;  %v1250_v56 = vmul.f32 0.01, %v1228_v48  ;;  %v1169_v30 = vadd.f32 %v1549_v1, %v1105_v27 }
 0x140   :  { %v1551_v57 = vpop.f32.mrf.mxu1 }
 0x141   :  { %v1257_v35 = vsel %vm1243_vm7, %v1228_v48, %v1250_v56  ;;  %v1233_v37 = vadd.f32 %v1232_v54, %v1169_v30 }
 0x142   :  { %1264 = vst [vmem:[%s2179_s3 + $0x28] sm:$0xff] %v1257_v35 }
 0x143   :  { %vm1244_vm8 = vcmp.ge.f32.partialorder %v1233_v37, 0.0  ;;  %v1251_v59 = vmul.f32 0.01, %v1233_v37 }
 0x145   :  { %v1258_v14 = vsel %vm1244_vm8, %v1233_v37, %v1251_v59 }
 0x146   :  { %1265 = vst [vmem:[%s2179_s3 + $0x30] sm:$0x3] %v1258_v14 }

// kernel: wavegan_generator_forward.18
= control target key start
LH: loop header
LB: loop body
LE: loop exit
PB: predicated region body
PF: predicated region fallthrough
CT: control target
= control target key end

     0   :  { %v1676_v1 = vmov 0   ;;  %vm914_vm0 = vcmask 1040384   ;;  %vm901_vm1 = vcmask 801792   ;;  %s2162_s1 = inlined_call_operand.vmem [shape: bf16[1250,128], index: 1, kind: input, shape index: {}]   ;;  %s2163_s0 = inlined_call_operand.vmem [shape: bf16[50,1250], index: 0, kind: input, shape index: {}]   ;;  %s2164_s2 = inlined_call_operand.vmem [shape: f32[50,1], index: 2, kind: input, shape index: {}]   ;;  %s2165_s3 = inlined_call_operand.vmem [shape: f32[50,128], index: 3, kind: output, shape index: {}]  }
   0x1   :  { %v1542_v0 = vld [vmem:[%s2162_s1 + $0x78] sm:$0xff]   ;;  %1540 = vset.pattern.permute.xlu0 %v1676_v1  ;;  %1541 = vset.pattern.permute.xlu1 %v1676_v1  ;;  %v1544_v3 = vld [vmem:[%s2162_s1 + $0x70] sm:$0xff]   ;;  %v1548_v7 = vld [vmem:[%s2162_s1 + $0x68] sm:$0xff]  }
   0x2   :  { %v1543_v2 = vld [vmem:[%s2162_s1 + $0x38] sm:$0xff]   ;;  %1379 = vmatprep.subr.bf16.mxu1 %v1542_v0  ;;  %v1546_v5 = vld [vmem:[%s2162_s1 + $0x30] sm:$0xff]   ;;  %v1550_v9 = vld [vmem:[%s2162_s1 + $0x28] sm:$0xff]  }
   0x3   :  { %1380 = vmatpush3.bf16.msra.mxu1 %v1543_v2  ;;  %v1545_v4 = vld [vmem:[%s2162_s1 + $0x178] sm:$0xff]   ;;  %v1549_v8 = vld [vmem:[%s2162_s1 + $0x170] sm:$0xff]   ;;  %v1552_v11 = vld [vmem:[%s2162_s1 + $0x60] sm:$0xff]  }
   0x4   :  { %1381 = vmatprep.subr.bf16.mxu1 %v1544_v3  ;;  %1459 = vmatprep.subr.bf16.mxu0 %v1545_v4  ;;  %v1547_v6 = vld [vmem:[%s2162_s1 + $0x138] sm:$0xff]   ;;  %v1551_v10 = vld [vmem:[%s2162_s1 + $0x130] sm:$0xff]   ;;  %v1553_v12 = vld [vmem:[%s2162_s1 + $0x168] sm:$0xff]  }
   0x5   :  { %1460 = vmatpush3.bf16.msra.mxu0 %v1547_v6  ;;  %v1554_v13 = vld [vmem:[%s2162_s1 + $0x20] sm:$0xff]   ;;  %v1555_v14 = vld [vmem:[%s2162_s1 + $0x128] sm:$0xff]   ;;  %v1556_v15 = vld [vmem:[%s2162_s1 + $0x58] sm:$0xff]  }
   0x6   :  { %1461 = vmatprep.subr.bf16.mxu0 %v1549_v8  ;;  %v1557_v16 = vld [vmem:[%s2162_s1 + $0x160] sm:$0xff]   ;;  %v1558_v17 = vld [vmem:[%s2162_s1 + $0x18] sm:$0xff]   ;;  %v1560_v19 = vld [vmem:[%s2162_s1 + $0x50] sm:$0xff]  }
   0x7   :  { %1382 = vmatpush3.bf16.msra.mxu1 %v1546_v5  ;;  %v1559_v18 = vld [vmem:[%s2162_s1 + $0x120] sm:$0xff]   ;;  %v1561_v20 = vld [vmem:[%s2162_s1 + $0x158] sm:$0xff]   ;;  %v1562_v21 = vld [vmem:[%s2162_s1 + $0x10] sm:$0xff]  }
   0x8   :  { %1383 = vmatprep.subr.bf16.mxu1 %v1548_v7  ;;  %v1563_v22 = vld [vmem:[%s2162_s1 + $0x118] sm:$0xff]   ;;  %v1564_v23 = vld [vmem:[%s2162_s1 + $0x48] sm:$0xff]   ;;  %v1565_v24 = vld [vmem:[%s2162_s1 + $0x150] sm:$0xff]  }
   0x9   :  { %1462 = vmatpush3.bf16.msra.mxu0 %v1551_v10  ;;  %v1566_v25 = vld [vmem:[%s2162_s1 + $0x8] sm:$0xff]   ;;  %v1567_v26 = vld [vmem:[%s2162_s1 + $0x110] sm:$0xff]   ;;  %v1568_v27 = vld [vmem:[%s2162_s1 + $0x40] sm:$0xff]  }
   0xa   :  { %1463 = vmatprep.subr.bf16.mxu0 %v1553_v12  ;;  %v1569_v28 = vld [vmem:[%s2162_s1 + $0x148] sm:$0xff]   ;;  %v1570_v29 = vld [vmem:[%s2162_s1] sm:$0xff]   ;;  %v1575_v33 = vld [vmem:[%s2162_s1 + $0xf8] sm:$0xff]  }
   0xb   :  { %1384 = vmatpush3.bf16.msra.mxu1 %v1550_v9  ;;  %v1571_v30 = vld [vmem:[%s2162_s1 + $0x108] sm:$0xff]   ;;  %v1576_v34 = vld [vmem:[%s2162_s1 + $0x140] sm:$0xff]   ;;  %v1577_v35 = vld [vmem:[%s2162_s1 + $0xb8] sm:$0xff]  }
   0xc   :  { %1385 = vmatprep.subr.bf16.mxu1 %v1552_v11  ;;  %v1572_v31 = vld [vmem:[%s2163_s0] ss:$40 sps:$4 sm:$0xff]   ;;  %v1574_v32 = vld [vmem:[%s2163_s0 + $0x4] ss:$40 sps:$4 sm:$0xff]   ;;  %v1579_v37 = vld [vmem:[%s2162_s1 + $0xf0] sm:$0xff]  }
   0xd   :  { %1464 = vmatpush3.bf16.msra.mxu0 %v1555_v14  ;;  %950 = vmatprep.mubr.bf16.mxu1 %v1574_v32  ;;  %v1578_v36 = vld [vmem:[%s2162_s1 + $0x100] sm:$0xff]   ;;  %v1580_v38 = vld [vmem:[%s2163_s0 + $0x10] ss:$40 sps:$4 sm:$0xff]   ;;  %v1582_v39 = vld [vmem:[%s2163_s0 + $0x14] ss:$40 sps:$4 sm:$0xff]  }
   0xe   :  { %1465 = vmatprep.subr.bf16.mxu0 %v1557_v16  ;;  %v1583_v40 = vld [vmem:[%s2162_s1 + $0xb0] sm:$0xff]   ;;  %1078 = vmatprep.mubr.bf16.mxu0 %v1582_v39  ;;  %v1584_v41 = vld [vmem:[%s2162_s1 + $0x238] sm:$0xff]   ;;  %v1588_v44 = vld [vmem:[%s2162_s1 + $0xe8] sm:$0xff]  }
   0xf   :  { %1386 = vmatpush3.bf16.msra.mxu1 %v1554_v13  ;;  %v1585_v42 = vld [vmem:[%s2163_s0 + $0x54] ss:$40 sps:$4 sm:$0xff]   ;;  %v1587_v43 = vld [vmem:[%s2163_s0 + $0x50] ss:$40 sps:$4 sm:$0xff]   ;;  %v1589_v45 = vld [vmem:[%s2162_s1 + $0xa8] sm:$0xff]  }
  0x10   :  { %1387 = vmatprep.subr.bf16.mxu1 %v1556_v15  ;;  %v1590_v46 = vld [vmem:[%s2162_s1 + $0x230] sm:$0xff]   ;;  %v1591_v47 = vld [vmem:[%s2162_s1 + $0xe0] sm:$0xff]   ;;  %v1593_v49 = vld [vmem:[%s2162_s1 + $0x228] sm:$0xff]  }
  0x11   :  { %1466 = vmatpush3.bf16.msra.mxu0 %v1559_v18  ;;  %v1592_v48 = vld [vmem:[%s2162_s1 + $0xa0] sm:$0xff]   ;;  %v1597_v52 = vld [vmem:[%s2162_s1 + $0xd8] sm:$0xff]   ;;  %v1600_v55 = vld [vmem:[%s2162_s1 + $0xd0] sm:$0xff]  }
  0x12   :  { %1467 = vmatprep.subr.bf16.mxu0 %v1561_v20  ;;  %v1594_v50 = vld [vmem:[%s2163_s0 + $0xa4] ss:$40 sps:$4 sm:$0xff]   ;;  %v1596_v51 = vld [vmem:[%s2163_s0 + $0xa0] ss:$40 sps:$4 sm:$0xff]   ;;  %v1598_v53 = vld [vmem:[%s2162_s1 + $0x98] sm:$0xff]  }
  0x13   :  { %1388 = vmatpush3.bf16.msra.mxu1 %v1558_v17  ;;  %v1599_v54 = vld [vmem:[%s2162_s1 + $0x220] sm:$0xff]   ;;  %v1601_v56 = vld [vmem:[%s2162_s1 + $0x90] sm:$0xff]   ;;  %v1602_v57 = vld [vmem:[%s2162_s1 + $0x218] sm:$0xff]  }
  0x14   :  { %1389 = vmatprep.subr.bf16.mxu1 %v1560_v19  ;;  %v45_v58 = vld [vmem:[%s2163_s0 + $0xf0] sm:$0x11]  ;;  %v1605_v61 = vld [vmem:[%s2162_s1 + $0xc8] sm:$0xff]   ;;  %v1608_v0 = vld [vmem:[%s2162_s1 + $0xc0] sm:$0xff]  }
  0x15   :  { %1468 = vmatpush3.bf16.msra.mxu0 %v1563_v22  ;;  %v1287_v59 = vcombine.high %v45_v58, %v45_v58  ;;  %v1286_v60 = vcombine.low %v45_v58, %v45_v58  ;;  %v1606_v62 = vld [vmem:[%s2162_s1 + $0x88] sm:$0xff]   ;;  %v1607_v63 = vld [vmem:[%s2162_s1 + $0x210] sm:$0xff]   ;;  %v1609_v2 = vld [vmem:[%s2162_s1 + $0x80] sm:$0xff]  }
  0x16   :  { %1469 = vmatprep.subr.bf16.mxu0 %v1565_v24  ;;  %v1610_v3 = vld [vmem:[%s2162_s1 + $0x208] sm:$0xff]   ;;  %v1614_v6 = vld [vmem:[%s2162_s1 + $0x1f8] sm:$0xff]   ;;  %v1616_v8 = vld [vmem:[%s2162_s1 + $0x200] sm:$0xff]  }
  0x17   :  { %1390 = vmatpush3.bf16.msra.mxu1 %v1562_v21  ;;  %v1611_v4 = vld [vmem:[%s2163_s0 + $0x8] ss:$40 sps:$4 sm:$0xff]   ;;  %v1613_v5 = vld [vmem:[%s2163_s0 + $0xc] ss:$40 sps:$4 sm:$0xff]   ;;  %v1615_v7 = vld [vmem:[%s2162_s1 + $0x1b8] sm:$0xff]  }
  0x18   :  { %1391 = vmatprep.subr.bf16.mxu1 %v1564_v23  ;;  %v1617_v9 = vld [vmem:[%s2162_s1 + $0x1f0] sm:$0xff]   ;;  %v1620_v12 = vld [vmem:[%s2163_s0 + $0x5c] ss:$40 sps:$4 sm:$0xff]   ;;  %v1624_v15 = vld [vmem:[%s2163_s0 + $0x58] ss:$40 sps:$4 sm:$0xff]  }
  0x19   :  { %1470 = vmatpush3.bf16.msra.mxu0 %v1567_v26  ;;  %v1618_v10 = vld [vmem:[%s2162_s1 + $0x1b0] sm:$0xff]   ;;  %v1622_v14 = vld [vmem:[%s2163_s0 + $0x64] ss:$40 sps:$4 sm:$0xff]   ;;  %v1625_v16 = vld [vmem:[%s2163_s0 + $0x60] ss:$40 sps:$4 sm:$0xff]  }
  0x1a   :  { %1471 = vmatprep.subr.bf16.mxu0 %v1569_v28  ;;  %v1619_v11 = vld [vmem:[%s2162_s1 + $0x270] ss:$0 sps:$4 sm:$0x11]   ;;  %v1626_v17 = vld [vmem:[%s2162_s1 + $0x1e8] sm:$0xff]   ;;  %v1629_v20 = vld [vmem:[%s2162_s1 + $0x1e0] sm:$0xff]  }
  0x1b   :  { %1392 = vmatpush3.bf16.msra.mxu1 %v1566_v25  ;;  %v916_v13 = vsel %vm914_vm0, %v1619_v11, 0  ;;  %v1627_v18 = vld [vmem:[%s2162_s1 + $0x1a8] sm:$0xff]   ;;  %v1630_v21 = vld [vmem:[%s2162_s1 + $0x1a0] sm:$0xff]   ;;  %v1634_v24 = vld [vmem:[%s2163_s0 + $0xb4] ss:$40 sps:$4 sm:$0xff]  }
  0x1c   :  { %1393 = vmatprep.subr.bf16.mxu1 %v1568_v27  ;;  %v1628_v19 = vld [vmem:[%s2162_s1 + $0x268] sm:$0xff]   ;;  %v1631_v22 = vld [vmem:[%s2162_s1 + $0x260] sm:$0xff]   ;;  %v1637_v26 = vld [vmem:[%s2163_s0 + $0xb0] ss:$40 sps:$4 sm:$0xff]  }
  0x1d   :  { %1472 = vmatpush3.bf16.msra.mxu0 %v1571_v30  ;;  %v1632_v23 = vld [vmem:[%s2163_s0 + $0xac] ss:$40 sps:$4 sm:$0xff]   ;;  %v1636_v25 = vld [vmem:[%s2163_s0 + $0xa8] ss:$40 sps:$4 sm:$0xff]   ;;  %v1638_v27 = vld [vmem:[%s2162_s1 + $0x1d8] sm:$0xff]  }
  0x1e   :  { %1473 = vmatprep.subr.bf16.mxu0 %v1576_v34  ;;  %v1639_v28 = vld [vmem:[%s2162_s1 + $0x198] sm:$0xff]   ;;  %v1641_v30 = vld [vmem:[%s2162_s1 + $0x1d0] sm:$0xff]   ;;  %v47_v34 = vld [vmem:[%s2163_s0 + $0x100] sm:$0x11] }
  0x1f   :  { %1394 = vmatpush3.bf16.msra.mxu1 %v1570_v29  ;;  %v1640_v29 = vld [vmem:[%s2162_s1 + $0x258] sm:$0xff]   ;;  %v1643_v32 = vld [vmem:[%s2162_s1 + $0x250] sm:$0xff]   ;;  %v1668_v58 = vld [vmem:[%s2163_s0 + $0xc4] ss:$40 sps:$4 sm:$0xff]  }
  0x20   :  { %1419 = vmatprep.subr.bf16.mxu1 %v1575_v33  ;;  %v46_v33 = vld [vmem:[%s2163_s0 + $0xf8] sm:$0x11] }
  0x21   :  { %1474 = vmatpush3.bf16.msra.mxu0 %v1578_v36  ;;  %v1291_v36 = vcombine.high %v47_v34, %v47_v34  ;;  %v1288_v39 = vcombine.low %v46_v33, %v46_v33 }
  0x22   :  { %951 = vmatmul.mubr.bf16.vlgmr.msra.gmra.mxu1 %v1572_v31  ;;  %1174 = vmatprep.subr.bf16.mxu0 %v1676_v1  ;;  %v1642_v31 = vld [vmem:[%s2162_s1 + $0x190] sm:$0xff]  }
  0x23   :  { %1420 = vmatpush3.bf16.msra.mxu1 %v1577_v35  ;;  %958 = vmatprep.mubr.bf16.mxu1 %v1585_v42  ;;  %v1289_v35 = vcombine.high %v46_v33, %v46_v33  ;;  %v1651_v42 = vld [vmem:[%s2162_s1 + $0x1c0] sm:$0xff]  }
  0x24   :  { %1421 = vmatprep.subr.bf16.mxu1 %v1579_v37  ;;  %1079 = vmatmul.mubr.bf16.vlgmr.msra.gmra.mxu0 %v1580_v38  ;;  %v1290_v37 = vcombine.low %v47_v34, %v47_v34  ;;  %v1648_v38 = vld [vmem:[%s2162_s1 + $0x1c8] sm:$0xff]  }
  0x25   :  { %1175 = vmatpush1.bf16.msra.mxu0 %v1584_v41  ;;  %1086 = vmatprep.mubr.bf16.mxu0 %v1622_v14  ;;  %v1650_v41 = vld [vmem:[%s2162_s1 + $0x248] sm:$0xff]  }
  0x26   :  { %1176 = vmatprep.subr.bf16.mxu0 %v1676_v1 }
  0x27   :  { %1422 = vmatpush3.bf16.msra.mxu1 %v1583_v40  ;;  %v1649_v40 = vld [vmem:[%s2162_s1 + $0x188] sm:$0xff]  }
  0x28   :  { %1423 = vmatprep.subr.bf16.mxu1 %v1588_v44  ;;  %v1656_v44 = vld [vmem:[%s2163_s0 + $0x1c] ss:$40 sps:$4 sm:$0xff]  }
  0x29   :  { %1177 = vmatpush1.bf16.msra.mxu0 %v1590_v46  ;;  %v1659_v46 = vld [vmem:[%s2163_s0 + $0x24] ss:$40 sps:$4 sm:$0xff]  }
  0x2a   :  { %959 = vmatmul.mubr.bf16.gmra.mxu1 %v1587_v43  ;;  %1178 = vmatprep.subr.bf16.mxu0 %v1676_v1  ;;  %v1652_v43 = vld [vmem:[%s2162_s1 + $0x180] sm:$0xff]  }
  0x2b   :  { %1424 = vmatpush3.bf16.msra.mxu1 %v1589_v45  ;;  %966 = vmatprep.mubr.bf16.mxu1 %v1594_v50  ;;  %v1653_v45 = vld [vmem:[%s2162_s1 + $0x240] sm:$0xff]  }
  0x2c   :  { %1425 = vmatprep.subr.bf16.mxu1 %v1591_v47  ;;  %1087 = vmatmul.mubr.bf16.gmra.mxu0 %v1625_v16  ;;  %v1654_v47 = vld [vmem:[%s2163_s0 + $0x18] ss:$40 sps:$4 sm:$0xff]  }
  0x2d   :  { %1179 = vmatpush1.bf16.msra.mxu0 %v1593_v49  ;;  %1094 = vmatprep.mubr.bf16.mxu0 %v1634_v24  ;;  %v1662_v49 = vld [vmem:[%s2163_s0 + $0x74] ss:$40 sps:$4 sm:$0xff]   ;;  %v207_v50 = vld [vmem:[%s2164_s2] sm:$0xff] }
  0x2e   :  { %1180 = vmatprep.subr.bf16.mxu0 %v1676_v1  ;;  %216 = vperm.xlu0 %1540, %v207_v50  }
  0x2f   :  { %1426 = vmatpush3.bf16.msra.mxu1 %v1592_v48  ;;  %v1657_v48 = vld [vmem:[%s2163_s0 + $0x20] ss:$40 sps:$4 sm:$0xff]  }
  0x30   :  { %1427 = vmatprep.subr.bf16.mxu1 %v1597_v52  ;;  %v209_v52 = vld [vmem:[%s2164_s2 + $0x10] sm:$0xff] }
  0x31   :  { %1181 = vmatpush1.bf16.msra.mxu0 %v1599_v54  ;;  %226 = vperm.xlu1 %1541, %v209_v52   ;;  %v1664_v54 = vld [vmem:[%s2163_s0 + $0x68] ss:$40 sps:$4 sm:$0xff]  }
  0x32   :  { %967 = vmatmul.mubr.bf16.gmra.mxu1 %v1596_v51  ;;  %1182 = vmatprep.subr.bf16.mxu0 %v1676_v1  ;;  %v208_v51 = vld [vmem:[%s2164_s2 + $0x8] sm:$0xff] }
  0x33   :  { %1428 = vmatpush3.bf16.msra.mxu1 %v1598_v53  ;;  %974 = vmatprep.mubr.bf16.mxu1 %v1287_v59  ;;  %v210_v53 = vld [vmem:[%s2164_s2 + $0x18] sm:$0xff]  ;;  %v212_v59 = vld [vmem:[%s2164_s2 + $0x28] sm:$0xff] }
  0x34   :  { %1429 = vmatprep.subr.bf16.mxu1 %v1600_v55  ;;  %1095 = vmatmul.mubr.bf16.gmra.mxu0 %v1637_v26  ;;  %v211_v55 = vld [vmem:[%s2164_s2 + $0x20] sm:$0xff] }
  0x35   :  { %1183 = vmatpush1.bf16.msra.mxu0 %v1602_v57  ;;  %1102 = vmatprep.mubr.bf16.mxu0 %v1291_v36  ;;  %v1666_v57 = vld [vmem:[%s2163_s0 + $0xbc] ss:$40 sps:$4 sm:$0xff]  }
  0x36   :  { %1184 = vmatprep.subr.bf16.mxu0 %v1676_v1  ;;  %221 = vperm.xlu0 %1540, %v208_v51  }
  0x37   :  { %1430 = vmatpush3.bf16.msra.mxu1 %v1601_v56  ;;  %v1665_v56 = vld [vmem:[%s2163_s0 + $0x70] ss:$40 sps:$4 sm:$0xff]   ;;  %231 = vperm.xlu1 %1541, %v210_v53  }
  0x38   :  { %1431 = vmatprep.subr.bf16.mxu1 %v1605_v61  ;;  %v48_v61 = vld [vmem:[%s2163_s0 + $0x108] sm:$0x11] }
  0x39   :  { %1185 = vmatpush1.bf16.msra.mxu0 %v1607_v63  ;;  %v1670_v63 = vld [vmem:[%s2163_s0 + $0xb8] ss:$40 sps:$4 sm:$0xff]  }
  0x3a   :  { %975 = vmatmul.mubr.bf16.gmra.mxu1 %v1286_v60  ;;  %1186 = vmatprep.subr.bf16.mxu0 %v1676_v1  ;;  %v213_v60 = vld [vmem:[%s2164_s2 + $0x30] sm:$0x3] }
  0x3b   :  { %1432 = vmatpush3.bf16.msra.mxu1 %v1606_v62  ;;  %1014 = vmatprep.mubr.bf16.mxu1 %v1613_v5  ;;  %v49_v62 = vld [vmem:[%s2163_s0 + $0x110] sm:$0x11] }
  0x3c   :  { %1433 = vmatprep.subr.bf16.mxu1 %v1608_v0  ;;  %1103 = vmatmul.mubr.bf16.gmra.mxu0 %v1290_v37  ;;  %v1671_v0 = vld [vmem:[%s2163_s0 + $0xc0] ss:$40 sps:$4 sm:$0xff]   ;;  %v1294_v5 = vcombine.low %v49_v62, %v49_v62 }
  0x3d   :  { %1187 = vmatpush1.bf16.msra.mxu0 %v1610_v3  ;;  %1375 = vmatprep.mubr.msk.bf16.mxu0 %vm901_vm1, %v1659_v46  ;;  %v1295_v3 = vcombine.high %v49_v62, %v49_v62 }
  0x3e   :  { %1188 = vmatprep.subr.bf16.mxu0 %v1676_v1  ;;  %236 = vperm.xlu0 %1540, %v211_v55  }
  0x3f   :  { %1434 = vmatpush3.bf16.msra.mxu1 %v1609_v2  ;;  %241 = vperm.xlu1 %1541, %v212_v59   ;;  %v1293_v2 = vcombine.high %v48_v61, %v48_v61 }
  0x40   :  { %1499 = vmatprep.subr.bf16.mxu1 %v1614_v6 }
  0x41   :  { %1189 = vmatpush1.bf16.msra.mxu0 %v1616_v8 }
  0x42   :  { %1015 = vmatmul.mubr.bf16.vlgmr.msra.gmra.mxu1 %v1611_v4  ;;  %1192 = vmatprep.subr.bf16.mxu0 %v1676_v1  ;;  %v1292_v4 = vcombine.low %v48_v61, %v48_v61 }
  0x43   :  { %1500 = vmatpush3.bf16.msra.mxu1 %v1615_v7  ;;  %1022 = vmatprep.mubr.bf16.mxu1 %v1620_v12 }
  0x44   :  { %1501 = vmatprep.subr.bf16.mxu1 %v1617_v9  ;;  %246 = vperm.xlu0 %1540, %v213_v60  }
  0x45   :  { %1193 = vmatpush2.bf16.msra.mxu0 %v916_v13 }
  0x46   :  { %1194 = vmatprep.subr.bf16.mxu0 %v1676_v1 }
  0x47   :  { %1502 = vmatpush3.bf16.msra.mxu1 %v1618_v10 }
  0x48   :  { %1503 = vmatprep.subr.bf16.mxu1 %v1626_v17 }
  0x49   :  { %1195 = vmatpush2.bf16.msra.mxu0 %v1628_v19 }
  0x4a   :  { %1023 = vmatmul.mubr.bf16.gmra.mxu1 %v1624_v15  ;;  %1196 = vmatprep.subr.bf16.mxu0 %v1676_v1 }
  0x4b   :  { %1504 = vmatpush3.bf16.msra.mxu1 %v1627_v18  ;;  %1030 = vmatprep.mubr.bf16.mxu1 %v1632_v23 }
  0x4c   :  { %1505 = vmatprep.subr.bf16.mxu1 %v1629_v20 }
  0x4d   :  { %1197 = vmatpush2.bf16.msra.mxu0 %v1631_v22 }
  0x4e   :  { %1198 = vmatprep.subr.bf16.mxu0 %v1676_v1 }
  0x4f   :  { %1506 = vmatpush3.bf16.msra.mxu1 %v1630_v21 }
  0x50   :  { %1507 = vmatprep.subr.bf16.mxu1 %v1638_v27 }
  0x51   :  { %1199 = vmatpush2.bf16.msra.mxu0 %v1640_v29 }
  0x52   :  { %1031 = vmatmul.mubr.bf16.gmra.mxu1 %v1636_v25  ;;  %1200 = vmatprep.subr.bf16.mxu0 %v1676_v1 }
  0x53   :  { %1508 = vmatpush3.bf16.msra.mxu1 %v1639_v28  ;;  %1038 = vmatprep.mubr.bf16.mxu1 %v1289_v35 }
  0x54   :  { %1509 = vmatprep.subr.bf16.mxu1 %v1641_v30 }
  0x55   :  { %1201 = vmatpush2.bf16.msra.mxu0 %v1643_v32 }
  0x56   :  { %1202 = vmatprep.subr.bf16.mxu0 %v1676_v1 }
  0x57   :  { %1510 = vmatpush3.bf16.msra.mxu1 %v1642_v31 }
  0x58   :  { %1511 = vmatprep.subr.bf16.mxu1 %v1648_v38 }
  0x59   :  { %1203 = vmatpush2.bf16.msra.mxu0 %v1650_v41 }
  0x5a   :  { %1039 = vmatmul.mubr.bf16.gmra.mxu1 %v1288_v39  ;;  %1204 = vmatprep.subr.bf16.mxu0 %v1676_v1  ;;  %v1660_v1 = vld [vmem:[%s2163_s0 + $0x6c] ss:$40 sps:$4 sm:$0xff]  }
  0x5b   :  { %1512 = vmatpush3.bf16.msra.mxu1 %v1649_v40  ;;  %1142 = vmatprep.mubr.bf16.mxu1 %v1656_v44 }
  0x5c   :  { %1513 = vmatprep.subr.bf16.mxu1 %v1651_v42 }
  0x5d   :  { %1205 = vmatpush2.bf16.msra.mxu0 %v1653_v45 }
  0x5f   :  { %1514 = vmatpush3.bf16.msra.mxu1 %v1652_v43 }
  0x60   :  { %1207 = vmatmul.mubr.bf16.vlgmr.msra.gmra.mxu0 %v1657_v48 }
  0x61   :  { %1376 = vmatprep.mubr.msk.bf16.mxu0 %vm901_vm1, %v1662_v49 }
  0x62   :  { %1143 = vmatmul.mubr.bf16.vlgmr.msra.gmra.mxu1 %v1654_v47 }
  0x63   :  { %1150 = vmatprep.mubr.bf16.mxu1 %v1660_v1 }
  0x68   :  { %1215 = vmatmul.mubr.bf16.gmra.mxu0 %v1665_v56 }
  0x69   :  { %1377 = vmatprep.mubr.msk.bf16.mxu0 %vm901_vm1, %v1668_v58 }
  0x6a   :  { %1151 = vmatmul.mubr.bf16.gmra.mxu1 %v1664_v54 }
  0x6b   :  { %1158 = vmatprep.mubr.bf16.mxu1 %v1666_v57 }
  0x70   :  { %1223 = vmatmul.mubr.bf16.gmra.mxu0 %v1671_v0 }
  0x71   :  { %1378 = vmatprep.mubr.msk.bf16.mxu0 %vm901_vm1, %v1295_v3 }
  0x72   :  { %1159 = vmatmul.mubr.bf16.gmra.mxu1 %v1670_v63 }
  0x73   :  { %1166 = vmatprep.mubr.bf16.mxu1 %v1293_v2 }
  0x78   :  { %1231 = vmatmul.mubr.bf16.gmra.mxu0 %v1294_v5 }
  0x7a   :  { %1167 = vmatmul.mubr.bf16.gmra.mxu1 %v1292_v4 }
  0xa9   :  { %v217_v46 = vpop.permute.xlu0 %216 }
  0xac   :  { %v227_v62 = vpop.permute.xlu1 %226 }
  0xb1   :  { %v222_v56 = vpop.permute.xlu0 %221 }
  0xe2   :  { %v1395_v6 = vpop.f32.mrf.mxu1 }
  0xe4   :  { %v1396_v7 = vpop.f32.mrf.mxu1  ;;  %v1475_v18 = vpop.f32.mrf.mxu0 }
  0xe5   :  { %v1397_v1 = vadd.f32 %v1396_v7, %v1395_v6 }
  0xe6   :  { %v1398_v8 = vpop.f32.mrf.mxu1  ;;  %v1476_v21 = vpop.f32.mrf.mxu0 }
  0xe7   :  { %v953_v55 = vadd.f32 %v1397_v1, %v217_v46  ;;  %v1477_v0 = vadd.f32 %v1476_v21, %v1475_v18  ;;  %v232_v46 = vpop.permute.xlu1 %231 }
  0xe8   :  { %v1399_v9 = vpop.f32.mrf.mxu1  ;;  %v1478_v24 = vpop.f32.mrf.mxu0 }
  0xe9   :  { %v1400_v53 = vadd.f32 %v1399_v9, %v1398_v8 }
  0xea   :  { %v1401_v10 = vpop.f32.mrf.mxu1  ;;  %v1479_v27 = vpop.f32.mrf.mxu0 }
  0xeb   :  { %v956_v61 = vadd.f32 %v1400_v53, %v222_v56  ;;  %v1480_v8 = vadd.f32 %v1479_v27, %v1478_v24  ;;  %v237_v53 = vpop.permute.xlu0 %236 }
  0xec   :  { %v1402_v11 = vpop.f32.mrf.mxu1  ;;  %v1481_v29 = vpop.f32.mrf.mxu0 }
  0xed   :  { %v1403_v2 = vadd.f32 %v1402_v11, %v1401_v10 }
  0xee   :  { %v2081_v12 = vpop.f32.mrf.mxu1  ;;  %v1482_v31 = vpop.f32.mrf.mxu0 }
  0xef   :  { %v1483_v1 = vadd.f32 %v1482_v31, %v1481_v29 }
  0xf0   :  { %v2083_v13 = vpop.f32.mrf.mxu1  ;;  %v2097_v33 = vpop.f32.mrf.mxu0 }
  0xf2   :  { %v2085_v14 = vpop.f32.mrf.mxu1  ;;  %v2099_v35 = vpop.f32.mrf.mxu0 }
  0xf4   :  { %v2087_v15 = vpop.f32.mrf.mxu1  ;;  %v2101_v38 = vpop.f32.mrf.mxu0 }
  0xf6   :  { %v2089_v16 = vpop.f32.mrf.mxu1  ;;  %v2103_v40 = vpop.f32.mrf.mxu0 }
  0xf8   :  { %v2091_v17 = vpop.f32.mrf.mxu1  ;;  %v2105_v42 = vpop.f32.mrf.mxu0 }
  0xfa   :  { %v2093_v19 = vpop.f32.mrf.mxu1  ;;  %v2109_v44 = vpop.f32.mrf.mxu0 }
  0xfc   :  { %v2095_v20 = vpop.f32.mrf.mxu1  ;;  %v2113_v47 = vpop.f32.mrf.mxu0 }
  0xfe   :  { %v1416_v22 = vpop.f32.mrf.mxu1  ;;  %v2117_v49 = vpop.f32.mrf.mxu0 }
 0x100   :  { %v1417_v23 = vpop.f32.mrf.mxu1  ;;  %v1496_v52 = vpop.f32.mrf.mxu0 }
 0x102   :  { %v1435_v25 = vpop.f32.mrf.mxu1  ;;  %v1497_v57 = vpop.f32.mrf.mxu0 }
 0x104   :  { %v1436_v26 = vpop.f32.mrf.mxu1 }
 0x105   :  { %v1437_v51 = vadd.f32 %v1436_v26, %v1435_v25  ;;  %v961_v25 = vadd.f32 %v1403_v2, %v227_v62  ;;  %v1406_v26 = vadd.f32 %v2083_v13, %v2081_v12 }
 0x106   :  { %v1438_v28 = vpop.f32.mrf.mxu1 }
 0x107   :  { %v1017_v60 = vadd.f32 %v1437_v51, %v953_v55  ;;  %v964_v27 = vadd.f32 %v1406_v26, %v232_v46 }
 0x108   :  { %v1439_v30 = vpop.f32.mrf.mxu1 }
 0x109   :  { %v1440_v58 = vadd.f32 %v1439_v30, %v1438_v28  ;;  %v1081_v7 = vadd.f32 %v1477_v0, %v1017_v60 }
 0x10a   :  { %v1441_v32 = vpop.f32.mrf.mxu1 }
 0x10b   :  { %v1020_v4 = vadd.f32 %v1440_v58, %v956_v61  ;;  %v242_v61 = vpop.permute.xlu1 %241 }
 0x10c   :  { %v1442_v34 = vpop.f32.mrf.mxu1 }
 0x10d   :  { %v1443_v6 = vadd.f32 %v1442_v34, %v1441_v32  ;;  %v1084_v51 = vadd.f32 %v1480_v8, %v1020_v4  ;;  %v1409_v34 = vadd.f32 %v2087_v15, %v2085_v14  ;;  %v1412_v14 = vadd.f32 %v2091_v17, %v2089_v16 }
 0x10e   :  { %v1444_v36 = vpop.f32.mrf.mxu1  ;;  %v1486_v15 = vadd.f32 %v2099_v35, %v2097_v33 }
 0x10f   :  { %v1025_v10 = vadd.f32 %v1443_v6, %v961_v25  ;;  %v969_v58 = vadd.f32 %v1409_v34, %v237_v53  ;;  %v972_v4 = vadd.f32 %v1412_v14, %v242_v61 }
 0x110   :  { %v1445_v37 = vpop.f32.mrf.mxu1 }
 0x111   :  { %v1446_v11 = vadd.f32 %v1445_v37, %v1444_v36  ;;  %v1089_v57 = vadd.f32 %v1483_v1, %v1025_v10  ;;  %v1495_v1 = vadd.f32 %v2117_v49, %v2113_v47 }
 0x112   :  { %v1447_v39 = vpop.f32.mrf.mxu1 }
 0x113   :  { %v1028_v29 = vadd.f32 %v1446_v11, %v964_v27 }
 0x114   :  { %v1448_v41 = vpop.f32.mrf.mxu1 }
 0x115   :  { %v1449_v13 = vadd.f32 %v1448_v41, %v1447_v39  ;;  %v1092_v2 = vadd.f32 %v1486_v15, %v1028_v29 }
 0x116   :  { %v2107_v43 = vpop.f32.mrf.mxu1 }
 0x117   :  { %v1033_v62 = vadd.f32 %v1449_v13, %v969_v58 }
 0x118   :  { %v2111_v45 = vpop.f32.mrf.mxu1 }
 0x11a   :  { %v2115_v48 = vpop.f32.mrf.mxu1 }
 0x11c   :  { %v2119_v50 = vpop.f32.mrf.mxu1 }
 0x11e   :  { %v1456_v54 = vpop.f32.mrf.mxu1 }
 0x120   :  { %v1457_v59 = vpop.f32.mrf.mxu1  ;;  %v1208_v3 = vpop.f32.mrf.mxu0 }
 0x122   :  { %v1515_v63 = vpop.f32.mrf.mxu1  ;;  %v1210_v23 = vpop.f32.mrf.mxu0 }
 0x124   :  { %v1516_v5 = vpop.f32.mrf.mxu1  ;;  %v1211_v30 = vpop.f32.mrf.mxu0 }
 0x125   :  { %v1517_v22 = vadd.f32 %v1516_v5, %v1515_v63  ;;  %v1489_v63 = vadd.f32 %v2103_v40, %v2101_v38  ;;  %v1415_v5 = vadd.f32 %v2095_v20, %v2093_v19  ;;  %v247_v40 = vpop.permute.xlu0 %246  ;;  %v1492_v19 = vadd.f32 %v2109_v44, %v2105_v42 }
 0x126   :  { %v1518_v9 = vpop.f32.mrf.mxu1  ;;  %v1213_v32 = vpop.f32.mrf.mxu0 }
 0x127   :  { %v1145_v28 = vadd.f32 %v1517_v22, %v1081_v7  ;;  %v1097_v22 = vadd.f32 %v1489_v63, %v1033_v62 }
 0x128   :  { %v1519_v18 = vpop.f32.mrf.mxu1  ;;  %v1216_v12 = vpop.f32.mrf.mxu0 }
 0x129   :  { %v1209_v21 = vadd.f32 %v1208_v3, %v1145_v28  ;;  %v1520_v52 = vadd.f32 %v1519_v18, %v1518_v9  ;;  %v1452_v3 = vadd.f32 %v2111_v45, %v2107_v43  ;;  %v1455_v43 = vadd.f32 %v2119_v50, %v2115_v48 }
 0x12a   :  { %v1521_v24 = vpop.f32.mrf.mxu1  ;;  %v1218_v37 = vpop.f32.mrf.mxu0  ;;  %v977_v28 = vadd.f32 %v1415_v5, %v247_v40 }
 0x12b   :  { %v1238_v54 = vmax.f32 %v1209_v21, 0.0  ;;  %v1148_v55 = vadd.f32 %v1520_v52, %v1084_v51  ;;  %v1036_v8 = vadd.f32 %v1452_v3, %v972_v4 }
 0x12c   :  { %v1522_v56 = vpop.f32.mrf.mxu1  ;;  %v1219_v41 = vpop.f32.mrf.mxu0  ;;  %v1041_v50 = vadd.f32 %v1455_v43, %v977_v28 }
 0x12d   :  { %1245 = vst [vmem:[%s2165_s3] sm:$0xff] %v1238_v54  ;;  %v1212_v31 = vadd.f32 %v1211_v30, %v1148_v55  ;;  %v1523_v36 = vadd.f32 %v1522_v56, %v1521_v24  ;;  %v1100_v48 = vadd.f32 %v1492_v19, %v1036_v8 }
 0x12e   :  { %v1524_v59 = vpop.f32.mrf.mxu1  ;;  %v1221_v33 = vpop.f32.mrf.mxu0  ;;  %v1105_v34 = vadd.f32 %v1495_v1, %v1041_v50 }
 0x12f   :  { %v1239_v60 = vmax.f32 %v1212_v31, 0.0  ;;  %v1153_v39 = vadd.f32 %v1523_v36, %v1089_v57 }
 0x130   :  { %v1525_v0 = vpop.f32.mrf.mxu1  ;;  %v1224_v38 = vpop.f32.mrf.mxu0 }
 0x131   :  { %1246 = vst [vmem:[%s2165_s3 + $0x8] sm:$0xff] %v1239_v60  ;;  %v1217_v16 = vadd.f32 %v1216_v12, %v1153_v39  ;;  %v1526_v17 = vadd.f32 %v1525_v0, %v1524_v59 }
 0x132   :  { %v1527_v35 = vpop.f32.mrf.mxu1  ;;  %v1226_v25 = vpop.f32.mrf.mxu0 }
 0x133   :  { %v1240_v6 = vmax.f32 %v1217_v16, 0.0  ;;  %v1156_v7 = vadd.f32 %v1526_v17, %v1092_v2 }
 0x134   :  { %v1528_v23 = vpop.f32.mrf.mxu1  ;;  %v1227_v46 = vpop.f32.mrf.mxu0 }
 0x135   :  { %1247 = vst [vmem:[%s2165_s3 + $0x10] sm:$0xff] %v1240_v6  ;;  %v1220_v45 = vadd.f32 %v1219_v41, %v1156_v7  ;;  %v1529_v9 = vadd.f32 %v1528_v23, %v1527_v35 }
 0x136   :  { %v1530_v26 = vpop.f32.mrf.mxu1  ;;  %v1229_v11 = vpop.f32.mrf.mxu0 }
 0x137   :  { %v1241_v20 = vmax.f32 %v1220_v45, 0.0  ;;  %v1161_v30 = vadd.f32 %v1529_v9, %v1097_v22 }
 0x138   :  { %v1531_v51 = vpop.f32.mrf.mxu1  ;;  %v1232_v42 = vpop.f32.mrf.mxu0 }
 0x139   :  { %1248 = vst [vmem:[%s2165_s3 + $0x18] sm:$0xff] %v1241_v20  ;;  %v1225_v18 = vadd.f32 %v1224_v38, %v1161_v30  ;;  %v1532_v10 = vadd.f32 %v1531_v51, %v1530_v26 }
 0x13a   :  { %v1533_v21 = vpop.f32.mrf.mxu1  ;;  %v1234_v24 = vpop.f32.mrf.mxu0 }
 0x13b   :  { %v1242_v52 = vmax.f32 %v1225_v18, 0.0  ;;  %v1164_v32 = vadd.f32 %v1532_v10, %v1100_v48 }
 0x13c   :  { %v1534_v44 = vpop.f32.mrf.mxu1  ;;  %v1235_v55 = vpop.f32.mrf.mxu0 }
 0x13d   :  { %1249 = vst [vmem:[%s2165_s3 + $0x20] sm:$0xff] %v1242_v52  ;;  %v1228_v47 = vadd.f32 %v1227_v46, %v1164_v32  ;;  %v1535_v49 = vadd.f32 %v1534_v44, %v1533_v21 }
 0x13e   :  { %v1536_v27 = vpop.f32.mrf.mxu1  ;;  %v1236_v56 = vpop.f32.mrf.mxu0 }
 0x13f   :  { %v1243_v53 = vmax.f32 %v1228_v47, 0.0  ;;  %v1169_v54 = vadd.f32 %v1535_v49, %v1105_v34 }
 0x140   :  { %v1537_v12 = vpop.f32.mrf.mxu1 }
 0x141   :  { %1250 = vst [vmem:[%s2165_s3 + $0x28] sm:$0xff] %v1243_v53  ;;  %v1233_v13 = vadd.f32 %v1232_v42, %v1169_v54 }
 0x143   :  { %v1244_v57 = vmax.f32 %v1233_v13, 0.0 }
 0x145   :  { %1251 = vst [vmem:[%s2165_s3 + $0x30] sm:$0x3] %v1244_v57 }

// kernel: wavegan_generator_forward.19
= control target key start
LH: loop header
LB: loop body
LE: loop exit
PB: predicated region body
PF: predicated region fallthrough
CT: control target
= control target key end

     0   :  { %v2713_v1 = vmov 0   ;;  %vm1536_vm0 = vcmask 1041408   ;;  %vm1529_vm1 = vcmask 556032   ;;  %s3453_s1 = inlined_call_operand.vmem [shape: bf16[2500,128], index: 1, kind: input, shape index: {}]   ;;  %s3454_s0 = inlined_call_operand.vmem [shape: bf16[30,2500], index: 0, kind: input, shape index: {}]   ;;  %s3455_s2 = inlined_call_operand.vmem [shape: f32[30,1], index: 2, kind: input, shape index: {}]   ;;  %s3456_s3 = inlined_call_operand.vmem [shape: f32[30,128], index: 3, kind: output, shape index: {}]  }
   0x1   :  { %v2496_v0 = vld [vmem:[%s3453_s1 + $0x78] sm:$0xff]   ;;  %2494 = vset.pattern.permute.xlu0 %v2713_v1  ;;  %2495 = vset.pattern.permute.xlu1 %v2713_v1  ;;  %v2500_v5 = vld [vmem:[%s3453_s1 + $0x70] sm:$0xff]   ;;  %v2504_v9 = vld [vmem:[%s3453_s1 + $0x68] sm:$0xff]  }
   0x2   :  { %v2497_v2 = vld [vmem:[%s3453_s1 + $0xf8] sm:$0xff]   ;;  %2241 = vmatprep.subr.bf16.mxu0 %v2496_v0  ;;  %v2501_v6 = vld [vmem:[%s3453_s1 + $0xf0] sm:$0xff]   ;;  %v2505_v10 = vld [vmem:[%s3453_s1 + $0xe8] sm:$0xff]  }
   0x3   :  { %v2498_v3 = vld [vmem:[%s3453_s1 + $0x38] sm:$0xff]   ;;  %2269 = vmatprep.subr.bf16.mxu1 %v2497_v2  ;;  %v2502_v7 = vld [vmem:[%s3453_s1 + $0x30] sm:$0xff]   ;;  %v2506_v11 = vld [vmem:[%s3453_s1 + $0x28] sm:$0xff]  }
   0x4   :  { %v2499_v4 = vld [vmem:[%s3453_s1 + $0xb8] sm:$0xff]   ;;  %2242 = vmatpush3.bf16.msra.mxu0 %v2498_v3  ;;  %v2503_v8 = vld [vmem:[%s3453_s1 + $0xb0] sm:$0xff]   ;;  %v2507_v12 = vld [vmem:[%s3453_s1 + $0xa8] sm:$0xff]  }
   0x5   :  { %2270 = vmatpush3.bf16.msra.mxu1 %v2499_v4  ;;  %2243 = vmatprep.subr.bf16.mxu0 %v2500_v5  ;;  %v2508_v13 = vld [vmem:[%s3453_s1 + $0x60] sm:$0xff]   ;;  %v2512_v17 = vld [vmem:[%s3453_s1 + $0x58] sm:$0xff]   ;;  %v2516_v21 = vld [vmem:[%s3453_s1 + $0x50] sm:$0xff]  }
   0x6   :  { %2271 = vmatprep.subr.bf16.mxu1 %v2501_v6  ;;  %v2509_v14 = vld [vmem:[%s3453_s1 + $0xe0] sm:$0xff]   ;;  %v2513_v18 = vld [vmem:[%s3453_s1 + $0xd8] sm:$0xff]   ;;  %v2517_v22 = vld [vmem:[%s3453_s1 + $0xd0] sm:$0xff]  }
   0x7   :  { %v2510_v15 = vld [vmem:[%s3453_s1 + $0x20] sm:$0xff]   ;;  %v2514_v19 = vld [vmem:[%s3453_s1 + $0x18] sm:$0xff]   ;;  %v2518_v23 = vld [vmem:[%s3453_s1 + $0x10] sm:$0xff]  }
   0x8   :  { %2244 = vmatpush3.bf16.msra.mxu0 %v2502_v7  ;;  %v2511_v16 = vld [vmem:[%s3453_s1 + $0xa0] sm:$0xff]   ;;  %v2515_v20 = vld [vmem:[%s3453_s1 + $0x98] sm:$0xff]   ;;  %v2519_v24 = vld [vmem:[%s3453_s1 + $0x90] sm:$0xff]  }
   0x9   :  { %2272 = vmatpush3.bf16.msra.mxu1 %v2503_v8  ;;  %2245 = vmatprep.subr.bf16.mxu0 %v2504_v9  ;;  %v2520_v25 = vld [vmem:[%s3453_s1 + $0x48] sm:$0xff]   ;;  %v2524_v29 = vld [vmem:[%s3453_s1 + $0x40] sm:$0xff]   ;;  %v2534_v37 = vld [vmem:[%s3453_s1 + $0x178] sm:$0xff]  }
   0xa   :  { %2273 = vmatprep.subr.bf16.mxu1 %v2505_v10  ;;  %v2521_v26 = vld [vmem:[%s3453_s1 + $0xc8] sm:$0xff]   ;;  %v2525_v30 = vld [vmem:[%s3453_s1 + $0xc0] sm:$0xff]   ;;  %v2535_v38 = vld [vmem:[%s3453_s1 + $0x1f8] sm:$0xff]  }
   0xb   :  { %v2522_v27 = vld [vmem:[%s3453_s1 + $0x8] sm:$0xff]   ;;  %v2526_v31 = vld [vmem:[%s3453_s1] sm:$0xff]   ;;  %v2536_v39 = vld [vmem:[%s3453_s1 + $0x138] sm:$0xff]  }
   0xc   :  { %2246 = vmatpush3.bf16.msra.mxu0 %v2506_v11  ;;  %v2523_v28 = vld [vmem:[%s3453_s1 + $0x88] sm:$0xff]   ;;  %v2527_v32 = vld [vmem:[%s3453_s1 + $0x80] sm:$0xff]   ;;  %v2537_v40 = vld [vmem:[%s3453_s1 + $0x1b8] sm:$0xff]  }
   0xd   :  { %2274 = vmatpush3.bf16.msra.mxu1 %v2507_v12  ;;  %2247 = vmatprep.subr.bf16.mxu0 %v2508_v13  ;;  %v2528_v33 = vld [vmem:[%s3454_s0] ss:$80 sps:$4 sm:$0xff]   ;;  %v2530_v34 = vld [vmem:[%s3454_s0 + $0x4] ss:$80 sps:$4 sm:$0xff]   ;;  %v2531_v35 = vld [vmem:[%s3454_s0 + $0x8] ss:$80 sps:$4 sm:$0xff]  }
   0xe   :  { %2275 = vmatprep.subr.bf16.mxu1 %v2509_v14  ;;  %v2533_v36 = vld [vmem:[%s3454_s0 + $0xc] ss:$80 sps:$4 sm:$0xff]   ;;  %1572 = vmatprep.mubr.bf16.mxu0 %v2530_v34  ;;  %v2538_v41 = vld [vmem:[%s3453_s1 + $0x170] sm:$0xff]   ;;  %v2546_v49 = vld [vmem:[%s3453_s1 + $0x160] sm:$0xff]  }
   0xf   :  { %1621 = vmatprep.mubr.bf16.mxu1 %v2533_v36  ;;  %v2539_v42 = vld [vmem:[%s3453_s1 + $0x1f0] sm:$0xff]   ;;  %v2542_v45 = vld [vmem:[%s3453_s1 + $0x168] sm:$0xff]   ;;  %v2547_v50 = vld [vmem:[%s3453_s1 + $0x1e0] sm:$0xff]  }
  0x10   :  { %2248 = vmatpush3.bf16.msra.mxu0 %v2510_v15  ;;  %v2540_v43 = vld [vmem:[%s3453_s1 + $0x130] sm:$0xff]   ;;  %v2543_v46 = vld [vmem:[%s3453_s1 + $0x1e8] sm:$0xff]   ;;  %v2548_v51 = vld [vmem:[%s3453_s1 + $0x120] sm:$0xff]  }
  0x11   :  { %2276 = vmatpush3.bf16.msra.mxu1 %v2511_v16  ;;  %2249 = vmatprep.subr.bf16.mxu0 %v2512_v17  ;;  %v2541_v44 = vld [vmem:[%s3453_s1 + $0x1b0] sm:$0xff]   ;;  %v2544_v47 = vld [vmem:[%s3453_s1 + $0x128] sm:$0xff]   ;;  %v2549_v52 = vld [vmem:[%s3453_s1 + $0x1a0] sm:$0xff]  }
  0x12   :  { %2277 = vmatprep.subr.bf16.mxu1 %v2513_v18  ;;  %v2545_v48 = vld [vmem:[%s3453_s1 + $0x1a8] sm:$0xff]   ;;  %v2550_v53 = vld [vmem:[%s3454_s0 + $0xa4] ss:$80 sps:$4 sm:$0x7f]   ;;  %v2552_v54 = vld [vmem:[%s3453_s1 + $0x158] sm:$0xff]  }
  0x13   :  { %v2553_v55 = vld [vmem:[%s3453_s1 + $0x1d8] sm:$0xff]   ;;  %v2554_v56 = vld [vmem:[%s3454_s0 + $0xa0] ss:$80 sps:$4 sm:$0x7f]   ;;  %v2564_v2 = vld [vmem:[%s3453_s1 + $0x148] sm:$0xff]  }
  0x14   :  { %2250 = vmatpush3.bf16.msra.mxu0 %v2514_v19  ;;  %v2555_v57 = vld [vmem:[%s3453_s1 + $0x118] sm:$0xff]   ;;  %v2560_v61 = vld [vmem:[%s3453_s1 + $0x150] sm:$0xff]   ;;  %v2565_v3 = vld [vmem:[%s3453_s1 + $0x1c8] sm:$0xff]  }
  0x15   :  { %2278 = vmatpush3.bf16.msra.mxu1 %v2515_v20  ;;  %2251 = vmatprep.subr.bf16.mxu0 %v2516_v21  ;;  %v2556_v58 = vld [vmem:[%s3453_s1 + $0x198] sm:$0xff]   ;;  %v2561_v62 = vld [vmem:[%s3453_s1 + $0x1d0] sm:$0xff]   ;;  %v2566_v4 = vld [vmem:[%s3453_s1 + $0x108] sm:$0xff]  }
  0x16   :  { %2279 = vmatprep.subr.bf16.mxu1 %v2517_v22  ;;  %v2557_v59 = vld [vmem:[%s3454_s0 + $0xac] ss:$80 sps:$4 sm:$0x7f]   ;;  %v2559_v60 = vld [vmem:[%s3454_s0 + $0xa8] ss:$80 sps:$4 sm:$0x7f]  }
  0x17   :  { %v2562_v63 = vld [vmem:[%s3453_s1 + $0x110] sm:$0xff]   ;;  %v2567_v5 = vld [vmem:[%s3453_s1 + $0x188] sm:$0xff]   ;;  %v2568_v6 = vld [vmem:[%s3453_s1 + $0x140] sm:$0xff]  }
  0x18   :  { %2252 = vmatpush3.bf16.msra.mxu0 %v2518_v23  ;;  %v2563_v0 = vld [vmem:[%s3453_s1 + $0x190] sm:$0xff]   ;;  %v2569_v7 = vld [vmem:[%s3453_s1 + $0x1c0] sm:$0xff]   ;;  %v2575_v12 = vld [vmem:[%s3454_s0 + $0x18] ss:$80 sps:$4 sm:$0xff]  }
  0x19   :  { %2280 = vmatpush3.bf16.msra.mxu1 %v2519_v24  ;;  %2253 = vmatprep.subr.bf16.mxu0 %v2520_v25  ;;  %v2570_v8 = vld [vmem:[%s3453_s1 + $0x100] sm:$0xff]   ;;  %v2577_v13 = vld [vmem:[%s3454_s0 + $0x1c] ss:$80 sps:$4 sm:$0xff]   ;;  %v2582_v18 = vld [vmem:[%s3453_s1 + $0x270] sm:$0xff]  }
  0x1a   :  { %2281 = vmatprep.subr.bf16.mxu1 %v2521_v26  ;;  %v2571_v9 = vld [vmem:[%s3453_s1 + $0x180] sm:$0xff]   ;;  %v2578_v14 = vld [vmem:[%s3453_s1 + $0x278] sm:$0xff]   ;;  %v2583_v19 = vld [vmem:[%s3453_s1 + $0x2f0] sm:$0xff]  }
  0x1b   :  { %v2572_v10 = vld [vmem:[%s3454_s0 + $0x10] ss:$80 sps:$4 sm:$0xff]   ;;  %v2574_v11 = vld [vmem:[%s3454_s0 + $0x14] ss:$80 sps:$4 sm:$0xff]   ;;  %v2579_v15 = vld [vmem:[%s3453_s1 + $0x2f8] sm:$0xff]  }
  0x1c   :  { %2254 = vmatpush3.bf16.msra.mxu0 %v2522_v27  ;;  %v2580_v16 = vld [vmem:[%s3453_s1 + $0x238] sm:$0xff]   ;;  %v2584_v20 = vld [vmem:[%s3453_s1 + $0x230] sm:$0xff]   ;;  %v2589_v24 = vld [vmem:[%s3453_s1 + $0x268] sm:$0xff]  }
  0x1d   :  { %2282 = vmatpush3.bf16.msra.mxu1 %v2523_v28  ;;  %2255 = vmatprep.subr.bf16.mxu0 %v2524_v29  ;;  %v2581_v17 = vld [vmem:[%s3453_s1 + $0x2b8] sm:$0xff]   ;;  %v2585_v21 = vld [vmem:[%s3453_s1 + $0x2b0] sm:$0xff]   ;;  %v2590_v25 = vld [vmem:[%s3453_s1 + $0x2e8] sm:$0xff]  }
  0x1e   :  { %2283 = vmatprep.subr.bf16.mxu1 %v2525_v30  ;;  %v2586_v22 = vld [vmem:[%s3454_s0 + $0xb4] ss:$80 sps:$4 sm:$0x7f]   ;;  %v2588_v23 = vld [vmem:[%s3454_s0 + $0xb0] ss:$80 sps:$4 sm:$0x7f]  }
  0x1f   :  { %v2591_v26 = vld [vmem:[%s3454_s0 + $0xbc] ss:$80 sps:$4 sm:$0x7f]   ;;  %v2595_v29 = vld [vmem:[%s3454_s0 + $0xb8] ss:$80 sps:$4 sm:$0x7f]  }
  0x20   :  { %2256 = vmatpush3.bf16.msra.mxu0 %v2526_v31  ;;  %v2593_v27 = vld [vmem:[%s3453_s1 + $0x228] sm:$0xff]   ;;  %v2596_v30 = vld [vmem:[%s3453_s1 + $0x260] sm:$0xff]   ;;  %v2600_v34 = vld [vmem:[%s3453_s1 + $0x258] sm:$0xff]  }
  0x21   :  { %2284 = vmatpush3.bf16.msra.mxu1 %v2527_v32  ;;  %2297 = vmatprep.subr.bf16.mxu0 %v2534_v37  ;;  %v2594_v28 = vld [vmem:[%s3453_s1 + $0x2a8] sm:$0xff]   ;;  %v2597_v31 = vld [vmem:[%s3453_s1 + $0x2e0] sm:$0xff]   ;;  %v2602_v36 = vld [vmem:[%s3453_s1 + $0x218] sm:$0xff]  }
  0x22   :  { %2325 = vmatprep.subr.bf16.mxu1 %v2535_v38  ;;  %v2598_v32 = vld [vmem:[%s3453_s1 + $0x220] sm:$0xff]   ;;  %v2603_v37 = vld [vmem:[%s3453_s1 + $0x298] sm:$0xff]   ;;  %v2604_v38 = vld [vmem:[%s3453_s1 + $0x250] sm:$0xff]  }
  0x23   :  { %1573 = vmatmul.mubr.bf16.vlgmr.msra.gmra.mxu0 %v2528_v33  ;;  %v2599_v33 = vld [vmem:[%s3453_s1 + $0x2a0] sm:$0xff]  }
  0x24   :  { %1622 = vmatmul.mubr.bf16.vlgmr.msra.gmra.mxu1 %v2531_v35  ;;  %2298 = vmatpush3.bf16.msra.mxu0 %v2536_v39  ;;  %v2601_v35 = vld [vmem:[%s3453_s1 + $0x2d8] sm:$0xff]   ;;  %v2605_v39 = vld [vmem:[%s3453_s1 + $0x2d0] sm:$0xff]  }
  0x25   :  { %2326 = vmatpush3.bf16.msra.mxu1 %v2537_v40  ;;  %2299 = vmatprep.subr.bf16.mxu0 %v2538_v41  ;;  %v2606_v40 = vld [vmem:[%s3453_s1 + $0x210] sm:$0xff]  }
  0x26   :  { %2327 = vmatprep.subr.bf16.mxu1 %v2539_v42  ;;  %1580 = vmatprep.mubr.bf16.mxu0 %v2550_v53  ;;  %v2607_v41 = vld [vmem:[%s3453_s1 + $0x290] sm:$0xff]   ;;  %v2608_v42 = vld [vmem:[%s3453_s1 + $0x248] sm:$0xff]  }
  0x27   :  { %1629 = vmatprep.mubr.bf16.mxu1 %v2557_v59  ;;  %v2621_v53 = vld [vmem:[%s3454_s0 + $0x2c] ss:$80 sps:$4 sm:$0xff]   ;;  %v2627_v59 = vld [vmem:[%s3453_s1 + $0x3f0] sm:$0xff]  }
  0x28   :  { %2300 = vmatpush3.bf16.msra.mxu0 %v2540_v43  ;;  %v2609_v43 = vld [vmem:[%s3453_s1 + $0x2c8] sm:$0xff]  }
  0x29   :  { %2328 = vmatpush3.bf16.msra.mxu1 %v2541_v44  ;;  %2301 = vmatprep.subr.bf16.mxu0 %v2542_v45  ;;  %v2610_v44 = vld [vmem:[%s3453_s1 + $0x208] sm:$0xff]  }
  0x2a   :  { %2329 = vmatprep.subr.bf16.mxu1 %v2543_v46  ;;  %v2611_v45 = vld [vmem:[%s3453_s1 + $0x288] sm:$0xff]   ;;  %v2612_v46 = vld [vmem:[%s3453_s1 + $0x240] sm:$0xff]  }
  0x2b   :  { %1581 = vmatmul.mubr.bf16.gmra.mxu0 %v2554_v56  ;;  %v2624_v56 = vld [vmem:[%s3453_s1 + $0x338] sm:$0xff]  }
  0x2c   :  { %2302 = vmatpush3.bf16.msra.mxu0 %v2544_v47  ;;  %1630 = vmatmul.mubr.bf16.gmra.mxu1 %v2559_v60  ;;  %v2613_v47 = vld [vmem:[%s3453_s1 + $0x2c0] sm:$0xff]   ;;  %v2628_v60 = vld [vmem:[%s3453_s1 + $0x330] sm:$0xff]  }
  0x2d   :  { %2330 = vmatpush3.bf16.msra.mxu1 %v2545_v48  ;;  %2303 = vmatprep.subr.bf16.mxu0 %v2546_v49  ;;  %v2614_v48 = vld [vmem:[%s3453_s1 + $0x200] sm:$0xff]  }
  0x2e   :  { %2331 = vmatprep.subr.bf16.mxu1 %v2547_v50  ;;  %1670 = vmatprep.mubr.bf16.mxu0 %v2574_v11  ;;  %v2615_v49 = vld [vmem:[%s3453_s1 + $0x280] sm:$0xff]  }
  0x2f   :  { %1719 = vmatprep.mubr.bf16.mxu1 %v2577_v13  ;;  %v2616_v50 = vld [vmem:[%s3454_s0 + $0x20] ss:$80 sps:$4 sm:$0xff]   ;;  %v2644_v13 = vld [vmem:[%s3453_s1 + $0x358] sm:$0xff]  }
  0x30   :  { %2304 = vmatpush3.bf16.msra.mxu0 %v2548_v51  ;;  %v2618_v51 = vld [vmem:[%s3454_s0 + $0x24] ss:$80 sps:$4 sm:$0xff]  }
  0x31   :  { %2332 = vmatpush3.bf16.msra.mxu1 %v2549_v52  ;;  %2305 = vmatprep.subr.bf16.mxu0 %v2552_v54  ;;  %v2619_v52 = vld [vmem:[%s3454_s0 + $0x28] ss:$80 sps:$4 sm:$0xff]   ;;  %v2642_v11 = vld [vmem:[%s3453_s1 + $0x320] sm:$0xff]  }
  0x32   :  { %2333 = vmatprep.subr.bf16.mxu1 %v2553_v55  ;;  %v2622_v54 = vld [vmem:[%s3453_s1 + $0x378] sm:$0xff]  }
  0x33   :  { %v2623_v55 = vld [vmem:[%s3453_s1 + $0x3f8] sm:$0xff]  }
  0x34   :  { %2306 = vmatpush3.bf16.msra.mxu0 %v2555_v57  ;;  %v2625_v57 = vld [vmem:[%s3453_s1 + $0x3b8] sm:$0xff]  }
  0x35   :  { %2334 = vmatpush3.bf16.msra.mxu1 %v2556_v58  ;;  %2307 = vmatprep.subr.bf16.mxu0 %v2560_v61  ;;  %v2626_v58 = vld [vmem:[%s3453_s1 + $0x370] sm:$0xff]  }
  0x36   :  { %2335 = vmatprep.subr.bf16.mxu1 %v2561_v62  ;;  %v2629_v61 = vld [vmem:[%s3453_s1 + $0x3b0] sm:$0xff]  }
  0x37   :  { %v2630_v62 = vld [vmem:[%s3454_s0 + $0xc4] ss:$80 sps:$4 sm:$0x7f]  }
  0x38   :  { %2308 = vmatpush3.bf16.msra.mxu0 %v2562_v63  ;;  %v2632_v63 = vld [vmem:[%s3454_s0 + $0xc0] ss:$80 sps:$4 sm:$0x7f]  }
  0x39   :  { %2336 = vmatpush3.bf16.msra.mxu1 %v2563_v0  ;;  %2309 = vmatprep.subr.bf16.mxu0 %v2564_v2  ;;  %v2633_v0 = vld [vmem:[%s3453_s1 + $0x368] sm:$0xff]  }
  0x3a   :  { %2337 = vmatprep.subr.bf16.mxu1 %v2565_v3  ;;  %v2634_v2 = vld [vmem:[%s3453_s1 + $0x3e8] sm:$0xff]   ;;  %v368_v3 = vld [vmem:[%s3455_s2] sm:$0xff] }
  0x3b   :  { %374 = vperm.xlu0 %2494, %v368_v3   ;;  %v2701_v3 = vld [vmem:[%s3454_s0 + $0xe4] ss:$80 sps:$4 sm:$0x7f]  }
  0x3c   :  { %2310 = vmatpush3.bf16.msra.mxu0 %v2566_v4  ;;  %v2635_v4 = vld [vmem:[%s3454_s0 + $0xcc] ss:$80 sps:$4 sm:$0x7f]  }
  0x3d   :  { %2338 = vmatpush3.bf16.msra.mxu1 %v2567_v5  ;;  %2311 = vmatprep.subr.bf16.mxu0 %v2568_v6  ;;  %v2637_v5 = vld [vmem:[%s3453_s1 + $0x328] sm:$0xff]  }
  0x3e   :  { %2339 = vmatprep.subr.bf16.mxu1 %v2569_v7  ;;  %v2638_v6 = vld [vmem:[%s3453_s1 + $0x3a8] sm:$0xff]  }
  0x3f   :  { %v2639_v7 = vld [vmem:[%s3454_s0 + $0xc8] ss:$80 sps:$4 sm:$0x7f]  }
  0x40   :  { %2312 = vmatpush3.bf16.msra.mxu0 %v2570_v8  ;;  %v2640_v8 = vld [vmem:[%s3453_s1 + $0x360] sm:$0xff]  }
  0x41   :  { %2340 = vmatpush3.bf16.msra.mxu1 %v2571_v9  ;;  %2353 = vmatprep.subr.bf16.mxu0 %v2578_v14  ;;  %v2641_v9 = vld [vmem:[%s3453_s1 + $0x3e0] sm:$0xff]   ;;  %v2645_v14 = vld [vmem:[%s3453_s1 + $0x3d8] sm:$0xff]  }
  0x42   :  { %2381 = vmatprep.subr.bf16.mxu1 %v2579_v15  ;;  %v2646_v15 = vld [vmem:[%s3453_s1 + $0x318] sm:$0xff]  }
  0x43   :  { %1671 = vmatmul.mubr.bf16.vlgmr.msra.gmra.mxu0 %v2572_v10  ;;  %v369_v10 = vld [vmem:[%s3455_s2 + $0x8] sm:$0xff] }
  0x44   :  { %1720 = vmatmul.mubr.bf16.vlgmr.msra.gmra.mxu1 %v2575_v12  ;;  %2354 = vmatpush3.bf16.msra.mxu0 %v2580_v16  ;;  %v2643_v12 = vld [vmem:[%s3453_s1 + $0x3a0] sm:$0xff]   ;;  %v2647_v16 = vld [vmem:[%s3453_s1 + $0x398] sm:$0xff]  }
  0x45   :  { %2382 = vmatpush3.bf16.msra.mxu1 %v2581_v17  ;;  %2355 = vmatprep.subr.bf16.mxu0 %v2582_v18  ;;  %v2648_v17 = vld [vmem:[%s3453_s1 + $0x350] sm:$0xff]  }
  0x46   :  { %2383 = vmatprep.subr.bf16.mxu1 %v2583_v19  ;;  %1678 = vmatprep.mubr.bf16.mxu0 %v2586_v22  ;;  %v2649_v18 = vld [vmem:[%s3453_s1 + $0x3d0] sm:$0xff]   ;;  %v2653_v22 = vld [vmem:[%s3453_s1 + $0x3c8] sm:$0xff]  }
  0x47   :  { %1727 = vmatprep.mubr.bf16.mxu1 %v2591_v26  ;;  %379 = vperm.xlu0 %2494, %v369_v10   ;;  %v2650_v19 = vld [vmem:[%s3453_s1 + $0x310] sm:$0xff]   ;;  %v2656_v26 = vld [vmem:[%s3453_s1 + $0x340] sm:$0xff]  }
  0x48   :  { %2356 = vmatpush3.bf16.msra.mxu0 %v2584_v20  ;;  %v2651_v20 = vld [vmem:[%s3453_s1 + $0x390] sm:$0xff]   ;;  %v2706_v10 = vld [vmem:[%s3453_s1 + $0x4c0] sm:$0xff]  }
  0x49   :  { %2384 = vmatpush3.bf16.msra.mxu1 %v2585_v21  ;;  %2357 = vmatprep.subr.bf16.mxu0 %v2589_v24  ;;  %v2652_v21 = vld [vmem:[%s3453_s1 + $0x348] sm:$0xff]  }
  0x4a   :  { %2385 = vmatprep.subr.bf16.mxu1 %v2590_v25  ;;  %v2655_v24 = vld [vmem:[%s3453_s1 + $0x388] sm:$0xff]   ;;  %v370_v25 = vld [vmem:[%s3455_s2 + $0x10] sm:$0xff] }
  0x4b   :  { %1679 = vmatmul.mubr.bf16.gmra.mxu0 %v2588_v23  ;;  %v2654_v23 = vld [vmem:[%s3453_s1 + $0x308] sm:$0xff]   ;;  %384 = vperm.xlu1 %2495, %v370_v25  }
  0x4c   :  { %2358 = vmatpush3.bf16.msra.mxu0 %v2593_v27  ;;  %1728 = vmatmul.mubr.bf16.gmra.mxu1 %v2595_v29  ;;  %v2657_v27 = vld [vmem:[%s3453_s1 + $0x3c0] sm:$0xff]  }
  0x4d   :  { %2386 = vmatpush3.bf16.msra.mxu1 %v2594_v28  ;;  %2359 = vmatprep.subr.bf16.mxu0 %v2596_v30  ;;  %v2658_v28 = vld [vmem:[%s3453_s1 + $0x300] sm:$0xff]   ;;  %v371_v30 = vld [vmem:[%s3455_s2 + $0x18] sm:$0x3f] }
  0x4e   :  { %2387 = vmatprep.subr.bf16.mxu1 %v2597_v31  ;;  %1768 = vmatprep.mubr.bf16.mxu0 %v2618_v51  ;;  %v2659_v29 = vld [vmem:[%s3453_s1 + $0x380] sm:$0xff]   ;;  %v2684_v51 = vld [vmem:[%s3453_s1 + $0x458] sm:$0xff]  }
  0x4f   :  { %1817 = vmatprep.mubr.bf16.mxu1 %v2621_v53  ;;  %389 = vperm.xlu1 %2495, %v371_v30   ;;  %v2660_v31 = vld [vmem:[%s3454_s0 + $0x30] ss:$80 sps:$4 sm:$0xff]   ;;  %v2686_v53 = vld [vmem:[%s3453_s1 + $0x498] sm:$0xff]  }
  0x50   :  { %2360 = vmatpush3.bf16.msra.mxu0 %v2598_v32  ;;  %v2662_v32 = vld [vmem:[%s3454_s0 + $0x34] ss:$80 sps:$4 sm:$0xff]  }
  0x51   :  { %2388 = vmatpush3.bf16.msra.mxu1 %v2599_v33  ;;  %2361 = vmatprep.subr.bf16.mxu0 %v2600_v34  ;;  %v2663_v33 = vld [vmem:[%s3454_s0 + $0x38] ss:$80 sps:$4 sm:$0xff]   ;;  %v2665_v34 = vld [vmem:[%s3454_s0 + $0x3c] ss:$80 sps:$4 sm:$0xff]  }
  0x52   :  { %2389 = vmatprep.subr.bf16.mxu1 %v2601_v35  ;;  %v2666_v35 = vld [vmem:[%s3453_s1 + $0x478] sm:$0xff]  }
  0x54   :  { %2362 = vmatpush3.bf16.msra.mxu0 %v2602_v36  ;;  %v2667_v36 = vld [vmem:[%s3453_s1 + $0x438] sm:$0xff]  }
  0x55   :  { %2390 = vmatpush3.bf16.msra.mxu1 %v2603_v37  ;;  %2363 = vmatprep.subr.bf16.mxu0 %v2604_v38  ;;  %v2668_v37 = vld [vmem:[%s3453_s1 + $0x4b8] sm:$0xff]   ;;  %v2669_v38 = vld [vmem:[%s3453_s1 + $0x470] sm:$0xff]  }
  0x56   :  { %2391 = vmatprep.subr.bf16.mxu1 %v2605_v39  ;;  %v2670_v39 = vld [vmem:[%s3453_s1 + $0x430] sm:$0xff]  }
  0x58   :  { %2364 = vmatpush3.bf16.msra.mxu0 %v2606_v40  ;;  %v2671_v40 = vld [vmem:[%s3453_s1 + $0x4b0] sm:$0xff]  }
  0x59   :  { %2392 = vmatpush3.bf16.msra.mxu1 %v2607_v41  ;;  %2365 = vmatprep.subr.bf16.mxu0 %v2608_v42  ;;  %v2672_v41 = vld [vmem:[%s3454_s0 + $0xd4] ss:$80 sps:$4 sm:$0x7f]   ;;  %v2674_v42 = vld [vmem:[%s3454_s0 + $0xd0] ss:$80 sps:$4 sm:$0x7f]  }
  0x5a   :  { %2393 = vmatprep.subr.bf16.mxu1 %v2609_v43  ;;  %v2675_v43 = vld [vmem:[%s3453_s1 + $0x468] sm:$0xff]  }
  0x5c   :  { %2366 = vmatpush3.bf16.msra.mxu0 %v2610_v44  ;;  %v2676_v44 = vld [vmem:[%s3454_s0 + $0xdc] ss:$80 sps:$4 sm:$0x7f]  }
  0x5d   :  { %2394 = vmatpush3.bf16.msra.mxu1 %v2611_v45  ;;  %2367 = vmatprep.subr.bf16.mxu0 %v2612_v46  ;;  %v2678_v45 = vld [vmem:[%s3453_s1 + $0x428] sm:$0xff]  }
  0x5e   :  { %2395 = vmatprep.subr.bf16.mxu1 %v2613_v47  ;;  %v2679_v46 = vld [vmem:[%s3453_s1 + $0x4a8] sm:$0xff]  }
  0x5f   :  { %v2680_v47 = vld [vmem:[%s3454_s0 + $0xd8] ss:$80 sps:$4 sm:$0x7f]  }
  0x60   :  { %2368 = vmatpush3.bf16.msra.mxu0 %v2614_v48  ;;  %v2681_v48 = vld [vmem:[%s3453_s1 + $0x460] sm:$0xff]  }
  0x61   :  { %2396 = vmatpush3.bf16.msra.mxu1 %v2615_v49  ;;  %2409 = vmatprep.subr.bf16.mxu0 %v2622_v54  ;;  %v2682_v49 = vld [vmem:[%s3453_s1 + $0x420] sm:$0xff]   ;;  %v2687_v54 = vld [vmem:[%s3453_s1 + $0x450] sm:$0xff]  }
  0x62   :  { %2437 = vmatprep.subr.bf16.mxu1 %v2623_v55  ;;  %v2688_v55 = vld [vmem:[%s3453_s1 + $0x410] sm:$0xff]  }
  0x63   :  { %1769 = vmatmul.mubr.bf16.vlgmr.msra.gmra.mxu0 %v2616_v50  ;;  %v2683_v50 = vld [vmem:[%s3453_s1 + $0x4a0] sm:$0xff]  }
  0x64   :  { %1818 = vmatmul.mubr.bf16.vlgmr.msra.gmra.mxu1 %v2619_v52  ;;  %2410 = vmatpush3.bf16.msra.mxu0 %v2624_v56  ;;  %v2685_v52 = vld [vmem:[%s3453_s1 + $0x418] sm:$0xff]   ;;  %v2689_v56 = vld [vmem:[%s3453_s1 + $0x490] sm:$0xff]  }
  0x65   :  { %2438 = vmatpush3.bf16.msra.mxu1 %v2625_v57  ;;  %2411 = vmatprep.subr.bf16.mxu0 %v2626_v58  ;;  %v2690_v57 = vld [vmem:[%s3453_s1 + $0x448] sm:$0xff]  }
  0x66   :  { %2439 = vmatprep.subr.bf16.mxu1 %v2627_v59  ;;  %1776 = vmatprep.mubr.bf16.mxu0 %v2630_v62  ;;  %v2691_v58 = vld [vmem:[%s3453_s1 + $0x408] sm:$0xff]   ;;  %v2698_v62 = vld [vmem:[%s3454_s0 + $0x44] ss:$80 sps:$4 sm:$0xff]  }
  0x67   :  { %1825 = vmatprep.mubr.bf16.mxu1 %v2635_v4  ;;  %v2692_v59 = vld [vmem:[%s3453_s1 + $0x488] sm:$0xff]  }
  0x68   :  { %2412 = vmatpush3.bf16.msra.mxu0 %v2628_v60  ;;  %v2693_v60 = vld [vmem:[%s3453_s1 + $0x440] sm:$0xff]  }
  0x69   :  { %2440 = vmatpush3.bf16.msra.mxu1 %v2629_v61  ;;  %2413 = vmatprep.subr.bf16.mxu0 %v2633_v0  ;;  %v2694_v61 = vld [vmem:[%s3453_s1 + $0x400] sm:$0xff]  }
  0x6a   :  { %2441 = vmatprep.subr.bf16.mxu1 %v2634_v2  ;;  %v2699_v0 = vld [vmem:[%s3453_s1 + $0x4e0] ss:$0 sps:$4 sm:$0x33]  }
  0x6b   :  { %1777 = vmatmul.mubr.bf16.gmra.mxu0 %v2632_v63  ;;  %v2695_v63 = vld [vmem:[%s3453_s1 + $0x480] sm:$0xff]   ;;  %v1538_v4 = vsel %vm1536_vm0, %v2699_v0, 0 }
  0x6c   :  { %2414 = vmatpush3.bf16.msra.mxu0 %v2637_v5  ;;  %1826 = vmatmul.mubr.bf16.gmra.mxu1 %v2639_v7  ;;  %v2696_v2 = vld [vmem:[%s3454_s0 + $0x40] ss:$80 sps:$4 sm:$0xff]   ;;  %v2709_v5 = vld [vmem:[%s3454_s0 + $0x4c] ss:$80 sps:$4 sm:$0xff]  }
  0x6d   :  { %2442 = vmatpush3.bf16.msra.mxu1 %v2638_v6  ;;  %2415 = vmatprep.subr.bf16.mxu0 %v2640_v8  ;;  %v2700_v6 = vld [vmem:[%s3453_s1 + $0x4d8] sm:$0xff]   ;;  %v2703_v7 = vld [vmem:[%s3454_s0 + $0xe0] ss:$80 sps:$4 sm:$0x7f]  }
  0x6e   :  { %2443 = vmatprep.subr.bf16.mxu1 %v2641_v9  ;;  %1866 = vmatprep.mubr.bf16.mxu0 %v2662_v32  ;;  %v2704_v8 = vld [vmem:[%s3453_s1 + $0x4d0] sm:$0xff]   ;;  %v2705_v9 = vld [vmem:[%s3453_s1 + $0x4c8] sm:$0xff]  }
  0x6f   :  { %1915 = vmatprep.mubr.bf16.mxu1 %v2665_v34 }
  0x70   :  { %2416 = vmatpush3.bf16.msra.mxu0 %v2642_v11  ;;  %v2707_v11 = vld [vmem:[%s3454_s0 + $0x48] ss:$80 sps:$4 sm:$0xff]  }
  0x71   :  { %2444 = vmatpush3.bf16.msra.mxu1 %v2643_v12  ;;  %2417 = vmatprep.subr.bf16.mxu0 %v2644_v13  ;;  %v2710_v12 = vld [vmem:[%s3454_s0 + $0xec] ss:$80 sps:$4 sm:$0x7f]   ;;  %v2712_v13 = vld [vmem:[%s3454_s0 + $0xe8] ss:$80 sps:$4 sm:$0x7f]  }
  0x72   :  { %2445 = vmatprep.subr.bf16.mxu1 %v2645_v14 }
  0x74   :  { %2418 = vmatpush3.bf16.msra.mxu0 %v2646_v15 }
  0x75   :  { %2446 = vmatpush3.bf16.msra.mxu1 %v2647_v16  ;;  %2419 = vmatprep.subr.bf16.mxu0 %v2648_v17 }
  0x76   :  { %2447 = vmatprep.subr.bf16.mxu1 %v2649_v18 }
  0x78   :  { %2420 = vmatpush3.bf16.msra.mxu0 %v2650_v19 }
  0x79   :  { %2448 = vmatpush3.bf16.msra.mxu1 %v2651_v20  ;;  %2421 = vmatprep.subr.bf16.mxu0 %v2652_v21 }
  0x7a   :  { %2449 = vmatprep.subr.bf16.mxu1 %v2653_v22 }
  0x7c   :  { %2422 = vmatpush3.bf16.msra.mxu0 %v2654_v23 }
  0x7d   :  { %2450 = vmatpush3.bf16.msra.mxu1 %v2655_v24  ;;  %2423 = vmatprep.subr.bf16.mxu0 %v2656_v26 }
  0x7e   :  { %2451 = vmatprep.subr.bf16.mxu1 %v2657_v27 }
  0x80   :  { %2424 = vmatpush3.bf16.msra.mxu0 %v2658_v28 }
  0x81   :  { %2452 = vmatpush3.bf16.msra.mxu1 %v2659_v29  ;;  %2465 = vmatprep.subr.bf16.mxu0 %v2666_v35 }
  0x82   :  { %1981 = vmatprep.subr.bf16.mxu1 %v2713_v1 }
  0x83   :  { %1867 = vmatmul.mubr.bf16.vlgmr.msra.gmra.mxu0 %v2660_v31 }
  0x84   :  { %1916 = vmatmul.mubr.bf16.vlgmr.msra.gmra.mxu1 %v2663_v33  ;;  %2466 = vmatpush3.bf16.msra.mxu0 %v2667_v36 }
  0x85   :  { %1982 = vmatpush1.bf16.msra.mxu1 %v2668_v37  ;;  %2467 = vmatprep.subr.bf16.mxu0 %v2669_v38 }
  0x86   :  { %1983 = vmatprep.subr.bf16.mxu1 %v2713_v1  ;;  %1874 = vmatprep.mubr.bf16.mxu0 %v2672_v41 }
  0x87   :  { %1923 = vmatprep.mubr.bf16.mxu1 %v2676_v44 }
  0x88   :  { %2468 = vmatpush3.bf16.msra.mxu0 %v2670_v39 }
  0x89   :  { %1984 = vmatpush1.bf16.msra.mxu1 %v2671_v40  ;;  %2469 = vmatprep.subr.bf16.mxu0 %v2675_v43 }
  0x8a   :  { %1985 = vmatprep.subr.bf16.mxu1 %v2713_v1 }
  0x8b   :  { %1875 = vmatmul.mubr.bf16.gmra.mxu0 %v2674_v42 }
  0x8c   :  { %2470 = vmatpush3.bf16.msra.mxu0 %v2678_v45  ;;  %1924 = vmatmul.mubr.bf16.gmra.mxu1 %v2680_v47 }
  0x8d   :  { %1986 = vmatpush1.bf16.msra.mxu1 %v2679_v46  ;;  %2471 = vmatprep.subr.bf16.mxu0 %v2681_v48 }
  0x8e   :  { %1987 = vmatprep.subr.bf16.mxu1 %v2713_v1  ;;  %1964 = vmatprep.mubr.bf16.mxu0 %v2698_v62 }
  0x8f   :  { %2239 = vmatprep.mubr.msk.bf16.mxu1 %vm1529_vm1, %v2709_v5 }
  0x90   :  { %2472 = vmatpush3.bf16.msra.mxu0 %v2682_v49 }
  0x91   :  { %1988 = vmatpush1.bf16.msra.mxu1 %v2683_v50  ;;  %2473 = vmatprep.subr.bf16.mxu0 %v2684_v51 }
  0x92   :  { %1989 = vmatprep.subr.bf16.mxu1 %v2713_v1 }
  0x94   :  { %2474 = vmatpush3.bf16.msra.mxu0 %v2685_v52 }
  0x95   :  { %1990 = vmatpush1.bf16.msra.mxu1 %v2686_v53  ;;  %2475 = vmatprep.subr.bf16.mxu0 %v2687_v54 }
  0x96   :  { %1991 = vmatprep.subr.bf16.mxu1 %v2713_v1 }
  0x98   :  { %2476 = vmatpush3.bf16.msra.mxu0 %v2688_v55 }
  0x99   :  { %1992 = vmatpush1.bf16.msra.mxu1 %v2689_v56  ;;  %2477 = vmatprep.subr.bf16.mxu0 %v2690_v57 }
  0x9a   :  { %1993 = vmatprep.subr.bf16.mxu1 %v2713_v1 }
  0x9c   :  { %2478 = vmatpush3.bf16.msra.mxu0 %v2691_v58 }
  0x9d   :  { %1994 = vmatpush1.bf16.msra.mxu1 %v2692_v59  ;;  %2479 = vmatprep.subr.bf16.mxu0 %v2693_v60 }
  0x9e   :  { %1995 = vmatprep.subr.bf16.mxu1 %v2713_v1 }
  0xa0   :  { %2480 = vmatpush3.bf16.msra.mxu0 %v2694_v61 }
  0xa1   :  { %1996 = vmatpush1.bf16.msra.mxu1 %v2695_v63 }
  0xa2   :  { %2003 = vmatprep.subr.bf16.mxu1 %v2713_v1 }
  0xa3   :  { %1965 = vmatmul.mubr.bf16.vlgmr.msra.gmra.mxu0 %v2696_v2 }
  0xa4   :  { %1972 = vmatprep.mubr.bf16.mxu0 %v2701_v3 }
  0xa5   :  { %2004 = vmatpush2.bf16.msra.mxu1 %v1538_v4 }
  0xa6   :  { %2005 = vmatprep.subr.bf16.mxu1 %v2713_v1 }
  0xa9   :  { %2006 = vmatpush2.bf16.msra.mxu1 %v2700_v6 }
  0xaa   :  { %2007 = vmatprep.subr.bf16.mxu1 %v2713_v1 }
  0xab   :  { %1973 = vmatmul.mubr.bf16.gmra.mxu0 %v2703_v7 }
  0xad   :  { %2008 = vmatpush2.bf16.msra.mxu1 %v2704_v8 }
  0xae   :  { %2009 = vmatprep.subr.bf16.mxu1 %v2713_v1 }
  0xb1   :  { %2010 = vmatpush2.bf16.msra.mxu1 %v2705_v9 }
  0xb2   :  { %2011 = vmatprep.subr.bf16.mxu1 %v2713_v1 }
  0xb5   :  { %2012 = vmatpush2.bf16.msra.mxu1 %v2706_v10 }
  0xb6   :  { %v375_v2 = vpop.permute.xlu0 %374 }
  0xb8   :  { %2014 = vmatmul.mubr.bf16.vlgmr.msra.gmra.mxu1 %v2707_v11 }
  0xb9   :  { %2240 = vmatprep.mubr.msk.bf16.mxu1 %vm1529_vm1, %v2710_v12 }
  0xc0   :  { %2022 = vmatmul.mubr.bf16.gmra.mxu1 %v2712_v13 }
  0xc2   :  { %v380_v10 = vpop.permute.xlu0 %379 }
  0xc6   :  { %v385_v13 = vpop.permute.xlu1 %384 }
  0xe3   :  { %v2257_v14 = vpop.f32.mrf.mxu0 }
  0xe4   :  { %v2285_v21 = vpop.f32.mrf.mxu1 }
  0xe5   :  { %v2258_v15 = vpop.f32.mrf.mxu0 }
  0xe6   :  { %v2286_v23 = vpop.f32.mrf.mxu1  ;;  %v2259_v5 = vadd.f32 %v2258_v15, %v2257_v14 }
  0xe7   :  { %v2260_v1 = vpop.f32.mrf.mxu0  ;;  %v2287_v12 = vadd.f32 %v2286_v23, %v2285_v21 }
  0xe8   :  { %v2288_v25 = vpop.f32.mrf.mxu1  ;;  %v1575_v9 = vadd.f32 %v2259_v5, %v375_v2 }
  0xe9   :  { %v2261_v16 = vpop.f32.mrf.mxu0 }
  0xea   :  { %v2289_v27 = vpop.f32.mrf.mxu1  ;;  %v2262_v8 = vadd.f32 %v2261_v16, %v2260_v1 }
  0xeb   :  { %v3354_v17 = vpop.f32.mrf.mxu0 }
  0xec   :  { %v2291_v29 = vpop.f32.mrf.mxu1 }
  0xed   :  { %v3356_v18 = vpop.f32.mrf.mxu0 }
  0xee   :  { %v2292_v31 = vpop.f32.mrf.mxu1 }
  0xef   :  { %v3358_v19 = vpop.f32.mrf.mxu0  ;;  %v2293_v23 = vadd.f32 %v2292_v31, %v2291_v29 }
  0xf0   :  { %v3366_v33 = vpop.f32.mrf.mxu1 }
  0xf1   :  { %v3360_v20 = vpop.f32.mrf.mxu0 }
  0xf2   :  { %v3370_v35 = vpop.f32.mrf.mxu1  ;;  %v2268_v16 = vadd.f32 %v3360_v20, %v3358_v19 }
 0x103   :  { %v2313_v22 = vpop.f32.mrf.mxu0 }
 0x104   :  { %v2341_v36 = vpop.f32.mrf.mxu1 }
 0x105   :  { %v2314_v24 = vpop.f32.mrf.mxu0 }
 0x106   :  { %v2342_v39 = vpop.f32.mrf.mxu1 }
 0x107   :  { %v2316_v26 = vpop.f32.mrf.mxu0 }
 0x108   :  { %v2344_v41 = vpop.f32.mrf.mxu1 }
 0x109   :  { %v2317_v28 = vpop.f32.mrf.mxu0 }
 0x10a   :  { %v2345_v43 = vpop.f32.mrf.mxu1  ;;  %v2318_v14 = vadd.f32 %v2317_v28, %v2316_v26 }
 0x10b   :  { %v3362_v30 = vpop.f32.mrf.mxu0  ;;  %v2346_v26 = vadd.f32 %v2345_v43, %v2344_v41 }
 0x10c   :  { %v3374_v44 = vpop.f32.mrf.mxu1 }
 0x10d   :  { %v3364_v32 = vpop.f32.mrf.mxu0 }
 0x10e   :  { %v3376_v46 = vpop.f32.mrf.mxu1 }
 0x10f   :  { %v3368_v34 = vpop.f32.mrf.mxu0 }
 0x110   :  { %v3380_v48 = vpop.f32.mrf.mxu1 }
 0x111   :  { %v3372_v37 = vpop.f32.mrf.mxu0 }
 0x112   :  { %v3384_v50 = vpop.f32.mrf.mxu1  ;;  %v2324_v31 = vadd.f32 %v3372_v37, %v3368_v34 }
 0x123   :  { %v2369_v38 = vpop.f32.mrf.mxu0 }
 0x124   :  { %v2397_v52 = vpop.f32.mrf.mxu1 }
 0x125   :  { %v2370_v40 = vpop.f32.mrf.mxu0 }
 0x126   :  { %v2398_v54 = vpop.f32.mrf.mxu1  ;;  %v2371_v2 = vadd.f32 %v2370_v40, %v2369_v38 }
 0x127   :  { %v2372_v42 = vpop.f32.mrf.mxu0  ;;  %v2399_v40 = vadd.f32 %v2398_v54, %v2397_v52 }
 0x128   :  { %v3390_v56 = vpop.f32.mrf.mxu1 }
 0x129   :  { %v2373_v45 = vpop.f32.mrf.mxu0 }
 0x12a   :  { %v3392_v58 = vpop.f32.mrf.mxu1 }
 0x12b   :  { %v3378_v47 = vpop.f32.mrf.mxu0  ;;  %v2402_v34 = vadd.f32 %v3392_v58, %v3390_v56 }
 0x12c   :  { %v3396_v60 = vpop.f32.mrf.mxu1 }
 0x12d   :  { %v3382_v49 = vpop.f32.mrf.mxu0  ;;  %3459 = vst [vmem:[#allocation4_spill] sm:$0xff] %v3396_v60 }
 0x12e   :  { %v3398_v62 = vpop.f32.mrf.mxu1 }
 0x12f   :  { %v3386_v51 = vpop.f32.mrf.mxu0  ;;  %3460 = vst [vmem:[#allocation5_spill] sm:$0xff] %v3398_v62  ;;  %v2315_v62 = vadd.f32 %v2314_v24, %v2313_v22  ;;  %v390_v22 = vpop.permute.xlu1 %389  ;;  %v2343_v24 = vadd.f32 %v2342_v39, %v2341_v36  ;;  %v2349_v39 = vadd.f32 %v3376_v46, %v3374_v44 }
 0x130   :  { %3457 = vst [vmem:[#allocation2_spill] sm:$0xff] %v3386_v51  ;;  %v3402_v0 = vpop.f32.mrf.mxu1 }
 0x131   :  { %v3388_v53 = vpop.f32.mrf.mxu0  ;;  %3462 = vst [vmem:[#allocation7_spill] sm:$0xff] %v3402_v0  ;;  %v1624_v0 = vadd.f32 %v2287_v12, %v1575_v9 }
 0x132   :  { %3458 = vst [vmem:[#allocation3_spill] sm:$0xff] %v3388_v53  ;;  %v3406_v4 = vpop.f32.mrf.mxu1 }
 0x133   :  { %3464 = vst [vmem:[#allocation9_spill] sm:$0xff] %v3406_v4  ;;  %v2290_v4 = vadd.f32 %v2289_v27, %v2288_v25  ;;  %v1673_v51 = vadd.f32 %v2315_v62, %v1624_v0  ;;  %v2296_v25 = vadd.f32 %v3370_v35, %v3366_v33  ;;  %v2374_v27 = vadd.f32 %v2373_v45, %v2372_v42 }
 0x134   :  { %v2377_v35 = vadd.f32 %v3382_v49, %v3378_v47  ;;  %v2352_v42 = vadd.f32 %v3384_v50, %v3380_v48  ;;  %v3468_v0 = vld [vmem:[#allocation4_spill] sm:$0xff] }
 0x136   :  { %v3469_v47 = vld [vmem:[#allocation5_spill] sm:$0xff] }
 0x137   :  { %v3466_v52 = vld [vmem:[#allocation2_spill] sm:$0xff]  ;;  %v2405_v49 = vadd.f32 %v3469_v47, %v3468_v0 }
 0x139   :  { %v3467_v54 = vld [vmem:[#allocation3_spill] sm:$0xff] }
 0x143   :  { %v2425_v55 = vpop.f32.mrf.mxu0 }
 0x144   :  { %v2453_v6 = vpop.f32.mrf.mxu1 }
 0x145   :  { %v2426_v57 = vpop.f32.mrf.mxu0 }
 0x146   :  { %v2454_v11 = vpop.f32.mrf.mxu1 }
 0x147   :  { %v3394_v59 = vpop.f32.mrf.mxu0 }
 0x148   :  { %v2456_v15 = vpop.f32.mrf.mxu1 }
 0x149   :  { %v2429_v61 = vpop.f32.mrf.mxu0 }
 0x14a   :  { %v2430_v37 = vadd.f32 %v2429_v61, %v3394_v59 }
 0x14b   :  { %v3400_v63 = vpop.f32.mrf.mxu0 }
 0x14c   :  { %3461 = vst [vmem:[#allocation6_spill] sm:$0xff] %v3400_v63  ;;  %v1578_v63 = vadd.f32 %v2262_v8, %v380_v10  ;;  %v2457_v8 = vpop.f32.mrf.mxu1  ;;  %v1722_v10 = vadd.f32 %v2343_v24, %v1673_v51 }
 0x14d   :  { %v3404_v3 = vpop.f32.mrf.mxu0 }
 0x14e   :  { %3463 = vst [vmem:[#allocation8_spill] sm:$0xff] %v3404_v3  ;;  %v2265_v3 = vadd.f32 %v3356_v18, %v3354_v17  ;;  %v1627_v1 = vadd.f32 %v2290_v4, %v1578_v63  ;;  %v2321_v17 = vadd.f32 %v3364_v32, %v3362_v30  ;;  %v1586_v18 = vadd.f32 %v2268_v16, %v390_v22  ;;  %v2459_v28 = vpop.f32.mrf.mxu1 }
 0x14f   :  { %v3408_v7 = vpop.f32.mrf.mxu0  ;;  %v1771_v20 = vadd.f32 %v2371_v2, %v1722_v10  ;;  %v2427_v30 = vadd.f32 %v2426_v57, %v2425_v55  ;;  %v2380_v55 = vadd.f32 %v3467_v54, %v3466_v52 }
 0x150   :  { %3465 = vst [vmem:[#allocation10_spill] sm:$0xff] %v3408_v7  ;;  %v1583_v21 = vadd.f32 %v2265_v3, %v385_v13  ;;  %v1676_v5 = vadd.f32 %v2318_v14, %v1627_v1  ;;  %v1635_v32 = vadd.f32 %v2296_v25, %v1586_v18  ;;  %v2460_v62 = vpop.f32.mrf.mxu1  ;;  %v2455_v3 = vadd.f32 %v2454_v11, %v2453_v6 }
 0x151   :  { %v3410_v60 = vpop.f32.mrf.mxu0  ;;  %v1820_v33 = vadd.f32 %v2399_v40, %v1771_v20  ;;  %v2458_v14 = vadd.f32 %v2457_v8, %v2456_v15 }
 0x152   :  { %v1632_v19 = vadd.f32 %v2293_v23, %v1583_v21  ;;  %v1725_v29 = vadd.f32 %v2346_v26, %v1676_v5  ;;  %v1684_v41 = vadd.f32 %v2324_v31, %v1635_v32  ;;  %v2462_v57 = vpop.f32.mrf.mxu1  ;;  %v3472_v21 = vld [vmem:[#allocation7_spill] sm:$0xff]  ;;  %v3473_v23 = vld [vmem:[#allocation9_spill] sm:$0xff] }
 0x153   :  { %v1869_v45 = vadd.f32 %v2427_v30, %v1820_v33  ;;  %v3470_v58 = vld [vmem:[#allocation6_spill] sm:$0xff]  ;;  %v2408_v22 = vadd.f32 %v3473_v23, %v3472_v21 }
 0x154   :  { %v1681_v38 = vadd.f32 %v2321_v17, %v1632_v19  ;;  %v1774_v51 = vadd.f32 %v2374_v27, %v1725_v29  ;;  %v1733_v48 = vadd.f32 %v2352_v42, %v1684_v41  ;;  %v2463_v1 = vpop.f32.mrf.mxu1 }
 0x155   :  { %v1918_v56 = vadd.f32 %v2455_v3, %v1869_v45  ;;  %v3471_v59 = vld [vmem:[#allocation8_spill] sm:$0xff] }
 0x156   :  { %v1730_v44 = vadd.f32 %v2349_v39, %v1681_v38  ;;  %v1823_v46 = vadd.f32 %v2402_v34, %v1774_v51  ;;  %v2433_v61 = vadd.f32 %v3471_v59, %v3470_v58  ;;  %v1782_v13 = vadd.f32 %v2380_v55, %v1733_v48 }
 0x157   :  { %v3474_v11 = vld [vmem:[#allocation10_spill] sm:$0xff] }
 0x158   :  { %v1779_v63 = vadd.f32 %v2377_v35, %v1730_v44  ;;  %v1872_v50 = vadd.f32 %v2430_v37, %v1823_v46  ;;  %v2436_v17 = vadd.f32 %v3410_v60, %v3474_v11  ;;  %v1831_v26 = vadd.f32 %v2408_v22, %v1782_v13 }
 0x15a   :  { %v1828_v16 = vadd.f32 %v2405_v49, %v1779_v63  ;;  %v1921_v5 = vadd.f32 %v2458_v14, %v1872_v50  ;;  %v1880_v31 = vadd.f32 %v2436_v17, %v1831_v26 }
 0x163   :  { %v2481_v53 = vpop.f32.mrf.mxu0 }
 0x165   :  { %v2482_v7 = vpop.f32.mrf.mxu0 }
 0x166   :  { %v2483_v4 = vadd.f32 %v2482_v7, %v2481_v53  ;;  %v1877_v53 = vadd.f32 %v2433_v61, %v1828_v16  ;;  %v2461_v7 = vadd.f32 %v2460_v62, %v2459_v28 }
 0x167   :  { %v2484_v9 = vpop.f32.mrf.mxu0 }
 0x168   :  { %v1967_v2 = vadd.f32 %v2483_v4, %v1918_v56  ;;  %v1926_v29 = vadd.f32 %v2461_v7, %v1877_v53 }
 0x169   :  { %v2485_v36 = vpop.f32.mrf.mxu0 }
 0x16a   :  { %v2486_v24 = vadd.f32 %v2485_v36, %v2484_v9  ;;  %v2464_v9 = vadd.f32 %v2463_v1, %v2462_v57 }
 0x16b   :  { %v2487_v43 = vpop.f32.mrf.mxu0 }
 0x16c   :  { %v1970_v8 = vadd.f32 %v2486_v24, %v1921_v5  ;;  %v1929_v30 = vadd.f32 %v2464_v9, %v1880_v31 }
 0x16d   :  { %v2488_v12 = vpop.f32.mrf.mxu0 }
 0x16e   :  { %v2489_v27 = vadd.f32 %v2488_v12, %v2487_v43 }
 0x16f   :  { %v2490_v10 = vpop.f32.mrf.mxu0 }
 0x170   :  { %v1975_v60 = vadd.f32 %v2489_v27, %v1926_v29 }
 0x171   :  { %v2491_v19 = vpop.f32.mrf.mxu0 }
 0x172   :  { %v2492_v38 = vadd.f32 %v2491_v19, %v2490_v10 }
 0x174   :  { %v1978_v33 = vadd.f32 %v2492_v38, %v1929_v30 }
 0x178   :  { %v2015_v6 = vpop.f32.mrf.mxu1 }
 0x179   :  { %v2016_v18 = vadd.f32 %v2015_v6, %v1967_v2 }
 0x17a   :  { %v2017_v25 = vpop.f32.mrf.mxu1 }
 0x17b   :  { %v2030_v15 = vmax.f32 %v2016_v18, 0.0 }
 0x17c   :  { %v2018_v20 = vpop.f32.mrf.mxu1 }
 0x17d   :  { %2034 = vst [vmem:[%s3456_s3] sm:$0xff] %v2030_v15  ;;  %v2019_v36 = vadd.f32 %v2018_v20, %v1970_v8 }
 0x17e   :  { %v2020_v28 = vpop.f32.mrf.mxu1 }
 0x17f   :  { %v2031_v39 = vmax.f32 %v2019_v36, 0.0 }
 0x180   :  { %v2023_v40 = vpop.f32.mrf.mxu1 }
 0x181   :  { %2035 = vst [vmem:[%s3456_s3 + $0x8] sm:$0xff] %v2031_v39  ;;  %v2024_v32 = vadd.f32 %v2023_v40, %v1975_v60 }
 0x182   :  { %v2025_v51 = vpop.f32.mrf.mxu1 }
 0x183   :  { %v2032_v62 = vmax.f32 %v2024_v32, 0.0 }
 0x184   :  { %v2026_v35 = vpop.f32.mrf.mxu1 }
 0x185   :  { %2036 = vst [vmem:[%s3456_s3 + $0x10] sm:$0xff] %v2032_v62  ;;  %v2027_v41 = vadd.f32 %v2026_v35, %v1978_v33 }
 0x186   :  { %v2028_v42 = vpop.f32.mrf.mxu1 }
 0x187   :  { %v2033_v34 = vmax.f32 %v2027_v41, 0.0 }
 0x189   :  { %2037 = vst [vmem:[%s3456_s3 + $0x18] sm:$0x3f] %v2033_v34 }

// kernel: wavegan_generator_forward.20
= control target key start
LH: loop header
LB: loop body
LE: loop exit
PB: predicated region body
PF: predicated region fallthrough
CT: control target
= control target key end

     0   :  { %v2009_v9 = vmov 0   ;;  %vm1224_vm0 = vcmask 752640   ;;  %vm1228_vm1 = vcmask 1045504   ;;  %s2648_s1 = inlined_call_operand.vmem [shape: bf16[1500,256], index: 1, kind: input, shape index: {}]   ;;  %s2649_s0 = inlined_call_operand.vmem [shape: bf16[10,1500], index: 0, kind: input, shape index: {}]   ;;  %s2650_s2 = inlined_call_operand.vmem [shape: f32[10,1], index: 2, kind: input, shape index: {}]   ;;  %s2651_s3 = inlined_call_operand.vmem [shape: f32[10,256], index: 3, kind: output, shape index: {}]  }
   0x1   :  { %v1709_v0 = vld [vmem:[%s2648_s1 + $0x74] ss:$8 sps:$4 sm:$0xff]   ;;  %v1711_v1 = vld [vmem:[%s2648_s1 + $0x70] ss:$8 sps:$4 sm:$0xff]   ;;  %v1715_v4 = vld [vmem:[%s2648_s1 + $0x64] ss:$8 sps:$4 sm:$0xff]   ;;  %1708 = vset.pattern.permute.xlu0 %v2009_v9 }
   0x2   :  { %1235 = vmatprep.subr.bf16.mxu0 %v1709_v0  ;;  %v1712_v2 = vld [vmem:[%s2648_s1 + $0x174] ss:$8 sps:$4 sm:$0xff]   ;;  %v1714_v3 = vld [vmem:[%s2648_s1 + $0x170] ss:$8 sps:$4 sm:$0xff]   ;;  %v1717_v5 = vld [vmem:[%s2648_s1 + $0x60] ss:$8 sps:$4 sm:$0xff]  }
   0x3   :  { %1236 = vmatpush1.bf16.msra.mxu0 %v1711_v1  ;;  %1278 = vmatprep.subr.bf16.mxu1 %v1712_v2  ;;  %v1718_v6 = vld [vmem:[%s2648_s1 + $0x164] ss:$8 sps:$4 sm:$0xff]   ;;  %v1720_v7 = vld [vmem:[%s2648_s1 + $0x160] ss:$8 sps:$4 sm:$0xff]   ;;  %v1721_v8 = vld [vmem:[%s2648_s1 + $0x54] ss:$8 sps:$4 sm:$0xff]  }
   0x4   :  { %1279 = vmatpush1.bf16.msra.mxu1 %v1714_v3  ;;  %1237 = vmatprep.subr.bf16.mxu0 %v1715_v4  ;;  %v1723_v10 = vld [vmem:[%s2648_s1 + $0x50] ss:$8 sps:$4 sm:$0xff]   ;;  %v1724_v11 = vld [vmem:[%s2648_s1 + $0x154] ss:$8 sps:$4 sm:$0xff]   ;;  %v1727_v12 = vld [vmem:[%s2648_s1 + $0x44] ss:$8 sps:$4 sm:$0xff]  }
   0x5   :  { %1280 = vmatprep.subr.bf16.mxu1 %v1718_v6  ;;  %v1726_v13 = vld [vmem:[%s2648_s1 + $0x150] ss:$8 sps:$4 sm:$0xff]   ;;  %v1730_v14 = vld [vmem:[%s2648_s1 + $0x144] ss:$8 sps:$4 sm:$0xff]   ;;  %v1729_v15 = vld [vmem:[%s2648_s1 + $0x40] ss:$8 sps:$4 sm:$0xff]  }
   0x6   :  { %v1733_v16 = vld [vmem:[%s2648_s1 + $0x34] ss:$8 sps:$4 sm:$0xff]   ;;  %v1732_v17 = vld [vmem:[%s2648_s1 + $0x140] ss:$8 sps:$4 sm:$0xff]   ;;  %v1735_v19 = vld [vmem:[%s2648_s1 + $0x30] ss:$8 sps:$4 sm:$0xff]  }
   0x7   :  { %1238 = vmatpush1.bf16.msra.mxu0 %v1717_v5  ;;  %v1736_v18 = vld [vmem:[%s2648_s1 + $0x134] ss:$8 sps:$4 sm:$0xff]   ;;  %v1739_v20 = vld [vmem:[%s2648_s1 + $0x24] ss:$8 sps:$4 sm:$0xff]   ;;  %v1738_v21 = vld [vmem:[%s2648_s1 + $0x130] ss:$8 sps:$4 sm:$0xff]  }
   0x8   :  { %1239 = vmatprep.subr.bf16.mxu0 %v1721_v8  ;;  %1281 = vmatpush1.bf16.msra.mxu1 %v1720_v7  ;;  %v1742_v22 = vld [vmem:[%s2648_s1 + $0x124] ss:$8 sps:$4 sm:$0xff]   ;;  %v1741_v23 = vld [vmem:[%s2648_s1 + $0x20] ss:$8 sps:$4 sm:$0xff]   ;;  %v1745_v24 = vld [vmem:[%s2648_s1 + $0x14] ss:$8 sps:$4 sm:$0xff]  }
   0x9   :  { %1282 = vmatprep.subr.bf16.mxu1 %v1724_v11  ;;  %v1744_v25 = vld [vmem:[%s2648_s1 + $0x120] ss:$8 sps:$4 sm:$0xff]   ;;  %v1748_v26 = vld [vmem:[%s2648_s1 + $0x114] ss:$8 sps:$4 sm:$0xff]   ;;  %v1747_v27 = vld [vmem:[%s2648_s1 + $0x10] ss:$8 sps:$4 sm:$0xff]  }
   0xa   :  { %v1751_v28 = vld [vmem:[%s2648_s1 + $0x4] ss:$8 sps:$4 sm:$0xff]   ;;  %v1750_v29 = vld [vmem:[%s2648_s1 + $0x110] ss:$8 sps:$4 sm:$0xff]   ;;  %v1753_v31 = vld [vmem:[%s2648_s1] ss:$8 sps:$4 sm:$0xff]  }
   0xb   :  { %1240 = vmatpush1.bf16.msra.mxu0 %v1723_v10  ;;  %v1754_v30 = vld [vmem:[%s2648_s1 + $0x104] ss:$8 sps:$4 sm:$0xff]   ;;  %v1757_v32 = vld [vmem:[%s2648_s1 + $0xf4] ss:$8 sps:$4 sm:$0xff]   ;;  %v1756_v33 = vld [vmem:[%s2648_s1 + $0x100] ss:$8 sps:$4 sm:$0xff]  }
   0xc   :  { %1241 = vmatprep.subr.bf16.mxu0 %v1727_v12  ;;  %1283 = vmatpush1.bf16.msra.mxu1 %v1726_v13  ;;  %v1760_v34 = vld [vmem:[%s2648_s1 + $0x1f4] ss:$8 sps:$4 sm:$0xff]   ;;  %v1759_v35 = vld [vmem:[%s2648_s1 + $0xf0] ss:$8 sps:$4 sm:$0xff]   ;;  %v1763_v36 = vld [vmem:[%s2648_s1 + $0xe4] ss:$8 sps:$4 sm:$0xff]  }
   0xd   :  { %1284 = vmatprep.subr.bf16.mxu1 %v1730_v14  ;;  %v1762_v37 = vld [vmem:[%s2648_s1 + $0x1f0] ss:$8 sps:$4 sm:$0xff]   ;;  %v1766_v38 = vld [vmem:[%s2648_s1 + $0x1e4] ss:$8 sps:$4 sm:$0xff]   ;;  %v1765_v39 = vld [vmem:[%s2648_s1 + $0xe0] ss:$8 sps:$4 sm:$0xff]  }
   0xe   :  { %v1769_v40 = vld [vmem:[%s2648_s1 + $0xd4] ss:$8 sps:$4 sm:$0xff]   ;;  %v1768_v41 = vld [vmem:[%s2648_s1 + $0x1e0] ss:$8 sps:$4 sm:$0xff]   ;;  %v1771_v43 = vld [vmem:[%s2648_s1 + $0xd0] ss:$8 sps:$4 sm:$0xff]  }
   0xf   :  { %1242 = vmatpush1.bf16.msra.mxu0 %v1729_v15  ;;  %v1772_v42 = vld [vmem:[%s2648_s1 + $0x1d4] ss:$8 sps:$4 sm:$0xff]   ;;  %v1775_v44 = vld [vmem:[%s2648_s1 + $0xc4] ss:$8 sps:$4 sm:$0xff]   ;;  %v1774_v45 = vld [vmem:[%s2648_s1 + $0x1d0] ss:$8 sps:$4 sm:$0xff]  }
  0x10   :  { %1243 = vmatprep.subr.bf16.mxu0 %v1733_v16  ;;  %1285 = vmatpush1.bf16.msra.mxu1 %v1732_v17  ;;  %v1778_v46 = vld [vmem:[%s2648_s1 + $0x1c4] ss:$8 sps:$4 sm:$0xff]   ;;  %v1777_v47 = vld [vmem:[%s2648_s1 + $0xc0] ss:$8 sps:$4 sm:$0xff]   ;;  %v1781_v49 = vld [vmem:[%s2648_s1 + $0xb4] ss:$8 sps:$4 sm:$0xff]  }
  0x11   :  { %1286 = vmatprep.subr.bf16.mxu1 %v1736_v18  ;;  %v1806_v48 = vld [vmem:[%s2649_s0 + $0x4] ss:$48 sps:$4 sm:$0x1f]   ;;  %v1780_v50 = vld [vmem:[%s2648_s1 + $0x1c0] ss:$8 sps:$4 sm:$0xff]  }
  0x12   :  { %1267 = vmatprep.mubr.bf16.mxu0 %v1806_v48  ;;  %v1784_v51 = vld [vmem:[%s2648_s1 + $0x1b4] ss:$8 sps:$4 sm:$0xff]   ;;  %v1783_v52 = vld [vmem:[%s2648_s1 + $0xb0] ss:$8 sps:$4 sm:$0xff]   ;;  %v1787_v54 = vld [vmem:[%s2648_s1 + $0xa4] ss:$8 sps:$4 sm:$0xff]  }
  0x13   :  { %1244 = vmatpush1.bf16.msra.mxu0 %v1735_v19  ;;  %v1813_v53 = vld [vmem:[%s2649_s0 + $0xc] ss:$48 sps:$4 sm:$0x1f]   ;;  %v1786_v55 = vld [vmem:[%s2648_s1 + $0x1b0] ss:$8 sps:$4 sm:$0xff]  }
  0x14   :  { %1245 = vmatprep.subr.bf16.mxu0 %v1739_v20  ;;  %1287 = vmatpush1.bf16.msra.mxu1 %v1738_v21  ;;  %v1790_v56 = vld [vmem:[%s2648_s1 + $0x1a4] ss:$8 sps:$4 sm:$0xff]   ;;  %v1789_v57 = vld [vmem:[%s2648_s1 + $0xa0] ss:$8 sps:$4 sm:$0xff]   ;;  %v1793_v58 = vld [vmem:[%s2648_s1 + $0x94] ss:$8 sps:$4 sm:$0xff]  }
  0x15   :  { %1288 = vmatprep.subr.bf16.mxu1 %v1742_v22  ;;  %1310 = vmatprep.mubr.bf16.mxu1 %v1813_v53  ;;  %v1792_v59 = vld [vmem:[%s2648_s1 + $0x1a0] ss:$8 sps:$4 sm:$0xff]   ;;  %v1796_v60 = vld [vmem:[%s2648_s1 + $0x194] ss:$8 sps:$4 sm:$0xff]   ;;  %v1795_v61 = vld [vmem:[%s2648_s1 + $0x90] ss:$8 sps:$4 sm:$0xff]  }
  0x16   :  { %v1799_v62 = vld [vmem:[%s2648_s1 + $0x84] ss:$8 sps:$4 sm:$0xff]   ;;  %v1798_v63 = vld [vmem:[%s2648_s1 + $0x190] ss:$8 sps:$4 sm:$0xff]   ;;  %v1801_v1 = vld [vmem:[%s2648_s1 + $0x80] ss:$8 sps:$4 sm:$0xff]  }
  0x17   :  { %1246 = vmatpush1.bf16.msra.mxu0 %v1741_v23  ;;  %v1802_v0 = vld [vmem:[%s2648_s1 + $0x184] ss:$8 sps:$4 sm:$0xff]   ;;  %v1810_v2 = vld [vmem:[%s2648_s1 + $0x274] ss:$8 sps:$4 sm:$0xff]   ;;  %v1807_v4 = vld [vmem:[%s2648_s1 + $0x180] ss:$8 sps:$4 sm:$0xff]  }
  0x18   :  { %1247 = vmatprep.subr.bf16.mxu0 %v1745_v24  ;;  %1289 = vmatpush1.bf16.msra.mxu1 %v1744_v25  ;;  %v1804_v3 = vld [vmem:[%s2649_s0] ss:$48 sps:$4 sm:$0x1f]   ;;  %v1816_v6 = vld [vmem:[%s2648_s1 + $0x374] ss:$8 sps:$4 sm:$0xff]  }
  0x19   :  { %1290 = vmatprep.subr.bf16.mxu1 %v1748_v26  ;;  %v1808_v5 = vld [vmem:[%s2648_s1 + $0x270] ss:$8 sps:$4 sm:$0xff]   ;;  %v1819_v8 = vld [vmem:[%s2648_s1 + $0x264] ss:$8 sps:$4 sm:$0xff]   ;;  %v1817_v11 = vld [vmem:[%s2648_s1 + $0x260] ss:$8 sps:$4 sm:$0xff]  }
  0x1a   :  { %v1811_v7 = vld [vmem:[%s2649_s0 + $0x8] ss:$48 sps:$4 sm:$0x1f]   ;;  %v1822_v10 = vld [vmem:[%s2648_s1 + $0x364] ss:$8 sps:$4 sm:$0xff]  }
  0x1b   :  { %1248 = vmatpush1.bf16.msra.mxu0 %v1747_v27  ;;  %v1814_v9 = vld [vmem:[%s2648_s1 + $0x370] ss:$8 sps:$4 sm:$0xff]   ;;  %v1825_v12 = vld [vmem:[%s2648_s1 + $0x254] ss:$8 sps:$4 sm:$0xff]   ;;  %v1820_v13 = vld [vmem:[%s2648_s1 + $0x360] ss:$8 sps:$4 sm:$0xff]  }
  0x1c   :  { %1249 = vmatprep.subr.bf16.mxu0 %v1751_v28  ;;  %1291 = vmatpush1.bf16.msra.mxu1 %v1750_v29  ;;  %v1828_v14 = vld [vmem:[%s2648_s1 + $0x354] ss:$8 sps:$4 sm:$0xff]   ;;  %v1823_v15 = vld [vmem:[%s2648_s1 + $0x250] ss:$8 sps:$4 sm:$0xff]   ;;  %v1831_v16 = vld [vmem:[%s2648_s1 + $0x244] ss:$8 sps:$4 sm:$0xff]  }
  0x1d   :  { %1292 = vmatprep.subr.bf16.mxu1 %v1754_v30  ;;  %v1826_v17 = vld [vmem:[%s2648_s1 + $0x350] ss:$8 sps:$4 sm:$0xff]   ;;  %v1834_v18 = vld [vmem:[%s2648_s1 + $0x344] ss:$8 sps:$4 sm:$0xff]   ;;  %v1829_v19 = vld [vmem:[%s2648_s1 + $0x240] ss:$8 sps:$4 sm:$0xff]  }
  0x1e   :  { %v1837_v20 = vld [vmem:[%s2648_s1 + $0x234] ss:$8 sps:$4 sm:$0xff]   ;;  %v1832_v21 = vld [vmem:[%s2648_s1 + $0x340] ss:$8 sps:$4 sm:$0xff]   ;;  %v1835_v23 = vld [vmem:[%s2648_s1 + $0x230] ss:$8 sps:$4 sm:$0xff]  }
  0x1f   :  { %1250 = vmatpush1.bf16.msra.mxu0 %v1753_v31  ;;  %v1840_v22 = vld [vmem:[%s2648_s1 + $0x334] ss:$8 sps:$4 sm:$0xff]   ;;  %v1843_v24 = vld [vmem:[%s2648_s1 + $0x224] ss:$8 sps:$4 sm:$0xff]   ;;  %v1838_v25 = vld [vmem:[%s2648_s1 + $0x330] ss:$8 sps:$4 sm:$0xff]  }
  0x20   :  { %1251 = vmatprep.subr.bf16.mxu0 %v1757_v32  ;;  %1293 = vmatpush1.bf16.msra.mxu1 %v1756_v33  ;;  %v1846_v26 = vld [vmem:[%s2648_s1 + $0x324] ss:$8 sps:$4 sm:$0xff]   ;;  %v1841_v27 = vld [vmem:[%s2648_s1 + $0x220] ss:$8 sps:$4 sm:$0xff]   ;;  %v1849_v28 = vld [vmem:[%s2648_s1 + $0x214] ss:$8 sps:$4 sm:$0xff]  }
  0x21   :  { %1294 = vmatprep.subr.bf16.mxu1 %v1760_v34  ;;  %v1844_v29 = vld [vmem:[%s2648_s1 + $0x320] ss:$8 sps:$4 sm:$0xff]   ;;  %v1852_v30 = vld [vmem:[%s2648_s1 + $0x314] ss:$8 sps:$4 sm:$0xff]   ;;  %v1847_v31 = vld [vmem:[%s2648_s1 + $0x210] ss:$8 sps:$4 sm:$0xff]  }
  0x22   :  { %v1855_v32 = vld [vmem:[%s2648_s1 + $0x204] ss:$8 sps:$4 sm:$0xff]   ;;  %v1850_v33 = vld [vmem:[%s2648_s1 + $0x310] ss:$8 sps:$4 sm:$0xff]   ;;  %v1873_v48 = vld [vmem:[%s2648_s1 + $0x2d4] ss:$8 sps:$4 sm:$0xff]  }
  0x23   :  { %1252 = vmatpush2.bf16.msra.mxu0 %v1759_v35  ;;  %v1909_v34 = vld [vmem:[%s2649_s0 + $0x14] ss:$48 sps:$4 sm:$0x1f]   ;;  %v1874_v53 = vld [vmem:[%s2648_s1 + $0x3d0] ss:$8 sps:$4 sm:$0xff]  }
  0x24   :  { %1253 = vmatprep.subr.bf16.mxu0 %v1763_v36  ;;  %1295 = vmatpush2.bf16.msra.mxu1 %v1762_v37  ;;  %v1858_v35 = vld [vmem:[%s2648_s1 + $0x304] ss:$8 sps:$4 sm:$0xff]   ;;  %v1853_v36 = vld [vmem:[%s2648_s1 + $0x200] ss:$8 sps:$4 sm:$0xff]   ;;  %v1861_v37 = vld [vmem:[%s2648_s1 + $0x2f4] ss:$8 sps:$4 sm:$0xff]  }
  0x25   :  { %1296 = vmatprep.subr.bf16.mxu1 %v1766_v38  ;;  %v1915_v38 = vld [vmem:[%s2649_s0 + $0x1c] ss:$48 sps:$4 sm:$0x1f]  }
  0x27   :  { %1254 = vmatpush2.bf16.msra.mxu0 %v1765_v39  ;;  %v1856_v39 = vld [vmem:[%s2648_s1 + $0x300] ss:$8 sps:$4 sm:$0xff]  }
  0x28   :  { %1255 = vmatprep.subr.bf16.mxu0 %v1769_v40  ;;  %1297 = vmatpush2.bf16.msra.mxu1 %v1768_v41  ;;  %v1864_v40 = vld [vmem:[%s2648_s1 + $0x3f4] ss:$8 sps:$4 sm:$0xff]   ;;  %v1859_v41 = vld [vmem:[%s2648_s1 + $0x2f0] ss:$8 sps:$4 sm:$0xff]  }
  0x29   :  { %1298 = vmatprep.subr.bf16.mxu1 %v1772_v42  ;;  %v215_v42 = vld [vmem:[%s2650_s2] sm:$0xff] }
  0x2a   :  { %219 = vperm.xlu0 %1708, %v215_v42   ;;  %v1963_v42 = vld [vmem:[%s2648_s1 + $0x504] ss:$8 sps:$4 sm:$0xff]  }
  0x2b   :  { %1256 = vmatpush2.bf16.msra.mxu0 %v1771_v43  ;;  %v1867_v43 = vld [vmem:[%s2648_s1 + $0x2e4] ss:$8 sps:$4 sm:$0xff]  }
  0x2c   :  { %1257 = vmatprep.subr.bf16.mxu0 %v1775_v44  ;;  %1299 = vmatpush2.bf16.msra.mxu1 %v1774_v45  ;;  %v1862_v44 = vld [vmem:[%s2648_s1 + $0x3f0] ss:$8 sps:$4 sm:$0xff]   ;;  %v1870_v45 = vld [vmem:[%s2648_s1 + $0x3e4] ss:$8 sps:$4 sm:$0xff]  }
  0x2d   :  { %1300 = vmatprep.subr.bf16.mxu1 %v1778_v46  ;;  %v216_v46 = vld [vmem:[%s2650_s2 + $0x8] sm:$0x3] }
  0x2e   :  { %224 = vperm.xlu0 %1708, %v216_v46   ;;  %v1967_v46 = vld [vmem:[%s2648_s1 + $0x5d4] ss:$8 sps:$4 sm:$0x3f]  }
  0x2f   :  { %1258 = vmatpush2.bf16.msra.mxu0 %v1777_v47  ;;  %v1865_v47 = vld [vmem:[%s2648_s1 + $0x2e0] ss:$8 sps:$4 sm:$0xff]  }
  0x30   :  { %1259 = vmatprep.subr.bf16.mxu0 %v1781_v49  ;;  %1301 = vmatpush2.bf16.msra.mxu1 %v1780_v50  ;;  %v1868_v49 = vld [vmem:[%s2648_s1 + $0x3e0] ss:$8 sps:$4 sm:$0xff]   ;;  %v1876_v50 = vld [vmem:[%s2648_s1 + $0x3d4] ss:$8 sps:$4 sm:$0xff]  }
  0x31   :  { %1302 = vmatprep.subr.bf16.mxu1 %v1784_v51  ;;  %v1871_v51 = vld [vmem:[%s2648_s1 + $0x2d0] ss:$8 sps:$4 sm:$0xff]  }
  0x33   :  { %1260 = vmatpush2.bf16.msra.mxu0 %v1783_v52  ;;  %v1879_v52 = vld [vmem:[%s2648_s1 + $0x2c4] ss:$8 sps:$4 sm:$0xff]  }
  0x34   :  { %1261 = vmatprep.subr.bf16.mxu0 %v1787_v54  ;;  %1303 = vmatpush2.bf16.msra.mxu1 %v1786_v55  ;;  %v1882_v54 = vld [vmem:[%s2648_s1 + $0x3c4] ss:$8 sps:$4 sm:$0xff]   ;;  %v1877_v55 = vld [vmem:[%s2648_s1 + $0x2c0] ss:$8 sps:$4 sm:$0xff]  }
  0x35   :  { %1304 = vmatprep.subr.bf16.mxu1 %v1790_v56  ;;  %v1885_v56 = vld [vmem:[%s2648_s1 + $0x2b4] ss:$8 sps:$4 sm:$0xff]  }
  0x37   :  { %1262 = vmatpush2.bf16.msra.mxu0 %v1789_v57  ;;  %v1880_v57 = vld [vmem:[%s2648_s1 + $0x3c0] ss:$8 sps:$4 sm:$0xff]  }
  0x38   :  { %1263 = vmatprep.subr.bf16.mxu0 %v1793_v58  ;;  %1305 = vmatpush2.bf16.msra.mxu1 %v1792_v59  ;;  %v1888_v58 = vld [vmem:[%s2648_s1 + $0x3b4] ss:$8 sps:$4 sm:$0xff]   ;;  %v1883_v59 = vld [vmem:[%s2648_s1 + $0x2b0] ss:$8 sps:$4 sm:$0xff]  }
  0x39   :  { %1306 = vmatprep.subr.bf16.mxu1 %v1796_v60  ;;  %v1891_v60 = vld [vmem:[%s2648_s1 + $0x2a4] ss:$8 sps:$4 sm:$0xff]  }
  0x3b   :  { %1264 = vmatpush2.bf16.msra.mxu0 %v1795_v61  ;;  %v1886_v61 = vld [vmem:[%s2648_s1 + $0x3b0] ss:$8 sps:$4 sm:$0xff]  }
  0x3c   :  { %1265 = vmatprep.subr.bf16.mxu0 %v1799_v62  ;;  %1307 = vmatpush2.bf16.msra.mxu1 %v1798_v63  ;;  %v1894_v62 = vld [vmem:[%s2648_s1 + $0x3a4] ss:$8 sps:$4 sm:$0xff]   ;;  %v1889_v63 = vld [vmem:[%s2648_s1 + $0x2a0] ss:$8 sps:$4 sm:$0xff]  }
  0x3d   :  { %1308 = vmatprep.subr.bf16.mxu1 %v1802_v0  ;;  %v1897_v0 = vld [vmem:[%s2648_s1 + $0x294] ss:$8 sps:$4 sm:$0xff]  }
  0x3f   :  { %1266 = vmatpush2.bf16.msra.mxu0 %v1801_v1  ;;  %v1892_v1 = vld [vmem:[%s2648_s1 + $0x3a0] ss:$8 sps:$4 sm:$0xff]  }
  0x40   :  { %1321 = vmatprep.subr.bf16.mxu0 %v1810_v2  ;;  %1309 = vmatpush2.bf16.msra.mxu1 %v1807_v4  ;;  %v1900_v2 = vld [vmem:[%s2648_s1 + $0x394] ss:$8 sps:$4 sm:$0xff]   ;;  %v1903_v4 = vld [vmem:[%s2648_s1 + $0x284] ss:$8 sps:$4 sm:$0xff]  }
  0x41   :  { %1364 = vmatprep.subr.bf16.mxu1 %v1816_v6  ;;  %v1906_v6 = vld [vmem:[%s2648_s1 + $0x384] ss:$8 sps:$4 sm:$0xff]  }
  0x42   :  { %1268 = vmatmul.mubr.bf16.vlgmr.msra.gmra.mxu0 %v1804_v3  ;;  %v1895_v3 = vld [vmem:[%s2648_s1 + $0x290] ss:$8 sps:$4 sm:$0xff]  }
  0x43   :  { %1322 = vmatpush1.bf16.msra.mxu0 %v1808_v5  ;;  %1311 = vmatmul.mubr.bf16.vlgmr.msra.gmra.mxu1 %v1811_v7  ;;  %v1898_v5 = vld [vmem:[%s2648_s1 + $0x390] ss:$8 sps:$4 sm:$0xff]   ;;  %v1901_v7 = vld [vmem:[%s2648_s1 + $0x280] ss:$8 sps:$4 sm:$0xff]  }
  0x44   :  { %1323 = vmatprep.subr.bf16.mxu0 %v1819_v8  ;;  %1365 = vmatpush1.bf16.msra.mxu1 %v1814_v9  ;;  %v1912_v8 = vld [vmem:[%s2648_s1 + $0x474] ss:$8 sps:$4 sm:$0xff]   ;;  %v1904_v9 = vld [vmem:[%s2648_s1 + $0x380] ss:$8 sps:$4 sm:$0xff]  }
  0x45   :  { %1366 = vmatprep.subr.bf16.mxu1 %v1822_v10  ;;  %1353 = vmatprep.mubr.bf16.mxu0 %v1909_v34  ;;  %v1907_v10 = vld [vmem:[%s2649_s0 + $0x10] ss:$48 sps:$4 sm:$0x1f]   ;;  %v1951_v34 = vld [vmem:[%s2648_s1 + $0x524] ss:$8 sps:$4 sm:$0xff]  }
  0x46   :  { %1396 = vmatprep.mubr.bf16.mxu1 %v1915_v38  ;;  %v1957_v38 = vld [vmem:[%s2648_s1 + $0x514] ss:$8 sps:$4 sm:$0xff]  }
  0x47   :  { %1324 = vmatpush1.bf16.msra.mxu0 %v1817_v11  ;;  %v1921_v11 = vld [vmem:[%s2648_s1 + $0x574] ss:$8 sps:$4 sm:$0xff]  }
  0x48   :  { %1325 = vmatprep.subr.bf16.mxu0 %v1825_v12  ;;  %1367 = vmatpush1.bf16.msra.mxu1 %v1820_v13  ;;  %v1910_v12 = vld [vmem:[%s2648_s1 + $0x470] ss:$8 sps:$4 sm:$0xff]  }
  0x49   :  { %1368 = vmatprep.subr.bf16.mxu1 %v1828_v14  ;;  %v1913_v13 = vld [vmem:[%s2649_s0 + $0x18] ss:$48 sps:$4 sm:$0x1f]   ;;  %v1918_v14 = vld [vmem:[%s2648_s1 + $0x464] ss:$8 sps:$4 sm:$0xff]  }
  0x4b   :  { %1326 = vmatpush1.bf16.msra.mxu0 %v1823_v15  ;;  %v1916_v15 = vld [vmem:[%s2648_s1 + $0x460] ss:$8 sps:$4 sm:$0xff]  }
  0x4c   :  { %1327 = vmatprep.subr.bf16.mxu0 %v1831_v16  ;;  %1369 = vmatpush1.bf16.msra.mxu1 %v1826_v17  ;;  %v1919_v16 = vld [vmem:[%s2648_s1 + $0x570] ss:$8 sps:$4 sm:$0xff]   ;;  %v1927_v17 = vld [vmem:[%s2648_s1 + $0x564] ss:$8 sps:$4 sm:$0xff]  }
  0x4d   :  { %1370 = vmatprep.subr.bf16.mxu1 %v1834_v18  ;;  %v1924_v18 = vld [vmem:[%s2648_s1 + $0x454] ss:$8 sps:$4 sm:$0xff]  }
  0x4f   :  { %1328 = vmatpush1.bf16.msra.mxu0 %v1829_v19  ;;  %v2000_v19 = vld [vmem:[%s2649_s0 + $0x2c] ss:$48 sps:$4 sm:$0x1f]  }
  0x50   :  { %1329 = vmatprep.subr.bf16.mxu0 %v1837_v20  ;;  %1371 = vmatpush1.bf16.msra.mxu1 %v1832_v21  ;;  %v1925_v20 = vld [vmem:[%s2648_s1 + $0x560] ss:$8 sps:$4 sm:$0xff]   ;;  %v1933_v21 = vld [vmem:[%s2648_s1 + $0x554] ss:$8 sps:$4 sm:$0xff]  }
  0x51   :  { %1372 = vmatprep.subr.bf16.mxu1 %v1840_v22  ;;  %v1922_v22 = vld [vmem:[%s2648_s1 + $0x450] ss:$8 sps:$4 sm:$0xff]  }
  0x53   :  { %1330 = vmatpush1.bf16.msra.mxu0 %v1835_v23  ;;  %v2008_v23 = vld [vmem:[%s2649_s0 + $0x24] ss:$48 sps:$4 sm:$0x1f]  }
  0x54   :  { %1331 = vmatprep.subr.bf16.mxu0 %v1843_v24  ;;  %1373 = vmatpush1.bf16.msra.mxu1 %v1838_v25  ;;  %v1930_v24 = vld [vmem:[%s2648_s1 + $0x444] ss:$8 sps:$4 sm:$0xff]   ;;  %v1931_v25 = vld [vmem:[%s2648_s1 + $0x550] ss:$8 sps:$4 sm:$0xff]  }
  0x55   :  { %1374 = vmatprep.subr.bf16.mxu1 %v1846_v26  ;;  %v1939_v26 = vld [vmem:[%s2648_s1 + $0x544] ss:$8 sps:$4 sm:$0xff]  }
  0x57   :  { %1332 = vmatpush1.bf16.msra.mxu0 %v1841_v27  ;;  %v1928_v27 = vld [vmem:[%s2648_s1 + $0x440] ss:$8 sps:$4 sm:$0xff]  }
  0x58   :  { %1333 = vmatprep.subr.bf16.mxu0 %v1849_v28  ;;  %1375 = vmatpush1.bf16.msra.mxu1 %v1844_v29  ;;  %v1936_v28 = vld [vmem:[%s2648_s1 + $0x434] ss:$8 sps:$4 sm:$0xff]   ;;  %v1937_v29 = vld [vmem:[%s2648_s1 + $0x540] ss:$8 sps:$4 sm:$0xff]  }
  0x59   :  { %1376 = vmatprep.subr.bf16.mxu1 %v1852_v30  ;;  %v1945_v30 = vld [vmem:[%s2648_s1 + $0x534] ss:$8 sps:$4 sm:$0xff]  }
  0x5b   :  { %1334 = vmatpush1.bf16.msra.mxu0 %v1847_v31  ;;  %v1934_v31 = vld [vmem:[%s2648_s1 + $0x430] ss:$8 sps:$4 sm:$0xff]  }
  0x5c   :  { %1335 = vmatprep.subr.bf16.mxu0 %v1855_v32  ;;  %1377 = vmatpush1.bf16.msra.mxu1 %v1850_v33  ;;  %v1942_v32 = vld [vmem:[%s2648_s1 + $0x424] ss:$8 sps:$4 sm:$0xff]   ;;  %v1943_v33 = vld [vmem:[%s2648_s1 + $0x530] ss:$8 sps:$4 sm:$0xff]  }
  0x5d   :  { %1378 = vmatprep.subr.bf16.mxu1 %v1858_v35  ;;  %v1940_v35 = vld [vmem:[%s2648_s1 + $0x420] ss:$8 sps:$4 sm:$0xff]  }
  0x5f   :  { %1336 = vmatpush1.bf16.msra.mxu0 %v1853_v36  ;;  %v1948_v36 = vld [vmem:[%s2648_s1 + $0x414] ss:$8 sps:$4 sm:$0xff]  }
  0x60   :  { %1337 = vmatprep.subr.bf16.mxu0 %v1861_v37  ;;  %1379 = vmatpush1.bf16.msra.mxu1 %v1856_v39  ;;  %v1949_v37 = vld [vmem:[%s2648_s1 + $0x520] ss:$8 sps:$4 sm:$0xff]   ;;  %v1946_v39 = vld [vmem:[%s2648_s1 + $0x410] ss:$8 sps:$4 sm:$0xff]  }
  0x61   :  { %1380 = vmatprep.subr.bf16.mxu1 %v1864_v40  ;;  %v1954_v40 = vld [vmem:[%s2648_s1 + $0x404] ss:$8 sps:$4 sm:$0xff]  }
  0x63   :  { %1338 = vmatpush2.bf16.msra.mxu0 %v1859_v41  ;;  %v1955_v41 = vld [vmem:[%s2648_s1 + $0x510] ss:$8 sps:$4 sm:$0xff]  }
  0x64   :  { %1339 = vmatprep.subr.bf16.mxu0 %v1867_v43  ;;  %1381 = vmatpush2.bf16.msra.mxu1 %v1862_v44  ;;  %v1952_v43 = vld [vmem:[%s2648_s1 + $0x400] ss:$8 sps:$4 sm:$0xff]   ;;  %v1960_v44 = vld [vmem:[%s2648_s1 + $0x4f4] ss:$8 sps:$4 sm:$0xff]  }
  0x65   :  { %1382 = vmatprep.subr.bf16.mxu1 %v1870_v45  ;;  %v1961_v45 = vld [vmem:[%s2648_s1 + $0x500] ss:$8 sps:$4 sm:$0xff]  }
  0x67   :  { %1340 = vmatpush2.bf16.msra.mxu0 %v1865_v47  ;;  %v1969_v47 = vld [vmem:[%s2648_s1 + $0x5d0] ss:$8 sps:$4 sm:$0x3f]  }
  0x68   :  { %1341 = vmatprep.subr.bf16.mxu0 %v1873_v48  ;;  %1383 = vmatpush2.bf16.msra.mxu1 %v1868_v49  ;;  %v1958_v48 = vld [vmem:[%s2648_s1 + $0x4f0] ss:$8 sps:$4 sm:$0xff]   ;;  %v1966_v49 = vld [vmem:[%s2648_s1 + $0x4e4] ss:$8 sps:$4 sm:$0xff]  }
  0x69   :  { %1384 = vmatprep.subr.bf16.mxu1 %v1876_v50  ;;  %v1230_v50 = vsel %vm1228_vm1, %v1969_v47, 0 }
  0x6b   :  { %1342 = vmatpush2.bf16.msra.mxu0 %v1871_v51  ;;  %v1975_v51 = vld [vmem:[%s2648_s1 + $0x5c4] ss:$8 sps:$4 sm:$0xff]  }
  0x6c   :  { %1343 = vmatprep.subr.bf16.mxu0 %v1879_v52  ;;  %1385 = vmatpush2.bf16.msra.mxu1 %v1874_v53  ;;  %v1964_v52 = vld [vmem:[%s2648_s1 + $0x4e0] ss:$8 sps:$4 sm:$0xff]   ;;  %v1972_v53 = vld [vmem:[%s2648_s1 + $0x4d4] ss:$8 sps:$4 sm:$0xff]  }
  0x6d   :  { %1386 = vmatprep.subr.bf16.mxu1 %v1882_v54  ;;  %v1973_v54 = vld [vmem:[%s2648_s1 + $0x5c0] ss:$8 sps:$4 sm:$0xff]  }
  0x6f   :  { %1344 = vmatpush2.bf16.msra.mxu0 %v1877_v55  ;;  %v1981_v55 = vld [vmem:[%s2648_s1 + $0x5b4] ss:$8 sps:$4 sm:$0xff]  }
  0x70   :  { %1345 = vmatprep.subr.bf16.mxu0 %v1885_v56  ;;  %1387 = vmatpush2.bf16.msra.mxu1 %v1880_v57  ;;  %v1970_v56 = vld [vmem:[%s2648_s1 + $0x4d0] ss:$8 sps:$4 sm:$0xff]   ;;  %v1978_v57 = vld [vmem:[%s2648_s1 + $0x4c4] ss:$8 sps:$4 sm:$0xff]  }
  0x71   :  { %1388 = vmatprep.subr.bf16.mxu1 %v1888_v58  ;;  %v1979_v58 = vld [vmem:[%s2648_s1 + $0x5b0] ss:$8 sps:$4 sm:$0xff]  }
  0x73   :  { %1346 = vmatpush2.bf16.msra.mxu0 %v1883_v59  ;;  %v1987_v59 = vld [vmem:[%s2648_s1 + $0x5a4] ss:$8 sps:$4 sm:$0xff]  }
  0x74   :  { %1347 = vmatprep.subr.bf16.mxu0 %v1891_v60  ;;  %1389 = vmatpush2.bf16.msra.mxu1 %v1886_v61  ;;  %v1976_v60 = vld [vmem:[%s2648_s1 + $0x4c0] ss:$8 sps:$4 sm:$0xff]   ;;  %v1984_v61 = vld [vmem:[%s2648_s1 + $0x4b4] ss:$8 sps:$4 sm:$0xff]  }
  0x75   :  { %1390 = vmatprep.subr.bf16.mxu1 %v1894_v62  ;;  %v1985_v62 = vld [vmem:[%s2648_s1 + $0x5a0] ss:$8 sps:$4 sm:$0xff]  }
  0x77   :  { %1348 = vmatpush2.bf16.msra.mxu0 %v1889_v63  ;;  %v1993_v63 = vld [vmem:[%s2648_s1 + $0x594] ss:$8 sps:$4 sm:$0xff]  }
  0x78   :  { %1349 = vmatprep.subr.bf16.mxu0 %v1897_v0  ;;  %1391 = vmatpush2.bf16.msra.mxu1 %v1892_v1  ;;  %v1982_v0 = vld [vmem:[%s2648_s1 + $0x4b0] ss:$8 sps:$4 sm:$0xff]   ;;  %v1990_v1 = vld [vmem:[%s2648_s1 + $0x4a4] ss:$8 sps:$4 sm:$0xff]  }
  0x79   :  { %1392 = vmatprep.subr.bf16.mxu1 %v1900_v2  ;;  %v1991_v2 = vld [vmem:[%s2648_s1 + $0x590] ss:$8 sps:$4 sm:$0xff]  }
  0x7b   :  { %1350 = vmatpush2.bf16.msra.mxu0 %v1895_v3  ;;  %v1999_v3 = vld [vmem:[%s2648_s1 + $0x584] ss:$8 sps:$4 sm:$0xff]  }
  0x7c   :  { %1351 = vmatprep.subr.bf16.mxu0 %v1903_v4  ;;  %1393 = vmatpush2.bf16.msra.mxu1 %v1898_v5  ;;  %v1988_v4 = vld [vmem:[%s2648_s1 + $0x4a0] ss:$8 sps:$4 sm:$0xff]   ;;  %v1996_v5 = vld [vmem:[%s2648_s1 + $0x494] ss:$8 sps:$4 sm:$0xff]  }
  0x7d   :  { %1394 = vmatprep.subr.bf16.mxu1 %v1906_v6  ;;  %v1997_v6 = vld [vmem:[%s2648_s1 + $0x580] ss:$8 sps:$4 sm:$0xff]  }
  0x7f   :  { %1352 = vmatpush2.bf16.msra.mxu0 %v1901_v7  ;;  %v1994_v7 = vld [vmem:[%s2648_s1 + $0x490] ss:$8 sps:$4 sm:$0xff]  }
  0x80   :  { %1407 = vmatprep.subr.bf16.mxu0 %v1912_v8  ;;  %1395 = vmatpush2.bf16.msra.mxu1 %v1904_v9  ;;  %v2004_v8 = vld [vmem:[%s2648_s1 + $0x484] ss:$8 sps:$4 sm:$0xff]   ;;  %v2005_v9 = vld [vmem:[%s2649_s0 + $0x28] ss:$48 sps:$4 sm:$0x1f]  }
  0x81   :  { %1450 = vmatprep.subr.bf16.mxu1 %v1921_v11  ;;  %v2006_v11 = vld [vmem:[%s2649_s0 + $0x20] ss:$48 sps:$4 sm:$0x1f]  }
  0x82   :  { %1354 = vmatmul.mubr.bf16.vlgmr.msra.gmra.mxu0 %v1907_v10  ;;  %v2002_v10 = vld [vmem:[%s2648_s1 + $0x480] ss:$8 sps:$4 sm:$0xff]  }
  0x83   :  { %1408 = vmatpush1.bf16.msra.mxu0 %v1910_v12  ;;  %1397 = vmatmul.mubr.bf16.vlgmr.msra.gmra.mxu1 %v1913_v13 }
  0x84   :  { %1409 = vmatprep.subr.bf16.mxu0 %v1918_v14  ;;  %1451 = vmatpush1.bf16.msra.mxu1 %v1919_v16 }
  0x85   :  { %1452 = vmatprep.subr.bf16.mxu1 %v1927_v17  ;;  %1706 = vmatprep.mubr.msk.bf16.mxu1 %vm1224_vm0, %v2000_v19 }
  0x86   :  { %1439 = vmatprep.mubr.bf16.mxu0 %v2008_v23 }
  0x87   :  { %1410 = vmatpush1.bf16.msra.mxu0 %v1916_v15 }
  0x88   :  { %1411 = vmatprep.subr.bf16.mxu0 %v1924_v18  ;;  %1453 = vmatpush1.bf16.msra.mxu1 %v1925_v20 }
  0x89   :  { %1454 = vmatprep.subr.bf16.mxu1 %v1933_v21 }
  0x8b   :  { %1412 = vmatpush1.bf16.msra.mxu0 %v1922_v22 }
  0x8c   :  { %1413 = vmatprep.subr.bf16.mxu0 %v1930_v24  ;;  %1455 = vmatpush1.bf16.msra.mxu1 %v1931_v25 }
  0x8d   :  { %1456 = vmatprep.subr.bf16.mxu1 %v1939_v26 }
  0x8f   :  { %1414 = vmatpush1.bf16.msra.mxu0 %v1928_v27 }
  0x90   :  { %1415 = vmatprep.subr.bf16.mxu0 %v1936_v28  ;;  %1457 = vmatpush1.bf16.msra.mxu1 %v1937_v29 }
  0x91   :  { %1458 = vmatprep.subr.bf16.mxu1 %v1945_v30 }
  0x93   :  { %1416 = vmatpush1.bf16.msra.mxu0 %v1934_v31 }
  0x94   :  { %1417 = vmatprep.subr.bf16.mxu0 %v1942_v32  ;;  %1459 = vmatpush1.bf16.msra.mxu1 %v1943_v33 }
  0x95   :  { %1460 = vmatprep.subr.bf16.mxu1 %v1951_v34 }
  0x97   :  { %1418 = vmatpush1.bf16.msra.mxu0 %v1940_v35 }
  0x98   :  { %1419 = vmatprep.subr.bf16.mxu0 %v1948_v36  ;;  %1461 = vmatpush1.bf16.msra.mxu1 %v1949_v37 }
  0x99   :  { %1462 = vmatprep.subr.bf16.mxu1 %v1957_v38 }
  0x9b   :  { %1420 = vmatpush1.bf16.msra.mxu0 %v1946_v39 }
  0x9c   :  { %1421 = vmatprep.subr.bf16.mxu0 %v1954_v40  ;;  %1463 = vmatpush1.bf16.msra.mxu1 %v1955_v41 }
  0x9d   :  { %1464 = vmatprep.subr.bf16.mxu1 %v1963_v42 }
  0x9f   :  { %1422 = vmatpush1.bf16.msra.mxu0 %v1952_v43 }
  0xa0   :  { %1423 = vmatprep.subr.bf16.mxu0 %v1960_v44  ;;  %1465 = vmatpush1.bf16.msra.mxu1 %v1961_v45 }
  0xa1   :  { %1705 = vmatprep.subr.msk.bf16.mxu1 %vm1228_vm1, %v1967_v46 }
  0xa3   :  { %1424 = vmatpush2.bf16.msra.mxu0 %v1958_v48 }
  0xa4   :  { %1425 = vmatprep.subr.bf16.mxu0 %v1966_v49  ;;  %1471 = vmatpush2.bf16.msra.mxu1 %v1230_v50 }
  0xa5   :  { %1472 = vmatprep.subr.bf16.mxu1 %v1975_v51  ;;  %v220_v20 = vpop.permute.xlu0 %219 }
  0xa7   :  { %1426 = vmatpush2.bf16.msra.mxu0 %v1964_v52 }
  0xa8   :  { %1427 = vmatprep.subr.bf16.mxu0 %v1972_v53  ;;  %1473 = vmatpush2.bf16.msra.mxu1 %v1973_v54 }
  0xa9   :  { %1474 = vmatprep.subr.bf16.mxu1 %v1981_v55  ;;  %v225_v25 = vpop.permute.xlu0 %224 }
  0xab   :  { %1428 = vmatpush2.bf16.msra.mxu0 %v1970_v56 }
  0xac   :  { %1429 = vmatprep.subr.bf16.mxu0 %v1978_v57  ;;  %1475 = vmatpush2.bf16.msra.mxu1 %v1979_v58 }
  0xad   :  { %1476 = vmatprep.subr.bf16.mxu1 %v1987_v59 }
  0xaf   :  { %1430 = vmatpush2.bf16.msra.mxu0 %v1976_v60 }
  0xb0   :  { %1431 = vmatprep.subr.bf16.mxu0 %v1984_v61  ;;  %1477 = vmatpush2.bf16.msra.mxu1 %v1985_v62 }
  0xb1   :  { %1478 = vmatprep.subr.bf16.mxu1 %v1993_v63 }
  0xb3   :  { %1432 = vmatpush2.bf16.msra.mxu0 %v1982_v0 }
  0xb4   :  { %1433 = vmatprep.subr.bf16.mxu0 %v1990_v1  ;;  %1479 = vmatpush2.bf16.msra.mxu1 %v1991_v2 }
  0xb5   :  { %1480 = vmatprep.subr.bf16.mxu1 %v1999_v3 }
  0xb7   :  { %1434 = vmatpush2.bf16.msra.mxu0 %v1988_v4 }
  0xb8   :  { %1435 = vmatprep.subr.bf16.mxu0 %v1996_v5  ;;  %1481 = vmatpush2.bf16.msra.mxu1 %v1997_v6 }
  0xbb   :  { %1436 = vmatpush2.bf16.msra.mxu0 %v1994_v7  ;;  %1483 = vmatmul.mubr.bf16.vlgmr.msra.gmra.mxu1 %v2005_v9 }
  0xbc   :  { %1437 = vmatprep.subr.bf16.mxu0 %v2004_v8 }
  0xbf   :  { %1438 = vmatpush2.bf16.msra.mxu0 %v2002_v10 }
  0xc2   :  { %1440 = vmatmul.mubr.bf16.vlgmr.msra.gmra.mxu0 %v2006_v11 }
 0x102   :  { %v1269_v13 = vpop.f32.mrf.mxu0 }
 0x103   :  { %v1312_v12 = vpop.f32.mrf.mxu1  ;;  %v1270_v24 = vadd.f32 %v1269_v13, %v220_v20 }
 0x104   :  { %v1271_v15 = vpop.f32.mrf.mxu0 }
 0x105   :  { %v1314_v14 = vpop.f32.mrf.mxu1  ;;  %v1272_v28 = vadd.f32 %v1271_v15, %v220_v20  ;;  %v1313_v29 = vadd.f32 %v1312_v12, %v1270_v24 }
 0x106   :  { %v1273_v17 = vpop.f32.mrf.mxu0 }
 0x107   :  { %v1316_v16 = vpop.f32.mrf.mxu1  ;;  %v1274_v30 = vadd.f32 %v1273_v17, %v225_v25  ;;  %v1315_v33 = vadd.f32 %v1314_v14, %v1272_v28 }
 0x108   :  { %v1275_v21 = vpop.f32.mrf.mxu0 }
 0x109   :  { %v1318_v18 = vpop.f32.mrf.mxu1  ;;  %v1276_v34 = vadd.f32 %v1275_v21, %v225_v25  ;;  %v1317_v37 = vadd.f32 %v1316_v16, %v1274_v30 }
 0x10b   :  { %v1319_v40 = vadd.f32 %v1318_v18, %v1276_v34 }
 0x142   :  { %v1355_v22 = vpop.f32.mrf.mxu0 }
 0x143   :  { %v1398_v19 = vpop.f32.mrf.mxu1  ;;  %v1356_v35 = vadd.f32 %v1355_v22, %v1313_v29 }
 0x144   :  { %v1357_v26 = vpop.f32.mrf.mxu0 }
 0x145   :  { %v1400_v23 = vpop.f32.mrf.mxu1  ;;  %v1358_v38 = vadd.f32 %v1357_v26, %v1315_v33  ;;  %v1399_v41 = vadd.f32 %v1398_v19, %v1356_v35 }
 0x146   :  { %v1359_v31 = vpop.f32.mrf.mxu0 }
 0x147   :  { %v1402_v27 = vpop.f32.mrf.mxu1  ;;  %v1360_v42 = vadd.f32 %v1359_v31, %v1317_v37  ;;  %v1401_v45 = vadd.f32 %v1400_v23, %v1358_v38 }
 0x148   :  { %v1361_v39 = vpop.f32.mrf.mxu0 }
 0x149   :  { %v1404_v32 = vpop.f32.mrf.mxu1  ;;  %v1362_v46 = vadd.f32 %v1361_v39, %v1319_v40  ;;  %v1403_v49 = vadd.f32 %v1402_v27, %v1360_v42 }
 0x14b   :  { %v1405_v54 = vadd.f32 %v1404_v32, %v1362_v46 }
 0x17b   :  { %v1484_v36 = vpop.f32.mrf.mxu1 }
 0x17d   :  { %v1486_v43 = vpop.f32.mrf.mxu1 }
 0x17f   :  { %v1488_v52 = vpop.f32.mrf.mxu1 }
 0x181   :  { %v1490_v62 = vpop.f32.mrf.mxu1 }
 0x182   :  { %v1441_v44 = vpop.f32.mrf.mxu0 }
 0x183   :  { %v1442_v47 = vadd.f32 %v1441_v44, %v1399_v41 }
 0x184   :  { %v1443_v48 = vpop.f32.mrf.mxu0 }
 0x185   :  { %v1485_v50 = vadd.f32 %v1484_v36, %v1442_v47  ;;  %v1444_v51 = vadd.f32 %v1443_v48, %v1401_v45 }
 0x186   :  { %v1445_v53 = vpop.f32.mrf.mxu0 }
 0x187   :  { %v1493_v55 = vmax.f32 %v1485_v50, 0.0  ;;  %v1487_v56 = vadd.f32 %v1486_v43, %v1444_v51  ;;  %v1446_v57 = vadd.f32 %v1445_v53, %v1403_v49 }
 0x188   :  { %v1447_v58 = vpop.f32.mrf.mxu0 }
 0x189   :  { %1497 = vst [vmem:[%s2651_s3] sm:$0xff] %v1493_v55  ;;  %v1494_v59 = vmax.f32 %v1487_v56, 0.0  ;;  %v1489_v60 = vadd.f32 %v1488_v52, %v1446_v57  ;;  %v1448_v61 = vadd.f32 %v1447_v58, %v1405_v54 }
 0x18b   :  { %1498 = vst [vmem:[%s2651_s3 + $0x8] sm:$0xff] %v1494_v59  ;;  %v1495_v63 = vmax.f32 %v1489_v60, 0.0  ;;  %v1491_v0 = vadd.f32 %v1490_v62, %v1448_v61 }
 0x18d   :  { %1499 = vst [vmem:[%s2651_s3 + $0x10] sm:$0x3] %v1495_v63  ;;  %v1496_v1 = vmax.f32 %v1491_v0, 0.0 }
 0x18f   :  { %1500 = vst [vmem:[%s2651_s3 + $0x18] sm:$0x3] %v1496_v1 }

// kernel: wavegan_generator_forward.21
= control target key start
LH: loop header
LB: loop body
LE: loop exit
PB: predicated region body
PF: predicated region fallthrough
CT: control target
= control target key end

     0   :  { %v1316_v8 = vmov 0   ;;  %vm795_vm0 = vcmask 1041408   ;;  %vm791_vm1 = vcmask 949248   ;;  %s1758_s1 = inlined_call_operand.vmem [shape: bf16[500,512], index: 1, kind: input, shape index: {}]   ;;  %s1759_s0 = inlined_call_operand.vmem [shape: bf16[5,500], index: 0, kind: input, shape index: {}]   ;;  %s1760_s2 = inlined_call_operand.vmem [shape: f32[5,1], index: 2, kind: input, shape index: {}]   ;;  %s1761_s3 = inlined_call_operand.vmem [shape: f32[5,512], index: 3, kind: output, shape index: {}]  }
   0x1   :  { %v1122_v0 = vld [vmem:[%s1758_s1 + $0xe4] ss:$16 sps:$4 sm:$0xff]   ;;  %v1126_v2 = vld [vmem:[%s1758_s1 + $0xe0] ss:$16 sps:$4 sm:$0xff]   ;;  %1121 = vset.pattern.permute.xlu0 %v1316_v8  ;;  %v15_v51 = vld [vmem:[%s1759_s0 + $0x8] sm:$0x77] }
   0x2   :  { %v1124_v1 = vld [vmem:[%s1758_s1 + $0x2e4] ss:$16 sps:$4 sm:$0xff]   ;;  %808 = vmatprep.subr.bf16.mxu0 %v1122_v0  ;;  %v1127_v3 = vld [vmem:[%s1758_s1 + $0x2e0] ss:$16 sps:$4 sm:$0xff]   ;;  %v1485_v53 = vcombine.high %v15_v51, %v15_v51  ;;  %v1226_v8 = vld [vmem:[%s1758_s1 + $0x2ec] ss:$16 sps:$4 sm:$0xff]  }
   0x3   :  { %849 = vmatprep.subr.bf16.mxu1 %v1124_v1  ;;  %v1128_v4 = vld [vmem:[%s1758_s1 + $0xc4] ss:$16 sps:$4 sm:$0xff]   ;;  %809 = vmatpush1.bf16.msra.mxu0 %v1126_v2  ;;  %v1132_v6 = vld [vmem:[%s1758_s1 + $0xc0] ss:$16 sps:$4 sm:$0xff]  }
   0x4   :  { %850 = vmatpush1.bf16.msra.mxu1 %v1127_v3  ;;  %v1130_v5 = vld [vmem:[%s1758_s1 + $0x2c4] ss:$16 sps:$4 sm:$0xff]   ;;  %810 = vmatprep.subr.bf16.mxu0 %v1128_v4  ;;  %v1133_v7 = vld [vmem:[%s1758_s1 + $0x2c0] ss:$16 sps:$4 sm:$0xff]  }
   0x5   :  { %851 = vmatprep.subr.bf16.mxu1 %v1130_v5  ;;  %v1134_v9 = vld [vmem:[%s1758_s1 + $0xa4] ss:$16 sps:$4 sm:$0xff]   ;;  %v1138_v11 = vld [vmem:[%s1758_s1 + $0xa0] ss:$16 sps:$4 sm:$0xff]   ;;  %1117 = vmatprep.mubr.msk.bf16.mxu1 %vm791_vm1, %v1485_v53 }
   0x6   :  { %v1136_v10 = vld [vmem:[%s1758_s1 + $0x2a4] ss:$16 sps:$4 sm:$0xff]   ;;  %v1139_v12 = vld [vmem:[%s1758_s1 + $0x2a0] ss:$16 sps:$4 sm:$0xff]  }
   0x7   :  { %811 = vmatpush1.bf16.msra.mxu0 %v1132_v6  ;;  %v1140_v13 = vld [vmem:[%s1758_s1 + $0x84] ss:$16 sps:$4 sm:$0xff]   ;;  %v1144_v15 = vld [vmem:[%s1758_s1 + $0x80] ss:$16 sps:$4 sm:$0xff]  }
   0x8   :  { %852 = vmatpush1.bf16.msra.mxu1 %v1133_v7  ;;  %812 = vmatprep.subr.bf16.mxu0 %v1134_v9  ;;  %v1142_v14 = vld [vmem:[%s1758_s1 + $0x284] ss:$16 sps:$4 sm:$0xff]   ;;  %v1145_v16 = vld [vmem:[%s1758_s1 + $0x280] ss:$16 sps:$4 sm:$0xff]   ;;  %v1223_v7 = vld [vmem:[%s1758_s1 + $0xec] ss:$16 sps:$4 sm:$0xff]  }
   0x9   :  { %853 = vmatprep.subr.bf16.mxu1 %v1136_v10  ;;  %v1146_v17 = vld [vmem:[%s1758_s1 + $0x64] ss:$16 sps:$4 sm:$0xff]   ;;  %v1150_v19 = vld [vmem:[%s1758_s1 + $0x60] ss:$16 sps:$4 sm:$0xff]   ;;  %v1549_v10 = vcombine.low %v15_v51, %v15_v51  ;;  %v1277_v51 = vld [vmem:[%s1758_s1 + $0x3c8] ss:$16 sps:$4 sm:$0xff]  }
   0xa   :  { %v1148_v18 = vld [vmem:[%s1758_s1 + $0x264] ss:$16 sps:$4 sm:$0xff]   ;;  %v1151_v20 = vld [vmem:[%s1758_s1 + $0x260] ss:$16 sps:$4 sm:$0xff]  }
   0xb   :  { %813 = vmatpush1.bf16.msra.mxu0 %v1138_v11  ;;  %v1152_v21 = vld [vmem:[%s1758_s1 + $0x44] ss:$16 sps:$4 sm:$0xff]   ;;  %v1156_v23 = vld [vmem:[%s1758_s1 + $0x40] ss:$16 sps:$4 sm:$0xff]   ;;  %v1221_v11 = vld [vmem:[%s1758_s1 + $0xe8] ss:$16 sps:$4 sm:$0xff]  }
   0xc   :  { %854 = vmatpush1.bf16.msra.mxu1 %v1139_v12  ;;  %814 = vmatprep.subr.bf16.mxu0 %v1140_v13  ;;  %v1154_v22 = vld [vmem:[%s1758_s1 + $0x244] ss:$16 sps:$4 sm:$0xff]   ;;  %v1157_v24 = vld [vmem:[%s1758_s1 + $0x240] ss:$16 sps:$4 sm:$0xff]   ;;  %v1224_v12 = vld [vmem:[%s1758_s1 + $0x2e8] ss:$16 sps:$4 sm:$0xff]  }
   0xd   :  { %855 = vmatprep.subr.bf16.mxu1 %v1142_v14  ;;  %v1158_v25 = vld [vmem:[%s1758_s1 + $0x24] ss:$16 sps:$4 sm:$0xff]   ;;  %v1162_v27 = vld [vmem:[%s1758_s1 + $0x20] ss:$16 sps:$4 sm:$0xff]   ;;  %v1229_v13 = vld [vmem:[%s1758_s1 + $0xcc] ss:$16 sps:$4 sm:$0xff]  }
   0xe   :  { %v1160_v26 = vld [vmem:[%s1758_s1 + $0x224] ss:$16 sps:$4 sm:$0xff]   ;;  %v1163_v28 = vld [vmem:[%s1758_s1 + $0x220] ss:$16 sps:$4 sm:$0xff]   ;;  %v1232_v14 = vld [vmem:[%s1758_s1 + $0x2cc] ss:$16 sps:$4 sm:$0xff]  }
   0xf   :  { %815 = vmatpush1.bf16.msra.mxu0 %v1144_v15  ;;  %v1164_v29 = vld [vmem:[%s1758_s1 + $0x4] ss:$16 sps:$4 sm:$0xff]   ;;  %v1168_v32 = vld [vmem:[%s1758_s1] ss:$16 sps:$4 sm:$0xff]   ;;  %v1227_v15 = vld [vmem:[%s1758_s1 + $0xc8] ss:$16 sps:$4 sm:$0xff]  }
  0x10   :  { %856 = vmatpush1.bf16.msra.mxu1 %v1145_v16  ;;  %816 = vmatprep.subr.bf16.mxu0 %v1146_v17  ;;  %v1166_v30 = vld [vmem:[%s1758_s1 + $0x204] ss:$16 sps:$4 sm:$0xff]   ;;  %v1169_v33 = vld [vmem:[%s1758_s1 + $0x200] ss:$16 sps:$4 sm:$0xff]   ;;  %v1230_v16 = vld [vmem:[%s1758_s1 + $0x2c8] ss:$16 sps:$4 sm:$0xff]  }
  0x11   :  { %857 = vmatprep.subr.bf16.mxu1 %v1148_v18  ;;  %v140_v31 = vld [vmem:[%s1758_s1 + $0x3e0] sm:$0x33]  ;;  %v1235_v17 = vld [vmem:[%s1758_s1 + $0xac] ss:$16 sps:$4 sm:$0xff]  }
  0x12   :  { %v1170_v34 = vld [vmem:[%s1758_s1 + $0x1e4] ss:$16 sps:$4 sm:$0xff]   ;;  %v1113_v35 = vcombine.high %v140_v31, %v140_v31  ;;  %v1112_v36 = vcombine.low %v140_v31, %v140_v31  ;;  %v1173_v37 = vld [vmem:[%s1758_s1 + $0x1e0] ss:$16 sps:$4 sm:$0xff]   ;;  %v1238_v18 = vld [vmem:[%s1758_s1 + $0x2ac] ss:$16 sps:$4 sm:$0xff]  }
  0x13   :  { %817 = vmatpush1.bf16.msra.mxu0 %v1150_v19  ;;  %v1175_v39 = vld [vmem:[%s1758_s1 + $0x1c4] ss:$16 sps:$4 sm:$0xff]   ;;  %v1179_v41 = vld [vmem:[%s1758_s1 + $0x1c0] ss:$16 sps:$4 sm:$0xff]   ;;  %v1233_v19 = vld [vmem:[%s1758_s1 + $0xa8] ss:$16 sps:$4 sm:$0xff]  }
  0x14   :  { %858 = vmatpush1.bf16.msra.mxu1 %v1151_v20  ;;  %818 = vmatprep.subr.bf16.mxu0 %v1152_v21  ;;  %v797_v38 = vsel %vm795_vm0, %v1112_v36, 0  ;;  %v1177_v40 = vld [vmem:[%s1758_s1 + $0x3c4] ss:$16 sps:$4 sm:$0xff]   ;;  %v1180_v42 = vld [vmem:[%s1758_s1 + $0x3c0] ss:$16 sps:$4 sm:$0xff]  }
  0x15   :  { %859 = vmatprep.subr.bf16.mxu1 %v1154_v22  ;;  %v1181_v43 = vld [vmem:[%s1758_s1 + $0x1a4] ss:$16 sps:$4 sm:$0xff]   ;;  %v1185_v45 = vld [vmem:[%s1758_s1 + $0x1a0] ss:$16 sps:$4 sm:$0xff]   ;;  %v1236_v20 = vld [vmem:[%s1758_s1 + $0x2a8] ss:$16 sps:$4 sm:$0xff]  }
  0x16   :  { %v1183_v44 = vld [vmem:[%s1758_s1 + $0x3a4] ss:$16 sps:$4 sm:$0xff]   ;;  %v1186_v46 = vld [vmem:[%s1758_s1 + $0x3a0] ss:$16 sps:$4 sm:$0xff]   ;;  %v1241_v21 = vld [vmem:[%s1758_s1 + $0x8c] ss:$16 sps:$4 sm:$0xff]  }
  0x17   :  { %819 = vmatpush1.bf16.msra.mxu0 %v1156_v23  ;;  %v1187_v47 = vld [vmem:[%s1758_s1 + $0x184] ss:$16 sps:$4 sm:$0xff]   ;;  %v1191_v52 = vld [vmem:[%s1758_s1 + $0x180] ss:$16 sps:$4 sm:$0xff]   ;;  %v1244_v22 = vld [vmem:[%s1758_s1 + $0x28c] ss:$16 sps:$4 sm:$0xff]  }
  0x18   :  { %860 = vmatpush1.bf16.msra.mxu1 %v1157_v24  ;;  %820 = vmatprep.subr.bf16.mxu0 %v1158_v25  ;;  %v1189_v48 = vld [vmem:[%s1758_s1 + $0x384] ss:$16 sps:$4 sm:$0xff]   ;;  %v1192_v54 = vld [vmem:[%s1758_s1 + $0x380] ss:$16 sps:$4 sm:$0xff]   ;;  %v1239_v23 = vld [vmem:[%s1758_s1 + $0x88] ss:$16 sps:$4 sm:$0xff]  }
  0x19   :  { %861 = vmatprep.subr.bf16.mxu1 %v1160_v26  ;;  %v14_v49 = vld [vmem:[%s1759_s0] sm:$0x77]  ;;  %v1242_v24 = vld [vmem:[%s1758_s1 + $0x288] ss:$16 sps:$4 sm:$0xff]   ;;  %v1247_v25 = vld [vmem:[%s1758_s1 + $0x6c] ss:$16 sps:$4 sm:$0xff]  }
  0x1a   :  { %v1477_v50 = vcombine.high %v14_v49, %v14_v49  ;;  %v1193_v55 = vld [vmem:[%s1758_s1 + $0x164] ss:$16 sps:$4 sm:$0xff]   ;;  %v1197_v57 = vld [vmem:[%s1758_s1 + $0x160] ss:$16 sps:$4 sm:$0xff]   ;;  %v1547_v9 = vcombine.low %v14_v49, %v14_v49  ;;  %v1250_v26 = vld [vmem:[%s1758_s1 + $0x26c] ss:$16 sps:$4 sm:$0xff]  }
  0x1b   :  { %821 = vmatpush1.bf16.msra.mxu0 %v1162_v27  ;;  %v1195_v56 = vld [vmem:[%s1758_s1 + $0x364] ss:$16 sps:$4 sm:$0xff]   ;;  %v1198_v58 = vld [vmem:[%s1758_s1 + $0x360] ss:$16 sps:$4 sm:$0xff]   ;;  %v1245_v27 = vld [vmem:[%s1758_s1 + $0x68] ss:$16 sps:$4 sm:$0xff]  }
  0x1c   :  { %862 = vmatpush1.bf16.msra.mxu1 %v1163_v28  ;;  %822 = vmatprep.subr.bf16.mxu0 %v1164_v29  ;;  %v1199_v59 = vld [vmem:[%s1758_s1 + $0x144] ss:$16 sps:$4 sm:$0xff]   ;;  %v1203_v61 = vld [vmem:[%s1758_s1 + $0x140] ss:$16 sps:$4 sm:$0xff]   ;;  %v1248_v28 = vld [vmem:[%s1758_s1 + $0x268] ss:$16 sps:$4 sm:$0xff]  }
  0x1d   :  { %863 = vmatprep.subr.bf16.mxu1 %v1166_v30  ;;  %840 = vmatprep.mubr.bf16.mxu0 %v1477_v50  ;;  %v1201_v60 = vld [vmem:[%s1758_s1 + $0x344] ss:$16 sps:$4 sm:$0xff]   ;;  %v1204_v62 = vld [vmem:[%s1758_s1 + $0x340] ss:$16 sps:$4 sm:$0xff]   ;;  %v1253_v29 = vld [vmem:[%s1758_s1 + $0x4c] ss:$16 sps:$4 sm:$0xff]  }
  0x1e   :  { %v1205_v63 = vld [vmem:[%s1758_s1 + $0x124] ss:$16 sps:$4 sm:$0xff]   ;;  %v1209_v1 = vld [vmem:[%s1758_s1 + $0x120] ss:$16 sps:$4 sm:$0xff]   ;;  %v1256_v30 = vld [vmem:[%s1758_s1 + $0x24c] ss:$16 sps:$4 sm:$0xff]  }
  0x1f   :  { %823 = vmatpush1.bf16.msra.mxu0 %v1168_v32  ;;  %v1207_v0 = vld [vmem:[%s1758_s1 + $0x324] ss:$16 sps:$4 sm:$0xff]   ;;  %v1210_v2 = vld [vmem:[%s1758_s1 + $0x320] ss:$16 sps:$4 sm:$0xff]   ;;  %v1251_v31 = vld [vmem:[%s1758_s1 + $0x48] ss:$16 sps:$4 sm:$0xff]  }
  0x20   :  { %864 = vmatpush1.bf16.msra.mxu1 %v1169_v33  ;;  %824 = vmatprep.subr.bf16.mxu0 %v1170_v34  ;;  %v1211_v3 = vld [vmem:[%s1758_s1 + $0x104] ss:$16 sps:$4 sm:$0xff]   ;;  %v1215_v5 = vld [vmem:[%s1758_s1 + $0x100] ss:$16 sps:$4 sm:$0xff]   ;;  %v1254_v32 = vld [vmem:[%s1758_s1 + $0x248] ss:$16 sps:$4 sm:$0xff]  }
  0x21   :  { %1116 = vmatprep.subr.msk.bf16.mxu1 %vm795_vm0, %v1113_v35  ;;  %v1213_v4 = vld [vmem:[%s1758_s1 + $0x304] ss:$16 sps:$4 sm:$0xff]   ;;  %v1216_v6 = vld [vmem:[%s1758_s1 + $0x300] ss:$16 sps:$4 sm:$0xff]   ;;  %v1259_v34 = vld [vmem:[%s1758_s1 + $0x2c] ss:$16 sps:$4 sm:$0xff]  }
  0x22   :  { %v142_v33 = vld [vmem:[%s1760_s2] sm:$0x1f]  ;;  %v1262_v35 = vld [vmem:[%s1758_s1 + $0x22c] ss:$16 sps:$4 sm:$0xff]   ;;  %v1257_v36 = vld [vmem:[%s1758_s1 + $0x28] ss:$16 sps:$4 sm:$0xff]  }
  0x23   :  { %825 = vmatpush2.bf16.msra.mxu0 %v1173_v37  ;;  %145 = vperm.xlu0 %1121, %v142_v33   ;;  %v1260_v37 = vld [vmem:[%s1758_s1 + $0x228] ss:$16 sps:$4 sm:$0xff]   ;;  %v1279_v49 = vld [vmem:[%s1758_s1 + $0x3cc] ss:$16 sps:$4 sm:$0xff]  }
  0x24   :  { %866 = vmatpush2.bf16.msra.mxu1 %v797_v38  ;;  %826 = vmatprep.subr.bf16.mxu0 %v1175_v39  ;;  %v1265_v38 = vld [vmem:[%s1758_s1 + $0xc] ss:$16 sps:$4 sm:$0xff]  }
  0x25   :  { %867 = vmatprep.subr.bf16.mxu1 %v1177_v40  ;;  %v1268_v39 = vld [vmem:[%s1758_s1 + $0x20c] ss:$16 sps:$4 sm:$0xff]  }
  0x26   :  { %v141_v40 = vld [vmem:[%s1758_s1 + $0x3e8] sm:$0x33] }
  0x27   :  { %827 = vmatpush2.bf16.msra.mxu0 %v1179_v41  ;;  %v1263_v41 = vld [vmem:[%s1758_s1 + $0x8] ss:$16 sps:$4 sm:$0xff]  }
  0x28   :  { %868 = vmatpush2.bf16.msra.mxu1 %v1180_v42  ;;  %828 = vmatprep.subr.bf16.mxu0 %v1181_v43  ;;  %v1266_v42 = vld [vmem:[%s1758_s1 + $0x208] ss:$16 sps:$4 sm:$0xff]   ;;  %v1271_v43 = vld [vmem:[%s1758_s1 + $0x1ec] ss:$16 sps:$4 sm:$0xff]  }
  0x29   :  { %869 = vmatprep.subr.bf16.mxu1 %v1183_v44  ;;  %v1115_v44 = vcombine.high %v141_v40, %v141_v40 }
  0x2b   :  { %829 = vmatpush2.bf16.msra.mxu0 %v1185_v45  ;;  %v1114_v45 = vcombine.low %v141_v40, %v141_v40 }
  0x2c   :  { %870 = vmatpush2.bf16.msra.mxu1 %v1186_v46  ;;  %830 = vmatprep.subr.bf16.mxu0 %v1187_v47  ;;  %v1269_v46 = vld [vmem:[%s1758_s1 + $0x1e8] ss:$16 sps:$4 sm:$0xff]  }
  0x2d   :  { %871 = vmatprep.subr.bf16.mxu1 %v1189_v48  ;;  %v803_v47 = vsel %vm795_vm0, %v1114_v45, 0  ;;  %v1276_v48 = vld [vmem:[%s1758_s1 + $0x1cc] ss:$16 sps:$4 sm:$0xff]  }
  0x2f   :  { %831 = vmatpush2.bf16.msra.mxu0 %v1191_v52  ;;  %v1282_v52 = vld [vmem:[%s1758_s1 + $0x1ac] ss:$16 sps:$4 sm:$0xff]  }
  0x30   :  { %872 = vmatpush2.bf16.msra.mxu1 %v1192_v54  ;;  %832 = vmatprep.subr.bf16.mxu0 %v1193_v55  ;;  %v1280_v54 = vld [vmem:[%s1758_s1 + $0x1a8] ss:$16 sps:$4 sm:$0xff]  }
  0x31   :  { %873 = vmatprep.subr.bf16.mxu1 %v1195_v56  ;;  %v1283_v55 = vld [vmem:[%s1758_s1 + $0x3a8] ss:$16 sps:$4 sm:$0xff]   ;;  %v1288_v56 = vld [vmem:[%s1758_s1 + $0x18c] ss:$16 sps:$4 sm:$0xff]  }
  0x33   :  { %833 = vmatpush2.bf16.msra.mxu0 %v1197_v57  ;;  %v1291_v57 = vld [vmem:[%s1758_s1 + $0x38c] ss:$16 sps:$4 sm:$0xff]  }
  0x34   :  { %874 = vmatpush2.bf16.msra.mxu1 %v1198_v58  ;;  %834 = vmatprep.subr.bf16.mxu0 %v1199_v59  ;;  %v1286_v58 = vld [vmem:[%s1758_s1 + $0x188] ss:$16 sps:$4 sm:$0xff]  }
  0x35   :  { %875 = vmatprep.subr.bf16.mxu1 %v1201_v60  ;;  %v1289_v59 = vld [vmem:[%s1758_s1 + $0x388] ss:$16 sps:$4 sm:$0xff]   ;;  %v1294_v60 = vld [vmem:[%s1758_s1 + $0x16c] ss:$16 sps:$4 sm:$0xff]  }
  0x37   :  { %835 = vmatpush2.bf16.msra.mxu0 %v1203_v61  ;;  %v1297_v61 = vld [vmem:[%s1758_s1 + $0x36c] ss:$16 sps:$4 sm:$0xff]  }
  0x38   :  { %876 = vmatpush2.bf16.msra.mxu1 %v1204_v62  ;;  %836 = vmatprep.subr.bf16.mxu0 %v1205_v63  ;;  %v1292_v62 = vld [vmem:[%s1758_s1 + $0x168] ss:$16 sps:$4 sm:$0xff]  }
  0x39   :  { %877 = vmatprep.subr.bf16.mxu1 %v1207_v0  ;;  %v1295_v63 = vld [vmem:[%s1758_s1 + $0x368] ss:$16 sps:$4 sm:$0xff]   ;;  %v1300_v0 = vld [vmem:[%s1758_s1 + $0x14c] ss:$16 sps:$4 sm:$0xff]  }
  0x3b   :  { %837 = vmatpush2.bf16.msra.mxu0 %v1209_v1  ;;  %v1303_v1 = vld [vmem:[%s1758_s1 + $0x34c] ss:$16 sps:$4 sm:$0xff]  }
  0x3c   :  { %878 = vmatpush2.bf16.msra.mxu1 %v1210_v2  ;;  %838 = vmatprep.subr.bf16.mxu0 %v1211_v3  ;;  %v1298_v2 = vld [vmem:[%s1758_s1 + $0x148] ss:$16 sps:$4 sm:$0xff]  }
  0x3d   :  { %879 = vmatprep.subr.bf16.mxu1 %v1213_v4  ;;  %v1301_v3 = vld [vmem:[%s1758_s1 + $0x348] ss:$16 sps:$4 sm:$0xff]   ;;  %v1306_v4 = vld [vmem:[%s1758_s1 + $0x12c] ss:$16 sps:$4 sm:$0xff]  }
  0x3f   :  { %839 = vmatpush2.bf16.msra.mxu0 %v1215_v5  ;;  %v1309_v5 = vld [vmem:[%s1758_s1 + $0x32c] ss:$16 sps:$4 sm:$0xff]  }
  0x40   :  { %880 = vmatpush2.bf16.msra.mxu1 %v1216_v6  ;;  %890 = vmatprep.subr.bf16.mxu0 %v1223_v7  ;;  %v1304_v6 = vld [vmem:[%s1758_s1 + $0x128] ss:$16 sps:$4 sm:$0xff]  }
  0x41   :  { %931 = vmatprep.subr.bf16.mxu1 %v1226_v8  ;;  %v1307_v7 = vld [vmem:[%s1758_s1 + $0x328] ss:$16 sps:$4 sm:$0xff]   ;;  %v1312_v8 = vld [vmem:[%s1758_s1 + $0x10c] ss:$16 sps:$4 sm:$0xff]  }
  0x42   :  { %841 = vmatmul.mubr.bf16.vlgmr.msra.gmra.mxu0 %v1547_v9 }
  0x43   :  { %882 = vmatmul.mubr.bf16.vlgmr.msra.gmra.mxu1 %v1549_v10  ;;  %891 = vmatpush1.bf16.msra.mxu0 %v1221_v11  ;;  %v1315_v11 = vld [vmem:[%s1758_s1 + $0x30c] ss:$16 sps:$4 sm:$0xff]  }
  0x44   :  { %932 = vmatpush1.bf16.msra.mxu1 %v1224_v12  ;;  %892 = vmatprep.subr.bf16.mxu0 %v1229_v13  ;;  %v1310_v12 = vld [vmem:[%s1758_s1 + $0x108] ss:$16 sps:$4 sm:$0xff]  }
  0x45   :  { %933 = vmatprep.subr.bf16.mxu1 %v1232_v14  ;;  %922 = vmatprep.mubr.bf16.mxu0 %v1477_v50  ;;  %v1274_v50 = vld [vmem:[%s1758_s1 + $0x1c8] ss:$16 sps:$4 sm:$0xff]  }
  0x46   :  { %1119 = vmatprep.mubr.msk.bf16.mxu1 %vm791_vm1, %v1485_v53  ;;  %v1285_v53 = vld [vmem:[%s1758_s1 + $0x3ac] ss:$16 sps:$4 sm:$0xff]   ;;  %v1313_v13 = vld [vmem:[%s1758_s1 + $0x308] ss:$16 sps:$4 sm:$0xff]  }
  0x47   :  { %893 = vmatpush1.bf16.msra.mxu0 %v1227_v15 }
  0x48   :  { %934 = vmatpush1.bf16.msra.mxu1 %v1230_v16  ;;  %894 = vmatprep.subr.bf16.mxu0 %v1235_v17 }
  0x49   :  { %935 = vmatprep.subr.bf16.mxu1 %v1238_v18 }
  0x4b   :  { %895 = vmatpush1.bf16.msra.mxu0 %v1233_v19 }
  0x4c   :  { %936 = vmatpush1.bf16.msra.mxu1 %v1236_v20  ;;  %896 = vmatprep.subr.bf16.mxu0 %v1241_v21 }
  0x4d   :  { %937 = vmatprep.subr.bf16.mxu1 %v1244_v22 }
  0x4f   :  { %897 = vmatpush1.bf16.msra.mxu0 %v1239_v23 }
  0x50   :  { %938 = vmatpush1.bf16.msra.mxu1 %v1242_v24  ;;  %898 = vmatprep.subr.bf16.mxu0 %v1247_v25 }
  0x51   :  { %939 = vmatprep.subr.bf16.mxu1 %v1250_v26 }
  0x53   :  { %899 = vmatpush1.bf16.msra.mxu0 %v1245_v27 }
  0x54   :  { %940 = vmatpush1.bf16.msra.mxu1 %v1248_v28  ;;  %900 = vmatprep.subr.bf16.mxu0 %v1253_v29 }
  0x55   :  { %941 = vmatprep.subr.bf16.mxu1 %v1256_v30 }
  0x57   :  { %901 = vmatpush1.bf16.msra.mxu0 %v1251_v31 }
  0x58   :  { %942 = vmatpush1.bf16.msra.mxu1 %v1254_v32  ;;  %902 = vmatprep.subr.bf16.mxu0 %v1259_v34 }
  0x59   :  { %943 = vmatprep.subr.bf16.mxu1 %v1262_v35 }
  0x5b   :  { %903 = vmatpush1.bf16.msra.mxu0 %v1257_v36 }
  0x5c   :  { %944 = vmatpush1.bf16.msra.mxu1 %v1260_v37  ;;  %904 = vmatprep.subr.bf16.mxu0 %v1265_v38 }
  0x5d   :  { %945 = vmatprep.subr.bf16.mxu1 %v1268_v39 }
  0x5f   :  { %905 = vmatpush1.bf16.msra.mxu0 %v1263_v41 }
  0x60   :  { %946 = vmatpush1.bf16.msra.mxu1 %v1266_v42  ;;  %906 = vmatprep.subr.bf16.mxu0 %v1271_v43 }
  0x61   :  { %1118 = vmatprep.subr.msk.bf16.mxu1 %vm795_vm0, %v1115_v44 }
  0x63   :  { %907 = vmatpush2.bf16.msra.mxu0 %v1269_v46 }
  0x64   :  { %948 = vmatpush2.bf16.msra.mxu1 %v803_v47  ;;  %908 = vmatprep.subr.bf16.mxu0 %v1276_v48 }
  0x65   :  { %949 = vmatprep.subr.bf16.mxu1 %v1279_v49 }
  0x67   :  { %909 = vmatpush2.bf16.msra.mxu0 %v1274_v50 }
  0x68   :  { %950 = vmatpush2.bf16.msra.mxu1 %v1277_v51  ;;  %910 = vmatprep.subr.bf16.mxu0 %v1282_v52 }
  0x69   :  { %951 = vmatprep.subr.bf16.mxu1 %v1285_v53 }
  0x6b   :  { %911 = vmatpush2.bf16.msra.mxu0 %v1280_v54 }
  0x6c   :  { %952 = vmatpush2.bf16.msra.mxu1 %v1283_v55  ;;  %912 = vmatprep.subr.bf16.mxu0 %v1288_v56 }
  0x6d   :  { %953 = vmatprep.subr.bf16.mxu1 %v1291_v57 }
  0x6f   :  { %913 = vmatpush2.bf16.msra.mxu0 %v1286_v58 }
  0x70   :  { %954 = vmatpush2.bf16.msra.mxu1 %v1289_v59  ;;  %914 = vmatprep.subr.bf16.mxu0 %v1294_v60 }
  0x71   :  { %955 = vmatprep.subr.bf16.mxu1 %v1297_v61 }
  0x73   :  { %915 = vmatpush2.bf16.msra.mxu0 %v1292_v62 }
  0x74   :  { %956 = vmatpush2.bf16.msra.mxu1 %v1295_v63  ;;  %916 = vmatprep.subr.bf16.mxu0 %v1300_v0 }
  0x75   :  { %957 = vmatprep.subr.bf16.mxu1 %v1303_v1 }
  0x77   :  { %917 = vmatpush2.bf16.msra.mxu0 %v1298_v2 }
  0x78   :  { %958 = vmatpush2.bf16.msra.mxu1 %v1301_v3  ;;  %918 = vmatprep.subr.bf16.mxu0 %v1306_v4 }
  0x79   :  { %959 = vmatprep.subr.bf16.mxu1 %v1309_v5 }
  0x7b   :  { %919 = vmatpush2.bf16.msra.mxu0 %v1304_v6 }
  0x7c   :  { %960 = vmatpush2.bf16.msra.mxu1 %v1307_v7  ;;  %920 = vmatprep.subr.bf16.mxu0 %v1312_v8 }
  0x7d   :  { %961 = vmatprep.subr.bf16.mxu1 %v1315_v11 }
  0x7f   :  { %921 = vmatpush2.bf16.msra.mxu0 %v1310_v12 }
  0x80   :  { %962 = vmatpush2.bf16.msra.mxu1 %v1313_v13 }
  0x82   :  { %923 = vmatmul.mubr.bf16.vlgmr.msra.gmra.mxu0 %v1547_v9 }
  0x83   :  { %964 = vmatmul.mubr.bf16.vlgmr.msra.gmra.mxu1 %v1549_v10 }
  0x9e   :  { %v146_v14 = vpop.permute.xlu0 %145 }
 0x102   :  { %v842_v15 = vpop.f32.mrf.mxu0 }
 0x103   :  { %v883_v16 = vpop.f32.mrf.mxu1  ;;  %v843_v17 = vadd.f32 %v842_v15, %v146_v14 }
 0x104   :  { %v844_v18 = vpop.f32.mrf.mxu0 }
 0x105   :  { %v885_v19 = vpop.f32.mrf.mxu1  ;;  %v884_v20 = vadd.f32 %v883_v16, %v843_v17  ;;  %v845_v21 = vadd.f32 %v844_v18, %v146_v14 }
 0x106   :  { %v846_v22 = vpop.f32.mrf.mxu0 }
 0x107   :  { %v887_v23 = vpop.f32.mrf.mxu1  ;;  %v972_v24 = vmax.f32 %v884_v20, 0.0  ;;  %v886_v25 = vadd.f32 %v885_v19, %v845_v21 }
 0x108   :  { %v847_v26 = vpop.f32.mrf.mxu0 }
 0x109   :  { %v888_v27 = vpop.f32.mrf.mxu1  ;;  %v973_v28 = vmax.f32 %v886_v25, 0.0  ;;  %976 = vst [vmem:[%s1761_s3] sm:$0x1f] %v972_v24 }
 0x10b   :  { %977 = vst [vmem:[%s1761_s3 + $0x8] sm:$0x1f] %v973_v28 }
 0x142   :  { %v924_v9 = vpop.f32.mrf.mxu0 }
 0x143   :  { %v965_v10 = vpop.f32.mrf.mxu1  ;;  %v925_v29 = vadd.f32 %v924_v9, %v146_v14 }
 0x144   :  { %v926_v30 = vpop.f32.mrf.mxu0 }
 0x145   :  { %v967_v31 = vpop.f32.mrf.mxu1  ;;  %v966_v32 = vadd.f32 %v965_v10, %v925_v29  ;;  %v927_v33 = vadd.f32 %v926_v30, %v146_v14 }
 0x146   :  { %v928_v34 = vpop.f32.mrf.mxu0 }
 0x147   :  { %v969_v35 = vpop.f32.mrf.mxu1  ;;  %v974_v36 = vmax.f32 %v966_v32, 0.0  ;;  %v968_v37 = vadd.f32 %v967_v31, %v927_v33 }
 0x148   :  { %v929_v38 = vpop.f32.mrf.mxu0 }
 0x149   :  { %v970_v39 = vpop.f32.mrf.mxu1  ;;  %978 = vst [vmem:[%s1761_s3 + $0x10] sm:$0x1f] %v974_v36  ;;  %v975_v40 = vmax.f32 %v968_v37, 0.0 }
 0x14b   :  { %979 = vst [vmem:[%s1761_s3 + $0x18] sm:$0x1f] %v975_v40 }

// kernel: wavegan_generator_forward.22
= control target key start
LH: loop header
LB: loop body
LE: loop exit
PB: predicated region body
PF: predicated region fallthrough
CT: control target
= control target key end

     0   :  { %s1172_s12 = smov 0   ;;  %s1174_s13 = smov 0   ;;  %s1441_s0 = inlined_call_operand.vmem [shape: bf16[2,250], index: 0, kind: input, shape index: {}]   ;;  %s1442_s1 = inlined_call_operand.vmem [shape: bf16[250,2560], index: 1, kind: input, shape index: {}]   ;;  %s1443_s2 = inlined_call_operand.vmem [shape: f32[2,1], index: 2, kind: input, shape index: {}]   ;;  %s1444_s3 = inlined_call_operand.vmem [shape: f32[2,2560], index: 3, kind: output, shape index: {}]  }
   0x1   :  { %s1176_s14 = smov 0  }
   0x2 LB: > { %s918_s15 = sadd.s32 4294967295, %s1147_s14   ;;  %s1189_s16 = sadd.s32 1, %s1147_s14   ;;  %s1147_s14 = sphi %s1176_s14, %s1447_s14   ;;  %s1143_s13 = sphi %s1174_s13, %s1446_s13   ;;  %s1139_s12 = sphi %s1172_s12, %s1445_s12  }
   0x3   : > { %s38_s17 = ssub.s32 %s1147_s14, %s1189_s16  ;;  %s41_s18 = sadd.s32 1, %s1143_s13 }
   0x4   : > { %p39_p0 = scmp.eq.s32.totalorder %s38_s17, 0  ;;  %p48_p1 = scmp.ne.s32.totalorder %s1143_s13, %s1139_s12 }
   0x5   : > { %p49_p2 = scmp.eq.s32.totalorder %s1147_s14, 0  ;;  %p921_p4 = scmp.ge.s32.totalorder %s1147_s14, 5 }
   0x6   : > { %s1198_s19 = scalar_select %p39_p0, %s1143_s13, %s41_s18  }
   0x7   : > { %p50_p3 = por %p49_p2, %p48_p1  ;;  %127 = sbr.rel (%p921_p4) target bundleno = 48 (0x30), region = 24 }
   0xc   : > { %130 = sbr.rel (!%p50_p3) target bundleno = 48 (0x30), region = 28  ;;  %s132_s20 = sand.u32 (%p50_p3), 1, %s1143_s13  }
   0xd   : > { %s1000_s21 = sshll.u32 (%p50_p3), %s1147_s14, 4  ;;  %s922_s22 = sshll.u32 (%p50_p3), %s132_s20, 9 }
   0xe   : > { %s1206_s25 = scalar_lea.vmem (%p50_p3), %s1442_s1, %s1000_s21  ;;  %s1211_s26 = scalar_lea.vmem (%p50_p3), [#allocation2], %s922_s22 }
   0xf   : > { %v150_v0 = vld [vmem:[%s1206_s25] sm:$0xff] (%p50_p3)  ;;  %v152_v1 = vld [vmem:[%s1206_s25 + $0x8] sm:$0xff] (%p50_p3)  ;;  %v154_v2 = vld [vmem:[%s1206_s25 + $0x50] sm:$0xff] (%p50_p3) }
  0x10   : > { %151 = vst [vmem:[%s1211_s26] sm:$0xff] (%p50_p3), %v150_v0  ;;  %153 = vst [vmem:[%s1211_s26 + $0x8] sm:$0xff] (%p50_p3), %v152_v1  ;;  %v156_v3 = vld [vmem:[%s1206_s25 + $0x58] sm:$0xff] (%p50_p3)  ;;  %v158_v4 = vld [vmem:[%s1206_s25 + $0xa0] sm:$0xff] (%p50_p3) }
  0x11   : > { %155 = vst [vmem:[%s1211_s26 + $0x10] sm:$0xff] %v154_v2  ;;  %v160_v5 = vld [vmem:[%s1206_s25 + $0xa8] sm:$0xff]  ;;  %157 = vst [vmem:[%s1211_s26 + $0x18] sm:$0xff] %v156_v3  ;;  %v162_v6 = vld [vmem:[%s1206_s25 + $0xf0] sm:$0xff] }
  0x12   : > { %159 = vst [vmem:[%s1211_s26 + $0x20] sm:$0xff] %v158_v4  ;;  %161 = vst [vmem:[%s1211_s26 + $0x28] sm:$0xff] %v160_v5  ;;  %v164_v7 = vld [vmem:[%s1206_s25 + $0xf8] sm:$0xff]  ;;  %v166_v8 = vld [vmem:[%s1206_s25 + $0x140] sm:$0xff] }
  0x13   : > { %163 = vst [vmem:[%s1211_s26 + $0x30] sm:$0xff] %v162_v6  ;;  %165 = vst [vmem:[%s1211_s26 + $0x38] sm:$0xff] %v164_v7  ;;  %v168_v9 = vld [vmem:[%s1206_s25 + $0x148] sm:$0xff]  ;;  %v170_v10 = vld [vmem:[%s1206_s25 + $0x190] sm:$0xff] }
  0x14   : > { %167 = vst [vmem:[%s1211_s26 + $0x40] sm:$0xff] %v166_v8  ;;  %v172_v11 = vld [vmem:[%s1206_s25 + $0x198] sm:$0xff]  ;;  %169 = vst [vmem:[%s1211_s26 + $0x48] sm:$0xff] %v168_v9  ;;  %v174_v12 = vld [vmem:[%s1206_s25 + $0x1e0] sm:$0xff] }
  0x15   : > { %171 = vst [vmem:[%s1211_s26 + $0x50] sm:$0xff] %v170_v10  ;;  %173 = vst [vmem:[%s1211_s26 + $0x58] sm:$0xff] %v172_v11  ;;  %v176_v13 = vld [vmem:[%s1206_s25 + $0x1e8] sm:$0xff]  ;;  %v178_v14 = vld [vmem:[%s1206_s25 + $0x230] sm:$0xff] }
  0x16   : > { %175 = vst [vmem:[%s1211_s26 + $0x60] sm:$0xff] %v174_v12  ;;  %177 = vst [vmem:[%s1211_s26 + $0x68] sm:$0xff] %v176_v13  ;;  %v180_v15 = vld [vmem:[%s1206_s25 + $0x238] sm:$0xff]  ;;  %v182_v16 = vld [vmem:[%s1206_s25 + $0x280] sm:$0xff] }
  0x17   : > { %179 = vst [vmem:[%s1211_s26 + $0x70] sm:$0xff] %v178_v14  ;;  %v184_v17 = vld [vmem:[%s1206_s25 + $0x288] sm:$0xff]  ;;  %181 = vst [vmem:[%s1211_s26 + $0x78] sm:$0xff] %v180_v15  ;;  %v186_v18 = vld [vmem:[%s1206_s25 + $0x2d0] sm:$0xff] }
  0x18   : > { %183 = vst [vmem:[%s1211_s26 + $0x80] sm:$0xff] %v182_v16  ;;  %185 = vst [vmem:[%s1211_s26 + $0x88] sm:$0xff] %v184_v17  ;;  %v188_v19 = vld [vmem:[%s1206_s25 + $0x2d8] sm:$0xff]  ;;  %v190_v20 = vld [vmem:[%s1206_s25 + $0x320] sm:$0xff] }
  0x19   : > { %187 = vst [vmem:[%s1211_s26 + $0x90] sm:$0xff] %v186_v18  ;;  %189 = vst [vmem:[%s1211_s26 + $0x98] sm:$0xff] %v188_v19  ;;  %v192_v21 = vld [vmem:[%s1206_s25 + $0x328] sm:$0xff]  ;;  %v194_v22 = vld [vmem:[%s1206_s25 + $0x370] sm:$0xff] }
  0x1a   : > { %191 = vst [vmem:[%s1211_s26 + $0xa0] sm:$0xff] %v190_v20  ;;  %v196_v23 = vld [vmem:[%s1206_s25 + $0x378] sm:$0xff]  ;;  %193 = vst [vmem:[%s1211_s26 + $0xa8] sm:$0xff] %v192_v21  ;;  %v198_v24 = vld [vmem:[%s1206_s25 + $0x3c0] sm:$0xff] }
  0x1b   : > { %195 = vst [vmem:[%s1211_s26 + $0xb0] sm:$0xff] %v194_v22  ;;  %197 = vst [vmem:[%s1211_s26 + $0xb8] sm:$0xff] %v196_v23  ;;  %v200_v25 = vld [vmem:[%s1206_s25 + $0x3c8] sm:$0xff]  ;;  %v202_v26 = vld [vmem:[%s1206_s25 + $0x410] sm:$0xff] }
  0x1c   : > { %199 = vst [vmem:[%s1211_s26 + $0xc0] sm:$0xff] %v198_v24  ;;  %201 = vst [vmem:[%s1211_s26 + $0xc8] sm:$0xff] %v200_v25  ;;  %v204_v27 = vld [vmem:[%s1206_s25 + $0x418] sm:$0xff]  ;;  %v206_v28 = vld [vmem:[%s1206_s25 + $0x460] sm:$0xff] }
  0x1d   : > { %203 = vst [vmem:[%s1211_s26 + $0xd0] sm:$0xff] %v202_v26  ;;  %v208_v29 = vld [vmem:[%s1206_s25 + $0x468] sm:$0xff]  ;;  %205 = vst [vmem:[%s1211_s26 + $0xd8] sm:$0xff] %v204_v27  ;;  %v210_v30 = vld [vmem:[%s1206_s25 + $0x4b0] sm:$0xff] }
  0x1e   : > { %207 = vst [vmem:[%s1211_s26 + $0xe0] sm:$0xff] %v206_v28  ;;  %209 = vst [vmem:[%s1211_s26 + $0xe8] sm:$0xff] %v208_v29  ;;  %v212_v31 = vld [vmem:[%s1206_s25 + $0x4b8] sm:$0xff]  ;;  %v214_v32 = vld [vmem:[%s1206_s25 + $0x500] sm:$0xff] }
  0x1f   : > { %211 = vst [vmem:[%s1211_s26 + $0xf0] sm:$0xff] %v210_v30  ;;  %213 = vst [vmem:[%s1211_s26 + $0xf8] sm:$0xff] %v212_v31  ;;  %v216_v33 = vld [vmem:[%s1206_s25 + $0x508] sm:$0xff]  ;;  %v218_v34 = vld [vmem:[%s1206_s25 + $0x550] sm:$0xff] }
  0x20   : > { %215 = vst [vmem:[%s1211_s26 + $0x100] sm:$0xff] %v214_v32  ;;  %v220_v35 = vld [vmem:[%s1206_s25 + $0x558] sm:$0xff]  ;;  %217 = vst [vmem:[%s1211_s26 + $0x108] sm:$0xff] %v216_v33  ;;  %v222_v36 = vld [vmem:[%s1206_s25 + $0x5a0] sm:$0xff] }
  0x21   : > { %219 = vst [vmem:[%s1211_s26 + $0x110] sm:$0xff] %v218_v34  ;;  %221 = vst [vmem:[%s1211_s26 + $0x118] sm:$0xff] %v220_v35  ;;  %v224_v37 = vld [vmem:[%s1206_s25 + $0x5a8] sm:$0xff]  ;;  %v226_v38 = vld [vmem:[%s1206_s25 + $0x5f0] sm:$0xff] }
  0x22   : > { %223 = vst [vmem:[%s1211_s26 + $0x120] sm:$0xff] %v222_v36  ;;  %225 = vst [vmem:[%s1211_s26 + $0x128] sm:$0xff] %v224_v37  ;;  %v228_v39 = vld [vmem:[%s1206_s25 + $0x5f8] sm:$0xff]  ;;  %v230_v40 = vld [vmem:[%s1206_s25 + $0x640] sm:$0xff] }
  0x23   : > { %227 = vst [vmem:[%s1211_s26 + $0x130] sm:$0xff] %v226_v38  ;;  %v232_v41 = vld [vmem:[%s1206_s25 + $0x648] sm:$0xff]  ;;  %229 = vst [vmem:[%s1211_s26 + $0x138] sm:$0xff] %v228_v39  ;;  %v234_v42 = vld [vmem:[%s1206_s25 + $0x690] sm:$0xff] }
  0x24   : > { %231 = vst [vmem:[%s1211_s26 + $0x140] sm:$0xff] %v230_v40  ;;  %233 = vst [vmem:[%s1211_s26 + $0x148] sm:$0xff] %v232_v41  ;;  %v236_v43 = vld [vmem:[%s1206_s25 + $0x698] sm:$0xff]  ;;  %v238_v44 = vld [vmem:[%s1206_s25 + $0x6e0] sm:$0xff] }
  0x25   : > { %235 = vst [vmem:[%s1211_s26 + $0x150] sm:$0xff] %v234_v42  ;;  %237 = vst [vmem:[%s1211_s26 + $0x158] sm:$0xff] %v236_v43  ;;  %v240_v45 = vld [vmem:[%s1206_s25 + $0x6e8] sm:$0xff]  ;;  %v242_v46 = vld [vmem:[%s1206_s25 + $0x730] sm:$0xff] }
  0x26   : > { %239 = vst [vmem:[%s1211_s26 + $0x160] sm:$0xff] %v238_v44  ;;  %v244_v47 = vld [vmem:[%s1206_s25 + $0x738] sm:$0xff]  ;;  %241 = vst [vmem:[%s1211_s26 + $0x168] sm:$0xff] %v240_v45  ;;  %v246_v48 = vld [vmem:[%s1206_s25 + $0x780] sm:$0xff] }
  0x27   : > { %243 = vst [vmem:[%s1211_s26 + $0x170] sm:$0xff] %v242_v46  ;;  %245 = vst [vmem:[%s1211_s26 + $0x178] sm:$0xff] %v244_v47  ;;  %v248_v49 = vld [vmem:[%s1206_s25 + $0x788] sm:$0xff]  ;;  %v250_v50 = vld [vmem:[%s1206_s25 + $0x7d0] sm:$0xff] }
  0x28   : > { %247 = vst [vmem:[%s1211_s26 + $0x180] sm:$0xff] %v246_v48  ;;  %249 = vst [vmem:[%s1211_s26 + $0x188] sm:$0xff] %v248_v49  ;;  %v252_v51 = vld [vmem:[%s1206_s25 + $0x7d8] sm:$0xff]  ;;  %v254_v52 = vld [vmem:[%s1206_s25 + $0x820] sm:$0xff] }
  0x29   : > { %251 = vst [vmem:[%s1211_s26 + $0x190] sm:$0xff] %v250_v50  ;;  %v256_v53 = vld [vmem:[%s1206_s25 + $0x828] sm:$0xff]  ;;  %253 = vst [vmem:[%s1211_s26 + $0x198] sm:$0xff] %v252_v51  ;;  %v258_v54 = vld [vmem:[%s1206_s25 + $0x870] sm:$0xff] }
  0x2a   : > { %255 = vst [vmem:[%s1211_s26 + $0x1a0] sm:$0xff] %v254_v52  ;;  %257 = vst [vmem:[%s1211_s26 + $0x1a8] sm:$0xff] %v256_v53  ;;  %v260_v55 = vld [vmem:[%s1206_s25 + $0x878] sm:$0xff]  ;;  %v262_v56 = vld [vmem:[%s1206_s25 + $0x8c0] sm:$0xff] }
  0x2b   : > { %259 = vst [vmem:[%s1211_s26 + $0x1b0] sm:$0xff] %v258_v54  ;;  %261 = vst [vmem:[%s1211_s26 + $0x1b8] sm:$0xff] %v260_v55  ;;  %v264_v57 = vld [vmem:[%s1206_s25 + $0x8c8] sm:$0xff]  ;;  %v266_v58 = vld [vmem:[%s1206_s25 + $0x910] sm:$0xff] }
  0x2c   : > { %263 = vst [vmem:[%s1211_s26 + $0x1c0] sm:$0xff] %v262_v56  ;;  %v268_v59 = vld [vmem:[%s1206_s25 + $0x918] sm:$0xff]  ;;  %265 = vst [vmem:[%s1211_s26 + $0x1c8] sm:$0xff] %v264_v57  ;;  %v270_v60 = vld [vmem:[%s1206_s25 + $0x960] sm:$0xff] }
  0x2d   : > { %267 = vst [vmem:[%s1211_s26 + $0x1d0] sm:$0xff] %v266_v58  ;;  %269 = vst [vmem:[%s1211_s26 + $0x1d8] sm:$0xff] %v268_v59  ;;  %v272_v61 = vld [vmem:[%s1206_s25 + $0x968] sm:$0xff]  ;;  %v274_v62 = vld [vmem:[%s1206_s25 + $0x9b0] sm:$0xff] }
  0x2e   : > { %271 = vst [vmem:[%s1211_s26 + $0x1e0] sm:$0xff] %v270_v60  ;;  %273 = vst [vmem:[%s1211_s26 + $0x1e8] sm:$0xff] %v272_v61  ;;  %v276_v63 = vld [vmem:[%s1206_s25 + $0x9b8] sm:$0xff] }
  0x2f   : > { %275 = vst [vmem:[%s1211_s26 + $0x1f0] sm:$0xff] %v274_v62  ;;  %277 = vst [vmem:[%s1211_s26 + $0x1f8] sm:$0xff] %v276_v63 }
  0x30 PF: > { %p925_p5 = scmp.ge.s32.totalorder %s1147_s14, 1  ;;  %p282_p6 = scmp.lt.s32.totalorder %s1147_s14, 6 }
  0x32   : > { %p283_p7 = pnand %p925_p5, %p282_p6 }
  0x33   : > { %s289_s27 = sand.u32 (!%p283_p7), 1, %s1139_s12   ;;  %s927_s7 = sshll.u32 (!%p283_p7), %s918_s15, 2 }
  0x34   : > { %286 = sbr.rel (%p283_p7) target bundleno = 330 (0x14a), region = 51  ;;  %s926_s30 = sshll.u32 (!%p283_p7), %s289_s27, 9 }
  0x35   : > { %s1351_s6 = scalar_lea.vmem (!%p283_p7), [#allocation2], %s926_s30  ;;  %p314_p8 = scmp.lt.s32.totalorder (!%p283_p7), %s927_s7, 19 }
  0x39   : > { %v1344_v0 = vld.sshfl [vmem:[%s1441_s0] sm:$0x11 pattern:$0x75316420]  ;;  %v402_v1 = vlaneseq  ;;  %v1149_v2 = vmov 1966171168  }
  0x3a   : > { %v400_v3 = vunpack.c.l.s4 %v1149_v2  ;;  %v1150_v5 = vmov 0   ;;  %v384_v6 = vld [vmem:[%s1443_s2] sm:$0x3]  ;;  %v1029_v7 = vld [vmem:[%s1351_s6 + $0xe4] ss:$16 sps:$4 sm:$0xff]   ;;  %v398_v9 = vcombine.high %v1344_v0, %v1344_v0  ;;  %vm730_vm0 = vcmask 998400  }
  0x3b   : > { %v1346_v4 = vshrl.u32 %v402_v1, 7  ;;  %1028 = vset.pattern.permute.xlu0 %v1150_v5  ;;  %v1031_v8 = vld [vmem:[%s1351_s6 + $0xec] ss:$16 sps:$4 sm:$0xff]   ;;  %747 = vmatprep.subr.bf16.mxu0 %v1029_v7  ;;  %v1033_v11 = vld [vmem:[%s1351_s6 + $0xe0] ss:$16 sps:$4 sm:$0xff]   ;;  %vm734_vm1 = vcmask 1044480  }
  0x3c   : > { %387 = vperm.xlu0 %1028, %v384_v6   ;;  %v401_v10 = vunpack.c.0.s8 %v400_v3  ;;  %v1034_v12 = vld [vmem:[%s1351_s6 + $0xe8] ss:$16 sps:$4 sm:$0xff]   ;;  %788 = vmatprep.subr.bf16.mxu1 %v1031_v8  ;;  %v1035_v13 = vld [vmem:[%s1351_s6 + $0xc4] ss:$16 sps:$4 sm:$0xff]   ;;  %v1037_v15 = vld [vmem:[%s1351_s6 + $0xcc] ss:$16 sps:$4 sm:$0xff]  }
  0x3d   : > { %748 = vmatpush1.bf16.msra.mxu0 %v1033_v11  ;;  %789 = vmatpush1.bf16.msra.mxu1 %v1034_v12  ;;  %v1039_v16 = vld [vmem:[%s1351_s6 + $0xc0] ss:$16 sps:$4 sm:$0xff]   ;;  %v1040_v17 = vld [vmem:[%s1351_s6 + $0xc8] ss:$16 sps:$4 sm:$0xff]   ;;  %v1041_v19 = vld [vmem:[%s1351_s6 + $0xa4] ss:$16 sps:$4 sm:$0xff]  }
  0x3e   : > { %v1361_v14 = vsub.s32 %v401_v10, %v1346_v4  ;;  %749 = vmatprep.subr.bf16.mxu0 %v1035_v13  ;;  %790 = vmatprep.subr.bf16.mxu1 %v1037_v15  ;;  %v1043_v20 = vld [vmem:[%s1351_s6 + $0xac] ss:$16 sps:$4 sm:$0xff]   ;;  %v1045_v21 = vld [vmem:[%s1351_s6 + $0xa0] ss:$16 sps:$4 sm:$0xff]   ;;  %v1046_v22 = vld [vmem:[%s1351_s6 + $0xa8] ss:$16 sps:$4 sm:$0xff]  }
  0x3f   : > { %v1047_v23 = vld [vmem:[%s1351_s6 + $0x84] ss:$16 sps:$4 sm:$0xff]   ;;  %v1049_v24 = vld [vmem:[%s1351_s6 + $0x8c] ss:$16 sps:$4 sm:$0xff]   ;;  %v1051_v25 = vld [vmem:[%s1351_s6 + $0x80] ss:$16 sps:$4 sm:$0xff]  }
  0x40   : > { %v412_v18 = vrot.slane %v398_v9, %v1361_v14  ;;  %v1052_v26 = vld [vmem:[%s1351_s6 + $0x88] ss:$16 sps:$4 sm:$0xff]   ;;  %v1053_v27 = vld [vmem:[%s1351_s6 + $0x64] ss:$16 sps:$4 sm:$0xff]   ;;  %v1055_v28 = vld [vmem:[%s1351_s6 + $0x6c] ss:$16 sps:$4 sm:$0xff]  }
  0x41   : > { %750 = vmatpush1.bf16.msra.mxu0 %v1039_v16  ;;  %791 = vmatpush1.bf16.msra.mxu1 %v1040_v17  ;;  %v1057_v29 = vld [vmem:[%s1351_s6 + $0x60] ss:$16 sps:$4 sm:$0xff]   ;;  %v1058_v30 = vld [vmem:[%s1351_s6 + $0x68] ss:$16 sps:$4 sm:$0xff]   ;;  %v1059_v31 = vld [vmem:[%s1351_s6 + $0x44] ss:$16 sps:$4 sm:$0xff]   ;;  %v405_v16 = vrot.slane %v1344_v0, %v1361_v14 }
  0x42   : > { %995 = vmatprep.mubr.msk.bf16.mxu0 %vm730_vm0, %v412_v18  ;;  %997 = vmatprep.mubr.msk.bf16.mxu1 %vm730_vm0, %v412_v18  ;;  %v1061_v32 = vld [vmem:[%s1351_s6 + $0x4c] ss:$16 sps:$4 sm:$0xff]   ;;  %v1063_v33 = vld [vmem:[%s1351_s6 + $0x40] ss:$16 sps:$4 sm:$0xff]   ;;  %v1064_v34 = vld [vmem:[%s1351_s6 + $0x48] ss:$16 sps:$4 sm:$0xff]  }
  0x43   : > { %751 = vmatprep.subr.bf16.mxu0 %v1041_v19  ;;  %792 = vmatprep.subr.bf16.mxu1 %v1043_v20  ;;  %v1065_v35 = vld [vmem:[%s1351_s6 + $0x24] ss:$16 sps:$4 sm:$0xff]   ;;  %v1067_v36 = vld [vmem:[%s1351_s6 + $0x2c] ss:$16 sps:$4 sm:$0xff]   ;;  %v1069_v37 = vld [vmem:[%s1351_s6 + $0x20] ss:$16 sps:$4 sm:$0xff]  }
  0x44   : > { %v1070_v38 = vld [vmem:[%s1351_s6 + $0x28] ss:$16 sps:$4 sm:$0xff]   ;;  %v1071_v39 = vld [vmem:[%s1351_s6 + $0x4] ss:$16 sps:$4 sm:$0xff]   ;;  %v1073_v40 = vld [vmem:[%s1351_s6 + $0xc] ss:$16 sps:$4 sm:$0xff]  }
  0x45   : > { %752 = vmatpush1.bf16.msra.mxu0 %v1045_v21  ;;  %793 = vmatpush1.bf16.msra.mxu1 %v1046_v22  ;;  %v1075_v41 = vld [vmem:[%s1351_s6] ss:$16 sps:$4 sm:$0xff]   ;;  %v1076_v42 = vld [vmem:[%s1351_s6 + $0x8] ss:$16 sps:$4 sm:$0xff]   ;;  %v1083_v47 = vld [vmem:[%s1351_s6 + $0x1c4] ss:$16 sps:$4 sm:$0xff]  }
  0x46   : > { %753 = vmatprep.subr.bf16.mxu0 %v1047_v23  ;;  %794 = vmatprep.subr.bf16.mxu1 %v1049_v24  ;;  %v1077_v43 = vld [vmem:[%s1351_s6 + $0x1e4] ss:$16 sps:$4 sm:$0x1f]   ;;  %v1079_v44 = vld [vmem:[%s1351_s6 + $0x1ec] ss:$16 sps:$4 sm:$0x1f]  }
  0x47   : > { %v1081_v45 = vld [vmem:[%s1351_s6 + $0x1e0] ss:$16 sps:$4 sm:$0x1f]   ;;  %v1082_v46 = vld [vmem:[%s1351_s6 + $0x1e8] ss:$16 sps:$4 sm:$0x1f]  }
  0x48   : > { %v736_v48 = vsel %vm734_vm1, %v1081_v45, 0  ;;  %v742_v49 = vsel %vm734_vm1, %v1082_v46, 0  ;;  %v1085_v50 = vld [vmem:[%s1351_s6 + $0x1cc] ss:$16 sps:$4 sm:$0xff]   ;;  %v1087_v51 = vld [vmem:[%s1351_s6 + $0x1c0] ss:$16 sps:$4 sm:$0xff]  }
  0x49   : > { %754 = vmatpush1.bf16.msra.mxu0 %v1051_v25  ;;  %795 = vmatpush1.bf16.msra.mxu1 %v1052_v26  ;;  %v1088_v52 = vld [vmem:[%s1351_s6 + $0x1c8] ss:$16 sps:$4 sm:$0xff]   ;;  %v1089_v53 = vld [vmem:[%s1351_s6 + $0x1a4] ss:$16 sps:$4 sm:$0xff]   ;;  %v1091_v54 = vld [vmem:[%s1351_s6 + $0x1ac] ss:$16 sps:$4 sm:$0xff]  }
  0x4a   : > { %755 = vmatprep.subr.bf16.mxu0 %v1053_v27  ;;  %796 = vmatprep.subr.bf16.mxu1 %v1055_v28  ;;  %v1093_v55 = vld [vmem:[%s1351_s6 + $0x1a0] ss:$16 sps:$4 sm:$0xff]   ;;  %v1094_v56 = vld [vmem:[%s1351_s6 + $0x1a8] ss:$16 sps:$4 sm:$0xff]   ;;  %v1095_v57 = vld [vmem:[%s1351_s6 + $0x184] ss:$16 sps:$4 sm:$0xff]  }
  0x4b   : > { %v1097_v58 = vld [vmem:[%s1351_s6 + $0x18c] ss:$16 sps:$4 sm:$0xff]   ;;  %v1099_v59 = vld [vmem:[%s1351_s6 + $0x180] ss:$16 sps:$4 sm:$0xff]   ;;  %v1100_v60 = vld [vmem:[%s1351_s6 + $0x188] ss:$16 sps:$4 sm:$0xff]  }
  0x4c   : > { %v1101_v61 = vld [vmem:[%s1351_s6 + $0x164] ss:$16 sps:$4 sm:$0xff]   ;;  %v1103_v62 = vld [vmem:[%s1351_s6 + $0x16c] ss:$16 sps:$4 sm:$0xff]   ;;  %v1105_v63 = vld [vmem:[%s1351_s6 + $0x160] ss:$16 sps:$4 sm:$0xff]  }
  0x4d   : > { %756 = vmatpush1.bf16.msra.mxu0 %v1057_v29  ;;  %797 = vmatpush1.bf16.msra.mxu1 %v1058_v30  ;;  %v1106_v1 = vld [vmem:[%s1351_s6 + $0x168] ss:$16 sps:$4 sm:$0xff]   ;;  %v1107_v2 = vld [vmem:[%s1351_s6 + $0x144] ss:$16 sps:$4 sm:$0xff]   ;;  %v1109_v3 = vld [vmem:[%s1351_s6 + $0x14c] ss:$16 sps:$4 sm:$0xff]  }
  0x4e   : > { %757 = vmatprep.subr.bf16.mxu0 %v1059_v31  ;;  %798 = vmatprep.subr.bf16.mxu1 %v1061_v32  ;;  %v1111_v5 = vld [vmem:[%s1351_s6 + $0x140] ss:$16 sps:$4 sm:$0xff]   ;;  %v1112_v6 = vld [vmem:[%s1351_s6 + $0x148] ss:$16 sps:$4 sm:$0xff]   ;;  %v1113_v7 = vld [vmem:[%s1351_s6 + $0x124] ss:$16 sps:$4 sm:$0xff]  }
  0x4f   : > { %v1115_v8 = vld [vmem:[%s1351_s6 + $0x12c] ss:$16 sps:$4 sm:$0xff]   ;;  %v1117_v9 = vld [vmem:[%s1351_s6 + $0x120] ss:$16 sps:$4 sm:$0xff]   ;;  %v1118_v10 = vld [vmem:[%s1351_s6 + $0x128] ss:$16 sps:$4 sm:$0xff]  }
  0x50   : > { %v1119_v11 = vld [vmem:[%s1351_s6 + $0x104] ss:$16 sps:$4 sm:$0xff]   ;;  %v1121_v12 = vld [vmem:[%s1351_s6 + $0x10c] ss:$16 sps:$4 sm:$0xff]   ;;  %v1123_v13 = vld [vmem:[%s1351_s6 + $0x100] ss:$16 sps:$4 sm:$0xff]  }
  0x51   : > { %758 = vmatpush1.bf16.msra.mxu0 %v1063_v33  ;;  %799 = vmatpush1.bf16.msra.mxu1 %v1064_v34  ;;  %v1124_v15 = vld [vmem:[%s1351_s6 + $0x108] ss:$16 sps:$4 sm:$0xff]   ;;  %v1151_v17 = vmov 1983009808   ;;  %s1449_s7 = smov (!%p314_p8, %s927_s7), 19 }
  0x52   : > { %759 = vmatprep.subr.bf16.mxu0 %v1065_v35  ;;  %800 = vmatprep.subr.bf16.mxu1 %v1067_v36  ;;  %v840_v18 = vunpack.c.l.s4 %v1151_v17  ;;  %s928_s8 = sshll.u32 %s1449_s7, 1 }
  0x53   : > { %s317_s11 = scalar_lea.vmem %s1444_s3, %s928_s8 }
  0x54   : > { %v841_v22 = vunpack.c.0.s8 %v840_v18 }
  0x55   : > { %760 = vmatpush1.bf16.msra.mxu0 %v1069_v37  ;;  %801 = vmatpush1.bf16.msra.mxu1 %v1070_v38 }
  0x56   : > { %761 = vmatprep.subr.bf16.mxu0 %v1071_v39  ;;  %802 = vmatprep.subr.bf16.mxu1 %v1073_v40  ;;  %v844_v14 = vsub.s32 %v841_v22, %v1346_v4 }
  0x59   : > { %762 = vmatpush1.bf16.msra.mxu0 %v1075_v41  ;;  %803 = vmatpush1.bf16.msra.mxu1 %v1076_v42 }
  0x5a   : > { %994 = vmatprep.subr.msk.bf16.mxu0 %vm734_vm1, %v1077_v43  ;;  %996 = vmatprep.subr.msk.bf16.mxu1 %vm734_vm1, %v1079_v44 }
  0x5d   : > { %764 = vmatpush2.bf16.msra.mxu0 %v736_v48  ;;  %805 = vmatpush2.bf16.msra.mxu1 %v742_v49 }
  0x5e   : > { %765 = vmatprep.subr.bf16.mxu0 %v1083_v47  ;;  %806 = vmatprep.subr.bf16.mxu1 %v1085_v50 }
  0x61   : > { %766 = vmatpush2.bf16.msra.mxu0 %v1087_v51  ;;  %807 = vmatpush2.bf16.msra.mxu1 %v1088_v52 }
  0x62   : > { %767 = vmatprep.subr.bf16.mxu0 %v1089_v53  ;;  %808 = vmatprep.subr.bf16.mxu1 %v1091_v54 }
  0x65   : > { %768 = vmatpush2.bf16.msra.mxu0 %v1093_v55  ;;  %809 = vmatpush2.bf16.msra.mxu1 %v1094_v56 }
  0x66   : > { %769 = vmatprep.subr.bf16.mxu0 %v1095_v57  ;;  %810 = vmatprep.subr.bf16.mxu1 %v1097_v58 }
  0x69   : > { %770 = vmatpush2.bf16.msra.mxu0 %v1099_v59  ;;  %811 = vmatpush2.bf16.msra.mxu1 %v1100_v60 }
  0x6a   : > { %771 = vmatprep.subr.bf16.mxu0 %v1101_v61  ;;  %812 = vmatprep.subr.bf16.mxu1 %v1103_v62 }
  0x6d   : > { %772 = vmatpush2.bf16.msra.mxu0 %v1105_v63  ;;  %813 = vmatpush2.bf16.msra.mxu1 %v1106_v1 }
  0x6e   : > { %773 = vmatprep.subr.bf16.mxu0 %v1107_v2  ;;  %814 = vmatprep.subr.bf16.mxu1 %v1109_v3 }
  0x71   : > { %774 = vmatpush2.bf16.msra.mxu0 %v1111_v5  ;;  %815 = vmatpush2.bf16.msra.mxu1 %v1112_v6 }
  0x72   : > { %775 = vmatprep.subr.bf16.mxu0 %v1113_v7  ;;  %816 = vmatprep.subr.bf16.mxu1 %v1115_v8 }
  0x75   : > { %776 = vmatpush2.bf16.msra.mxu0 %v1117_v9  ;;  %817 = vmatpush2.bf16.msra.mxu1 %v1118_v10 }
  0x76   : > { %777 = vmatprep.subr.bf16.mxu0 %v1119_v11  ;;  %818 = vmatprep.subr.bf16.mxu1 %v1121_v12 }
  0x79   : > { %778 = vmatpush2.bf16.msra.mxu0 %v1123_v13  ;;  %819 = vmatpush2.bf16.msra.mxu1 %v1124_v15 }
  0x7c   : > { %780 = vmatmul.mubr.bf16.vlgmr.msra.gmra.mxu0 %v405_v16  ;;  %821 = vmatmul.mubr.bf16.vlgmr.msra.gmra.mxu1 %v405_v16 }
  0xb7   : > { %v388_v19 = vpop.permute.xlu0 %387 }
 0x13c   : > { %v781_v20 = vpop.f32.mrf.mxu0  ;;  %v822_v21 = vpop.f32.mrf.mxu1 }
 0x13d   : > { %v782_v23 = vadd.f32 %v781_v20, %v388_v19  ;;  %v823_v24 = vadd.f32 %v822_v21, %v388_v19 }
 0x13e   : > { %v783_v25 = vpop.f32.mrf.mxu0  ;;  %v824_v26 = vpop.f32.mrf.mxu1 }
 0x13f   : > { %v784_v27 = vadd.f32 %v783_v25, %v388_v19  ;;  %v825_v0 = vadd.f32 %v824_v26, %v388_v19  ;;  %v829_v30 = vmax.f32 %v782_v23, 0.0  ;;  %v831_v31 = vmax.f32 %v823_v24, 0.0 }
 0x140   : > { %v785_v28 = vpop.f32.mrf.mxu0  ;;  %v826_v29 = vpop.f32.mrf.mxu1 }
 0x141   : > { %v830_v32 = vmax.f32 %v784_v27, 0.0  ;;  %v832_v33 = vmax.f32 %v825_v0, 0.0 }
 0x142   : > { %v786_v34 = vpop.f32.mrf.mxu0  ;;  %v827_v35 = vpop.f32.mrf.mxu1 }
 0x143   : > { %v837_v36 = vcombine.low %v829_v30, %v830_v32  ;;  %v838_v37 = vcombine.low %v831_v31, %v832_v33 }
 0x145   : > { %v845_v38 = vrot.slane %v837_v36, %v844_v14  ;;  %v852_v39 = vrot.slane %v838_v37, %v844_v14 }
 0x147   : > { %v853_v40 = vcombine.low %v845_v38, %v852_v39 }
 0x149   : > { %855 = vst [vmem:[%s317_s11] sm:$0xff] %v853_v40 }
 0x14a PF: > { %p10_p9 = scmp.ge.s32.totalorder %s1189_s16, 7   ;;  %s1445_s12 = smov %s1143_s13 }
 0x14b   : > { %s1446_s13 = smov %s1198_s19  ;;  %s1447_s14 = smov %s1189_s16 }
 0x14c   :  { %12 = sbr.rel (!%p10_p9) target bundleno = 2 (0x2), region = 90 }

// kernel: wavegan_generator_forward.23
= control target key start
LH: loop header
LB: loop body
LE: loop exit
PB: predicated region body
PF: predicated region fallthrough
CT: control target
= control target key end

     0   :  { %s615_s12 = smov 0   ;;  %s617_s13 = smov 0   ;;  %s689_s0 = inlined_call_operand.vmem [shape: bf16[8,50], index: 0, kind: input, shape index: {}]   ;;  %s690_s1 = inlined_call_operand.vmem [shape: bf16[50,5120], index: 1, kind: input, shape index: {}]   ;;  %s691_s2 = inlined_call_operand.vmem [shape: f32[8,1], index: 2, kind: input, shape index: {}]   ;;  %s692_s3 = inlined_call_operand.vmem [shape: f32[8,5120], index: 3, kind: output, shape index: {}]  }
   0x1   :  { %s619_s14 = smov 0  }
   0x2 LB: > { %s480_s15 = sadd.s32 4294967295, %s592_s14   ;;  %s632_s16 = sadd.s32 1, %s592_s14   ;;  %s592_s14 = sphi %s619_s14, %s695_s14   ;;  %s588_s13 = sphi %s617_s13, %s694_s13   ;;  %s584_s12 = sphi %s615_s12, %s693_s12  }
   0x3   : > { %s38_s17 = ssub.s32 %s592_s14, %s632_s16  ;;  %s41_s18 = sadd.s32 1, %s588_s13 }
   0x4   : > { %p39_p0 = scmp.eq.s32.totalorder %s38_s17, 0  ;;  %p48_p1 = scmp.ne.s32.totalorder %s588_s13, %s584_s12 }
   0x5   : > { %p49_p2 = scmp.eq.s32.totalorder %s592_s14, 0  ;;  %p483_p4 = scmp.ge.s32.totalorder %s592_s14, 10 }
   0x6   : > { %s641_s19 = scalar_select %p39_p0, %s588_s13, %s41_s18  }
   0x7   : > { %p50_p3 = por %p49_p2, %p48_p1  ;;  %127 = sbr.rel (%p483_p4) target bundleno = 23 (0x17), region = 24 }
   0xc   : > { %130 = sbr.rel (!%p50_p3) target bundleno = 23 (0x17), region = 28  ;;  %s132_s20 = sand.u32 (%p50_p3), 1, %s588_s13  }
   0xd   : > { %s511_s21 = sshll.u32 (%p50_p3), %s592_s14, 4  ;;  %s512_s22 = smul.u32 (%p50_p3), 112, %s132_s20 }
   0xe   : > { %s137_s25 = scalar_lea.vmem (%p50_p3), %s690_s1, %s511_s21 }
   0xf   : > { %v150_v0 = vld [vmem:[%s137_s25] sm:$0xff] (%p50_p3)  ;;  %v152_v1 = vld [vmem:[%s137_s25 + $0x8] sm:$0xff] (%p50_p3)  ;;  %s134_s26 = scalar_lea.vmem (%p50_p3), [#allocation2], %s512_s22 }
  0x10   : > { %v154_v2 = vld [vmem:[%s137_s25 + $0xa0] sm:$0xff] (%p50_p3)  ;;  %v156_v3 = vld [vmem:[%s137_s25 + $0xa8] sm:$0xff] (%p50_p3)  ;;  %151 = vst [vmem:[%s134_s26] sm:$0xff] (%p50_p3), %v150_v0  ;;  %153 = vst [vmem:[%s134_s26 + $0x8] sm:$0xff] (%p50_p3), %v152_v1 }
  0x11   : > { %v158_v4 = vld [vmem:[%s137_s25 + $0x140] sm:$0xff]  ;;  %v160_v5 = vld [vmem:[%s137_s25 + $0x148] sm:$0xff]  ;;  %155 = vst [vmem:[%s134_s26 + $0x10] sm:$0xff] %v154_v2  ;;  %157 = vst [vmem:[%s134_s26 + $0x18] sm:$0xff] %v156_v3 }
  0x12   : > { %159 = vst [vmem:[%s134_s26 + $0x20] sm:$0xff] %v158_v4  ;;  %161 = vst [vmem:[%s134_s26 + $0x28] sm:$0xff] %v160_v5  ;;  %v162_v6 = vld [vmem:[%s137_s25 + $0x1e0] sm:$0xff]  ;;  %v164_v7 = vld [vmem:[%s137_s25 + $0x1e8] sm:$0xff] }
  0x13   : > { %v166_v8 = vld [vmem:[%s137_s25 + $0x280] sm:$0xff]  ;;  %163 = vst [vmem:[%s134_s26 + $0x30] sm:$0xff] %v162_v6  ;;  %165 = vst [vmem:[%s134_s26 + $0x38] sm:$0xff] %v164_v7  ;;  %v168_v9 = vld [vmem:[%s137_s25 + $0x288] sm:$0xff] }
  0x14   : > { %167 = vst [vmem:[%s134_s26 + $0x40] sm:$0xff] %v166_v8  ;;  %v170_v10 = vld [vmem:[%s137_s25 + $0x320] sm:$0xff]  ;;  %v172_v11 = vld [vmem:[%s137_s25 + $0x328] sm:$0xff]  ;;  %169 = vst [vmem:[%s134_s26 + $0x48] sm:$0xff] %v168_v9 }
  0x15   : > { %171 = vst [vmem:[%s134_s26 + $0x50] sm:$0xff] %v170_v10  ;;  %173 = vst [vmem:[%s134_s26 + $0x58] sm:$0xff] %v172_v11  ;;  %v174_v12 = vld [vmem:[%s137_s25 + $0x3c0] sm:$0xff]  ;;  %v176_v13 = vld [vmem:[%s137_s25 + $0x3c8] sm:$0xff] }
  0x16   : > { %175 = vst [vmem:[%s134_s26 + $0x60] sm:$0xff] %v174_v12  ;;  %177 = vst [vmem:[%s134_s26 + $0x68] sm:$0xff] %v176_v13 }
  0x17 PF: > { %p486_p5 = scmp.ge.s32.totalorder %s592_s14, 1  ;;  %p182_p6 = scmp.lt.s32.totalorder %s592_s14, 11 }
  0x19   : > { %p183_p7 = pnand %p486_p5, %p182_p6 }
  0x1a   : > { %s189_s27 = sand.u32 (!%p183_p7), 1, %s584_s12   ;;  %s487_s7 = sshll.u32 (!%p183_p7), %s480_s15, 2 }
  0x1b   : > { %186 = sbr.rel (%p183_p7) target bundleno = 265 (0x109), region = 51  ;;  %p214_p8 = scmp.lt.s32.totalorder (!%p183_p7), %s487_s7, 39 }
  0x1c   : > { %s513_s28 = smul.u32 (!%p183_p7), 112, %s189_s27 }
  0x1e   : > { %s655_s4 = scalar_lea.vmem (!%p183_p7), [#allocation2], %s513_s28 }
  0x20   : > { %v594_v14 = vmov 0   ;;  %v235_v15 = vld [vmem:[%s691_s2] sm:$0xff]  ;;  %vm315_vm0 = vcmask 1040384   ;;  %v234_v17 = vld [vmem:[%s655_s4 + $0x68] sm:$0x11]  ;;  %vm311_vm1 = vcmask 408576  }
  0x21   : > { %360 = vmatprep.mubr.bf16.mxu0 %v594_v14  ;;  %401 = vmatprep.mubr.bf16.mxu1 %v594_v14  ;;  %v233_v16 = vld [vmem:[%s655_s4 + $0x60] sm:$0x11]  ;;  %v504_v19 = vcombine.high %v234_v17, %v234_v17  ;;  %v503_v21 = vcombine.low %v234_v17, %v234_v17  ;;  %v546_v23 = vld [vmem:[%s655_s4 + $0x4c] ss:$16 sps:$4 sm:$0xff]   ;;  %v549_v27 = vld [vmem:[%s655_s4 + $0x48] ss:$16 sps:$4 sm:$0xff]  }
  0x22   : > { %539 = vset.pattern.permute.xlu0 %v594_v14  ;;  %v502_v18 = vcombine.high %v233_v16, %v233_v16  ;;  %v501_v20 = vcombine.low %v233_v16, %v233_v16  ;;  %v544_v22 = vld [vmem:[%s655_s4 + $0x44] ss:$16 sps:$4 sm:$0xff]   ;;  %v548_v26 = vld [vmem:[%s655_s4 + $0x40] ss:$16 sps:$4 sm:$0xff]   ;;  %v552_v29 = vld [vmem:[%s655_s4 + $0x2c] ss:$16 sps:$4 sm:$0xff]  }
  0x23   : > { %238 = vperm.xlu0 %539, %v235_v15   ;;  %507 = vmatprep.subr.msk.bf16.mxu1 %vm315_vm0, %v504_v19  ;;  %v323_v25 = vsel %vm315_vm0, %v503_v21, 0  ;;  %v550_v28 = vld [vmem:[%s655_s4 + $0x24] ss:$16 sps:$4 sm:$0xff]   ;;  %v554_v30 = vld [vmem:[%s655_s4 + $0x20] ss:$16 sps:$4 sm:$0xff]   ;;  %s697_s7 = smov (!%p214_p8, %s487_s7), 39 }
  0x24   : > { %505 = vmatprep.subr.msk.bf16.mxu0 %vm315_vm0, %v502_v18  ;;  %v317_v24 = vsel %vm315_vm0, %v501_v20, 0  ;;  %378 = vmatpush1.bf16.msra.mxu1 %v323_v25  ;;  %v555_v31 = vld [vmem:[%s655_s4 + $0x28] ss:$16 sps:$4 sm:$0xff]   ;;  %v556_v32 = vld [vmem:[%s655_s4 + $0x4] ss:$16 sps:$4 sm:$0xff]   ;;  %s488_s8 = sshll.u32 %s697_s7, 3 }
  0x25   : > { %337 = vmatpush1.bf16.msra.mxu0 %v317_v24  ;;  %379 = vmatprep.subr.bf16.mxu1 %v546_v23  ;;  %v558_v33 = vld [vmem:[%s655_s4 + $0xc] ss:$16 sps:$4 sm:$0xff]   ;;  %v560_v34 = vld [vmem:[%s655_s4] ss:$16 sps:$4 sm:$0xff]   ;;  %v561_v35 = vld [vmem:[%s655_s4 + $0x8] ss:$16 sps:$4 sm:$0xff]   ;;  %s217_s11 = scalar_lea.vmem %s692_s3, %s488_s8 }
  0x26   : > { %338 = vmatprep.subr.bf16.mxu0 %v544_v22  ;;  %v220_v36 = vld [vmem:[%s689_s0] sm:$0xf] }
  0x28   : > { %380 = vmatpush1.bf16.msra.mxu1 %v549_v27 }
  0x29   : > { %339 = vmatpush1.bf16.msra.mxu0 %v548_v26  ;;  %381 = vmatprep.subr.bf16.mxu1 %v552_v29 }
  0x2a   : > { %340 = vmatprep.subr.bf16.mxu0 %v550_v28 }
  0x2c   : > { %382 = vmatpush1.bf16.msra.mxu1 %v555_v31 }
  0x2d   : > { %341 = vmatpush1.bf16.msra.mxu0 %v554_v30  ;;  %383 = vmatprep.subr.bf16.mxu1 %v558_v33 }
  0x2e   : > { %342 = vmatprep.subr.bf16.mxu0 %v556_v32 }
  0x30   : > { %384 = vmatpush1.bf16.msra.mxu1 %v561_v35 }
  0x31   : > { %343 = vmatpush1.bf16.msra.mxu0 %v560_v34 }
  0x33   : > { %508 = vmatmul.mubr.msk.bf16.vlgmr.msra.gmra.mxu1 %vm311_vm1, %v220_v36 }
  0x34   : > { %506 = vmatmul.mubr.msk.bf16.vlgmr.msra.gmra.mxu0 %vm311_vm1, %v220_v36 }
  0x9e   : > { %v239_v37 = vpop.permute.xlu0 %238 }
  0xf3   : > { %v403_v39 = vpop.f32.mrf.mxu1 }
  0xf4   : > { %v362_v38 = vpop.f32.mrf.mxu0  ;;  %v404_v41 = vadd.f32 %v403_v39, %v239_v37 }
  0xf5   : > { %v363_v40 = vadd.f32 %v362_v38, %v239_v37  ;;  %v405_v43 = vpop.f32.mrf.mxu1 }
  0xf6   : > { %v364_v42 = vpop.f32.mrf.mxu0  ;;  %v406_v45 = vadd.f32 %v405_v43, %v239_v37 }
  0xf7   : > { %562 = vtanh.f32 %v363_v40  ;;  %v365_v44 = vadd.f32 %v364_v42, %v239_v37  ;;  %v407_v47 = vpop.f32.mrf.mxu1 }
  0xf8   : > { %564 = vtanh.f32 %v404_v41  ;;  %v366_v46 = vpop.f32.mrf.mxu0 }
  0xf9   : > { %566 = vtanh.f32 %v365_v44  ;;  %v408_v49 = vpop.f32.mrf.mxu1 }
  0xfa   : > { %568 = vtanh.f32 %v406_v45  ;;  %v367_v48 = vpop.f32.mrf.mxu0 }
 0x104   : > { %v563_v50 = vpop.eup %562 }
 0x105   : > { %v565_v51 = vpop.eup %564  ;;  %414 = vst [vmem:[%s217_s11] sm:$0xff] %v563_v50 }
 0x106   : > { %v567_v52 = vpop.eup %566  ;;  %416 = vst [vmem:[%s217_s11 + $0x10] sm:$0xff] %v565_v51 }
 0x107   : > { %v569_v53 = vpop.eup %568  ;;  %415 = vst [vmem:[%s217_s11 + $0x8] sm:$0xff] %v567_v52 }
 0x108   : > { %417 = vst [vmem:[%s217_s11 + $0x18] sm:$0xff] %v569_v53 }
 0x109 PF: > { %p10_p9 = scmp.ge.s32.totalorder %s632_s16, 12   ;;  %s693_s12 = smov %s588_s13 }
 0x10a   : > { %s694_s13 = smov %s641_s19  ;;  %s695_s14 = smov %s632_s16 }
 0x10b   :  { %12 = sbr.rel (!%p10_p9) target bundleno = 2 (0x2), region = 90 }

</bundles_post_ra>
